<compile_context>
chip_gen: v5e
topology: v5e:2x2
jax: 0.10.0
libtpu: 0.0.40
codegen_flags: <defaults>
</compile_context>

<pallas_src>
import functools
import math

import jax
import jax.numpy as jnp
from jax.experimental import pallas as pl
from jax.experimental.pallas import tpu as pltpu

NEG_SLOPE = 0.1
DEG_FSIZE = 512
MXU_DTYPE = jnp.bfloat16          # MXU inputs; accumulation + epilogues stay f32

_PARALLEL = pltpu.CompilerParams(dimension_semantics=("parallel",))


def _lrelu(x):
    return jnp.where(x >= 0, x, NEG_SLOPE * x)


# ----------------------------------------------------------------------------
# Pallas kernels
# ----------------------------------------------------------------------------

def _deg_head_kernel(kv_ref, ak_ref, w1k_ref, w2k_ref, ac_ref, w1c_ref, w2c_ref,
                     kflat_ref, att_ref):
    """Degradation branch of one DA_conv (grid axis = DA_conv index).

    Produces the per-sample dynamic depthwise kernel (flattened) and the
    channel-attention vector, keeping all intermediates in VMEM.
    """
    kv = kv_ref[...]                                           # (Bp, 512) f32
    # kernel-generation MLP:  Linear -> LeakyReLU -> Linear
    feat = jnp.dot(kv, ak_ref[0], preferred_element_type=jnp.float32)
    hid = _lrelu(jnp.dot(feat, w1k_ref[0], preferred_element_type=jnp.float32))
    kflat_ref[0] = jnp.dot(hid, w2k_ref[0], preferred_element_type=jnp.float32)
    # CA_layer:  1x1 conv -> LeakyReLU -> 1x1 conv -> Sigmoid
    cfeat = jnp.dot(kv, ac_ref[0], preferred_element_type=jnp.float32)
    chid = _lrelu(jnp.dot(cfeat, w1c_ref[0], preferred_element_type=jnp.float32))
    att_ref[0] = jax.nn.sigmoid(
        jnp.dot(chid, w2c_ref[0], preferred_element_type=jnp.float32))


def _conv_kernel(*refs, H, W, Cin, Cout, K, act, has_res):
    """Same-padding KxK conv as one im2col MXU matmul, with fused bias,
    optional residual add and optional LeakyReLU epilogue (per-sample).
    Zero padding happens in-kernel via the pad scratch."""
    if has_res:
        x_ref, w_ref, b_ref, res_ref, o_ref, pad_scr = refs
    else:
        x_ref, w_ref, b_ref, o_ref, pad_scr = refs
        res_ref = None
    pad = (K - 1) // 2
    pad_scr[...] = jnp.zeros_like(pad_scr)                     # clean border
    pad_scr[pad:pad + H, pad:pad + W, :] = x_ref[0]            # interior
    taps = [pad_scr[dy:dy + H, dx:dx + W, :]
            for dy in range(K) for dx in range(K)]
    patch = jnp.concatenate(taps, axis=-1).reshape(H * W, K * K * Cin)
    acc = jnp.dot(patch.astype(MXU_DTYPE), w_ref[...],
                  preferred_element_type=jnp.float32)          # (H*W, Cout)
    out = (acc + b_ref[...]).reshape(H, W, Cout)
    if has_res:
        out = out + res_ref[0]
    if act == "lrelu":
        out = _lrelu(out)
    o_ref[0] = out


def _dag_kernel(x_ref, ker_ref, att_ref, wda_ref, bda_ref, wc_ref, bc_ref,
                wt_ref, bt_ref, o_ref, feat_scr, gin_scr, pad_scr,
                *, H, W, C, K):
    """One full residual group (DAG): grid = (batch, block).

    The running feature map is carried in `feat_scr` across the sequential
    block axis; `gin_scr` holds the group input for the final group residual.
    Each block runs: DA_conv1 -> LReLU -> conv3 -> LReLU -> DA_conv2 -> LReLU
    -> conv3 + block residual, all in VMEM.  The last block also applies the
    group-tail conv3 and adds the group input.
    """
    j = pl.program_id(1)
    last = pl.num_programs(1) - 1
    pad = (K - 1) // 2

    pad_scr[...] = jnp.zeros_like(pad_scr)                     # clean border

    @pl.when(j == 0)
    def _():
        xb = x_ref[0]
        feat_scr[...] = xb
        gin_scr[...] = xb

    def repad(t):
        pad_scr[pad:pad + H, pad:pad + W, :] = t

    def conv3(t, w, b):
        repad(t)
        taps = [pad_scr[dy:dy + H, dx:dx + W, :]
                for dy in range(K) for dx in range(K)]
        patch = jnp.concatenate(taps, axis=-1).reshape(H * W, K * K * C)
        r = jnp.dot(patch.astype(MXU_DTYPE), w,
                    preferred_element_type=jnp.float32)
        return (r + b).reshape(H, W, C)

    def da_conv(t, ker, w1x1, b1x1, att):
        # dynamic depthwise KxK -> LReLU -> 1x1 conv + bias -> + t*att -> LReLU
        repad(t)
        acc = jnp.zeros((H, W, C), jnp.float32)
        for dy in range(K):
            for dx in range(K):
                acc = acc + pad_scr[dy:dy + H, dx:dx + W, :] \
                    * ker[dy, dx][None, None, :]
        acc = _lrelu(acc)
        y = jnp.dot(acc.reshape(H * W, C).astype(MXU_DTYPE), w1x1,
                    preferred_element_type=jnp.float32) + b1x1
        return _lrelu(y.reshape(H, W, C) + t * att[None, None, :])

    ker = ker_ref[...]          # (1, 2, 1, K, K, C)
    att = att_ref[...]          # (1, 2, 1, 1, C)
    wda = wda_ref[...]          # (1, 2, C, C)      bf16
    bda = bda_ref[...]          # (1, 2, 1, C)
    wc = wc_ref[...]            # (1, 2, K*K*C, C)  bf16
    bc = bc_ref[...]            # (1, 2, 1, C)

    x0 = feat_scr[...]
    out = da_conv(x0, ker[0, 0, 0], wda[0, 0], bda[0, 0], att[0, 0, 0, 0])
    out = _lrelu(conv3(out, wc[0, 0], bc[0, 0]))
    out = da_conv(out, ker[0, 1, 0], wda[0, 1], bda[0, 1], att[0, 1, 0, 0])
    res = conv3(out, wc[0, 1], bc[0, 1]) + x0
    feat_scr[...] = res

    @pl.when(j == last)
    def _():
        o_ref[0] = conv3(res, wt_ref[...], bt_ref[...]) + gin_scr[...]


# ----------------------------------------------------------------------------
# Wrappers
# ----------------------------------------------------------------------------

def deg_head(kv, deg):
    """Run every DA_conv degradation MLP of the network in one pallas_call."""
    n_da, F, C = deg["A_k"].shape
    Cr = deg["W1_k"].shape[2]
    CKK = deg["W2_k"].shape[2]
    B = kv.shape[0]
    Bp = max(8, -(-B // 8) * 8)                 # pad rows to full sublanes
    if Bp > B:
        kv = jnp.pad(kv, ((0, Bp - B), (0, 0)))
    kflat, att = pl.pallas_call(
        _deg_head_kernel,
        out_shape=(jax.ShapeDtypeStruct((n_da, Bp, CKK), jnp.float32),
                   jax.ShapeDtypeStruct((n_da, Bp, C), jnp.float32)),
        grid=(n_da,),
        in_specs=[
            pl.BlockSpec((Bp, F), lambda i: (0, 0)),
            pl.BlockSpec((1, F, C), lambda i: (i, 0, 0)),
            pl.BlockSpec((1, C, Cr), lambda i: (i, 0, 0)),
            pl.BlockSpec((1, Cr, CKK), lambda i: (i, 0, 0)),
            pl.BlockSpec((1, F, C), lambda i: (i, 0, 0)),
            pl.BlockSpec((1, C, Cr), lambda i: (i, 0, 0)),
            pl.BlockSpec((1, Cr, C), lambda i: (i, 0, 0)),
        ],
        out_specs=(pl.BlockSpec((1, Bp, CKK), lambda i: (i, 0, 0)),
                   pl.BlockSpec((1, Bp, C), lambda i: (i, 0, 0))),
        compiler_params=_PARALLEL,
    )(kv, deg["A_k"], deg["W1_k"], deg["W2_k"],
      deg["A_c"], deg["W1_c"], deg["W2_c"])
    return kflat[:, :B], att[:, :B]


def conv2d(x, w_flat, b, *, K, act="none", res=None):
    """Same-padding KxK conv + bias [+ residual] [+ LeakyReLU].  NHWC."""
    B, H, W_, Cin = x.shape
    Cout = w_flat.shape[1]
    pad = (K - 1) // 2
    Hp, Wp = H + 2 * pad, W_ + 2 * pad
    kern = functools.partial(_conv_kernel, H=H, W=W_, Cin=Cin, Cout=Cout,
                             K=K, act=act, has_res=res is not None)
    in_specs = [
        pl.BlockSpec((1, H, W_, Cin), lambda i: (i, 0, 0, 0)),
        pl.BlockSpec((K * K * Cin, Cout), lambda i: (0, 0)),
        pl.BlockSpec((1, Cout), lambda i: (0, 0)),
    ]
    args = [x, w_flat, b]
    if res is not None:
        in_specs.append(pl.BlockSpec((1, H, W_, Cout), lambda i: (i, 0, 0, 0)))
        args.append(res)
    return pl.pallas_call(
        kern,
        out_shape=jax.ShapeDtypeStruct((B, H, W_, Cout), jnp.float32),
        grid=(B,),
        in_specs=in_specs,
        out_specs=pl.BlockSpec((1, H, W_, Cout), lambda i: (i, 0, 0, 0)),
        scratch_shapes=[pltpu.VMEM((Hp, Wp, Cin), jnp.float32)],
        compiler_params=_PARALLEL,
    )(*args)


def dag_forward(x, kers_g, atts_g, gp, *, K):
    """One residual group (DAG) as a single pallas_call.

    x: (B,H,W,C); kers_g: (n_blocks,2,B,K,K,C); atts_g: (n_blocks,2,B,1,C).
    """
    B, H, W_, C = x.shape
    n_blocks = gp["wda"].shape[0]
    KKC = K * K * C
    pad = (K - 1) // 2
    Hp, Wp = H + 2 * pad, W_ + 2 * pad
    kern = functools.partial(_dag_kernel, H=H, W=W_, C=C, K=K)
    return pl.pallas_call(
        kern,
        out_shape=jax.ShapeDtypeStruct((B, H, W_, C), jnp.float32),
        grid=(B, n_blocks),
        in_specs=[
            pl.BlockSpec((1, H, W_, C), lambda b, j: (b, 0, 0, 0)),
            pl.BlockSpec((1, 2, 1, K, K, C), lambda b, j: (j, 0, b, 0, 0, 0)),
            pl.BlockSpec((1, 2, 1, 1, C), lambda b, j: (j, 0, b, 0, 0)),
            pl.BlockSpec((1, 2, C, C), lambda b, j: (j, 0, 0, 0)),
            pl.BlockSpec((1, 2, 1, C), lambda b, j: (j, 0, 0, 0)),
            pl.BlockSpec((1, 2, KKC, C), lambda b, j: (j, 0, 0, 0)),
            pl.BlockSpec((1, 2, 1, C), lambda b, j: (j, 0, 0, 0)),
            pl.BlockSpec((KKC, C), lambda b, j: (0, 0)),
            pl.BlockSpec((1, C), lambda b, j: (0, 0)),
        ],
        out_specs=pl.BlockSpec((1, H, W_, C), lambda b, j: (b, 0, 0, 0)),
        scratch_shapes=[pltpu.VMEM((H, W_, C), jnp.float32),
                        pltpu.VMEM((H, W_, C), jnp.float32),
                        pltpu.VMEM((Hp, Wp, C), jnp.float32)],
        compiler_params=pltpu.CompilerParams(
            dimension_semantics=("parallel", "arbitrary")),
    )(x, kers_g, atts_g, gp["wda"], gp["bda"], gp["wc"], gp["bc"],
      gp["tail_w"], gp["tail_b"])


# ----------------------------------------------------------------------------
# JAX glue (data movement only)
# ----------------------------------------------------------------------------

def pixel_shuffle_nhwc(x, r):
    # Matches torch.nn.PixelShuffle channel ordering: c_in = c_out*r*r + i*r + j
    B, H, W_, C = x.shape
    Co = C // (r * r)
    x = x.reshape(B, H, W_, Co, r, r)
    x = jnp.transpose(x, (0, 1, 4, 2, 5, 3))
    return x.reshape(B, H * r, W_ * r, Co)


# ----------------------------------------------------------------------------
# Parameter construction (deterministic, in-script)
# ----------------------------------------------------------------------------

class KeyGen:
    def __init__(self, seed):
        self._key = jax.random.PRNGKey(seed)

    def __call__(self):
        self._key, sub = jax.random.split(self._key)
        return sub


def _conv_p(kg, K, cin, cout):
    w = (jax.random.normal(kg(), (K * K * cin, cout), jnp.float32)
         / math.sqrt(K * K * cin))
    b = jax.random.normal(kg(), (1, cout), jnp.float32) * 0.01
    return {"w": w.astype(MXU_DTYPE), "b": b}


def _conv1x1_p(kg, cin, cout):
    w = jax.random.normal(kg(), (cin, cout), jnp.float32) / math.sqrt(cin)
    b = jax.random.normal(kg(), (1, cout), jnp.float32) * 0.01
    return {"w": w.astype(MXU_DTYPE), "b": b}


def build_dasr_params(seed, in_ch, mid, K, r, n_groups, n_blocks, scale,
                      deg_fsize=DEG_FSIZE):
    kg = KeyGen(seed)
    C, Cr = mid, max(1, mid // r)
    n_up = int(math.log2(scale))
    A_k, W1_k, W2_k, A_c, W1_c, W2_c = [], [], [], [], [], []

    def add_da():
        A_k.append(jax.random.normal(kg(), (deg_fsize, C), jnp.float32)
                   / math.sqrt(deg_fsize))
        W1_k.append(jax.random.normal(kg(), (C, Cr), jnp.float32) / math.sqrt(C))
        W2_k.append(jax.random.normal(kg(), (Cr, C * K * K), jnp.float32)
                    / math.sqrt(Cr))
        A_c.append(jax.random.normal(kg(), (deg_fsize, C), jnp.float32)
                   / math.sqrt(deg_fsize))
        W1_c.append(jax.random.normal(kg(), (C, Cr), jnp.float32) / math.sqrt(C))
        W2_c.append(jax.random.normal(kg(), (Cr, C), jnp.float32) / math.sqrt(Cr))

    groups = []
    for _ in range(n_groups):
        wda, bda, wc, bc = [], [], [], []
        for _ in range(n_blocks):
            add_da()                                    # da_conv1
            add_da()                                    # da_conv2
            p1, p2 = _conv1x1_p(kg, C, C), _conv1x1_p(kg, C, C)
            c1, c2 = _conv_p(kg, K, C, C), _conv_p(kg, K, C, C)
            wda.append(jnp.stack([p1["w"], p2["w"]]))
            bda.append(jnp.stack([p1["b"], p2["b"]]))
            wc.append(jnp.stack([c1["w"], c2["w"]]))
            bc.append(jnp.stack([c1["b"], c2["b"]]))
        tail = _conv_p(kg, K, C, C)
        groups.append({"wda": jnp.stack(wda), "bda": jnp.stack(bda),
                       "wc": jnp.stack(wc), "bc": jnp.stack(bc),
                       "tail_w": tail["w"], "tail_b": tail["b"]})

    return {
        "head": _conv_p(kg, K, in_ch, mid),
        "deg": {"A_k": jnp.stack(A_k), "W1_k": jnp.stack(W1_k),
                "W2_k": jnp.stack(W2_k), "A_c": jnp.stack(A_c),
                "W1_c": jnp.stack(W1_c), "W2_c": jnp.stack(W2_c)},
        "groups": groups,
        "body_tail": _conv_p(kg, K, mid, mid),
        "ups": [_conv_p(kg, K, mid, 4 * mid) for _ in range(n_up)],
        "final": _conv_p(kg, K, mid, in_ch),
    }


# ----------------------------------------------------------------------------
# Model forward (mirrors the PyTorch module structure)
# ----------------------------------------------------------------------------

def dasr_forward(params, x_nhwc, kv):
    deg = params["deg"]
    n_da, _, C = deg["A_k"].shape
    K = int(round(math.sqrt(deg["W2_k"].shape[2] // C)))
    B = x_nhwc.shape[0]
    n_groups = len(params["groups"])
    n_blocks = params["groups"][0]["wda"].shape[0]

    # 1) every degradation-branch MLP in the network, in one kernel
    kflat_all, att_all = deg_head(kv, deg)     # (n_da,B,C*K*K), (n_da,B,C)
    # PyTorch kernel layout (B, C, K, K) -> NHWC depthwise kernel (B, K, K, C)
    kers = jnp.transpose(kflat_all.reshape(n_da, B, C, K, K), (0, 1, 3, 4, 2))
    kers = kers.reshape(n_groups, n_blocks, 2, B, K, K, C)
    atts = att_all.reshape(n_groups, n_blocks, 2, B, 1, C)

    # 2) head conv + body (one fused pallas_call per residual group)
    x = conv2d(x_nhwc, params["head"]["w"], params["head"]["b"], K=K)
    res = x
    for gi, gp in enumerate(params["groups"]):
        res = dag_forward(res, kers[gi], atts[gi], gp, K=K)
    res = conv2d(res, params["body_tail"]["w"], params["body_tail"]["b"],
                 K=K, res=x)

    # 3) tail: Upsampler(conv -> PixelShuffle(2)) * log2(scale), final conv
    for up in params["ups"]:
        res = conv2d(res, up["w"], up["b"], K=K)
        res = pixel_shuffle_nhwc(res, 2)
    return conv2d(res, params["final"]["w"], params["final"]["b"], K=K)


# ----------------------------------------------------------------------------
# Main
# ----------------------------------------------------------------------------

if __name__ == "__main__":
    # Small config consistent with the module (deg_fsize=512 is hardcoded).
    B, in_ch, H, W = 2, 3, 8, 8
    mid, K, reduction = 16, 3, 8
    n_groups, n_blocks, scale = 1, 1, 2

    key = jax.random.PRNGKey(0)
    kx, kf = jax.random.split(key)
    x_nchw = jax.random.normal(kx, (B, in_ch, H, W), jnp.float32)        # image
    deg_rep = jax.random.normal(kf, (B, DEG_FSIZE, 1, 1), jnp.float32)   # feat[0]

    params = build_dasr_params(42, in_ch, mid, K, reduction,
                               n_groups, n_blocks, scale)

    # boundary glue: NCHW -> NHWC; adaptive avg-pool + flatten of the deg rep
    x_nhwc = jnp.transpose(x_nchw, (0, 2, 3, 1))
    kv = jnp.mean(deg_rep, axis=(2, 3))                                  # (B, 512)

    fwd = jax.jit(dasr_forward)
    out_nhwc = fwd(params, x_nhwc, kv)
    out = jnp.transpose(out_nhwc, (0, 3, 1, 2))                          # to NCHW
    jax.block_until_ready(out)

    assert out.shape == (B, in_ch, H * scale, W * scale), out.shape
    assert bool(jnp.all(jnp.isfinite(out)))
    print("KERNEL_OK")
</pallas_src>

<mosaic_0001>
module attributes {stable_mosaic.version = 11 : i64} {
  func.func @_deg_head_kernel(%arg0: i32, %arg1: memref<8x512xf32, #tpu.memory_space<vmem>>, %arg2: memref<1x512x16xf32, #tpu.memory_space<vmem>>, %arg3: memref<1x16x2xf32, #tpu.memory_space<vmem>>, %arg4: memref<1x2x144xf32, #tpu.memory_space<vmem>>, %arg5: memref<1x512x16xf32, #tpu.memory_space<vmem>>, %arg6: memref<1x16x2xf32, #tpu.memory_space<vmem>>, %arg7: memref<1x2x16xf32, #tpu.memory_space<vmem>>, %arg8: memref<1x8x144xf32, #tpu.memory_space<vmem>>, %arg9: memref<1x8x16xf32, #tpu.memory_space<vmem>>) attributes {dimension_semantics = [#tpu.dimension_semantics<parallel>], iteration_bounds = array<i64: 2>, scalar_prefetch = 0 : i64, scratch_operands = 0 : i64, tpu.core_type = #tpu.core_type<tc>, window_params = [{pipeline_mode = #tpu.pipeline_mode<synchronous>, transform_indices = @transform_0, window_bounds = array<i64: 8, 512>}, {transform_indices = @transform_1, window_bounds = array<i64: 1, 512, 16>}, {transform_indices = @transform_2, window_bounds = array<i64: 1, 16, 2>}, {transform_indices = @transform_3, window_bounds = array<i64: 1, 2, 144>}, {transform_indices = @transform_4, window_bounds = array<i64: 1, 512, 16>}, {transform_indices = @transform_5, window_bounds = array<i64: 1, 16, 2>}, {transform_indices = @transform_6, window_bounds = array<i64: 1, 2, 16>}, {transform_indices = @transform_7, window_bounds = array<i64: 1, 8, 144>}, {transform_indices = @transform_8, window_bounds = array<i64: 1, 8, 16>}]} {
    %c0 = arith.constant 0 : index
    %c0_0 = arith.constant 0 : index
    %0 = vector.load %arg1[%c0, %c0_0] : memref<8x512xf32, #tpu.memory_space<vmem>>, vector<8x512xf32>
    %c0_1 = arith.constant 0 : index
    %c0_2 = arith.constant 0 : index
    %c0_3 = arith.constant 0 : index
    %1 = vector.load %arg2[%c0_1, %c0_2, %c0_3] : memref<1x512x16xf32, #tpu.memory_space<vmem>>, vector<1x512x16xf32>
    %2 = vector.shape_cast %1 : vector<1x512x16xf32> to vector<512x16xf32>
    %cst = arith.constant dense<0.000000e+00> : vector<8x16xf32>
    %3 = tpu.matmul %0, %2, %cst {dimension_numbers = #tpu.dot_dimension_numbers<[1], [0], [0], [1], [0, 0, 1, 1], [], []>} : vector<8x512xf32>, vector<512x16xf32>, vector<8x16xf32> -> vector<8x16xf32>
    %c0_4 = arith.constant 0 : index
    %c0_5 = arith.constant 0 : index
    %c0_6 = arith.constant 0 : index
    %4 = vector.load %arg3[%c0_4, %c0_5, %c0_6] : memref<1x16x2xf32, #tpu.memory_space<vmem>>, vector<1x16x2xf32>
    %5 = vector.shape_cast %4 : vector<1x16x2xf32> to vector<16x2xf32>
    %cst_7 = arith.constant dense<0.000000e+00> : vector<8x2xf32>
    %6 = tpu.matmul %3, %5, %cst_7 {dimension_numbers = #tpu.dot_dimension_numbers<[1], [0], [0], [1], [0, 0, 1, 1], [], []>} : vector<8x16xf32>, vector<16x2xf32>, vector<8x2xf32> -> vector<8x2xf32>
    %cst_8 = arith.constant 0.000000e+00 : f32
    %7 = vector.broadcast %cst_8 : f32 to vector<8x2xf32>
    %8 = arith.cmpf oge, %6, %7 : vector<8x2xf32>
    %cst_9 = arith.constant 1.000000e-01 : f32
    %9 = vector.broadcast %cst_9 : f32 to vector<8x2xf32>
    %10 = arith.mulf %9, %6 : vector<8x2xf32>
    %11 = arith.select %8, %6, %10 : vector<8x2xi1>, vector<8x2xf32>
    %c0_10 = arith.constant 0 : index
    %c0_11 = arith.constant 0 : index
    %c0_12 = arith.constant 0 : index
    %12 = vector.load %arg4[%c0_10, %c0_11, %c0_12] : memref<1x2x144xf32, #tpu.memory_space<vmem>>, vector<1x2x144xf32>
    %13 = vector.shape_cast %12 : vector<1x2x144xf32> to vector<2x144xf32>
    %cst_13 = arith.constant dense<0.000000e+00> : vector<8x144xf32>
    %14 = tpu.matmul %11, %13, %cst_13 {dimension_numbers = #tpu.dot_dimension_numbers<[1], [0], [0], [1], [0, 0, 1, 1], [], []>} : vector<8x2xf32>, vector<2x144xf32>, vector<8x144xf32> -> vector<8x144xf32>
    %c0_14 = arith.constant 0 : index
    %c0_15 = arith.constant 0 : index
    %c0_16 = arith.constant 0 : index
    %15 = vector.load %arg8[%c0_14, %c0_15, %c0_16] : memref<1x8x144xf32, #tpu.memory_space<vmem>>, vector<1x8x144xf32>
    %16 = vector.shape_cast %15 : vector<1x8x144xf32> to vector<8x144xf32>
    %17 = vector.shape_cast %14 : vector<8x144xf32> to vector<1x8x144xf32>
    tpu.vector_store %arg8[%c0_14, %c0_15, %c0_16], %17 {strides = array<i32>} : memref<1x8x144xf32, #tpu.memory_space<vmem>>, vector<1x8x144xf32>,
    %c0_17 = arith.constant 0 : index
    %c0_18 = arith.constant 0 : index
    %c0_19 = arith.constant 0 : index
    %18 = vector.load %arg5[%c0_17, %c0_18, %c0_19] : memref<1x512x16xf32, #tpu.memory_space<vmem>>, vector<1x512x16xf32>
    %19 = vector.shape_cast %18 : vector<1x512x16xf32> to vector<512x16xf32>
    %cst_20 = arith.constant dense<0.000000e+00> : vector<8x16xf32>
    %20 = tpu.matmul %0, %19, %cst_20 {dimension_numbers = #tpu.dot_dimension_numbers<[1], [0], [0], [1], [0, 0, 1, 1], [], []>} : vector<8x512xf32>, vector<512x16xf32>, vector<8x16xf32> -> vector<8x16xf32>
    %c0_21 = arith.constant 0 : index
    %c0_22 = arith.constant 0 : index
    %c0_23 = arith.constant 0 : index
    %21 = vector.load %arg6[%c0_21, %c0_22, %c0_23] : memref<1x16x2xf32, #tpu.memory_space<vmem>>, vector<1x16x2xf32>
    %22 = vector.shape_cast %21 : vector<1x16x2xf32> to vector<16x2xf32>
    %cst_24 = arith.constant dense<0.000000e+00> : vector<8x2xf32>
    %23 = tpu.matmul %20, %22, %cst_24 {dimension_numbers = #tpu.dot_dimension_numbers<[1], [0], [0], [1], [0, 0, 1, 1], [], []>} : vector<8x16xf32>, vector<16x2xf32>, vector<8x2xf32> -> vector<8x2xf32>
    %cst_25 = arith.constant 0.000000e+00 : f32
    %24 = vector.broadcast %cst_25 : f32 to vector<8x2xf32>
    %25 = arith.cmpf oge, %23, %24 : vector<8x2xf32>
    %cst_26 = arith.constant 1.000000e-01 : f32
    %26 = vector.broadcast %cst_26 : f32 to vector<8x2xf32>
    %27 = arith.mulf %26, %23 : vector<8x2xf32>
    %28 = arith.select %25, %23, %27 : vector<8x2xi1>, vector<8x2xf32>
    %c0_27 = arith.constant 0 : index
    %c0_28 = arith.constant 0 : index
    %c0_29 = arith.constant 0 : index
    %29 = vector.load %arg7[%c0_27, %c0_28, %c0_29] : memref<1x2x16xf32, #tpu.memory_space<vmem>>, vector<1x2x16xf32>
    %30 = vector.shape_cast %29 : vector<1x2x16xf32> to vector<2x16xf32>
    %cst_30 = arith.constant dense<0.000000e+00> : vector<8x16xf32>
    %31 = tpu.matmul %28, %30, %cst_30 {dimension_numbers = #tpu.dot_dimension_numbers<[1], [0], [0], [1], [0, 0, 1, 1], [], []>} : vector<8x2xf32>, vector<2x16xf32>, vector<8x16xf32> -> vector<8x16xf32>
    %32 = arith.negf %31 : vector<8x16xf32>
    %33 = math.exp %32 : vector<8x16xf32>
    %cst_31 = arith.constant 1.000000e+00 : f32
    %34 = vector.broadcast %cst_31 : f32 to vector<8x16xf32>
    %35 = arith.addf %34, %33 : vector<8x16xf32>
    %36 = arith.divf %34, %35 : vector<8x16xf32>
    %c0_32 = arith.constant 0 : index
    %c0_33 = arith.constant 0 : index
    %c0_34 = arith.constant 0 : index
    %37 = vector.load %arg9[%c0_32, %c0_33, %c0_34] : memref<1x8x16xf32, #tpu.memory_space<vmem>>, vector<1x8x16xf32>
    %38 = vector.shape_cast %37 : vector<1x8x16xf32> to vector<8x16xf32>
    %39 = vector.shape_cast %36 : vector<8x16xf32> to vector<1x8x16xf32>
    tpu.vector_store %arg9[%c0_32, %c0_33, %c0_34], %39 {strides = array<i32>} : memref<1x8x16xf32, #tpu.memory_space<vmem>>, vector<1x8x16xf32>,
    return
  }
  func.func @transform_0(%arg0: i32) -> (i32, i32) {
    %c0_i32 = arith.constant 0 : i32
    %c0_i32_0 = arith.constant 0 : i32
    %c0_i32_1 = arith.constant 0 : i32
    return %c0_i32, %c0_i32_0 : i32, i32
  }
  func.func @transform_1(%arg0: i32) -> (i32, i32, i32) {
    %c0_i32 = arith.constant 0 : i32
    %c0_i32_0 = arith.constant 0 : i32
    %c0_i32_1 = arith.constant 0 : i32
    return %arg0, %c0_i32, %c0_i32_0 : i32, i32, i32
  }
  func.func @transform_2(%arg0: i32) -> (i32, i32, i32) {
    %c0_i32 = arith.constant 0 : i32
    %c0_i32_0 = arith.constant 0 : i32
    %c0_i32_1 = arith.constant 0 : i32
    return %arg0, %c0_i32, %c0_i32_0 : i32, i32, i32
  }
  func.func @transform_3(%arg0: i32) -> (i32, i32, i32) {
    %c0_i32 = arith.constant 0 : i32
    %c0_i32_0 = arith.constant 0 : i32
    %c0_i32_1 = arith.constant 0 : i32
    return %arg0, %c0_i32, %c0_i32_0 : i32, i32, i32
  }
  func.func @transform_4(%arg0: i32) -> (i32, i32, i32) {
    %c0_i32 = arith.constant 0 : i32
    %c0_i32_0 = arith.constant 0 : i32
    %c0_i32_1 = arith.constant 0 : i32
    return %arg0, %c0_i32, %c0_i32_0 : i32, i32, i32
  }
  func.func @transform_5(%arg0: i32) -> (i32, i32, i32) {
    %c0_i32 = arith.constant 0 : i32
    %c0_i32_0 = arith.constant 0 : i32
    %c0_i32_1 = arith.constant 0 : i32
    return %arg0, %c0_i32, %c0_i32_0 : i32, i32, i32
  }
  func.func @transform_6(%arg0: i32) -> (i32, i32, i32) {
    %c0_i32 = arith.constant 0 : i32
    %c0_i32_0 = arith.constant 0 : i32
    %c0_i32_1 = arith.constant 0 : i32
    return %arg0, %c0_i32, %c0_i32_0 : i32, i32, i32
  }
  func.func @transform_7(%arg0: i32) -> (i32, i32, i32) {
    %c0_i32 = arith.constant 0 : i32
    %c0_i32_0 = arith.constant 0 : i32
    %c0_i32_1 = arith.constant 0 : i32
    return %arg0, %c0_i32, %c0_i32_0 : i32, i32, i32
  }
  func.func @transform_8(%arg0: i32) -> (i32, i32, i32) {
    %c0_i32 = arith.constant 0 : i32
    %c0_i32_0 = arith.constant 0 : i32
    %c0_i32_1 = arith.constant 0 : i32
    return %arg0, %c0_i32, %c0_i32_0 : i32, i32, i32
  }
}

module attributes {stable_mosaic.version = 11 : i64} {
  func.func @_conv_kernel(%arg0: i32, %arg1: memref<1x8x8x3xf32, #tpu.memory_space<vmem>>, %arg2: memref<27x16xbf16, #tpu.memory_space<vmem>>, %arg3: memref<1x16xf32, #tpu.memory_space<vmem>>, %arg4: memref<1x8x8x16xf32, #tpu.memory_space<vmem>>, %arg5: memref<10x10x3xf32, #tpu.memory_space<vmem>>) attributes {dimension_semantics = [#tpu.dimension_semantics<parallel>], iteration_bounds = array<i64: 2>, scalar_prefetch = 0 : i64, scratch_operands = 1 : i64, tpu.core_type = #tpu.core_type<tc>, window_params = [{transform_indices = @transform_0, window_bounds = array<i64: 1, 8, 8, 3>}, {pipeline_mode = #tpu.pipeline_mode<synchronous>, transform_indices = @transform_1, window_bounds = array<i64: 27, 16>}, {pipeline_mode = #tpu.pipeline_mode<synchronous>, transform_indices = @transform_2, window_bounds = array<i64: 1, 16>}, {transform_indices = @transform_3, window_bounds = array<i64: 1, 8, 8, 16>}]} {
    %cst = arith.constant 0.000000e+00 : f32
    %0 = vector.broadcast %cst : f32 to vector<10x10x3xf32>
    %c0 = arith.constant 0 : index
    %c0_0 = arith.constant 0 : index
    %c0_1 = arith.constant 0 : index
    %1 = vector.load %arg5[%c0, %c0_0, %c0_1] : memref<10x10x3xf32, #tpu.memory_space<vmem>>, vector<10x10x3xf32>
    tpu.vector_store %arg5[%c0, %c0_0, %c0_1], %0 {strides = array<i32>} : memref<10x10x3xf32, #tpu.memory_space<vmem>>, vector<10x10x3xf32>,
    %c0_2 = arith.constant 0 : index
    %c0_3 = arith.constant 0 : index
    %c0_4 = arith.constant 0 : index
    %c0_5 = arith.constant 0 : index
    %2 = vector.load %arg1[%c0_2, %c0_3, %c0_4, %c0_5] : memref<1x8x8x3xf32, #tpu.memory_space<vmem>>, vector<1x8x8x3xf32>
    %3 = vector.shape_cast %2 : vector<1x8x8x3xf32> to vector<8x8x3xf32>
    %c1 = arith.constant 1 : index
    %c1_6 = arith.constant 1 : index
    %c0_7 = arith.constant 0 : index
    %4 = vector.load %arg5[%c1, %c1_6, %c0_7] : memref<10x10x3xf32, #tpu.memory_space<vmem>>, vector<8x8x3xf32>
    tpu.vector_store %arg5[%c1, %c1_6, %c0_7], %3 {strides = array<i32>} : memref<10x10x3xf32, #tpu.memory_space<vmem>>, vector<8x8x3xf32>,
    %c0_8 = arith.constant 0 : index
    %c0_9 = arith.constant 0 : index
    %c0_10 = arith.constant 0 : index
    %5 = vector.load %arg5[%c0_8, %c0_9, %c0_10] : memref<10x10x3xf32, #tpu.memory_space<vmem>>, vector<8x8x3xf32>
    %c0_11 = arith.constant 0 : index
    %c1_12 = arith.constant 1 : index
    %c0_13 = arith.constant 0 : index
    %6 = vector.load %arg5[%c0_11, %c1_12, %c0_13] : memref<10x10x3xf32, #tpu.memory_space<vmem>>, vector<8x8x3xf32>
    %c0_14 = arith.constant 0 : index
    %c2 = arith.constant 2 : index
    %c0_15 = arith.constant 0 : index
    %7 = vector.load %arg5[%c0_14, %c2, %c0_15] : memref<10x10x3xf32, #tpu.memory_space<vmem>>, vector<8x8x3xf32>
    %c1_16 = arith.constant 1 : index
    %c0_17 = arith.constant 0 : index
    %c0_18 = arith.constant 0 : index
    %8 = vector.load %arg5[%c1_16, %c0_17, %c0_18] : memref<10x10x3xf32, #tpu.memory_space<vmem>>, vector<8x8x3xf32>
    %c1_19 = arith.constant 1 : index
    %c1_20 = arith.constant 1 : index
    %c0_21 = arith.constant 0 : index
    %9 = vector.load %arg5[%c1_19, %c1_20, %c0_21] : memref<10x10x3xf32, #tpu.memory_space<vmem>>, vector<8x8x3xf32>
    %c1_22 = arith.constant 1 : index
    %c2_23 = arith.constant 2 : index
    %c0_24 = arith.constant 0 : index
    %10 = vector.load %arg5[%c1_22, %c2_23, %c0_24] : memref<10x10x3xf32, #tpu.memory_space<vmem>>, vector<8x8x3xf32>
    %c2_25 = arith.constant 2 : index
    %c0_26 = arith.constant 0 : index
    %c0_27 = arith.constant 0 : index
    %11 = vector.load %arg5[%c2_25, %c0_26, %c0_27] : memref<10x10x3xf32, #tpu.memory_space<vmem>>, vector<8x8x3xf32>
    %c2_28 = arith.constant 2 : index
    %c1_29 = arith.constant 1 : index
    %c0_30 = arith.constant 0 : index
    %12 = vector.load %arg5[%c2_28, %c1_29, %c0_30] : memref<10x10x3xf32, #tpu.memory_space<vmem>>, vector<8x8x3xf32>
    %c2_31 = arith.constant 2 : index
    %c2_32 = arith.constant 2 : index
    %c0_33 = arith.constant 0 : index
    %13 = vector.load %arg5[%c2_31, %c2_32, %c0_33] : memref<10x10x3xf32, #tpu.memory_space<vmem>>, vector<8x8x3xf32>
    %14 = tpu.concatenate %5, %6, %7, %8, %9, %10, %11, %12, %13 in 2 : vector<8x8x3xf32>, vector<8x8x3xf32>, vector<8x8x3xf32>, vector<8x8x3xf32>, vector<8x8x3xf32>, vector<8x8x3xf32>, vector<8x8x3xf32>, vector<8x8x3xf32>, vector<8x8x3xf32> -> vector<8x8x27xf32>
    %15 = vector.shape_cast %14 : vector<8x8x27xf32> to vector<64x27xf32>
    %16 = arith.truncf %15 : vector<64x27xf32> to vector<64x27xbf16>
    %c0_34 = arith.constant 0 : index
    %c0_35 = arith.constant 0 : index
    %17 = vector.load %arg2[%c0_34, %c0_35] : memref<27x16xbf16, #tpu.memory_space<vmem>>, vector<27x16xbf16>
    %cst_36 = arith.constant dense<0.000000e+00> : vector<64x16xf32>
    %18 = tpu.matmul %16, %17, %cst_36 {dimension_numbers = #tpu.dot_dimension_numbers<[1], [0], [0], [1], [0, 0, 1, 1], [], []>} : vector<64x27xbf16>, vector<27x16xbf16>, vector<64x16xf32> -> vector<64x16xf32>
    %c0_37 = arith.constant 0 : index
    %c0_38 = arith.constant 0 : index
    %19 = vector.load %arg3[%c0_37, %c0_38] : memref<1x16xf32, #tpu.memory_space<vmem>>, vector<1x16xf32>
    %20 = vector.broadcast %19 : vector<1x16xf32> to vector<64x16xf32>
    %21 = arith.addf %18, %20 : vector<64x16xf32>
    %22 = vector.shape_cast %21 : vector<64x16xf32> to vector<8x8x16xf32>
    %c0_39 = arith.constant 0 : index
    %c0_40 = arith.constant 0 : index
    %c0_41 = arith.constant 0 : index
    %c0_42 = arith.constant 0 : index
    %23 = vector.load %arg4[%c0_39, %c0_40, %c0_41, %c0_42] : memref<1x8x8x16xf32, #tpu.memory_space<vmem>>, vector<1x8x8x16xf32>
    %24 = vector.shape_cast %23 : vector<1x8x8x16xf32> to vector<8x8x16xf32>
    %25 = vector.shape_cast %22 : vector<8x8x16xf32> to vector<1x8x8x16xf32>
    tpu.vector_store %arg4[%c0_39, %c0_40, %c0_41, %c0_42], %25 {strides = array<i32>} : memref<1x8x8x16xf32, #tpu.memory_space<vmem>>, vector<1x8x8x16xf32>,
    return
  }
  func.func @transform_0(%arg0: i32) -> (i32, i32, i32, i32) {
    %c0_i32 = arith.constant 0 : i32
    %c0_i32_0 = arith.constant 0 : i32
    %c0_i32_1 = arith.constant 0 : i32
    %c0_i32_2 = arith.constant 0 : i32
    return %arg0, %c0_i32, %c0_i32_0, %c0_i32_1 : i32, i32, i32, i32
  }
  func.func @transform_1(%arg0: i32) -> (i32, i32) {
    %c0_i32 = arith.constant 0 : i32
    %c0_i32_0 = arith.constant 0 : i32
    %c0_i32_1 = arith.constant 0 : i32
    return %c0_i32, %c0_i32_0 : i32, i32
  }
  func.func @transform_2(%arg0: i32) -> (i32, i32) {
    %c0_i32 = arith.constant 0 : i32
    %c0_i32_0 = arith.constant 0 : i32
    %c0_i32_1 = arith.constant 0 : i32
    return %c0_i32, %c0_i32_0 : i32, i32
  }
  func.func @transform_3(%arg0: i32) -> (i32, i32, i32, i32) {
    %c0_i32 = arith.constant 0 : i32
    %c0_i32_0 = arith.constant 0 : i32
    %c0_i32_1 = arith.constant 0 : i32
    %c0_i32_2 = arith.constant 0 : i32
    return %arg0, %c0_i32, %c0_i32_0, %c0_i32_1 : i32, i32, i32, i32
  }
}

module attributes {stable_mosaic.version = 11 : i64} {
  func.func @_conv_kernel(%arg0: i32, %arg1: memref<1x8x8x16xf32, #tpu.memory_space<vmem>>, %arg2: memref<144x16xbf16, #tpu.memory_space<vmem>>, %arg3: memref<1x16xf32, #tpu.memory_space<vmem>>, %arg4: memref<1x8x8x16xf32, #tpu.memory_space<vmem>>, %arg5: memref<1x8x8x16xf32, #tpu.memory_space<vmem>>, %arg6: memref<10x10x16xf32, #tpu.memory_space<vmem>>) attributes {dimension_semantics = [#tpu.dimension_semantics<parallel>], iteration_bounds = array<i64: 2>, scalar_prefetch = 0 : i64, scratch_operands = 1 : i64, tpu.core_type = #tpu.core_type<tc>, window_params = [{transform_indices = @transform_0, window_bounds = array<i64: 1, 8, 8, 16>}, {pipeline_mode = #tpu.pipeline_mode<synchronous>, transform_indices = @transform_1, window_bounds = array<i64: 144, 16>}, {pipeline_mode = #tpu.pipeline_mode<synchronous>, transform_indices = @transform_2, window_bounds = array<i64: 1, 16>}, {transform_indices = @transform_3, window_bounds = array<i64: 1, 8, 8, 16>}, {transform_indices = @transform_4, window_bounds = array<i64: 1, 8, 8, 16>}]} {
    %cst = arith.constant 0.000000e+00 : f32
    %0 = vector.broadcast %cst : f32 to vector<10x10x16xf32>
    %c0 = arith.constant 0 : index
    %c0_0 = arith.constant 0 : index
    %c0_1 = arith.constant 0 : index
    %1 = vector.load %arg6[%c0, %c0_0, %c0_1] : memref<10x10x16xf32, #tpu.memory_space<vmem>>, vector<10x10x16xf32>
    tpu.vector_store %arg6[%c0, %c0_0, %c0_1], %0 {strides = array<i32>} : memref<10x10x16xf32, #tpu.memory_space<vmem>>, vector<10x10x16xf32>,
    %c0_2 = arith.constant 0 : index
    %c0_3 = arith.constant 0 : index
    %c0_4 = arith.constant 0 : index
    %c0_5 = arith.constant 0 : index
    %2 = vector.load %arg1[%c0_2, %c0_3, %c0_4, %c0_5] : memref<1x8x8x16xf32, #tpu.memory_space<vmem>>, vector<1x8x8x16xf32>
    %3 = vector.shape_cast %2 : vector<1x8x8x16xf32> to vector<8x8x16xf32>
    %c1 = arith.constant 1 : index
    %c1_6 = arith.constant 1 : index
    %c0_7 = arith.constant 0 : index
    %4 = vector.load %arg6[%c1, %c1_6, %c0_7] : memref<10x10x16xf32, #tpu.memory_space<vmem>>, vector<8x8x16xf32>
    tpu.vector_store %arg6[%c1, %c1_6, %c0_7], %3 {strides = array<i32>} : memref<10x10x16xf32, #tpu.memory_space<vmem>>, vector<8x8x16xf32>,
    %c0_8 = arith.constant 0 : index
    %c0_9 = arith.constant 0 : index
    %c0_10 = arith.constant 0 : index
    %5 = vector.load %arg6[%c0_8, %c0_9, %c0_10] : memref<10x10x16xf32, #tpu.memory_space<vmem>>, vector<8x8x16xf32>
    %c0_11 = arith.constant 0 : index
    %c1_12 = arith.constant 1 : index
    %c0_13 = arith.constant 0 : index
    %6 = vector.load %arg6[%c0_11, %c1_12, %c0_13] : memref<10x10x16xf32, #tpu.memory_space<vmem>>, vector<8x8x16xf32>
    %c0_14 = arith.constant 0 : index
    %c2 = arith.constant 2 : index
    %c0_15 = arith.constant 0 : index
    %7 = vector.load %arg6[%c0_14, %c2, %c0_15] : memref<10x10x16xf32, #tpu.memory_space<vmem>>, vector<8x8x16xf32>
    %c1_16 = arith.constant 1 : index
    %c0_17 = arith.constant 0 : index
    %c0_18 = arith.constant 0 : index
    %8 = vector.load %arg6[%c1_16, %c0_17, %c0_18] : memref<10x10x16xf32, #tpu.memory_space<vmem>>, vector<8x8x16xf32>
    %c1_19 = arith.constant 1 : index
    %c1_20 = arith.constant 1 : index
    %c0_21 = arith.constant 0 : index
    %9 = vector.load %arg6[%c1_19, %c1_20, %c0_21] : memref<10x10x16xf32, #tpu.memory_space<vmem>>, vector<8x8x16xf32>
    %c1_22 = arith.constant 1 : index
    %c2_23 = arith.constant 2 : index
    %c0_24 = arith.constant 0 : index
    %10 = vector.load %arg6[%c1_22, %c2_23, %c0_24] : memref<10x10x16xf32, #tpu.memory_space<vmem>>, vector<8x8x16xf32>
    %c2_25 = arith.constant 2 : index
    %c0_26 = arith.constant 0 : index
    %c0_27 = arith.constant 0 : index
    %11 = vector.load %arg6[%c2_25, %c0_26, %c0_27] : memref<10x10x16xf32, #tpu.memory_space<vmem>>, vector<8x8x16xf32>
    %c2_28 = arith.constant 2 : index
    %c1_29 = arith.constant 1 : index
    %c0_30 = arith.constant 0 : index
    %12 = vector.load %arg6[%c2_28, %c1_29, %c0_30] : memref<10x10x16xf32, #tpu.memory_space<vmem>>, vector<8x8x16xf32>
    %c2_31 = arith.constant 2 : index
    %c2_32 = arith.constant 2 : index
    %c0_33 = arith.constant 0 : index
    %13 = vector.load %arg6[%c2_31, %c2_32, %c0_33] : memref<10x10x16xf32, #tpu.memory_space<vmem>>, vector<8x8x16xf32>
    %14 = tpu.concatenate %5, %6, %7, %8, %9, %10, %11, %12, %13 in 2 : vector<8x8x16xf32>, vector<8x8x16xf32>, vector<8x8x16xf32>, vector<8x8x16xf32>, vector<8x8x16xf32>, vector<8x8x16xf32>, vector<8x8x16xf32>, vector<8x8x16xf32>, vector<8x8x16xf32> -> vector<8x8x144xf32>
    %15 = vector.shape_cast %14 : vector<8x8x144xf32> to vector<64x144xf32>
    %16 = arith.truncf %15 : vector<64x144xf32> to vector<64x144xbf16>
    %c0_34 = arith.constant 0 : index
    %c0_35 = arith.constant 0 : index
    %17 = vector.load %arg2[%c0_34, %c0_35] : memref<144x16xbf16, #tpu.memory_space<vmem>>, vector<144x16xbf16>
    %cst_36 = arith.constant dense<0.000000e+00> : vector<64x16xf32>
    %18 = tpu.matmul %16, %17, %cst_36 {dimension_numbers = #tpu.dot_dimension_numbers<[1], [0], [0], [1], [0, 0, 1, 1], [], []>} : vector<64x144xbf16>, vector<144x16xbf16>, vector<64x16xf32> -> vector<64x16xf32>
    %c0_37 = arith.constant 0 : index
    %c0_38 = arith.constant 0 : index
    %19 = vector.load %arg3[%c0_37, %c0_38] : memref<1x16xf32, #tpu.memory_space<vmem>>, vector<1x16xf32>
    %20 = vector.broadcast %19 : vector<1x16xf32> to vector<64x16xf32>
    %21 = arith.addf %18, %20 : vector<64x16xf32>
    %22 = vector.shape_cast %21 : vector<64x16xf32> to vector<8x8x16xf32>
    %c0_39 = arith.constant 0 : index
    %c0_40 = arith.constant 0 : index
    %c0_41 = arith.constant 0 : index
    %c0_42 = arith.constant 0 : index
    %23 = vector.load %arg4[%c0_39, %c0_40, %c0_41, %c0_42] : memref<1x8x8x16xf32, #tpu.memory_space<vmem>>, vector<1x8x8x16xf32>
    %24 = vector.shape_cast %23 : vector<1x8x8x16xf32> to vector<8x8x16xf32>
    %25 = arith.addf %22, %24 : vector<8x8x16xf32>
    %c0_43 = arith.constant 0 : index
    %c0_44 = arith.constant 0 : index
    %c0_45 = arith.constant 0 : index
    %c0_46 = arith.constant 0 : index
    %26 = vector.load %arg5[%c0_43, %c0_44, %c0_45, %c0_46] : memref<1x8x8x16xf32, #tpu.memory_space<vmem>>, vector<1x8x8x16xf32>
    %27 = vector.shape_cast %26 : vector<1x8x8x16xf32> to vector<8x8x16xf32>
    %28 = vector.shape_cast %25 : vector<8x8x16xf32> to vector<1x8x8x16xf32>
    tpu.vector_store %arg5[%c0_43, %c0_44, %c0_45, %c0_46], %28 {strides = array<i32>} : memref<1x8x8x16xf32, #tpu.memory_space<vmem>>, vector<1x8x8x16xf32>,
    return
  }
  func.func @transform_0(%arg0: i32) -> (i32, i32, i32, i32) {
    %c0_i32 = arith.constant 0 : i32
    %c0_i32_0 = arith.constant 0 : i32
    %c0_i32_1 = arith.constant 0 : i32
    %c0_i32_2 = arith.constant 0 : i32
    return %arg0, %c0_i32, %c0_i32_0, %c0_i32_1 : i32, i32, i32, i32
  }
  func.func @transform_1(%arg0: i32) -> (i32, i32) {
    %c0_i32 = arith.constant 0 : i32
    %c0_i32_0 = arith.constant 0 : i32
    %c0_i32_1 = arith.constant 0 : i32
    return %c0_i32, %c0_i32_0 : i32, i32
  }
  func.func @transform_2(%arg0: i32) -> (i32, i32) {
    %c0_i32 = arith.constant 0 : i32
    %c0_i32_0 = arith.constant 0 : i32
    %c0_i32_1 = arith.constant 0 : i32
    return %c0_i32, %c0_i32_0 : i32, i32
  }
  func.func @transform_3(%arg0: i32) -> (i32, i32, i32, i32) {
    %c0_i32 = arith.constant 0 : i32
    %c0_i32_0 = arith.constant 0 : i32
    %c0_i32_1 = arith.constant 0 : i32
    %c0_i32_2 = arith.constant 0 : i32
    return %arg0, %c0_i32, %c0_i32_0, %c0_i32_1 : i32, i32, i32, i32
  }
  func.func @transform_4(%arg0: i32) -> (i32, i32, i32, i32) {
    %c0_i32 = arith.constant 0 : i32
    %c0_i32_0 = arith.constant 0 : i32
    %c0_i32_1 = arith.constant 0 : i32
    %c0_i32_2 = arith.constant 0 : i32
    return %arg0, %c0_i32, %c0_i32_0, %c0_i32_1 : i32, i32, i32, i32
  }
}

module attributes {stable_mosaic.version = 11 : i64} {
  func.func @_dag_kernel(%arg0: i32, %arg1: i32, %arg2: memref<1x8x8x16xf32, #tpu.memory_space<vmem>>, %arg3: memref<1x2x1x3x3x16xf32, #tpu.memory_space<vmem>>, %arg4: memref<1x2x1x1x16xf32, #tpu.memory_space<vmem>>, %arg5: memref<1x2x16x16xbf16, #tpu.memory_space<vmem>>, %arg6: memref<1x2x1x16xf32, #tpu.memory_space<vmem>>, %arg7: memref<1x2x144x16xbf16, #tpu.memory_space<vmem>>, %arg8: memref<1x2x1x16xf32, #tpu.memory_space<vmem>>, %arg9: memref<144x16xbf16, #tpu.memory_space<vmem>>, %arg10: memref<1x16xf32, #tpu.memory_space<vmem>>, %arg11: memref<1x8x8x16xf32, #tpu.memory_space<vmem>>, %arg12: memref<8x8x16xf32, #tpu.memory_space<vmem>>, %arg13: memref<8x8x16xf32, #tpu.memory_space<vmem>>, %arg14: memref<10x10x16xf32, #tpu.memory_space<vmem>>) attributes {dimension_semantics = [#tpu.dimension_semantics<parallel>, #tpu.dimension_semantics<arbitrary>], iteration_bounds = array<i64: 2, 1>, scalar_prefetch = 0 : i64, scratch_operands = 3 : i64, tpu.core_type = #tpu.core_type<tc>, window_params = [{transform_indices = @transform_0, window_bounds = array<i64: 1, 8, 8, 16>}, {transform_indices = @transform_1, window_bounds = array<i64: 1, 2, 1, 3, 3, 16>}, {transform_indices = @transform_2, window_bounds = array<i64: 1, 2, 1, 1, 16>}, {transform_indices = @transform_3, window_bounds = array<i64: 1, 2, 16, 16>}, {transform_indices = @transform_4, window_bounds = array<i64: 1, 2, 1, 16>}, {transform_indices = @transform_5, window_bounds = array<i64: 1, 2, 144, 16>}, {transform_indices = @transform_6, window_bounds = array<i64: 1, 2, 1, 16>}, {pipeline_mode = #tpu.pipeline_mode<synchronous>, transform_indices = @transform_7, window_bounds = array<i64: 144, 16>}, {pipeline_mode = #tpu.pipeline_mode<synchronous>, transform_indices = @transform_8, window_bounds = array<i64: 1, 16>}, {transform_indices = @transform_9, window_bounds = array<i64: 1, 8, 8, 16>}]} {
    %cst = arith.constant 0.000000e+00 : f32
    %0 = vector.broadcast %cst : f32 to vector<10x10x16xf32>
    %c0 = arith.constant 0 : index
    %c0_0 = arith.constant 0 : index
    %c0_1 = arith.constant 0 : index
    %1 = vector.load %arg14[%c0, %c0_0, %c0_1] : memref<10x10x16xf32, #tpu.memory_space<vmem>>, vector<10x10x16xf32>
    tpu.vector_store %arg14[%c0, %c0_0, %c0_1], %0 {strides = array<i32>} : memref<10x10x16xf32, #tpu.memory_space<vmem>>, vector<10x10x16xf32>,
    %c0_i32 = arith.constant 0 : i32
    %2 = arith.cmpi eq, %arg1, %c0_i32 : i32
    %3 = arith.extui %2 : i1 to i32
    %c0_i32_2 = arith.constant 0 : i32
    %4 = arith.cmpi ne, %3, %c0_i32_2 : i32
    scf.if %4 {
      %c0_172 = arith.constant 0 : index
      %c0_173 = arith.constant 0 : index
      %c0_174 = arith.constant 0 : index
      %c0_175 = arith.constant 0 : index
      %250 = vector.load %arg2[%c0_172, %c0_173, %c0_174, %c0_175] : memref<1x8x8x16xf32, #tpu.memory_space<vmem>>, vector<1x8x8x16xf32>
      %251 = vector.shape_cast %250 : vector<1x8x8x16xf32> to vector<8x8x16xf32>
      %c0_176 = arith.constant 0 : index
      %c0_177 = arith.constant 0 : index
      %c0_178 = arith.constant 0 : index
      %252 = vector.load %arg12[%c0_176, %c0_177, %c0_178] : memref<8x8x16xf32, #tpu.memory_space<vmem>>, vector<8x8x16xf32>
      tpu.vector_store %arg12[%c0_176, %c0_177, %c0_178], %251 {strides = array<i32>} : memref<8x8x16xf32, #tpu.memory_space<vmem>>, vector<8x8x16xf32>,
      %c0_179 = arith.constant 0 : index
      %c0_180 = arith.constant 0 : index
      %c0_181 = arith.constant 0 : index
      %253 = vector.load %arg13[%c0_179, %c0_180, %c0_181] : memref<8x8x16xf32, #tpu.memory_space<vmem>>, vector<8x8x16xf32>
      tpu.vector_store %arg13[%c0_179, %c0_180, %c0_181], %251 {strides = array<i32>} : memref<8x8x16xf32, #tpu.memory_space<vmem>>, vector<8x8x16xf32>,
    } else {
    }
    %c0_3 = arith.constant 0 : index
    %c0_4 = arith.constant 0 : index
    %c0_5 = arith.constant 0 : index
    %c0_6 = arith.constant 0 : index
    %c0_7 = arith.constant 0 : index
    %c0_8 = arith.constant 0 : index
    %5 = vector.load %arg3[%c0_3, %c0_4, %c0_5, %c0_6, %c0_7, %c0_8] : memref<1x2x1x3x3x16xf32, #tpu.memory_space<vmem>>, vector<1x2x1x3x3x16xf32>
    %c0_9 = arith.constant 0 : index
    %c0_10 = arith.constant 0 : index
    %c0_11 = arith.constant 0 : index
    %c0_12 = arith.constant 0 : index
    %c0_13 = arith.constant 0 : index
    %6 = vector.load %arg4[%c0_9, %c0_10, %c0_11, %c0_12, %c0_13] : memref<1x2x1x1x16xf32, #tpu.memory_space<vmem>>, vector<1x2x1x1x16xf32>
    %c0_14 = arith.constant 0 : index
    %c0_15 = arith.constant 0 : index
    %c0_16 = arith.constant 0 : index
    %c0_17 = arith.constant 0 : index
    %7 = vector.load %arg5[%c0_14, %c0_15, %c0_16, %c0_17] : memref<1x2x16x16xbf16, #tpu.memory_space<vmem>>, vector<1x2x16x16xbf16>
    %c0_18 = arith.constant 0 : index
    %c0_19 = arith.constant 0 : index
    %c0_20 = arith.constant 0 : index
    %c0_21 = arith.constant 0 : index
    %8 = vector.load %arg6[%c0_18, %c0_19, %c0_20, %c0_21] : memref<1x2x1x16xf32, #tpu.memory_space<vmem>>, vector<1x2x1x16xf32>
    %c0_22 = arith.constant 0 : index
    %c0_23 = arith.constant 0 : index
    %c0_24 = arith.constant 0 : index
    %c0_25 = arith.constant 0 : index
    %9 = vector.load %arg7[%c0_22, %c0_23, %c0_24, %c0_25] : memref<1x2x144x16xbf16, #tpu.memory_space<vmem>>, vector<1x2x144x16xbf16>
    %c0_26 = arith.constant 0 : index
    %c0_27 = arith.constant 0 : index
    %c0_28 = arith.constant 0 : index
    %c0_29 = arith.constant 0 : index
    %10 = vector.load %arg8[%c0_26, %c0_27, %c0_28, %c0_29] : memref<1x2x1x16xf32, #tpu.memory_space<vmem>>, vector<1x2x1x16xf32>
    %c0_30 = arith.constant 0 : index
    %c0_31 = arith.constant 0 : index
    %c0_32 = arith.constant 0 : index
    %11 = vector.load %arg12[%c0_30, %c0_31, %c0_32] : memref<8x8x16xf32, #tpu.memory_space<vmem>>, vector<8x8x16xf32>
    %12 = vector.extract_strided_slice %5 {offsets = [0, 0, 0, 0, 0, 0], sizes = [1, 1, 1, 3, 3, 16], strides = [1, 1, 1, 1, 1, 1]} : vector<1x2x1x3x3x16xf32> to vector<1x1x1x3x3x16xf32>
    %13 = vector.shape_cast %12 : vector<1x1x1x3x3x16xf32> to vector<3x3x16xf32>
    %14 = vector.extract_strided_slice %7 {offsets = [0, 0, 0, 0], sizes = [1, 1, 16, 16], strides = [1, 1, 1, 1]} : vector<1x2x16x16xbf16> to vector<1x1x16x16xbf16>
    %15 = vector.shape_cast %14 : vector<1x1x16x16xbf16> to vector<16x16xbf16>
    %16 = vector.extract_strided_slice %8 {offsets = [0, 0, 0, 0], sizes = [1, 1, 1, 16], strides = [1, 1, 1, 1]} : vector<1x2x1x16xf32> to vector<1x1x1x16xf32>
    %17 = vector.shape_cast %16 : vector<1x1x1x16xf32> to vector<1x16xf32>
    %18 = vector.extract_strided_slice %6 {offsets = [0, 0, 0, 0, 0], sizes = [1, 1, 1, 1, 16], strides = [1, 1, 1, 1, 1]} : vector<1x2x1x1x16xf32> to vector<1x1x1x1x16xf32>
    %19 = vector.shape_cast %18 : vector<1x1x1x1x16xf32> to vector<16xf32>
    %c1 = arith.constant 1 : index
    %c1_33 = arith.constant 1 : index
    %c0_34 = arith.constant 0 : index
    %20 = vector.load %arg14[%c1, %c1_33, %c0_34] : memref<10x10x16xf32, #tpu.memory_space<vmem>>, vector<8x8x16xf32>
    tpu.vector_store %arg14[%c1, %c1_33, %c0_34], %11 {strides = array<i32>} : memref<10x10x16xf32, #tpu.memory_space<vmem>>, vector<8x8x16xf32>,
    %cst_35 = arith.constant 0.000000e+00 : f32
    %21 = vector.broadcast %cst_35 : f32 to vector<8x8x16xf32>
    %c0_36 = arith.constant 0 : index
    %c0_37 = arith.constant 0 : index
    %c0_38 = arith.constant 0 : index
    %22 = vector.load %arg14[%c0_36, %c0_37, %c0_38] : memref<10x10x16xf32, #tpu.memory_space<vmem>>, vector<8x8x16xf32>
    %23 = vector.extract_strided_slice %13 {offsets = [0, 0, 0], sizes = [1, 1, 16], strides = [1, 1, 1]} : vector<3x3x16xf32> to vector<1x1x16xf32>
    %24 = vector.shape_cast %23 : vector<1x1x16xf32> to vector<16xf32>
    %25 = vector.shape_cast %24 : vector<16xf32> to vector<1x1x16xf32>
    %26 = vector.broadcast %25 : vector<1x1x16xf32> to vector<8x8x16xf32>
    %27 = arith.mulf %22, %26 : vector<8x8x16xf32>
    %28 = arith.addf %21, %27 : vector<8x8x16xf32>
    %c0_39 = arith.constant 0 : index
    %c1_40 = arith.constant 1 : index
    %c0_41 = arith.constant 0 : index
    %29 = vector.load %arg14[%c0_39, %c1_40, %c0_41] : memref<10x10x16xf32, #tpu.memory_space<vmem>>, vector<8x8x16xf32>
    %30 = vector.extract_strided_slice %13 {offsets = [0, 1, 0], sizes = [1, 1, 16], strides = [1, 1, 1]} : vector<3x3x16xf32> to vector<1x1x16xf32>
    %31 = vector.shape_cast %30 : vector<1x1x16xf32> to vector<16xf32>
    %32 = vector.shape_cast %31 : vector<16xf32> to vector<1x1x16xf32>
    %33 = vector.broadcast %32 : vector<1x1x16xf32> to vector<8x8x16xf32>
    %34 = arith.mulf %29, %33 : vector<8x8x16xf32>
    %35 = arith.addf %28, %34 : vector<8x8x16xf32>
    %c0_42 = arith.constant 0 : index
    %c2 = arith.constant 2 : index
    %c0_43 = arith.constant 0 : index
    %36 = vector.load %arg14[%c0_42, %c2, %c0_43] : memref<10x10x16xf32, #tpu.memory_space<vmem>>, vector<8x8x16xf32>
    %37 = vector.extract_strided_slice %13 {offsets = [0, 2, 0], sizes = [1, 1, 16], strides = [1, 1, 1]} : vector<3x3x16xf32> to vector<1x1x16xf32>
    %38 = vector.shape_cast %37 : vector<1x1x16xf32> to vector<16xf32>
    %39 = vector.shape_cast %38 : vector<16xf32> to vector<1x1x16xf32>
    %40 = vector.broadcast %39 : vector<1x1x16xf32> to vector<8x8x16xf32>
    %41 = arith.mulf %36, %40 : vector<8x8x16xf32>
    %42 = arith.addf %35, %41 : vector<8x8x16xf32>
    %c1_44 = arith.constant 1 : index
    %c0_45 = arith.constant 0 : index
    %c0_46 = arith.constant 0 : index
    %43 = vector.load %arg14[%c1_44, %c0_45, %c0_46] : memref<10x10x16xf32, #tpu.memory_space<vmem>>, vector<8x8x16xf32>
    %44 = vector.extract_strided_slice %13 {offsets = [1, 0, 0], sizes = [1, 1, 16], strides = [1, 1, 1]} : vector<3x3x16xf32> to vector<1x1x16xf32>
    %45 = vector.shape_cast %44 : vector<1x1x16xf32> to vector<16xf32>
    %46 = vector.shape_cast %45 : vector<16xf32> to vector<1x1x16xf32>
    %47 = vector.broadcast %46 : vector<1x1x16xf32> to vector<8x8x16xf32>
    %48 = arith.mulf %43, %47 : vector<8x8x16xf32>
    %49 = arith.addf %42, %48 : vector<8x8x16xf32>
    %c1_47 = arith.constant 1 : index
    %c1_48 = arith.constant 1 : index
    %c0_49 = arith.constant 0 : index
    %50 = vector.load %arg14[%c1_47, %c1_48, %c0_49] : memref<10x10x16xf32, #tpu.memory_space<vmem>>, vector<8x8x16xf32>
    %51 = vector.extract_strided_slice %13 {offsets = [1, 1, 0], sizes = [1, 1, 16], strides = [1, 1, 1]} : vector<3x3x16xf32> to vector<1x1x16xf32>
    %52 = vector.shape_cast %51 : vector<1x1x16xf32> to vector<16xf32>
    %53 = vector.shape_cast %52 : vector<16xf32> to vector<1x1x16xf32>
    %54 = vector.broadcast %53 : vector<1x1x16xf32> to vector<8x8x16xf32>
    %55 = arith.mulf %50, %54 : vector<8x8x16xf32>
    %56 = arith.addf %49, %55 : vector<8x8x16xf32>
    %c1_50 = arith.constant 1 : index
    %c2_51 = arith.constant 2 : index
    %c0_52 = arith.constant 0 : index
    %57 = vector.load %arg14[%c1_50, %c2_51, %c0_52] : memref<10x10x16xf32, #tpu.memory_space<vmem>>, vector<8x8x16xf32>
    %58 = vector.extract_strided_slice %13 {offsets = [1, 2, 0], sizes = [1, 1, 16], strides = [1, 1, 1]} : vector<3x3x16xf32> to vector<1x1x16xf32>
    %59 = vector.shape_cast %58 : vector<1x1x16xf32> to vector<16xf32>
    %60 = vector.shape_cast %59 : vector<16xf32> to vector<1x1x16xf32>
    %61 = vector.broadcast %60 : vector<1x1x16xf32> to vector<8x8x16xf32>
    %62 = arith.mulf %57, %61 : vector<8x8x16xf32>
    %63 = arith.addf %56, %62 : vector<8x8x16xf32>
    %c2_53 = arith.constant 2 : index
    %c0_54 = arith.constant 0 : index
    %c0_55 = arith.constant 0 : index
    %64 = vector.load %arg14[%c2_53, %c0_54, %c0_55] : memref<10x10x16xf32, #tpu.memory_space<vmem>>, vector<8x8x16xf32>
    %65 = vector.extract_strided_slice %13 {offsets = [2, 0, 0], sizes = [1, 1, 16], strides = [1, 1, 1]} : vector<3x3x16xf32> to vector<1x1x16xf32>
    %66 = vector.shape_cast %65 : vector<1x1x16xf32> to vector<16xf32>
    %67 = vector.shape_cast %66 : vector<16xf32> to vector<1x1x16xf32>
    %68 = vector.broadcast %67 : vector<1x1x16xf32> to vector<8x8x16xf32>
    %69 = arith.mulf %64, %68 : vector<8x8x16xf32>
    %70 = arith.addf %63, %69 : vector<8x8x16xf32>
    %c2_56 = arith.constant 2 : index
    %c1_57 = arith.constant 1 : index
    %c0_58 = arith.constant 0 : index
    %71 = vector.load %arg14[%c2_56, %c1_57, %c0_58] : memref<10x10x16xf32, #tpu.memory_space<vmem>>, vector<8x8x16xf32>
    %72 = vector.extract_strided_slice %13 {offsets = [2, 1, 0], sizes = [1, 1, 16], strides = [1, 1, 1]} : vector<3x3x16xf32> to vector<1x1x16xf32>
    %73 = vector.shape_cast %72 : vector<1x1x16xf32> to vector<16xf32>
    %74 = vector.shape_cast %73 : vector<16xf32> to vector<1x1x16xf32>
    %75 = vector.broadcast %74 : vector<1x1x16xf32> to vector<8x8x16xf32>
    %76 = arith.mulf %71, %75 : vector<8x8x16xf32>
    %77 = arith.addf %70, %76 : vector<8x8x16xf32>
    %c2_59 = arith.constant 2 : index
    %c2_60 = arith.constant 2 : index
    %c0_61 = arith.constant 0 : index
    %78 = vector.load %arg14[%c2_59, %c2_60, %c0_61] : memref<10x10x16xf32, #tpu.memory_space<vmem>>, vector<8x8x16xf32>
    %79 = vector.extract_strided_slice %13 {offsets = [2, 2, 0], sizes = [1, 1, 16], strides = [1, 1, 1]} : vector<3x3x16xf32> to vector<1x1x16xf32>
    %80 = vector.shape_cast %79 : vector<1x1x16xf32> to vector<16xf32>
    %81 = vector.shape_cast %80 : vector<16xf32> to vector<1x1x16xf32>
    %82 = vector.broadcast %81 : vector<1x1x16xf32> to vector<8x8x16xf32>
    %83 = arith.mulf %78, %82 : vector<8x8x16xf32>
    %84 = arith.addf %77, %83 : vector<8x8x16xf32>
    %cst_62 = arith.constant 0.000000e+00 : f32
    %85 = vector.broadcast %cst_62 : f32 to vector<8x8x16xf32>
    %86 = arith.cmpf oge, %84, %85 : vector<8x8x16xf32>
    %cst_63 = arith.constant 1.000000e-01 : f32
    %87 = vector.broadcast %cst_63 : f32 to vector<8x8x16xf32>
    %88 = arith.mulf %87, %84 : vector<8x8x16xf32>
    %89 = arith.select %86, %84, %88 : vector<8x8x16xi1>, vector<8x8x16xf32>
    %90 = vector.shape_cast %89 : vector<8x8x16xf32> to vector<64x16xf32>
    %91 = arith.truncf %90 : vector<64x16xf32> to vector<64x16xbf16>
    %cst_64 = arith.constant dense<0.000000e+00> : vector<64x16xf32>
    %92 = tpu.matmul %91, %15, %cst_64 {dimension_numbers = #tpu.dot_dimension_numbers<[1], [0], [0], [1], [0, 0, 1, 1], [], []>} : vector<64x16xbf16>, vector<16x16xbf16>, vector<64x16xf32> -> vector<64x16xf32>
    %93 = vector.broadcast %17 : vector<1x16xf32> to vector<64x16xf32>
    %94 = arith.addf %92, %93 : vector<64x16xf32>
    %95 = vector.shape_cast %94 : vector<64x16xf32> to vector<8x8x16xf32>
    %96 = vector.shape_cast %19 : vector<16xf32> to vector<1x1x16xf32>
    %97 = vector.broadcast %96 : vector<1x1x16xf32> to vector<8x8x16xf32>
    %98 = arith.mulf %11, %97 : vector<8x8x16xf32>
    %99 = arith.addf %95, %98 : vector<8x8x16xf32>
    %cst_65 = arith.constant 0.000000e+00 : f32
    %100 = vector.broadcast %cst_65 : f32 to vector<8x8x16xf32>
    %101 = arith.cmpf oge, %99, %100 : vector<8x8x16xf32>
    %cst_66 = arith.constant 1.000000e-01 : f32
    %102 = vector.broadcast %cst_66 : f32 to vector<8x8x16xf32>
    %103 = arith.mulf %102, %99 : vector<8x8x16xf32>
    %104 = arith.select %101, %99, %103 : vector<8x8x16xi1>, vector<8x8x16xf32>
    %105 = vector.extract_strided_slice %9 {offsets = [0, 0, 0, 0], sizes = [1, 1, 144, 16], strides = [1, 1, 1, 1]} : vector<1x2x144x16xbf16> to vector<1x1x144x16xbf16>
    %106 = vector.shape_cast %105 : vector<1x1x144x16xbf16> to vector<144x16xbf16>
    %107 = vector.extract_strided_slice %10 {offsets = [0, 0, 0, 0], sizes = [1, 1, 1, 16], strides = [1, 1, 1, 1]} : vector<1x2x1x16xf32> to vector<1x1x1x16xf32>
    %108 = vector.shape_cast %107 : vector<1x1x1x16xf32> to vector<1x16xf32>
    %c1_67 = arith.constant 1 : index
    %c1_68 = arith.constant 1 : index
    %c0_69 = arith.constant 0 : index
    %109 = vector.load %arg14[%c1_67, %c1_68, %c0_69] : memref<10x10x16xf32, #tpu.memory_space<vmem>>, vector<8x8x16xf32>
    tpu.vector_store %arg14[%c1_67, %c1_68, %c0_69], %104 {strides = array<i32>} : memref<10x10x16xf32, #tpu.memory_space<vmem>>, vector<8x8x16xf32>,
    %c0_70 = arith.constant 0 : index
    %c0_71 = arith.constant 0 : index
    %c0_72 = arith.constant 0 : index
    %110 = vector.load %arg14[%c0_70, %c0_71, %c0_72] : memref<10x10x16xf32, #tpu.memory_space<vmem>>, vector<8x8x16xf32>
    %c0_73 = arith.constant 0 : index
    %c1_74 = arith.constant 1 : index
    %c0_75 = arith.constant 0 : index
    %111 = vector.load %arg14[%c0_73, %c1_74, %c0_75] : memref<10x10x16xf32, #tpu.memory_space<vmem>>, vector<8x8x16xf32>
    %c0_76 = arith.constant 0 : index
    %c2_77 = arith.constant 2 : index
    %c0_78 = arith.constant 0 : index
    %112 = vector.load %arg14[%c0_76, %c2_77, %c0_78] : memref<10x10x16xf32, #tpu.memory_space<vmem>>, vector<8x8x16xf32>
    %c1_79 = arith.constant 1 : index
    %c0_80 = arith.constant 0 : index
    %c0_81 = arith.constant 0 : index
    %113 = vector.load %arg14[%c1_79, %c0_80, %c0_81] : memref<10x10x16xf32, #tpu.memory_space<vmem>>, vector<8x8x16xf32>
    %c1_82 = arith.constant 1 : index
    %c1_83 = arith.constant 1 : index
    %c0_84 = arith.constant 0 : index
    %114 = vector.load %arg14[%c1_82, %c1_83, %c0_84] : memref<10x10x16xf32, #tpu.memory_space<vmem>>, vector<8x8x16xf32>
    %c1_85 = arith.constant 1 : index
    %c2_86 = arith.constant 2 : index
    %c0_87 = arith.constant 0 : index
    %115 = vector.load %arg14[%c1_85, %c2_86, %c0_87] : memref<10x10x16xf32, #tpu.memory_space<vmem>>, vector<8x8x16xf32>
    %c2_88 = arith.constant 2 : index
    %c0_89 = arith.constant 0 : index
    %c0_90 = arith.constant 0 : index
    %116 = vector.load %arg14[%c2_88, %c0_89, %c0_90] : memref<10x10x16xf32, #tpu.memory_space<vmem>>, vector<8x8x16xf32>
    %c2_91 = arith.constant 2 : index
    %c1_92 = arith.constant 1 : index
    %c0_93 = arith.constant 0 : index
    %117 = vector.load %arg14[%c2_91, %c1_92, %c0_93] : memref<10x10x16xf32, #tpu.memory_space<vmem>>, vector<8x8x16xf32>
    %c2_94 = arith.constant 2 : index
    %c2_95 = arith.constant 2 : index
    %c0_96 = arith.constant 0 : index
    %118 = vector.load %arg14[%c2_94, %c2_95, %c0_96] : memref<10x10x16xf32, #tpu.memory_space<vmem>>, vector<8x8x16xf32>
    %119 = tpu.concatenate %110, %111, %112, %113, %114, %115, %116, %117, %118 in 2 : vector<8x8x16xf32>, vector<8x8x16xf32>, vector<8x8x16xf32>, vector<8x8x16xf32>, vector<8x8x16xf32>, vector<8x8x16xf32>, vector<8x8x16xf32>, vector<8x8x16xf32>, vector<8x8x16xf32> -> vector<8x8x144xf32>
    %120 = vector.shape_cast %119 : vector<8x8x144xf32> to vector<64x144xf32>
    %121 = arith.truncf %120 : vector<64x144xf32> to vector<64x144xbf16>
    %cst_97 = arith.constant dense<0.000000e+00> : vector<64x16xf32>
    %122 = tpu.matmul %121, %106, %cst_97 {dimension_numbers = #tpu.dot_dimension_numbers<[1], [0], [0], [1], [0, 0, 1, 1], [], []>} : vector<64x144xbf16>, vector<144x16xbf16>, vector<64x16xf32> -> vector<64x16xf32>
    %123 = vector.broadcast %108 : vector<1x16xf32> to vector<64x16xf32>
    %124 = arith.addf %122, %123 : vector<64x16xf32>
    %125 = vector.shape_cast %124 : vector<64x16xf32> to vector<8x8x16xf32>
    %cst_98 = arith.constant 0.000000e+00 : f32
    %126 = vector.broadcast %cst_98 : f32 to vector<8x8x16xf32>
    %127 = arith.cmpf oge, %125, %126 : vector<8x8x16xf32>
    %cst_99 = arith.constant 1.000000e-01 : f32
    %128 = vector.broadcast %cst_99 : f32 to vector<8x8x16xf32>
    %129 = arith.mulf %128, %125 : vector<8x8x16xf32>
    %130 = arith.select %127, %125, %129 : vector<8x8x16xi1>, vector<8x8x16xf32>
    %131 = vector.extract_strided_slice %5 {offsets = [0, 1, 0, 0, 0, 0], sizes = [1, 1, 1, 3, 3, 16], strides = [1, 1, 1, 1, 1, 1]} : vector<1x2x1x3x3x16xf32> to vector<1x1x1x3x3x16xf32>
    %132 = vector.shape_cast %131 : vector<1x1x1x3x3x16xf32> to vector<3x3x16xf32>
    %133 = vector.extract_strided_slice %7 {offsets = [0, 1, 0, 0], sizes = [1, 1, 16, 16], strides = [1, 1, 1, 1]} : vector<1x2x16x16xbf16> to vector<1x1x16x16xbf16>
    %134 = vector.shape_cast %133 : vector<1x1x16x16xbf16> to vector<16x16xbf16>
    %135 = vector.extract_strided_slice %8 {offsets = [0, 1, 0, 0], sizes = [1, 1, 1, 16], strides = [1, 1, 1, 1]} : vector<1x2x1x16xf32> to vector<1x1x1x16xf32>
    %136 = vector.shape_cast %135 : vector<1x1x1x16xf32> to vector<1x16xf32>
    %137 = vector.extract_strided_slice %6 {offsets = [0, 1, 0, 0, 0], sizes = [1, 1, 1, 1, 16], strides = [1, 1, 1, 1, 1]} : vector<1x2x1x1x16xf32> to vector<1x1x1x1x16xf32>
    %138 = vector.shape_cast %137 : vector<1x1x1x1x16xf32> to vector<16xf32>
    %c1_100 = arith.constant 1 : index
    %c1_101 = arith.constant 1 : index
    %c0_102 = arith.constant 0 : index
    %139 = vector.load %arg14[%c1_100, %c1_101, %c0_102] : memref<10x10x16xf32, #tpu.memory_space<vmem>>, vector<8x8x16xf32>
    tpu.vector_store %arg14[%c1_100, %c1_101, %c0_102], %130 {strides = array<i32>} : memref<10x10x16xf32, #tpu.memory_space<vmem>>, vector<8x8x16xf32>,
    %cst_103 = arith.constant 0.000000e+00 : f32
    %140 = vector.broadcast %cst_103 : f32 to vector<8x8x16xf32>
    %c0_104 = arith.constant 0 : index
    %c0_105 = arith.constant 0 : index
    %c0_106 = arith.constant 0 : index
    %141 = vector.load %arg14[%c0_104, %c0_105, %c0_106] : memref<10x10x16xf32, #tpu.memory_space<vmem>>, vector<8x8x16xf32>
    %142 = vector.extract_strided_slice %132 {offsets = [0, 0, 0], sizes = [1, 1, 16], strides = [1, 1, 1]} : vector<3x3x16xf32> to vector<1x1x16xf32>
    %143 = vector.shape_cast %142 : vector<1x1x16xf32> to vector<16xf32>
    %144 = vector.shape_cast %143 : vector<16xf32> to vector<1x1x16xf32>
    %145 = vector.broadcast %144 : vector<1x1x16xf32> to vector<8x8x16xf32>
    %146 = arith.mulf %141, %145 : vector<8x8x16xf32>
    %147 = arith.addf %140, %146 : vector<8x8x16xf32>
    %c0_107 = arith.constant 0 : index
    %c1_108 = arith.constant 1 : index
    %c0_109 = arith.constant 0 : index
    %148 = vector.load %arg14[%c0_107, %c1_108, %c0_109] : memref<10x10x16xf32, #tpu.memory_space<vmem>>, vector<8x8x16xf32>
    %149 = vector.extract_strided_slice %132 {offsets = [0, 1, 0], sizes = [1, 1, 16], strides = [1, 1, 1]} : vector<3x3x16xf32> to vector<1x1x16xf32>
    %150 = vector.shape_cast %149 : vector<1x1x16xf32> to vector<16xf32>
    %151 = vector.shape_cast %150 : vector<16xf32> to vector<1x1x16xf32>
    %152 = vector.broadcast %151 : vector<1x1x16xf32> to vector<8x8x16xf32>
    %153 = arith.mulf %148, %152 : vector<8x8x16xf32>
    %154 = arith.addf %147, %153 : vector<8x8x16xf32>
    %c0_110 = arith.constant 0 : index
    %c2_111 = arith.constant 2 : index
    %c0_112 = arith.constant 0 : index
    %155 = vector.load %arg14[%c0_110, %c2_111, %c0_112] : memref<10x10x16xf32, #tpu.memory_space<vmem>>, vector<8x8x16xf32>
    %156 = vector.extract_strided_slice %132 {offsets = [0, 2, 0], sizes = [1, 1, 16], strides = [1, 1, 1]} : vector<3x3x16xf32> to vector<1x1x16xf32>
    %157 = vector.shape_cast %156 : vector<1x1x16xf32> to vector<16xf32>
    %158 = vector.shape_cast %157 : vector<16xf32> to vector<1x1x16xf32>
    %159 = vector.broadcast %158 : vector<1x1x16xf32> to vector<8x8x16xf32>
    %160 = arith.mulf %155, %159 : vector<8x8x16xf32>
    %161 = arith.addf %154, %160 : vector<8x8x16xf32>
    %c1_113 = arith.constant 1 : index
    %c0_114 = arith.constant 0 : index
    %c0_115 = arith.constant 0 : index
    %162 = vector.load %arg14[%c1_113, %c0_114, %c0_115] : memref<10x10x16xf32, #tpu.memory_space<vmem>>, vector<8x8x16xf32>
    %163 = vector.extract_strided_slice %132 {offsets = [1, 0, 0], sizes = [1, 1, 16], strides = [1, 1, 1]} : vector<3x3x16xf32> to vector<1x1x16xf32>
    %164 = vector.shape_cast %163 : vector<1x1x16xf32> to vector<16xf32>
    %165 = vector.shape_cast %164 : vector<16xf32> to vector<1x1x16xf32>
    %166 = vector.broadcast %165 : vector<1x1x16xf32> to vector<8x8x16xf32>
    %167 = arith.mulf %162, %166 : vector<8x8x16xf32>
    %168 = arith.addf %161, %167 : vector<8x8x16xf32>
    %c1_116 = arith.constant 1 : index
    %c1_117 = arith.constant 1 : index
    %c0_118 = arith.constant 0 : index
    %169 = vector.load %arg14[%c1_116, %c1_117, %c0_118] : memref<10x10x16xf32, #tpu.memory_space<vmem>>, vector<8x8x16xf32>
    %170 = vector.extract_strided_slice %132 {offsets = [1, 1, 0], sizes = [1, 1, 16], strides = [1, 1, 1]} : vector<3x3x16xf32> to vector<1x1x16xf32>
    %171 = vector.shape_cast %170 : vector<1x1x16xf32> to vector<16xf32>
    %172 = vector.shape_cast %171 : vector<16xf32> to vector<1x1x16xf32>
    %173 = vector.broadcast %172 : vector<1x1x16xf32> to vector<8x8x16xf32>
    %174 = arith.mulf %169, %173 : vector<8x8x16xf32>
    %175 = arith.addf %168, %174 : vector<8x8x16xf32>
    %c1_119 = arith.constant 1 : index
    %c2_120 = arith.constant 2 : index
    %c0_121 = arith.constant 0 : index
    %176 = vector.load %arg14[%c1_119, %c2_120, %c0_121] : memref<10x10x16xf32, #tpu.memory_space<vmem>>, vector<8x8x16xf32>
    %177 = vector.extract_strided_slice %132 {offsets = [1, 2, 0], sizes = [1, 1, 16], strides = [1, 1, 1]} : vector<3x3x16xf32> to vector<1x1x16xf32>
    %178 = vector.shape_cast %177 : vector<1x1x16xf32> to vector<16xf32>
    %179 = vector.shape_cast %178 : vector<16xf32> to vector<1x1x16xf32>
    %180 = vector.broadcast %179 : vector<1x1x16xf32> to vector<8x8x16xf32>
    %181 = arith.mulf %176, %180 : vector<8x8x16xf32>
    %182 = arith.addf %175, %181 : vector<8x8x16xf32>
    %c2_122 = arith.constant 2 : index
    %c0_123 = arith.constant 0 : index
    %c0_124 = arith.constant 0 : index
    %183 = vector.load %arg14[%c2_122, %c0_123, %c0_124] : memref<10x10x16xf32, #tpu.memory_space<vmem>>, vector<8x8x16xf32>
    %184 = vector.extract_strided_slice %132 {offsets = [2, 0, 0], sizes = [1, 1, 16], strides = [1, 1, 1]} : vector<3x3x16xf32> to vector<1x1x16xf32>
    %185 = vector.shape_cast %184 : vector<1x1x16xf32> to vector<16xf32>
    %186 = vector.shape_cast %185 : vector<16xf32> to vector<1x1x16xf32>
    %187 = vector.broadcast %186 : vector<1x1x16xf32> to vector<8x8x16xf32>
    %188 = arith.mulf %183, %187 : vector<8x8x16xf32>
    %189 = arith.addf %182, %188 : vector<8x8x16xf32>
    %c2_125 = arith.constant 2 : index
    %c1_126 = arith.constant 1 : index
    %c0_127 = arith.constant 0 : index
    %190 = vector.load %arg14[%c2_125, %c1_126, %c0_127] : memref<10x10x16xf32, #tpu.memory_space<vmem>>, vector<8x8x16xf32>
    %191 = vector.extract_strided_slice %132 {offsets = [2, 1, 0], sizes = [1, 1, 16], strides = [1, 1, 1]} : vector<3x3x16xf32> to vector<1x1x16xf32>
    %192 = vector.shape_cast %191 : vector<1x1x16xf32> to vector<16xf32>
    %193 = vector.shape_cast %192 : vector<16xf32> to vector<1x1x16xf32>
    %194 = vector.broadcast %193 : vector<1x1x16xf32> to vector<8x8x16xf32>
    %195 = arith.mulf %190, %194 : vector<8x8x16xf32>
    %196 = arith.addf %189, %195 : vector<8x8x16xf32>
    %c2_128 = arith.constant 2 : index
    %c2_129 = arith.constant 2 : index
    %c0_130 = arith.constant 0 : index
    %197 = vector.load %arg14[%c2_128, %c2_129, %c0_130] : memref<10x10x16xf32, #tpu.memory_space<vmem>>, vector<8x8x16xf32>
    %198 = vector.extract_strided_slice %132 {offsets = [2, 2, 0], sizes = [1, 1, 16], strides = [1, 1, 1]} : vector<3x3x16xf32> to vector<1x1x16xf32>
    %199 = vector.shape_cast %198 : vector<1x1x16xf32> to vector<16xf32>
    %200 = vector.shape_cast %199 : vector<16xf32> to vector<1x1x16xf32>
    %201 = vector.broadcast %200 : vector<1x1x16xf32> to vector<8x8x16xf32>
    %202 = arith.mulf %197, %201 : vector<8x8x16xf32>
    %203 = arith.addf %196, %202 : vector<8x8x16xf32>
    %cst_131 = arith.constant 0.000000e+00 : f32
    %204 = vector.broadcast %cst_131 : f32 to vector<8x8x16xf32>
    %205 = arith.cmpf oge, %203, %204 : vector<8x8x16xf32>
    %cst_132 = arith.constant 1.000000e-01 : f32
    %206 = vector.broadcast %cst_132 : f32 to vector<8x8x16xf32>
    %207 = arith.mulf %206, %203 : vector<8x8x16xf32>
    %208 = arith.select %205, %203, %207 : vector<8x8x16xi1>, vector<8x8x16xf32>
    %209 = vector.shape_cast %208 : vector<8x8x16xf32> to vector<64x16xf32>
    %210 = arith.truncf %209 : vector<64x16xf32> to vector<64x16xbf16>
    %cst_133 = arith.constant dense<0.000000e+00> : vector<64x16xf32>
    %211 = tpu.matmul %210, %134, %cst_133 {dimension_numbers = #tpu.dot_dimension_numbers<[1], [0], [0], [1], [0, 0, 1, 1], [], []>} : vector<64x16xbf16>, vector<16x16xbf16>, vector<64x16xf32> -> vector<64x16xf32>
    %212 = vector.broadcast %136 : vector<1x16xf32> to vector<64x16xf32>
    %213 = arith.addf %211, %212 : vector<64x16xf32>
    %214 = vector.shape_cast %213 : vector<64x16xf32> to vector<8x8x16xf32>
    %215 = vector.shape_cast %138 : vector<16xf32> to vector<1x1x16xf32>
    %216 = vector.broadcast %215 : vector<1x1x16xf32> to vector<8x8x16xf32>
    %217 = arith.mulf %130, %216 : vector<8x8x16xf32>
    %218 = arith.addf %214, %217 : vector<8x8x16xf32>
    %cst_134 = arith.constant 0.000000e+00 : f32
    %219 = vector.broadcast %cst_134 : f32 to vector<8x8x16xf32>
    %220 = arith.cmpf oge, %218, %219 : vector<8x8x16xf32>
    %cst_135 = arith.constant 1.000000e-01 : f32
    %221 = vector.broadcast %cst_135 : f32 to vector<8x8x16xf32>
    %222 = arith.mulf %221, %218 : vector<8x8x16xf32>
    %223 = arith.select %220, %218, %222 : vector<8x8x16xi1>, vector<8x8x16xf32>
    %224 = vector.extract_strided_slice %9 {offsets = [0, 1, 0, 0], sizes = [1, 1, 144, 16], strides = [1, 1, 1, 1]} : vector<1x2x144x16xbf16> to vector<1x1x144x16xbf16>
    %225 = vector.shape_cast %224 : vector<1x1x144x16xbf16> to vector<144x16xbf16>
    %226 = vector.extract_strided_slice %10 {offsets = [0, 1, 0, 0], sizes = [1, 1, 1, 16], strides = [1, 1, 1, 1]} : vector<1x2x1x16xf32> to vector<1x1x1x16xf32>
    %227 = vector.shape_cast %226 : vector<1x1x1x16xf32> to vector<1x16xf32>
    %c1_136 = arith.constant 1 : index
    %c1_137 = arith.constant 1 : index
    %c0_138 = arith.constant 0 : index
    %228 = vector.load %arg14[%c1_136, %c1_137, %c0_138] : memref<10x10x16xf32, #tpu.memory_space<vmem>>, vector<8x8x16xf32>
    tpu.vector_store %arg14[%c1_136, %c1_137, %c0_138], %223 {strides = array<i32>} : memref<10x10x16xf32, #tpu.memory_space<vmem>>, vector<8x8x16xf32>,
    %c0_139 = arith.constant 0 : index
    %c0_140 = arith.constant 0 : index
    %c0_141 = arith.constant 0 : index
    %229 = vector.load %arg14[%c0_139, %c0_140, %c0_141] : memref<10x10x16xf32, #tpu.memory_space<vmem>>, vector<8x8x16xf32>
    %c0_142 = arith.constant 0 : index
    %c1_143 = arith.constant 1 : index
    %c0_144 = arith.constant 0 : index
    %230 = vector.load %arg14[%c0_142, %c1_143, %c0_144] : memref<10x10x16xf32, #tpu.memory_space<vmem>>, vector<8x8x16xf32>
    %c0_145 = arith.constant 0 : index
    %c2_146 = arith.constant 2 : index
    %c0_147 = arith.constant 0 : index
    %231 = vector.load %arg14[%c0_145, %c2_146, %c0_147] : memref<10x10x16xf32, #tpu.memory_space<vmem>>, vector<8x8x16xf32>
    %c1_148 = arith.constant 1 : index
    %c0_149 = arith.constant 0 : index
    %c0_150 = arith.constant 0 : index
    %232 = vector.load %arg14[%c1_148, %c0_149, %c0_150] : memref<10x10x16xf32, #tpu.memory_space<vmem>>, vector<8x8x16xf32>
    %c1_151 = arith.constant 1 : index
    %c1_152 = arith.constant 1 : index
    %c0_153 = arith.constant 0 : index
    %233 = vector.load %arg14[%c1_151, %c1_152, %c0_153] : memref<10x10x16xf32, #tpu.memory_space<vmem>>, vector<8x8x16xf32>
    %c1_154 = arith.constant 1 : index
    %c2_155 = arith.constant 2 : index
    %c0_156 = arith.constant 0 : index
    %234 = vector.load %arg14[%c1_154, %c2_155, %c0_156] : memref<10x10x16xf32, #tpu.memory_space<vmem>>, vector<8x8x16xf32>
    %c2_157 = arith.constant 2 : index
    %c0_158 = arith.constant 0 : index
    %c0_159 = arith.constant 0 : index
    %235 = vector.load %arg14[%c2_157, %c0_158, %c0_159] : memref<10x10x16xf32, #tpu.memory_space<vmem>>, vector<8x8x16xf32>
    %c2_160 = arith.constant 2 : index
    %c1_161 = arith.constant 1 : index
    %c0_162 = arith.constant 0 : index
    %236 = vector.load %arg14[%c2_160, %c1_161, %c0_162] : memref<10x10x16xf32, #tpu.memory_space<vmem>>, vector<8x8x16xf32>
    %c2_163 = arith.constant 2 : index
    %c2_164 = arith.constant 2 : index
    %c0_165 = arith.constant 0 : index
    %237 = vector.load %arg14[%c2_163, %c2_164, %c0_165] : memref<10x10x16xf32, #tpu.memory_space<vmem>>, vector<8x8x16xf32>
    %238 = tpu.concatenate %229, %230, %231, %232, %233, %234, %235, %236, %237 in 2 : vector<8x8x16xf32>, vector<8x8x16xf32>, vector<8x8x16xf32>, vector<8x8x16xf32>, vector<8x8x16xf32>, vector<8x8x16xf32>, vector<8x8x16xf32>, vector<8x8x16xf32>, vector<8x8x16xf32> -> vector<8x8x144xf32>
    %239 = vector.shape_cast %238 : vector<8x8x144xf32> to vector<64x144xf32>
    %240 = arith.truncf %239 : vector<64x144xf32> to vector<64x144xbf16>
    %cst_166 = arith.constant dense<0.000000e+00> : vector<64x16xf32>
    %241 = tpu.matmul %240, %225, %cst_166 {dimension_numbers = #tpu.dot_dimension_numbers<[1], [0], [0], [1], [0, 0, 1, 1], [], []>} : vector<64x144xbf16>, vector<144x16xbf16>, vector<64x16xf32> -> vector<64x16xf32>
    %242 = vector.broadcast %227 : vector<1x16xf32> to vector<64x16xf32>
    %243 = arith.addf %241, %242 : vector<64x16xf32>
    %244 = vector.shape_cast %243 : vector<64x16xf32> to vector<8x8x16xf32>
    %245 = arith.addf %244, %11 : vector<8x8x16xf32>
    %c0_167 = arith.constant 0 : index
    %c0_168 = arith.constant 0 : index
    %c0_169 = arith.constant 0 : index
    %246 = vector.load %arg12[%c0_167, %c0_168, %c0_169] : memref<8x8x16xf32, #tpu.memory_space<vmem>>, vector<8x8x16xf32>
    tpu.vector_store %arg12[%c0_167, %c0_168, %c0_169], %245 {strides = array<i32>} : memref<8x8x16xf32, #tpu.memory_space<vmem>>, vector<8x8x16xf32>,
    %c0_i32_170 = arith.constant 0 : i32
    %247 = arith.cmpi eq, %arg1, %c0_i32_170 : i32
    %248 = arith.extui %247 : i1 to i32
    %c0_i32_171 = arith.constant 0 : i32
    %249 = arith.cmpi ne, %248, %c0_i32_171 : i32
    scf.if %249 {
      %c0_172 = arith.constant 0 : index
      %c0_173 = arith.constant 0 : index
      %250 = vector.load %arg9[%c0_172, %c0_173] : memref<144x16xbf16, #tpu.memory_space<vmem>>, vector<144x16xbf16>
      %c0_174 = arith.constant 0 : index
      %c0_175 = arith.constant 0 : index
      %251 = vector.load %arg10[%c0_174, %c0_175] : memref<1x16xf32, #tpu.memory_space<vmem>>, vector<1x16xf32>
      %c1_176 = arith.constant 1 : index
      %c1_177 = arith.constant 1 : index
      %c0_178 = arith.constant 0 : index
      %252 = vector.load %arg14[%c1_176, %c1_177, %c0_178] : memref<10x10x16xf32, #tpu.memory_space<vmem>>, vector<8x8x16xf32>
      tpu.vector_store %arg14[%c1_176, %c1_177, %c0_178], %245 {strides = array<i32>} : memref<10x10x16xf32, #tpu.memory_space<vmem>>, vector<8x8x16xf32>,
      %c0_179 = arith.constant 0 : index
      %c0_180 = arith.constant 0 : index
      %c0_181 = arith.constant 0 : index
      %253 = vector.load %arg14[%c0_179, %c0_180, %c0_181] : memref<10x10x16xf32, #tpu.memory_space<vmem>>, vector<8x8x16xf32>
      %c0_182 = arith.constant 0 : index
      %c1_183 = arith.constant 1 : index
      %c0_184 = arith.constant 0 : index
      %254 = vector.load %arg14[%c0_182, %c1_183, %c0_184] : memref<10x10x16xf32, #tpu.memory_space<vmem>>, vector<8x8x16xf32>
      %c0_185 = arith.constant 0 : index
      %c2_186 = arith.constant 2 : index
      %c0_187 = arith.constant 0 : index
      %255 = vector.load %arg14[%c0_185, %c2_186, %c0_187] : memref<10x10x16xf32, #tpu.memory_space<vmem>>, vector<8x8x16xf32>
      %c1_188 = arith.constant 1 : index
      %c0_189 = arith.constant 0 : index
      %c0_190 = arith.constant 0 : index
      %256 = vector.load %arg14[%c1_188, %c0_189, %c0_190] : memref<10x10x16xf32, #tpu.memory_space<vmem>>, vector<8x8x16xf32>
      %c1_191 = arith.constant 1 : index
      %c1_192 = arith.constant 1 : index
      %c0_193 = arith.constant 0 : index
      %257 = vector.load %arg14[%c1_191, %c1_192, %c0_193] : memref<10x10x16xf32, #tpu.memory_space<vmem>>, vector<8x8x16xf32>
      %c1_194 = arith.constant 1 : index
      %c2_195 = arith.constant 2 : index
      %c0_196 = arith.constant 0 : index
      %258 = vector.load %arg14[%c1_194, %c2_195, %c0_196] : memref<10x10x16xf32, #tpu.memory_space<vmem>>, vector<8x8x16xf32>
      %c2_197 = arith.constant 2 : index
      %c0_198 = arith.constant 0 : index
      %c0_199 = arith.constant 0 : index
      %259 = vector.load %arg14[%c2_197, %c0_198, %c0_199] : memref<10x10x16xf32, #tpu.memory_space<vmem>>, vector<8x8x16xf32>
      %c2_200 = arith.constant 2 : index
      %c1_201 = arith.constant 1 : index
      %c0_202 = arith.constant 0 : index
      %260 = vector.load %arg14[%c2_200, %c1_201, %c0_202] : memref<10x10x16xf32, #tpu.memory_space<vmem>>, vector<8x8x16xf32>
      %c2_203 = arith.constant 2 : index
      %c2_204 = arith.constant 2 : index
      %c0_205 = arith.constant 0 : index
      %261 = vector.load %arg14[%c2_203, %c2_204, %c0_205] : memref<10x10x16xf32, #tpu.memory_space<vmem>>, vector<8x8x16xf32>
      %262 = tpu.concatenate %253, %254, %255, %256, %257, %258, %259, %260, %261 in 2 : vector<8x8x16xf32>, vector<8x8x16xf32>, vector<8x8x16xf32>, vector<8x8x16xf32>, vector<8x8x16xf32>, vector<8x8x16xf32>, vector<8x8x16xf32>, vector<8x8x16xf32>, vector<8x8x16xf32> -> vector<8x8x144xf32>
      %263 = vector.shape_cast %262 : vector<8x8x144xf32> to vector<64x144xf32>
      %264 = arith.truncf %263 : vector<64x144xf32> to vector<64x144xbf16>
      %cst_206 = arith.constant dense<0.000000e+00> : vector<64x16xf32>
      %265 = tpu.matmul %264, %250, %cst_206 {dimension_numbers = #tpu.dot_dimension_numbers<[1], [0], [0], [1], [0, 0, 1, 1], [], []>} : vector<64x144xbf16>, vector<144x16xbf16>, vector<64x16xf32> -> vector<64x16xf32>
      %266 = vector.broadcast %251 : vector<1x16xf32> to vector<64x16xf32>
      %267 = arith.addf %265, %266 : vector<64x16xf32>
      %268 = vector.shape_cast %267 : vector<64x16xf32> to vector<8x8x16xf32>
      %c0_207 = arith.constant 0 : index
      %c0_208 = arith.constant 0 : index
      %c0_209 = arith.constant 0 : index
      %269 = vector.load %arg13[%c0_207, %c0_208, %c0_209] : memref<8x8x16xf32, #tpu.memory_space<vmem>>, vector<8x8x16xf32>
      %270 = arith.addf %268, %269 : vector<8x8x16xf32>
      %c0_210 = arith.constant 0 : index
      %c0_211 = arith.constant 0 : index
      %c0_212 = arith.constant 0 : index
      %c0_213 = arith.constant 0 : index
      %271 = vector.load %arg11[%c0_210, %c0_211, %c0_212, %c0_213] : memref<1x8x8x16xf32, #tpu.memory_space<vmem>>, vector<1x8x8x16xf32>
      %272 = vector.shape_cast %271 : vector<1x8x8x16xf32> to vector<8x8x16xf32>
      %273 = vector.shape_cast %270 : vector<8x8x16xf32> to vector<1x8x8x16xf32>
      tpu.vector_store %arg11[%c0_210, %c0_211, %c0_212, %c0_213], %273 {strides = array<i32>} : memref<1x8x8x16xf32, #tpu.memory_space<vmem>>, vector<1x8x8x16xf32>,
    } else {
    }
    return
  }
  func.func @transform_0(%arg0: i32, %arg1: i32) -> (i32, i32, i32, i32) {
    %c0_i32 = arith.constant 0 : i32
    %c0_i32_0 = arith.constant 0 : i32
    %c0_i32_1 = arith.constant 0 : i32
    %c0_i32_2 = arith.constant 0 : i32
    return %arg0, %c0_i32, %c0_i32_0, %c0_i32_1 : i32, i32, i32, i32
  }
  func.func @transform_1(%arg0: i32, %arg1: i32) -> (i32, i32, i32, i32, i32, i32) {
    %c0_i32 = arith.constant 0 : i32
    %c0_i32_0 = arith.constant 0 : i32
    %c0_i32_1 = arith.constant 0 : i32
    %c0_i32_2 = arith.constant 0 : i32
    %c0_i32_3 = arith.constant 0 : i32
    return %arg1, %c0_i32, %arg0, %c0_i32_0, %c0_i32_1, %c0_i32_2 : i32, i32, i32, i32, i32, i32
  }
  func.func @transform_2(%arg0: i32, %arg1: i32) -> (i32, i32, i32, i32, i32) {
    %c0_i32 = arith.constant 0 : i32
    %c0_i32_0 = arith.constant 0 : i32
    %c0_i32_1 = arith.constant 0 : i32
    %c0_i32_2 = arith.constant 0 : i32
    return %arg1, %c0_i32, %arg0, %c0_i32_0, %c0_i32_1 : i32, i32, i32, i32, i32
  }
  func.func @transform_3(%arg0: i32, %arg1: i32) -> (i32, i32, i32, i32) {
    %c0_i32 = arith.constant 0 : i32
    %c0_i32_0 = arith.constant 0 : i32
    %c0_i32_1 = arith.constant 0 : i32
    %c0_i32_2 = arith.constant 0 : i32
    return %arg1, %c0_i32, %c0_i32_0, %c0_i32_1 : i32, i32, i32, i32
  }
  func.func @transform_4(%arg0: i32, %arg1: i32) -> (i32, i32, i32, i32) {
    %c0_i32 = arith.constant 0 : i32
    %c0_i32_0 = arith.constant 0 : i32
    %c0_i32_1 = arith.constant 0 : i32
    %c0_i32_2 = arith.constant 0 : i32
    return %arg1, %c0_i32, %c0_i32_0, %c0_i32_1 : i32, i32, i32, i32
  }
  func.func @transform_5(%arg0: i32, %arg1: i32) -> (i32, i32, i32, i32) {
    %c0_i32 = arith.constant 0 : i32
    %c0_i32_0 = arith.constant 0 : i32
    %c0_i32_1 = arith.constant 0 : i32
    %c0_i32_2 = arith.constant 0 : i32
    return %arg1, %c0_i32, %c0_i32_0, %c0_i32_1 : i32, i32, i32, i32
  }
  func.func @transform_6(%arg0: i32, %arg1: i32) -> (i32, i32, i32, i32) {
    %c0_i32 = arith.constant 0 : i32
    %c0_i32_0 = arith.constant 0 : i32
    %c0_i32_1 = arith.constant 0 : i32
    %c0_i32_2 = arith.constant 0 : i32
    return %arg1, %c0_i32, %c0_i32_0, %c0_i32_1 : i32, i32, i32, i32
  }
  func.func @transform_7(%arg0: i32, %arg1: i32) -> (i32, i32) {
    %c0_i32 = arith.constant 0 : i32
    %c0_i32_0 = arith.constant 0 : i32
    %c0_i32_1 = arith.constant 0 : i32
    return %c0_i32, %c0_i32_0 : i32, i32
  }
  func.func @transform_8(%arg0: i32, %arg1: i32) -> (i32, i32) {
    %c0_i32 = arith.constant 0 : i32
    %c0_i32_0 = arith.constant 0 : i32
    %c0_i32_1 = arith.constant 0 : i32
    return %c0_i32, %c0_i32_0 : i32, i32
  }
  func.func @transform_9(%arg0: i32, %arg1: i32) -> (i32, i32, i32, i32) {
    %c0_i32 = arith.constant 0 : i32
    %c0_i32_0 = arith.constant 0 : i32
    %c0_i32_1 = arith.constant 0 : i32
    %c0_i32_2 = arith.constant 0 : i32
    return %arg0, %c0_i32, %c0_i32_0, %c0_i32_1 : i32, i32, i32, i32
  }
}

module attributes {stable_mosaic.version = 11 : i64} {
  func.func @_conv_kernel(%arg0: i32, %arg1: memref<1x8x8x16xf32, #tpu.memory_space<vmem>>, %arg2: memref<144x64xbf16, #tpu.memory_space<vmem>>, %arg3: memref<1x64xf32, #tpu.memory_space<vmem>>, %arg4: memref<1x8x8x64xf32, #tpu.memory_space<vmem>>, %arg5: memref<10x10x16xf32, #tpu.memory_space<vmem>>) attributes {dimension_semantics = [#tpu.dimension_semantics<parallel>], iteration_bounds = array<i64: 2>, scalar_prefetch = 0 : i64, scratch_operands = 1 : i64, tpu.core_type = #tpu.core_type<tc>, window_params = [{transform_indices = @transform_0, window_bounds = array<i64: 1, 8, 8, 16>}, {pipeline_mode = #tpu.pipeline_mode<synchronous>, transform_indices = @transform_1, window_bounds = array<i64: 144, 64>}, {pipeline_mode = #tpu.pipeline_mode<synchronous>, transform_indices = @transform_2, window_bounds = array<i64: 1, 64>}, {transform_indices = @transform_3, window_bounds = array<i64: 1, 8, 8, 64>}]} {
    %cst = arith.constant 0.000000e+00 : f32
    %0 = vector.broadcast %cst : f32 to vector<10x10x16xf32>
    %c0 = arith.constant 0 : index
    %c0_0 = arith.constant 0 : index
    %c0_1 = arith.constant 0 : index
    %1 = vector.load %arg5[%c0, %c0_0, %c0_1] : memref<10x10x16xf32, #tpu.memory_space<vmem>>, vector<10x10x16xf32>
    tpu.vector_store %arg5[%c0, %c0_0, %c0_1], %0 {strides = array<i32>} : memref<10x10x16xf32, #tpu.memory_space<vmem>>, vector<10x10x16xf32>,
    %c0_2 = arith.constant 0 : index
    %c0_3 = arith.constant 0 : index
    %c0_4 = arith.constant 0 : index
    %c0_5 = arith.constant 0 : index
    %2 = vector.load %arg1[%c0_2, %c0_3, %c0_4, %c0_5] : memref<1x8x8x16xf32, #tpu.memory_space<vmem>>, vector<1x8x8x16xf32>
    %3 = vector.shape_cast %2 : vector<1x8x8x16xf32> to vector<8x8x16xf32>
    %c1 = arith.constant 1 : index
    %c1_6 = arith.constant 1 : index
    %c0_7 = arith.constant 0 : index
    %4 = vector.load %arg5[%c1, %c1_6, %c0_7] : memref<10x10x16xf32, #tpu.memory_space<vmem>>, vector<8x8x16xf32>
    tpu.vector_store %arg5[%c1, %c1_6, %c0_7], %3 {strides = array<i32>} : memref<10x10x16xf32, #tpu.memory_space<vmem>>, vector<8x8x16xf32>,
    %c0_8 = arith.constant 0 : index
    %c0_9 = arith.constant 0 : index
    %c0_10 = arith.constant 0 : index
    %5 = vector.load %arg5[%c0_8, %c0_9, %c0_10] : memref<10x10x16xf32, #tpu.memory_space<vmem>>, vector<8x8x16xf32>
    %c0_11 = arith.constant 0 : index
    %c1_12 = arith.constant 1 : index
    %c0_13 = arith.constant 0 : index
    %6 = vector.load %arg5[%c0_11, %c1_12, %c0_13] : memref<10x10x16xf32, #tpu.memory_space<vmem>>, vector<8x8x16xf32>
    %c0_14 = arith.constant 0 : index
    %c2 = arith.constant 2 : index
    %c0_15 = arith.constant 0 : index
    %7 = vector.load %arg5[%c0_14, %c2, %c0_15] : memref<10x10x16xf32, #tpu.memory_space<vmem>>, vector<8x8x16xf32>
    %c1_16 = arith.constant 1 : index
    %c0_17 = arith.constant 0 : index
    %c0_18 = arith.constant 0 : index
    %8 = vector.load %arg5[%c1_16, %c0_17, %c0_18] : memref<10x10x16xf32, #tpu.memory_space<vmem>>, vector<8x8x16xf32>
    %c1_19 = arith.constant 1 : index
    %c1_20 = arith.constant 1 : index
    %c0_21 = arith.constant 0 : index
    %9 = vector.load %arg5[%c1_19, %c1_20, %c0_21] : memref<10x10x16xf32, #tpu.memory_space<vmem>>, vector<8x8x16xf32>
    %c1_22 = arith.constant 1 : index
    %c2_23 = arith.constant 2 : index
    %c0_24 = arith.constant 0 : index
    %10 = vector.load %arg5[%c1_22, %c2_23, %c0_24] : memref<10x10x16xf32, #tpu.memory_space<vmem>>, vector<8x8x16xf32>
    %c2_25 = arith.constant 2 : index
    %c0_26 = arith.constant 0 : index
    %c0_27 = arith.constant 0 : index
    %11 = vector.load %arg5[%c2_25, %c0_26, %c0_27] : memref<10x10x16xf32, #tpu.memory_space<vmem>>, vector<8x8x16xf32>
    %c2_28 = arith.constant 2 : index
    %c1_29 = arith.constant 1 : index
    %c0_30 = arith.constant 0 : index
    %12 = vector.load %arg5[%c2_28, %c1_29, %c0_30] : memref<10x10x16xf32, #tpu.memory_space<vmem>>, vector<8x8x16xf32>
    %c2_31 = arith.constant 2 : index
    %c2_32 = arith.constant 2 : index
    %c0_33 = arith.constant 0 : index
    %13 = vector.load %arg5[%c2_31, %c2_32, %c0_33] : memref<10x10x16xf32, #tpu.memory_space<vmem>>, vector<8x8x16xf32>
    %14 = tpu.concatenate %5, %6, %7, %8, %9, %10, %11, %12, %13 in 2 : vector<8x8x16xf32>, vector<8x8x16xf32>, vector<8x8x16xf32>, vector<8x8x16xf32>, vector<8x8x16xf32>, vector<8x8x16xf32>, vector<8x8x16xf32>, vector<8x8x16xf32>, vector<8x8x16xf32> -> vector<8x8x144xf32>
    %15 = vector.shape_cast %14 : vector<8x8x144xf32> to vector<64x144xf32>
    %16 = arith.truncf %15 : vector<64x144xf32> to vector<64x144xbf16>
    %c0_34 = arith.constant 0 : index
    %c0_35 = arith.constant 0 : index
    %17 = vector.load %arg2[%c0_34, %c0_35] : memref<144x64xbf16, #tpu.memory_space<vmem>>, vector<144x64xbf16>
    %cst_36 = arith.constant dense<0.000000e+00> : vector<64x64xf32>
    %18 = tpu.matmul %16, %17, %cst_36 {dimension_numbers = #tpu.dot_dimension_numbers<[1], [0], [0], [1], [0, 0, 1, 1], [], []>} : vector<64x144xbf16>, vector<144x64xbf16>, vector<64x64xf32> -> vector<64x64xf32>
    %c0_37 = arith.constant 0 : index
    %c0_38 = arith.constant 0 : index
    %19 = vector.load %arg3[%c0_37, %c0_38] : memref<1x64xf32, #tpu.memory_space<vmem>>, vector<1x64xf32>
    %20 = vector.broadcast %19 : vector<1x64xf32> to vector<64x64xf32>
    %21 = arith.addf %18, %20 : vector<64x64xf32>
    %22 = vector.shape_cast %21 : vector<64x64xf32> to vector<8x8x64xf32>
    %c0_39 = arith.constant 0 : index
    %c0_40 = arith.constant 0 : index
    %c0_41 = arith.constant 0 : index
    %c0_42 = arith.constant 0 : index
    %23 = vector.load %arg4[%c0_39, %c0_40, %c0_41, %c0_42] : memref<1x8x8x64xf32, #tpu.memory_space<vmem>>, vector<1x8x8x64xf32>
    %24 = vector.shape_cast %23 : vector<1x8x8x64xf32> to vector<8x8x64xf32>
    %25 = vector.shape_cast %22 : vector<8x8x64xf32> to vector<1x8x8x64xf32>
    tpu.vector_store %arg4[%c0_39, %c0_40, %c0_41, %c0_42], %25 {strides = array<i32>} : memref<1x8x8x64xf32, #tpu.memory_space<vmem>>, vector<1x8x8x64xf32>,
    return
  }
  func.func @transform_0(%arg0: i32) -> (i32, i32, i32, i32) {
    %c0_i32 = arith.constant 0 : i32
    %c0_i32_0 = arith.constant 0 : i32
    %c0_i32_1 = arith.constant 0 : i32
    %c0_i32_2 = arith.constant 0 : i32
    return %arg0, %c0_i32, %c0_i32_0, %c0_i32_1 : i32, i32, i32, i32
  }
  func.func @transform_1(%arg0: i32) -> (i32, i32) {
    %c0_i32 = arith.constant 0 : i32
    %c0_i32_0 = arith.constant 0 : i32
    %c0_i32_1 = arith.constant 0 : i32
    return %c0_i32, %c0_i32_0 : i32, i32
  }
  func.func @transform_2(%arg0: i32) -> (i32, i32) {
    %c0_i32 = arith.constant 0 : i32
    %c0_i32_0 = arith.constant 0 : i32
    %c0_i32_1 = arith.constant 0 : i32
    return %c0_i32, %c0_i32_0 : i32, i32
  }
  func.func @transform_3(%arg0: i32) -> (i32, i32, i32, i32) {
    %c0_i32 = arith.constant 0 : i32
    %c0_i32_0 = arith.constant 0 : i32
    %c0_i32_1 = arith.constant 0 : i32
    %c0_i32_2 = arith.constant 0 : i32
    return %arg0, %c0_i32, %c0_i32_0, %c0_i32_1 : i32, i32, i32, i32
  }
}

module attributes {stable_mosaic.version = 11 : i64} {
  func.func @_conv_kernel(%arg0: i32, %arg1: memref<1x16x16x16xf32, #tpu.memory_space<vmem>>, %arg2: memref<144x3xbf16, #tpu.memory_space<vmem>>, %arg3: memref<1x3xf32, #tpu.memory_space<vmem>>, %arg4: memref<1x16x16x3xf32, #tpu.memory_space<vmem>>, %arg5: memref<18x18x16xf32, #tpu.memory_space<vmem>>) attributes {dimension_semantics = [#tpu.dimension_semantics<parallel>], iteration_bounds = array<i64: 2>, scalar_prefetch = 0 : i64, scratch_operands = 1 : i64, tpu.core_type = #tpu.core_type<tc>, window_params = [{transform_indices = @transform_0, window_bounds = array<i64: 1, 16, 16, 16>}, {pipeline_mode = #tpu.pipeline_mode<synchronous>, transform_indices = @transform_1, window_bounds = array<i64: 144, 3>}, {pipeline_mode = #tpu.pipeline_mode<synchronous>, transform_indices = @transform_2, window_bounds = array<i64: 1, 3>}, {transform_indices = @transform_3, window_bounds = array<i64: 1, 16, 16, 3>}]} {
    %cst = arith.constant 0.000000e+00 : f32
    %0 = vector.broadcast %cst : f32 to vector<18x18x16xf32>
    %c0 = arith.constant 0 : index
    %c0_0 = arith.constant 0 : index
    %c0_1 = arith.constant 0 : index
    %1 = vector.load %arg5[%c0, %c0_0, %c0_1] : memref<18x18x16xf32, #tpu.memory_space<vmem>>, vector<18x18x16xf32>
    tpu.vector_store %arg5[%c0, %c0_0, %c0_1], %0 {strides = array<i32>} : memref<18x18x16xf32, #tpu.memory_space<vmem>>, vector<18x18x16xf32>,
    %c0_2 = arith.constant 0 : index
    %c0_3 = arith.constant 0 : index
    %c0_4 = arith.constant 0 : index
    %c0_5 = arith.constant 0 : index
    %2 = vector.load %arg1[%c0_2, %c0_3, %c0_4, %c0_5] : memref<1x16x16x16xf32, #tpu.memory_space<vmem>>, vector<1x16x16x16xf32>
    %3 = vector.shape_cast %2 : vector<1x16x16x16xf32> to vector<16x16x16xf32>
    %c1 = arith.constant 1 : index
    %c1_6 = arith.constant 1 : index
    %c0_7 = arith.constant 0 : index
    %4 = vector.load %arg5[%c1, %c1_6, %c0_7] : memref<18x18x16xf32, #tpu.memory_space<vmem>>, vector<16x16x16xf32>
    tpu.vector_store %arg5[%c1, %c1_6, %c0_7], %3 {strides = array<i32>} : memref<18x18x16xf32, #tpu.memory_space<vmem>>, vector<16x16x16xf32>,
    %c0_8 = arith.constant 0 : index
    %c0_9 = arith.constant 0 : index
    %c0_10 = arith.constant 0 : index
    %5 = vector.load %arg5[%c0_8, %c0_9, %c0_10] : memref<18x18x16xf32, #tpu.memory_space<vmem>>, vector<16x16x16xf32>
    %c0_11 = arith.constant 0 : index
    %c1_12 = arith.constant 1 : index
    %c0_13 = arith.constant 0 : index
    %6 = vector.load %arg5[%c0_11, %c1_12, %c0_13] : memref<18x18x16xf32, #tpu.memory_space<vmem>>, vector<16x16x16xf32>
    %c0_14 = arith.constant 0 : index
    %c2 = arith.constant 2 : index
    %c0_15 = arith.constant 0 : index
    %7 = vector.load %arg5[%c0_14, %c2, %c0_15] : memref<18x18x16xf32, #tpu.memory_space<vmem>>, vector<16x16x16xf32>
    %c1_16 = arith.constant 1 : index
    %c0_17 = arith.constant 0 : index
    %c0_18 = arith.constant 0 : index
    %8 = vector.load %arg5[%c1_16, %c0_17, %c0_18] : memref<18x18x16xf32, #tpu.memory_space<vmem>>, vector<16x16x16xf32>
    %c1_19 = arith.constant 1 : index
    %c1_20 = arith.constant 1 : index
    %c0_21 = arith.constant 0 : index
    %9 = vector.load %arg5[%c1_19, %c1_20, %c0_21] : memref<18x18x16xf32, #tpu.memory_space<vmem>>, vector<16x16x16xf32>
    %c1_22 = arith.constant 1 : index
    %c2_23 = arith.constant 2 : index
    %c0_24 = arith.constant 0 : index
    %10 = vector.load %arg5[%c1_22, %c2_23, %c0_24] : memref<18x18x16xf32, #tpu.memory_space<vmem>>, vector<16x16x16xf32>
    %c2_25 = arith.constant 2 : index
    %c0_26 = arith.constant 0 : index
    %c0_27 = arith.constant 0 : index
    %11 = vector.load %arg5[%c2_25, %c0_26, %c0_27] : memref<18x18x16xf32, #tpu.memory_space<vmem>>, vector<16x16x16xf32>
    %c2_28 = arith.constant 2 : index
    %c1_29 = arith.constant 1 : index
    %c0_30 = arith.constant 0 : index
    %12 = vector.load %arg5[%c2_28, %c1_29, %c0_30] : memref<18x18x16xf32, #tpu.memory_space<vmem>>, vector<16x16x16xf32>
    %c2_31 = arith.constant 2 : index
    %c2_32 = arith.constant 2 : index
    %c0_33 = arith.constant 0 : index
    %13 = vector.load %arg5[%c2_31, %c2_32, %c0_33] : memref<18x18x16xf32, #tpu.memory_space<vmem>>, vector<16x16x16xf32>
    %14 = tpu.concatenate %5, %6, %7, %8, %9, %10, %11, %12, %13 in 2 : vector<16x16x16xf32>, vector<16x16x16xf32>, vector<16x16x16xf32>, vector<16x16x16xf32>, vector<16x16x16xf32>, vector<16x16x16xf32>, vector<16x16x16xf32>, vector<16x16x16xf32>, vector<16x16x16xf32> -> vector<16x16x144xf32>
    %15 = vector.shape_cast %14 : vector<16x16x144xf32> to vector<256x144xf32>
    %16 = arith.truncf %15 : vector<256x144xf32> to vector<256x144xbf16>
    %c0_34 = arith.constant 0 : index
    %c0_35 = arith.constant 0 : index
    %17 = vector.load %arg2[%c0_34, %c0_35] : memref<144x3xbf16, #tpu.memory_space<vmem>>, vector<144x3xbf16>
    %cst_36 = arith.constant dense<0.000000e+00> : vector<256x3xf32>
    %18 = tpu.matmul %16, %17, %cst_36 {dimension_numbers = #tpu.dot_dimension_numbers<[1], [0], [0], [1], [0, 0, 1, 1], [], []>} : vector<256x144xbf16>, vector<144x3xbf16>, vector<256x3xf32> -> vector<256x3xf32>
    %c0_37 = arith.constant 0 : index
    %c0_38 = arith.constant 0 : index
    %19 = vector.load %arg3[%c0_37, %c0_38] : memref<1x3xf32, #tpu.memory_space<vmem>>, vector<1x3xf32>
    %20 = vector.broadcast %19 : vector<1x3xf32> to vector<256x3xf32>
    %21 = arith.addf %18, %20 : vector<256x3xf32>
    %22 = vector.shape_cast %21 : vector<256x3xf32> to vector<16x16x3xf32>
    %c0_39 = arith.constant 0 : index
    %c0_40 = arith.constant 0 : index
    %c0_41 = arith.constant 0 : index
    %c0_42 = arith.constant 0 : index
    %23 = vector.load %arg4[%c0_39, %c0_40, %c0_41, %c0_42] : memref<1x16x16x3xf32, #tpu.memory_space<vmem>>, vector<1x16x16x3xf32>
    %24 = vector.shape_cast %23 : vector<1x16x16x3xf32> to vector<16x16x3xf32>
    %25 = vector.shape_cast %22 : vector<16x16x3xf32> to vector<1x16x16x3xf32>
    tpu.vector_store %arg4[%c0_39, %c0_40, %c0_41, %c0_42], %25 {strides = array<i32>} : memref<1x16x16x3xf32, #tpu.memory_space<vmem>>, vector<1x16x16x3xf32>,
    return
  }
  func.func @transform_0(%arg0: i32) -> (i32, i32, i32, i32) {
    %c0_i32 = arith.constant 0 : i32
    %c0_i32_0 = arith.constant 0 : i32
    %c0_i32_1 = arith.constant 0 : i32
    %c0_i32_2 = arith.constant 0 : i32
    return %arg0, %c0_i32, %c0_i32_0, %c0_i32_1 : i32, i32, i32, i32
  }
  func.func @transform_1(%arg0: i32) -> (i32, i32) {
    %c0_i32 = arith.constant 0 : i32
    %c0_i32_0 = arith.constant 0 : i32
    %c0_i32_1 = arith.constant 0 : i32
    return %c0_i32, %c0_i32_0 : i32, i32
  }
  func.func @transform_2(%arg0: i32) -> (i32, i32) {
    %c0_i32 = arith.constant 0 : i32
    %c0_i32_0 = arith.constant 0 : i32
    %c0_i32_1 = arith.constant 0 : i32
    return %c0_i32, %c0_i32_0 : i32, i32
  }
  func.func @transform_3(%arg0: i32) -> (i32, i32, i32, i32) {
    %c0_i32 = arith.constant 0 : i32
    %c0_i32_0 = arith.constant 0 : i32
    %c0_i32_1 = arith.constant 0 : i32
    %c0_i32_2 = arith.constant 0 : i32
    return %arg0, %c0_i32, %c0_i32_0, %c0_i32_1 : i32, i32, i32, i32
  }
}

</mosaic_0001>

<bundles_post_ra>
// kernel: dasr_forward.7
= control target key start
LH: loop header
LB: loop body
LE: loop exit
PB: predicated region body
PF: predicated region fallthrough
CT: control target
= control target key end

     0   :  { %s997_s12 = smov 0   ;;  %s1273_s0 = inlined_call_operand.vmem [shape: f32[2,8,8,3], index: 0, kind: input, shape index: {}]   ;;  %s1274_s1 = inlined_call_operand.vmem [shape: bf16[27,16], index: 1, kind: input, shape index: {}]   ;;  %s1275_s2 = inlined_call_operand.vmem [shape: f32[1,16], index: 2, kind: input, shape index: {}]   ;;  %s1276_s3 = inlined_call_operand.vmem [shape: f32[2,8,8,16], index: 3, kind: output, shape index: {}]  }
   0x1 LB: > { %s747_s13 = sadd.s32 4294967295, %s965_s12   ;;  %p751_p0 = scmp.ge.s32.totalorder %s965_s12, 1  ;;  %s965_s12 = sphi %s997_s12, %s13_s12  }
   0x2   : > { %p137_p1 = scmp.lt.s32.totalorder %s965_s12, 3 }
   0x4   : > { %p138_p2 = pnand %p751_p0, %p137_p1 }
   0x5   : > { %p161_p3 = scmp.lt.s32.totalorder (!%p138_p2), %s747_s13, 1  ;;  %s968_s18 = smov (!%p138_p2), 6  }
   0x6   : > { %141 = sbr.rel (%p138_p2) target bundleno = 375 (0x177), region = 32  ;;  %s969_s19 = smov (!%p138_p2), 3  }
   0x7   : > { %s970_s20 = smov (!%p138_p2), 9   ;;  %s971_s21 = smov (!%p138_p2), 12  }
   0x8   : > { %s972_s22 = smov (!%p138_p2), 15   ;;  %s973_s23 = smov (!%p138_p2), 18  }
   0x9   : > { %s974_s24 = smov (!%p138_p2), 21   ;;  %s975_s25 = smov (!%p138_p2), 24  }
   0xb   : > { %vm172_vm0 = vcmask 23552   ;;  %vm174_vm1 = vcmask 17408   ;;  %v967_v0 = vmov 0.0   ;;  %s1278_s13 = smov (!%p161_p3, %s747_s13), 1  ;;  %vm647_vm2 = vcmask 1044480  }
   0xc   : > { %182 = vst.msk [vmem:[#allocation2 + $0x40] sm:$0xff] %vm172_vm0, %v967_v0  ;;  %s770_s14 = sshll.u32 %s1278_s13, 6  ;;  %vm648_vm3 = vcmask 1045504   ;;  %vm548_vm4 = vcmask 48128   ;;  %vm557_vm5 = vcmask 72704   ;;  %vm566_vm6 = vcmask 97280  }
   0xd   : > { %183 = vst.msk [vmem:[#allocation2 + $0x48] sm:$0x3] %vm174_vm1, %v967_v0  ;;  %s1017_s17 = scalar_lea.vmem %s1273_s0, %s770_s14  ;;  %vm575_vm7 = vcmask 121856   ;;  %vm584_vm8 = vcmask 146432   ;;  %vm593_vm9 = vcmask 171008   ;;  %vm602_vm10 = vcmask 195584   ;;  %s170_s9 = scalar_lea.vmem %s1276_s3, %s770_s14 }
   0xe   : > { %184 = vst.msk [vmem:[#allocation2 + $0x50] sm:$0xff] %vm172_vm0, %v967_v0  ;;  %v197_v1 = vld [vmem:[%s1017_s17 + $0x18] sm:$0xff]  ;;  %v198_v2 = vld [vmem:[%s1017_s17 + $0x20] sm:$0xff]  ;;  %v199_v9 = vld [vmem:[%s1017_s17 + $0x28] sm:$0xff]  ;;  %vm634_vm11 = vcmask 220160   ;;  %vm683_vm12 = vcmask 130048  }
   0xf   : > { %185 = vst.msk [vmem:[#allocation2 + $0x58] sm:$0x3] %vm174_vm1, %v967_v0  ;;  %v200_v10 = vld [vmem:[%s1017_s17 + $0x30] sm:$0xff]  ;;  %v201_v11 = vld [vmem:[%s1017_s17 + $0x38] sm:$0xff]  ;;  %v195_v12 = vld [vmem:[%s1017_s17 + $0x8] sm:$0xff] }
  0x10   : > { %173 = vst.msk [vmem:[#allocation2] sm:$0xff] %vm172_vm0, %v967_v0  ;;  %v196_v13 = vld [vmem:[%s1017_s17 + $0x10] sm:$0xff]  ;;  %v194_v14 = vld [vmem:[%s1017_s17] sm:$0xff] }
  0x11   : > { %175 = vst.msk [vmem:[#allocation2 + $0x8] sm:$0x3] %vm174_vm1, %v967_v0 }
  0x12   : > { %206 = vst.msk [vmem:[#allocation2 + $0x41] sm:$0xff] %vm172_vm0, %v197_v1 }
  0x13   : > { %207 = vst.msk [vmem:[#allocation2 + $0x51] sm:$0xff] %vm172_vm0, %v198_v2 }
  0x14   : > { %176 = vst.msk [vmem:[#allocation2 + $0x10] sm:$0xff] %vm172_vm0, %v967_v0 }
  0x15   : > { %177 = vst.msk [vmem:[#allocation2 + $0x18] sm:$0x3] %vm174_vm1, %v967_v0 }
  0x16   : > { %178 = vst.msk [vmem:[#allocation2 + $0x20] sm:$0xff] %vm172_vm0, %v967_v0 }
  0x17   : > { %179 = vst.msk [vmem:[#allocation2 + $0x28] sm:$0x3] %vm174_vm1, %v967_v0 }
  0x18   : > { %180 = vst.msk [vmem:[#allocation2 + $0x30] sm:$0xff] %vm172_vm0, %v967_v0  ;;  %v219_v34 = vld [vmem:[#allocation2 + $0x1] sm:$0xff] }
  0x19   : > { %v1030_v3 = vld [vmem:[#allocation2 + $0x42] sm:$0xff]  ;;  %181 = vst.msk [vmem:[#allocation2 + $0x38] sm:$0x3] %vm174_vm1, %v967_v0 }
  0x1a   : > { %v1033_v4 = vld [vmem:[#allocation2 + $0x41] sm:$0xff]  ;;  %v232_v5 = vld [vmem:[#allocation2 + $0x52] sm:$0xff]  ;;  %186 = vst.msk [vmem:[#allocation2 + $0x60] sm:$0xff] %vm172_vm0, %v967_v0 }
  0x1b   : > { %v224_v6 = vld [vmem:[#allocation2 + $0x51] sm:$0xff]  ;;  %v1037_v7 = vpack.i.bf16 %v232_v5, %v1030_v3  ;;  %187 = vst.msk [vmem:[#allocation2 + $0x68] sm:$0x3] %vm174_vm1, %v967_v0  ;;  %v227_v42 = vld [vmem:[#allocation2 + $0x2] sm:$0xff] }
  0x1c   : > { %v1041_v8 = vpack.i.bf16 %v224_v6, %v1033_v4  ;;  %188 = vst.msk [vmem:[#allocation2 + $0x70] sm:$0xff] %vm172_vm0, %v967_v0  ;;  %v1064_v15 = vld [vmem:[#allocation2 + $0x50] sm:$0xff]  ;;  %v1098_v55 = vld [vmem:[#allocation2 + $0x40] sm:$0xff] }
  0x1d   : > { %809 = vrot.lane.b32.xlu1 %v1037_v7, %s968_s18  ;;  %189 = vst.msk [vmem:[#allocation2 + $0x78] sm:$0x3] %vm174_vm1, %v967_v0  ;;  %v933_v63 = vpack.i.bf16 %v1064_v15, %v1098_v55 }
  0x1e   : > { %799 = vrot.lane.b32.xlu0 %v1041_v8, %s969_s19  ;;  %190 = vst.msk [vmem:[#allocation2 + $0x80] sm:$0xff] %vm172_vm0, %v967_v0 }
  0x1f   : > { %191 = vst.msk [vmem:[#allocation2 + $0x88] sm:$0x3] %vm174_vm1, %v967_v0 }
  0x20   : > { %192 = vst.msk [vmem:[#allocation2 + $0x90] sm:$0xff] %vm172_vm0, %v967_v0 }
  0x21   : > { %193 = vst.msk [vmem:[#allocation2 + $0x98] sm:$0x3] %vm174_vm1, %v967_v0 }
  0x22   : > { %208 = vst.msk [vmem:[#allocation2 + $0x61] sm:$0xff] %vm172_vm0, %v199_v9  ;;  %v762_v9 = vld [vmem:[%s1274_s1 + $0x8] sm:$0xf] }
  0x23   : > { %209 = vst.msk [vmem:[#allocation2 + $0x71] sm:$0xff] %vm172_vm0, %v200_v10  ;;  %v976_v10 = vmov 65535  }
  0x24   : > { %210 = vst.msk [vmem:[#allocation2 + $0x81] sm:$0xff] %vm172_vm0, %v201_v11  ;;  %v649_v11 = vsel %vm647_vm2, 4294967295, %v976_v10 }
  0x25   : > { %204 = vst.msk [vmem:[#allocation2 + $0x21] sm:$0xff] %vm172_vm0, %v195_v12  ;;  %v650_v12 = vsel %vm648_vm3, %v649_v11, 0 }
  0x26   : > { %205 = vst.msk [vmem:[#allocation2 + $0x31] sm:$0xff] %vm172_vm0, %v196_v13 }
  0x27   : > { %203 = vst.msk [vmem:[#allocation2 + $0x11] sm:$0xff] %vm172_vm0, %v194_v14  ;;  %v267_v35 = vld [vmem:[#allocation2 + $0x90] sm:$0xff] }
  0x28   : > { %v275_v44 = vld [vmem:[#allocation2 + $0x91] sm:$0xff] }
  0x29   : > { %v233_v16 = vld [vmem:[#allocation2 + $0x62] sm:$0xff]  ;;  %v283_v49 = vld [vmem:[#allocation2 + $0x92] sm:$0xff] }
  0x2a   : > { %v225_v17 = vld [vmem:[#allocation2 + $0x61] sm:$0xff]  ;;  %v234_v19 = vld [vmem:[#allocation2 + $0x72] sm:$0xff]  ;;  %v838_v31 = vpack.i.bf16 %v233_v16, %v232_v5 }
  0x2b   : > { %v1067_v18 = vld [vmem:[#allocation2 + $0x60] sm:$0xff]  ;;  %v226_v20 = vld [vmem:[#allocation2 + $0x71] sm:$0xff]  ;;  %v813_v22 = vpack.i.bf16 %v234_v19, %v233_v16  ;;  %v828_v29 = vpack.i.bf16 %v225_v17, %v224_v6 }
  0x2c   : > { %v818_v21 = vpack.i.bf16 %v1067_v18, %v1064_v15  ;;  %v803_v23 = vpack.i.bf16 %v226_v20, %v225_v17  ;;  %v1074_v24 = vld [vmem:[#allocation2 + $0x70] sm:$0xff]  ;;  %v242_v25 = vld [vmem:[#allocation2 + $0x80] sm:$0xff] }
  0x2d   : > { %814 = vrot.lane.b32.xlu1 %v813_v22, %s968_s18  ;;  %v250_v26 = vld [vmem:[#allocation2 + $0x81] sm:$0xff]  ;;  %v823_v27 = vpack.i.bf16 %v242_v25, %v1074_v24  ;;  %v848_v32 = vpack.i.bf16 %v1074_v24, %v1067_v18  ;;  %v222_v37 = vld [vmem:[#allocation2 + $0x31] sm:$0xff]  ;;  %v853_v39 = vpack.i.bf16 %v267_v35, %v242_v25 }
  0x2e   : > { %819 = vrot.lane.b32.xlu2 %v818_v21, %s970_s20  ;;  %804 = vrot.lane.b32.xlu0 %v803_v23, %s969_s19  ;;  %v833_v28 = vpack.i.bf16 %v250_v26, %v226_v20  ;;  %v258_v30 = vld [vmem:[#allocation2 + $0x82] sm:$0xff]  ;;  %v220_v38 = vld [vmem:[#allocation2 + $0x11] sm:$0xff]  ;;  %v873_v46 = vpack.i.bf16 %v275_v44, %v250_v26  ;;  %v913_v59 = vpack.i.bf16 %v1033_v4, %v222_v37 }
  0x2f   : > { %v843_v33 = vpack.i.bf16 %v258_v30, %v234_v19  ;;  %v221_v36 = vld [vmem:[#allocation2 + $0x21] sm:$0xff]  ;;  %v858_v41 = vpack.i.bf16 %v220_v38, %v219_v34  ;;  %v228_v43 = vld [vmem:[#allocation2 + $0x12] sm:$0xff]  ;;  %v893_v51 = vpack.i.bf16 %v283_v49, %v258_v30 }
  0x30   : > { %v863_v40 = vpack.i.bf16 %v222_v37, %v221_v36  ;;  %v878_v45 = vpack.i.bf16 %v228_v43, %v227_v42  ;;  %v229_v47 = vld [vmem:[#allocation2 + $0x22] sm:$0xff]  ;;  %v230_v48 = vld [vmem:[#allocation2 + $0x32] sm:$0xff]  ;;  %v908_v57 = vpack.i.bf16 %v221_v36, %v220_v38 }
  0x31   : > { %v883_v50 = vpack.i.bf16 %v230_v48, %v229_v47  ;;  %v1092_v52 = vld [vmem:[#allocation2 + $0x10] sm:$0xff]  ;;  %v1094_v53 = vld [vmem:[#allocation2 + $0x20] sm:$0xff]  ;;  %v923_v60 = vpack.i.bf16 %v1030_v3, %v230_v48  ;;  %v918_v61 = vpack.i.bf16 %v229_v47, %v228_v43 }
  0x32   : > { %v1096_v54 = vld [vmem:[#allocation2 + $0x30] sm:$0xff]  ;;  %v898_v56 = vpack.i.bf16 %v1094_v53, %v1092_v52  ;;  %v772_v19 = vld [vmem:[%s1274_s1] sm:$0xff] }
  0x33   : > { %v903_v58 = vpack.i.bf16 %v1098_v55, %v1096_v54  ;;  %v928_v62 = vpack.i.bf16 %v1096_v54, %v1094_v53 }
  0x35   : > { %834 = vrot.lane.b32.xlu1 %v833_v28, %s971_s21 }
  0x36   : > { %824 = vrot.lane.b32.xlu2 %v823_v27, %s970_s20  ;;  %829 = vrot.lane.b32.xlu0 %v828_v29, %s971_s21 }
  0x3d   : > { %849 = vrot.lane.b32.xlu1 %v848_v32, %s973_s23 }
  0x3e   : > { %839 = vrot.lane.b32.xlu2 %v838_v31, %s972_s22  ;;  %844 = vrot.lane.b32.xlu0 %v843_v33, %s972_s22 }
  0x45   : > { %864 = vrot.lane.b32.xlu1 %v863_v40, %s969_s19 }
  0x46   : > { %854 = vrot.lane.b32.xlu2 %v853_v39, %s973_s23  ;;  %859 = vrot.lane.b32.xlu0 %v858_v41, %s969_s19 }
  0x4d   : > { %879 = vrot.lane.b32.xlu1 %v878_v45, %s968_s18 }
  0x4e   : > { %869 = vrot.lane.b32.xlu2 %v803_v23, %s974_s24  ;;  %874 = vrot.lane.b32.xlu0 %v873_v46, %s974_s24 }
  0x55   : > { %894 = vrot.lane.b32.xlu1 %v893_v51, %s975_s25 }
  0x56   : > { %884 = vrot.lane.b32.xlu2 %v883_v50, %s968_s18  ;;  %889 = vrot.lane.b32.xlu0 %v813_v22, %s975_s25 }
  0x5d   : > { %909 = vrot.lane.b32.xlu1 %v908_v57, %s971_s21 }
  0x5e   : > { %899 = vrot.lane.b32.xlu2 %v898_v56, %s970_s20  ;;  %904 = vrot.lane.b32.xlu0 %v903_v58, %s970_s20 }
  0x65   : > { %924 = vrot.lane.b32.xlu1 %v923_v60, %s972_s22 }
  0x66   : > { %914 = vrot.lane.b32.xlu2 %v913_v59, %s971_s21  ;;  %919 = vrot.lane.b32.xlu0 %v918_v61, %s972_s22 }
  0x6d   : > { %939 = vrot.lane.b32.xlu1 %v863_v40, %s974_s24 }
  0x6e   : > { %929 = vrot.lane.b32.xlu2 %v928_v62, %s973_s23  ;;  %934 = vrot.lane.b32.xlu0 %v933_v63, %s973_s23 }
  0x75   : > { %954 = vrot.lane.b32.xlu1 %v1037_v7, %s975_s25 }
  0x76   : > { %944 = vrot.lane.b32.xlu2 %v1041_v8, %s974_s24  ;;  %949 = vrot.lane.b32.xlu0 %v883_v50, %s975_s25  ;;  %v773_v8 = vld [vmem:[%s1274_s1 + $0x8] sm:$0x30] }
  0x77   : > { %v763_v7 = vor.u32 %v773_v8, %v762_v9 }
  0x79   : > { %v652_v13 = vand.u32 %v763_v7, %v650_v12 }
  0x7b   : > { %775 = vmatpush.bf16.msra.mxu2 %v652_v13  ;;  %776 = vmatpush.bf16.msra.mxu3 %v652_v13 }
  0x7c   : > { %660 = vmatpush.bf16.msra.mxu0 %v652_v13  ;;  %774 = vmatpush.bf16.msra.mxu1 %v652_v13 }
  0x7f   : > { %778 = vmatpush.bf16.msra.mxu2 %v772_v19  ;;  %779 = vmatpush.bf16.msra.mxu3 %v772_v19 }
  0x80   : > { %661 = vmatpush.bf16.msra.mxu0 %v772_v19  ;;  %777 = vmatpush.bf16.msra.mxu1 %v772_v19 }
  0x88   : > { %v1122_v0 = vpop.permute.xlu2 %819 }
  0x89   : > { %v822_v39 = vunpack.i.h.bf16 %v1122_v0  ;;  %v821_v40 = vunpack.i.l.bf16 %v1122_v0 }
  0x8f   : > { %v810_v2 = vpop.permute.xlu1 %809 }
  0x90   : > { %v1124_v1 = vpop.permute.xlu2 %824  ;;  %v800_v3 = vpop.permute.xlu0 %799  ;;  %v812_v30 = vunpack.i.h.bf16 %v810_v2  ;;  %v811_v31 = vunpack.i.l.bf16 %v810_v2 }
  0x91   : > { %v802_v23 = vunpack.i.h.bf16 %v800_v3  ;;  %v801_v25 = vunpack.i.l.bf16 %v800_v3  ;;  %v827_v42 = vunpack.i.h.bf16 %v1124_v1  ;;  %v826_v43 = vunpack.i.l.bf16 %v1124_v1 }
  0x93   : > { %v545_v32 = vsel %vm172_vm0, %v1064_v15, %v802_v23  ;;  %v544_v33 = vsel %vm172_vm0, %v1098_v55, %v801_v25 }
  0x94   : > { %v554_v15 = vsel %vm548_vm4, %v545_v32, %v812_v30  ;;  %v553_v41 = vsel %vm548_vm4, %v544_v33, %v811_v31 }
  0x95   : > { %v562_v50 = vsel %vm557_vm5, %v553_v41, %v821_v40  ;;  %v563_v51 = vsel %vm557_vm5, %v554_v15, %v822_v39 }
  0x98   : > { %v1126_v4 = vpop.permute.xlu2 %839 }
  0x99   : > { %v842_v57 = vunpack.i.h.bf16 %v1126_v4  ;;  %v841_v58 = vunpack.i.l.bf16 %v1126_v4 }
  0x9f   : > { %v815_v5 = vpop.permute.xlu1 %814 }
  0xa0   : > { %v805_v6 = vpop.permute.xlu0 %804  ;;  %v1134_v14 = vpop.permute.xlu2 %854  ;;  %v817_v34 = vunpack.i.h.bf16 %v815_v5  ;;  %v816_v35 = vunpack.i.l.bf16 %v815_v5 }
  0xa1   : > { %v807_v26 = vunpack.i.h.bf16 %v805_v6  ;;  %v806_v27 = vunpack.i.l.bf16 %v805_v6  ;;  %v857_v3 = vunpack.i.h.bf16 %v1134_v14  ;;  %v856_v4 = vunpack.i.l.bf16 %v1134_v14 }
  0xa3   : > { %v547_v37 = vsel %vm172_vm0, %v1074_v24, %v807_v26  ;;  %v546_v38 = vsel %vm172_vm0, %v1067_v18, %v806_v27 }
  0xa4   : > { %v556_v44 = vsel %vm548_vm4, %v547_v37, %v817_v34  ;;  %v555_v24 = vsel %vm548_vm4, %v546_v38, %v816_v35 }
  0xa5   : > { %v564_v59 = vsel %vm557_vm5, %v555_v24, %v826_v43  ;;  %v565_v60 = vsel %vm557_vm5, %v556_v44, %v827_v42 }
  0xa7   : > { %v1136_v16 = vpop.permute.xlu1 %834 }
  0xa8   : > { %v830_v17 = vpop.permute.xlu0 %829  ;;  %v1143_v22 = vpop.permute.xlu2 %869  ;;  %v837_v46 = vunpack.i.h.bf16 %v1136_v16  ;;  %v836_v47 = vunpack.i.l.bf16 %v1136_v16 }
  0xa9   : > { %v832_v45 = vunpack.i.h.bf16 %v830_v17  ;;  %v831_v18 = vunpack.i.l.bf16 %v830_v17  ;;  %v872_v9 = vunpack.i.h.bf16 %v1143_v22  ;;  %v871_v8 = vunpack.i.l.bf16 %v1143_v22 }
  0xaa   : > { %v573_v1 = vsel %vm566_vm6, %v564_v59, %v836_v47  ;;  %v574_v2 = vsel %vm566_vm6, %v565_v60, %v837_v46  ;;  %v211_v47 = vld [vmem:[#allocation2] sm:$0xff] }
  0xab   : > { %v571_v61 = vsel %vm566_vm6, %v562_v50, %v831_v18  ;;  %v572_v62 = vsel %vm566_vm6, %v563_v51, %v832_v45 }
  0xac   : > { %v580_v10 = vsel %vm575_vm7, %v571_v61, %v841_v58  ;;  %v581_v11 = vsel %vm575_vm7, %v572_v62, %v842_v57 }
  0xaf   : > { %v1141_v20 = vpop.permute.xlu1 %849 }
  0xb0   : > { %v845_v21 = vpop.permute.xlu0 %844  ;;  %v1153_v36 = vpop.permute.xlu2 %884  ;;  %v852_v63 = vunpack.i.h.bf16 %v1141_v20  ;;  %v851_v0 = vunpack.i.l.bf16 %v1141_v20 }
  0xb1   : > { %v847_v55 = vunpack.i.h.bf16 %v845_v21  ;;  %v846_v56 = vunpack.i.l.bf16 %v845_v21  ;;  %v887_v51 = vunpack.i.h.bf16 %v1153_v36 }
  0xb2   : > { %v589_v16 = vsel %vm584_vm8, %v580_v10, %v851_v0  ;;  %v590_v14 = vsel %vm584_vm8, %v581_v11, %v852_v63 }
  0xb3   : > { %v582_v5 = vsel %vm575_vm7, %v573_v1, %v846_v56  ;;  %v583_v6 = vsel %vm575_vm7, %v574_v2, %v847_v55  ;;  %v598_v27 = vsel %vm593_vm9, %v589_v16, %v871_v8  ;;  %v599_v30 = vsel %vm593_vm9, %v590_v14, %v872_v9 }
  0xb4   : > { %v591_v17 = vsel %vm584_vm8, %v582_v5, %v856_v4  ;;  %v592_v19 = vsel %vm584_vm8, %v583_v6, %v857_v3  ;;  %v886_v55 = vunpack.i.l.bf16 %v1153_v36 }
  0xb7   : > { %v1145_v28 = vpop.permute.xlu1 %864 }
  0xb8   : > { %v1147_v29 = vpop.permute.xlu0 %859  ;;  %v1189_v7 = vpop.permute.xlu2 %899  ;;  %v867_v43 = vunpack.i.h.bf16 %v1145_v28  ;;  %v866_v44 = vunpack.i.l.bf16 %v1145_v28 }
  0xb9   : > { %v862_v18 = vunpack.i.h.bf16 %v1147_v29  ;;  %v861_v46 = vunpack.i.l.bf16 %v1147_v29  ;;  %v902_v58 = vunpack.i.h.bf16 %v1189_v7  ;;  %v901_v59 = vunpack.i.l.bf16 %v1189_v7 }
  0xba   : > { %v543_v56 = vsel %vm172_vm0, %v1096_v54, %v867_v43  ;;  %v542_v28 = vsel %vm172_vm0, %v1094_v53, %v866_v44 }
  0xbb   : > { %v540_v57 = vsel %vm172_vm0, %v211_v47, %v861_v46  ;;  %v541_v29 = vsel %vm172_vm0, %v1092_v52, %v862_v18  ;;  %v551_v54 = vsel %vm548_vm4, %v542_v28, %v886_v55  ;;  %v552_v62 = vsel %vm548_vm4, %v543_v56, %v887_v51  ;;  %v958_v55 = vld [vmem:[%s1275_s2] ss:$0 sm:$0xff] }
  0xbf   : > { %v1169_v48 = vpop.permute.xlu1 %879 }
  0xc0   : > { %v875_v49 = vpop.permute.xlu0 %874  ;;  %v915_v40 = vpop.permute.xlu2 %914  ;;  %v881_v50 = vunpack.i.l.bf16 %v1169_v48 }
  0xc1   : > { %v877_v12 = vunpack.i.h.bf16 %v875_v49  ;;  %v876_v13 = vunpack.i.l.bf16 %v875_v49  ;;  %v882_v49 = vunpack.i.h.bf16 %v1169_v48  ;;  %v917_v0 = vunpack.i.h.bf16 %v915_v40 }
  0xc2   : > { %v549_v48 = vsel %vm548_vm4, %v540_v57, %v881_v50  ;;  %v916_v1 = vunpack.i.l.bf16 %v915_v40 }
  0xc3   : > { %v601_v31 = vsel %vm593_vm9, %v592_v19, %v877_v12  ;;  %v600_v32 = vsel %vm593_vm9, %v591_v17, %v876_v13  ;;  %v550_v60 = vsel %vm548_vm4, %v541_v29, %v882_v49  ;;  %v558_v3 = vsel %vm557_vm5, %v549_v48, %v901_v59 }
  0xc4   : > { %v559_v4 = vsel %vm557_vm5, %v550_v60, %v902_v58 }
  0xc7   : > { %v895_v20 = vpop.permute.xlu1 %894 }
  0xc8   : > { %v890_v21 = vpop.permute.xlu0 %889  ;;  %v897_v22 = vunpack.i.h.bf16 %v895_v20  ;;  %v896_v23 = vunpack.i.l.bf16 %v895_v20  ;;  %v930_v42 = vpop.permute.xlu2 %929 }
  0xc9   : > { %v892_v25 = vunpack.i.h.bf16 %v890_v21  ;;  %v891_v26 = vunpack.i.l.bf16 %v890_v21  ;;  %v932_v12 = vunpack.i.h.bf16 %v930_v42  ;;  %v931_v13 = vunpack.i.l.bf16 %v930_v42 }
  0xca   : > { %v609_v35 = vsel %vm602_vm10, %v600_v32, %v896_v23  ;;  %v610_v37 = vsel %vm602_vm10, %v601_v31, %v897_v22 }
  0xcb   : > { %v607_v33 = vsel %vm602_vm10, %v598_v27, %v891_v26  ;;  %v608_v34 = vsel %vm602_vm10, %v599_v30, %v892_v25  ;;  %v614_v39 = vpack.c.bf16 %v610_v37, %v609_v35 }
  0xcc   : > { %v613_v38 = vpack.c.bf16 %v608_v34, %v607_v33 }
  0xcd   : > { %767 = vmatmul.msk.bf16.vlgmr.msra.gmra.mxu3 %vm634_vm11, %v614_v39 }
  0xce   : > { %766 = vmatmul.msk.bf16.vlgmr.msra.gmra.mxu2 %vm634_vm11, %v613_v38 }
  0xcf   : > { %v910_v15 = vpop.permute.xlu1 %909 }
  0xd0   : > { %v905_v41 = vpop.permute.xlu0 %904  ;;  %v912_v53 = vunpack.i.h.bf16 %v910_v15  ;;  %v911_v63 = vunpack.i.l.bf16 %v910_v15  ;;  %v945_v9 = vpop.permute.xlu2 %944 }
  0xd1   : > { %v907_v36 = vunpack.i.h.bf16 %v905_v41  ;;  %v906_v61 = vunpack.i.l.bf16 %v905_v41  ;;  %v947_v20 = vunpack.i.h.bf16 %v945_v9  ;;  %v946_v21 = vunpack.i.l.bf16 %v945_v9 }
  0xd2   : > { %v567_v17 = vsel %vm566_vm6, %v558_v3, %v911_v63  ;;  %v568_v19 = vsel %vm566_vm6, %v559_v4, %v912_v53 }
  0xd3   : > { %v561_v8 = vsel %vm557_vm5, %v552_v62, %v907_v36  ;;  %v560_v7 = vsel %vm557_vm5, %v551_v54, %v906_v61 }
  0xd4   : > { %v569_v22 = vsel %vm566_vm6, %v560_v7, %v916_v1  ;;  %v570_v23 = vsel %vm566_vm6, %v561_v8, %v917_v0 }
  0xd7   : > { %v925_v24 = vpop.permute.xlu1 %924 }
  0xd8   : > { %v920_v45 = vpop.permute.xlu0 %919  ;;  %v927_v10 = vunpack.i.h.bf16 %v925_v24  ;;  %v926_v11 = vunpack.i.l.bf16 %v925_v24 }
  0xd9   : > { %v922_v5 = vunpack.i.h.bf16 %v920_v45  ;;  %v921_v6 = vunpack.i.l.bf16 %v920_v45 }
  0xda   : > { %v578_v27 = vsel %vm575_vm7, %v569_v22, %v926_v11  ;;  %v579_v30 = vsel %vm575_vm7, %v570_v23, %v927_v10 }
  0xdb   : > { %v576_v25 = vsel %vm575_vm7, %v567_v17, %v921_v6  ;;  %v577_v26 = vsel %vm575_vm7, %v568_v19, %v922_v5 }
  0xdc   : > { %v585_v35 = vsel %vm584_vm8, %v576_v25, %v931_v13  ;;  %v586_v37 = vsel %vm584_vm8, %v577_v26, %v932_v12 }
  0xdf   : > { %v940_v2 = vpop.permute.xlu1 %939 }
  0xe0   : > { %v935_v52 = vpop.permute.xlu0 %934  ;;  %v942_v31 = vunpack.i.h.bf16 %v940_v2  ;;  %v941_v32 = vunpack.i.l.bf16 %v940_v2 }
  0xe1   : > { %v937_v16 = vunpack.i.h.bf16 %v935_v52  ;;  %v936_v14 = vunpack.i.l.bf16 %v935_v52 }
  0xe2   : > { %v594_v43 = vsel %vm593_vm9, %v585_v35, %v941_v32  ;;  %v595_v44 = vsel %vm593_vm9, %v586_v37, %v942_v31 }
  0xe3   : > { %v587_v33 = vsel %vm584_vm8, %v578_v27, %v936_v14  ;;  %v588_v34 = vsel %vm584_vm8, %v579_v30, %v937_v16 }
  0xe4   : > { %v596_v24 = vsel %vm593_vm9, %v587_v33, %v946_v21  ;;  %v597_v45 = vsel %vm593_vm9, %v588_v34, %v947_v20 }
  0xe7   : > { %v955_v38 = vpop.permute.xlu1 %954 }
  0xe8   : > { %v950_v39 = vpop.permute.xlu0 %949  ;;  %v957_v40 = vunpack.i.h.bf16 %v955_v38  ;;  %v956_v15 = vunpack.i.l.bf16 %v955_v38 }
  0xe9   : > { %v952_v41 = vunpack.i.h.bf16 %v950_v39  ;;  %v951_v42 = vunpack.i.l.bf16 %v950_v39 }
  0xea   : > { %v605_v47 = vsel %vm602_vm10, %v596_v24, %v956_v15  ;;  %v606_v49 = vsel %vm602_vm10, %v597_v45, %v957_v40 }
  0xeb   : > { %v603_v18 = vsel %vm602_vm10, %v594_v43, %v951_v42  ;;  %v604_v46 = vsel %vm602_vm10, %v595_v44, %v952_v41  ;;  %v612_v51 = vpack.c.bf16 %v606_v49, %v605_v47 }
  0xec   : > { %v611_v50 = vpack.c.bf16 %v604_v46, %v603_v18 }
  0xed   : > { %765 = vmatmul.msk.bf16.vlgmr.msra.gmra.mxu1 %vm634_vm11, %v612_v51 }
  0xee   : > { %764 = vmatmul.msk.bf16.vlgmr.msra.gmra.mxu0 %vm634_vm11, %v611_v50 }
 0x150   : > { %v678_v28 = vpop.f32.mrf.mxu3 }
 0x151   : > { %v673_v56 = vpop.f32.mrf.mxu2  ;;  %v679_v29 = vadd.f32 %v958_v55, %v678_v28 }
 0x152   : > { %v674_v57 = vadd.f32 %v958_v55, %v673_v56 }
 0x153   : > { %690 = vst.msk [vmem:[%s170_s9 + $0x30] sm:$0xff] %vm683_vm12, %v679_v29 }
 0x154   : > { %688 = vst.msk [vmem:[%s170_s9 + $0x20] sm:$0xff] %vm683_vm12, %v674_v57 }
 0x158   : > { %v680_v59 = vpop.f32.mrf.mxu3 }
 0x159   : > { %v675_v58 = vpop.f32.mrf.mxu2  ;;  %v681_v60 = vadd.f32 %v958_v55, %v680_v59 }
 0x15a   : > { %v676_v48 = vadd.f32 %v958_v55, %v675_v58 }
 0x15b   : > { %691 = vst.msk [vmem:[%s170_s9 + $0x38] sm:$0xff] %vm683_vm12, %v681_v60 }
 0x15c   : > { %689 = vst.msk [vmem:[%s170_s9 + $0x28] sm:$0xff] %vm683_vm12, %v676_v48 }
 0x16a   : > { %v668_v61 = vpop.f32.mrf.mxu1 }
 0x16b   : > { %v663_v36 = vpop.f32.mrf.mxu0  ;;  %v669_v62 = vadd.f32 %v958_v55, %v668_v61 }
 0x16c   : > { %v664_v54 = vadd.f32 %v958_v55, %v663_v36 }
 0x16d   : > { %686 = vst.msk [vmem:[%s170_s9 + $0x10] sm:$0xff] %vm683_vm12, %v669_v62 }
 0x16e   : > { %684 = vst.msk [vmem:[%s170_s9] sm:$0xff] %vm683_vm12, %v664_v54 }
 0x172   : > { %v670_v63 = vpop.f32.mrf.mxu1 }
 0x173   : > { %v665_v53 = vpop.f32.mrf.mxu0  ;;  %v671_v1 = vadd.f32 %v958_v55, %v670_v63 }
 0x174   : > { %v666_v0 = vadd.f32 %v958_v55, %v665_v53 }
 0x175   : > { %687 = vst.msk [vmem:[%s170_s9 + $0x18] sm:$0xff] %vm683_vm12, %v671_v1 }
 0x176   : > { %685 = vst.msk [vmem:[%s170_s9 + $0x8] sm:$0xff] %vm683_vm12, %v666_v0 }
 0x177 PF: > { %s13_s12 = sadd.s32 1, %s965_s12  }
 0x178   : > { %p10_p4 = scmp.ge.s32.totalorder %s13_s12, 4  }
 0x17a   :  { %12 = sbr.rel (!%p10_p4) target bundleno = 1 (0x1), region = 64 }

// kernel: dasr_forward.6
= control target key start
LH: loop header
LB: loop body
LE: loop exit
PB: predicated region body
PF: predicated region fallthrough
CT: control target
= control target key end

     0   :  { %s1113_s27 = smov 0   ;;  %s1334_s0 = inlined_call_operand.vmem [shape: f32[8,512], index: 0, kind: input, shape index: {}]   ;;  %s1335_s1 = inlined_call_operand.vmem [shape: f32[2,512,16], index: 1, kind: input, shape index: {}]   ;;  %s1336_s2 = inlined_call_operand.vmem [shape: f32[2,16,2], index: 2, kind: input, shape index: {}]   ;;  %s1337_s3 = inlined_call_operand.vmem [shape: f32[2,2,144], index: 3, kind: input, shape index: {}]   ;;  %s1338_s4 = inlined_call_operand.vmem [shape: f32[2,512,16], index: 4, kind: input, shape index: {}]   ;;  %s1339_s5 = inlined_call_operand.vmem [shape: f32[2,16,2], index: 5, kind: input, shape index: {}]   ;;  %s1340_s6 = inlined_call_operand.vmem [shape: f32[2,2,16], index: 6, kind: input, shape index: {}]   ;;  %s1341_s7 = inlined_call_operand.vmem [shape: f32[2,8,144], index: 7, kind: output, shape index: {0}]   ;;  %s1342_s8 = inlined_call_operand.vmem [shape: f32[2,8,16], index: 8, kind: output, shape index: {1}]  }
   0x1 LB: > { %s1012_s28 = sadd.s32 4294967295, %s1066_s27   ;;  %p1016_p0 = scmp.ge.s32.totalorder %s1066_s27, 1  ;;  %s1066_s27 = sphi %s1113_s27, %s19_s27  }
   0x2   : > { %p314_p1 = scmp.lt.s32.totalorder %s1066_s27, 3 }
   0x4   : > { %p315_p2 = pnand %p1016_p0, %p314_p1 }
   0x5   : > { %p376_p3 = scmp.lt.s32.totalorder (!%p315_p2), %s1012_s28, 1 }
   0x6   : > { %318 = sbr.rel (%p315_p2) target bundleno = 744 (0x2e8), region = 48 }
   0xb   : > { %s1344_s28 = smov (!%p376_p3, %s1012_s28), 1  ;;  %v1199_v62 = vld [vmem:[%s1334_s0 + $0x10] sm:$0xff]  ;;  %v1204_v63 = vld [vmem:[%s1334_s0 + $0x18] sm:$0xff]  ;;  %vm600_vm0 = vcmask 1041408   ;;  %vm564_vm1 = vcmask 130048   ;;  %vm596_vm3 = vcmask 15360  }
   0xc   : > { %s1042_s29 = sshll.u32 %s1344_s28, 9  ;;  %s1190_s11 = sshll.u32 %s1344_s28, 4 }
   0xd   : > { %s1129_s10 = scalar_lea.vmem %s1335_s1, %s1042_s29  ;;  %s385_s18 = scalar_lea.vmem %s1336_s2, %s1190_s11 }
   0xe   : > { %v465_v0 = vld [vmem:[%s1129_s10 + $0x178] sm:$0xff]  ;;  %v464_v1 = vld [vmem:[%s1129_s10 + $0x170] sm:$0xff]  ;;  %v463_v5 = vld [vmem:[%s1129_s10 + $0x168] sm:$0xff]  ;;  %s1044_s23 = sshll.u32 %s1344_s28, 2  ;;  %s1232_s26 = scalar_lea.vmem %s1338_s4, %s1042_s29 }
   0xf   : > { %v481_v2 = vld [vmem:[%s1129_s10 + $0x1f8] sm:$0xff]  ;;  %522 = vmatpush.msra.mxu2 %v465_v0  ;;  %v480_v6 = vld [vmem:[%s1129_s10 + $0x1f0] sm:$0xff]  ;;  %v479_v9 = vld [vmem:[%s1129_s10 + $0x1e8] sm:$0xff]  ;;  %s400_s13 = scalar_lea.vmem %s1339_s5, %s1190_s11  ;;  %s1027_s14 = sshll.u32 %s1344_s28, 1 }
  0x10   : > { %542 = vmatpush.msra.mxu3 %v481_v2  ;;  %v433_v3 = vld [vmem:[%s1129_s10 + $0x78] sm:$0xff]  ;;  %v432_v7 = vld [vmem:[%s1129_s10 + $0x70] sm:$0xff]  ;;  %v431_v10 = vld [vmem:[%s1129_s10 + $0x68] sm:$0xff]  ;;  %s404_s17 = scalar_lea.vmem %s1340_s6, %s1027_s14  ;;  %s409_s20 = scalar_lea.vmem %s1341_s7, %s1190_s11 }
  0x11   : > { %v449_v4 = vld [vmem:[%s1129_s10 + $0xf8] sm:$0xff]  ;;  %482 = vmatpush.msra.mxu0 %v433_v3  ;;  %v448_v8 = vld [vmem:[%s1129_s10 + $0xf0] sm:$0xff]  ;;  %523 = vmatpush.msra.mxu2 %v464_v1  ;;  %v462_v11 = vld [vmem:[%s1129_s10 + $0x160] sm:$0xff]  ;;  %s1030_s11 = sshll.u32 %s1344_s28, 3 }
  0x12   : > { %502 = vmatpush.msra.mxu1 %v449_v4  ;;  %543 = vmatpush.msra.mxu3 %v480_v6  ;;  %v447_v12 = vld [vmem:[%s1129_s10 + $0xe8] sm:$0xff]  ;;  %v478_v13 = vld [vmem:[%s1129_s10 + $0x1e0] sm:$0xff]  ;;  %v461_v16 = vld [vmem:[%s1129_s10 + $0x158] sm:$0xff] }
  0x13   : > { %483 = vmatpush.msra.mxu0 %v432_v7  ;;  %524 = vmatpush.msra.mxu2 %v463_v5  ;;  %v430_v14 = vld [vmem:[%s1129_s10 + $0x60] sm:$0xff]  ;;  %v477_v17 = vld [vmem:[%s1129_s10 + $0x1d8] sm:$0xff]  ;;  %v460_v20 = vld [vmem:[%s1129_s10 + $0x150] sm:$0xff] }
  0x14   : > { %503 = vmatpush.msra.mxu1 %v448_v8  ;;  %544 = vmatpush.msra.mxu3 %v479_v9  ;;  %v446_v15 = vld [vmem:[%s1129_s10 + $0xe0] sm:$0xff]  ;;  %v429_v18 = vld [vmem:[%s1129_s10 + $0x58] sm:$0xff]  ;;  %v476_v21 = vld [vmem:[%s1129_s10 + $0x1d0] sm:$0xff] }
  0x15   : > { %484 = vmatpush.msra.mxu0 %v431_v10  ;;  %525 = vmatpush.msra.mxu2 %v462_v11  ;;  %v445_v19 = vld [vmem:[%s1129_s10 + $0xd8] sm:$0xff]  ;;  %v428_v22 = vld [vmem:[%s1129_s10 + $0x50] sm:$0xff]  ;;  %v459_v24 = vld [vmem:[%s1129_s10 + $0x148] sm:$0xff] }
  0x16   : > { %504 = vmatpush.msra.mxu1 %v447_v12  ;;  %545 = vmatpush.msra.mxu3 %v478_v13  ;;  %v444_v23 = vld [vmem:[%s1129_s10 + $0xd0] sm:$0xff]  ;;  %v475_v25 = vld [vmem:[%s1129_s10 + $0x1c8] sm:$0xff]  ;;  %v458_v28 = vld [vmem:[%s1129_s10 + $0x140] sm:$0xff] }
  0x17   : > { %485 = vmatpush.msra.mxu0 %v430_v14  ;;  %526 = vmatpush.msra.mxu2 %v461_v16  ;;  %v427_v26 = vld [vmem:[%s1129_s10 + $0x48] sm:$0xff]  ;;  %v474_v29 = vld [vmem:[%s1129_s10 + $0x1c0] sm:$0xff]  ;;  %v457_v32 = vld [vmem:[%s1129_s10 + $0x138] sm:$0xff] }
  0x18   : > { %505 = vmatpush.msra.mxu1 %v446_v15  ;;  %546 = vmatpush.msra.mxu3 %v477_v17  ;;  %v443_v27 = vld [vmem:[%s1129_s10 + $0xc8] sm:$0xff]  ;;  %v426_v30 = vld [vmem:[%s1129_s10 + $0x40] sm:$0xff]  ;;  %v473_v33 = vld [vmem:[%s1129_s10 + $0x1b8] sm:$0xff] }
  0x19   : > { %486 = vmatpush.msra.mxu0 %v429_v18  ;;  %527 = vmatpush.msra.mxu2 %v460_v20  ;;  %v442_v31 = vld [vmem:[%s1129_s10 + $0xc0] sm:$0xff]  ;;  %v425_v34 = vld [vmem:[%s1129_s10 + $0x38] sm:$0xff]  ;;  %v456_v36 = vld [vmem:[%s1129_s10 + $0x130] sm:$0xff] }
  0x1a   : > { %506 = vmatpush.msra.mxu1 %v445_v19  ;;  %547 = vmatpush.msra.mxu3 %v476_v21  ;;  %v441_v35 = vld [vmem:[%s1129_s10 + $0xb8] sm:$0xff]  ;;  %v472_v37 = vld [vmem:[%s1129_s10 + $0x1b0] sm:$0xff]  ;;  %v455_v40 = vld [vmem:[%s1129_s10 + $0x128] sm:$0xff] }
  0x1b   : > { %487 = vmatpush.msra.mxu0 %v428_v22  ;;  %528 = vmatpush.msra.mxu2 %v459_v24  ;;  %v424_v38 = vld [vmem:[%s1129_s10 + $0x30] sm:$0xff]  ;;  %v471_v41 = vld [vmem:[%s1129_s10 + $0x1a8] sm:$0xff]  ;;  %v454_v44 = vld [vmem:[%s1129_s10 + $0x120] sm:$0xff] }
  0x1c   : > { %507 = vmatpush.msra.mxu1 %v444_v23  ;;  %548 = vmatpush.msra.mxu3 %v475_v25  ;;  %v440_v39 = vld [vmem:[%s1129_s10 + $0xb0] sm:$0xff]  ;;  %v423_v42 = vld [vmem:[%s1129_s10 + $0x28] sm:$0xff]  ;;  %v470_v45 = vld [vmem:[%s1129_s10 + $0x1a0] sm:$0xff] }
  0x1d   : > { %488 = vmatpush.msra.mxu0 %v427_v26  ;;  %529 = vmatpush.msra.mxu2 %v458_v28  ;;  %v439_v43 = vld [vmem:[%s1129_s10 + $0xa8] sm:$0xff]  ;;  %v422_v46 = vld [vmem:[%s1129_s10 + $0x20] sm:$0xff]  ;;  %v453_v48 = vld [vmem:[%s1129_s10 + $0x118] sm:$0xff] }
  0x1e   : > { %508 = vmatpush.msra.mxu1 %v443_v27  ;;  %549 = vmatpush.msra.mxu3 %v474_v29  ;;  %v438_v47 = vld [vmem:[%s1129_s10 + $0xa0] sm:$0xff]  ;;  %v469_v49 = vld [vmem:[%s1129_s10 + $0x198] sm:$0xff]  ;;  %v452_v52 = vld [vmem:[%s1129_s10 + $0x110] sm:$0xff] }
  0x1f   : > { %489 = vmatpush.msra.mxu0 %v426_v30  ;;  %530 = vmatpush.msra.mxu2 %v457_v32  ;;  %v421_v50 = vld [vmem:[%s1129_s10 + $0x18] sm:$0xff]  ;;  %v468_v53 = vld [vmem:[%s1129_s10 + $0x190] sm:$0xff]  ;;  %v451_v56 = vld [vmem:[%s1129_s10 + $0x108] sm:$0xff] }
  0x20   : > { %509 = vmatpush.msra.mxu1 %v442_v31  ;;  %550 = vmatpush.msra.mxu3 %v473_v33  ;;  %v437_v51 = vld [vmem:[%s1129_s10 + $0x98] sm:$0xff]  ;;  %v420_v54 = vld [vmem:[%s1129_s10 + $0x10] sm:$0xff]  ;;  %v467_v57 = vld [vmem:[%s1129_s10 + $0x188] sm:$0xff] }
  0x21   : > { %490 = vmatpush.msra.mxu0 %v425_v34  ;;  %531 = vmatpush.msra.mxu2 %v456_v36  ;;  %v436_v55 = vld [vmem:[%s1129_s10 + $0x90] sm:$0xff]  ;;  %v419_v58 = vld [vmem:[%s1129_s10 + $0x8] sm:$0xff]  ;;  %v450_v60 = vld [vmem:[%s1129_s10 + $0x100] sm:$0xff] }
  0x22   : > { %510 = vmatpush.msra.mxu1 %v441_v35  ;;  %551 = vmatpush.msra.mxu3 %v472_v37  ;;  %v435_v59 = vld [vmem:[%s1129_s10 + $0x88] sm:$0xff]  ;;  %v466_v61 = vld [vmem:[%s1129_s10 + $0x180] sm:$0xff]  ;;  %v662_v6 = vld [vmem:[%s1232_s26 + $0x78] sm:$0xff] }
  0x23   : > { %491 = vmatpush.msra.mxu0 %v424_v38  ;;  %532 = vmatpush.msra.mxu2 %v455_v40  ;;  %v418_v0 = vld [vmem:[%s1129_s10] sm:$0xff]  ;;  %v1220_v3 = vld [vmem:[%s1334_s0 + $0x8] sm:$0xff]  ;;  %v661_v7 = vld [vmem:[%s1232_s26 + $0x70] sm:$0xff] }
  0x24   : > { %511 = vmatpush.msra.mxu1 %v440_v39  ;;  %552 = vmatpush.msra.mxu3 %v471_v41  ;;  %v434_v1 = vld [vmem:[%s1129_s10 + $0x80] sm:$0xff]  ;;  %v563_v4 = vld [vmem:[%s385_s18 + $0x8] sm:$0xff]  ;;  %s390_s10 = scalar_lea.vmem %s1337_s3, %s1044_s23  ;;  %v678_v10 = vld [vmem:[%s1232_s26 + $0xf8] sm:$0xff]  ;;  %s413_s23 = scalar_lea.vmem %s1342_s8, %s1030_s11 }
  0x25   : > { %492 = vmatpush.msra.mxu0 %v423_v42  ;;  %533 = vmatpush.msra.mxu2 %v454_v44  ;;  %v1215_v2 = vld [vmem:[%s1334_s0] sm:$0xff]  ;;  %v660_v9 = vld [vmem:[%s1232_s26 + $0x68] sm:$0xff]  ;;  %v677_v11 = vld [vmem:[%s1232_s26 + $0xf0] sm:$0xff] }
  0x26   : > { %512 = vmatpush.msra.mxu1 %v439_v43  ;;  %553 = vmatpush.msra.mxu3 %v470_v45  ;;  %v562_v5 = vld [vmem:[%s385_s18] sm:$0xff]  ;;  %v676_v13 = vld [vmem:[%s1232_s26 + $0xe8] sm:$0xff]  ;;  %v710_v14 = vld [vmem:[%s1232_s26 + $0x1f8] sm:$0xff] }
  0x27   : > { %493 = vmatpush.msra.mxu0 %v422_v46  ;;  %534 = vmatpush.msra.mxu2 %v453_v48  ;;  %v591_v8 = vld [vmem:[%s390_s10] sm:$0xf]  ;;  %v658_v15 = vld [vmem:[%s1232_s26 + $0x58] sm:$0xff]  ;;  %v709_v20 = vld [vmem:[%s1232_s26 + $0x1f0] sm:$0xff] }
  0x28   : > { %513 = vmatpush.msra.mxu1 %v438_v47  ;;  %554 = vmatpush.msra.mxu3 %v469_v49  ;;  %593 = vst [vmem:[#allocation1] ss:$4 sm:$0xff] %v591_v8  ;;  %v659_v12 = vld [vmem:[%s1232_s26 + $0x60] sm:$0xff]  ;;  %v694_v16 = vld [vmem:[%s1232_s26 + $0x178] sm:$0xff]  ;;  %v657_v21 = vld [vmem:[%s1232_s26 + $0x50] sm:$0xff] }
  0x29   : > { %494 = vmatpush.msra.mxu0 %v421_v50  ;;  %535 = vmatpush.msra.mxu2 %v452_v52  ;;  %v675_v17 = vld [vmem:[%s1232_s26 + $0xe0] sm:$0xff]  ;;  %v693_v22 = vld [vmem:[%s1232_s26 + $0x170] sm:$0xff]  ;;  %v674_v23 = vld [vmem:[%s1232_s26 + $0xd8] sm:$0xff] }
  0x2a   : > { %514 = vmatpush.msra.mxu1 %v437_v51  ;;  %555 = vmatpush.msra.mxu3 %v468_v53  ;;  %v708_v24 = vld [vmem:[%s1232_s26 + $0x1e8] sm:$0xff]  ;;  %v673_v27 = vld [vmem:[%s1232_s26 + $0xd0] sm:$0xff]  ;;  %v707_v28 = vld [vmem:[%s1232_s26 + $0x1e0] sm:$0xff] }
  0x2b   : > { %495 = vmatpush.msra.mxu0 %v420_v54  ;;  %536 = vmatpush.msra.mxu2 %v451_v56  ;;  %v656_v25 = vld [vmem:[%s1232_s26 + $0x48] sm:$0xff]  ;;  %v655_v29 = vld [vmem:[%s1232_s26 + $0x40] sm:$0xff]  ;;  %v706_v32 = vld [vmem:[%s1232_s26 + $0x1d8] sm:$0xff] }
  0x2c   : > { %515 = vmatpush.msra.mxu1 %v436_v55  ;;  %556 = vmatpush.msra.mxu3 %v467_v57  ;;  %v692_v26 = vld [vmem:[%s1232_s26 + $0x168] sm:$0xff]  ;;  %v691_v30 = vld [vmem:[%s1232_s26 + $0x160] sm:$0xff]  ;;  %v654_v33 = vld [vmem:[%s1232_s26 + $0x38] sm:$0xff] }
  0x2d   : > { %496 = vmatpush.msra.mxu0 %v419_v58  ;;  %537 = vmatpush.msra.mxu2 %v450_v60  ;;  %v672_v31 = vld [vmem:[%s1232_s26 + $0xc8] sm:$0xff]  ;;  %v690_v34 = vld [vmem:[%s1232_s26 + $0x158] sm:$0xff]  ;;  %v671_v35 = vld [vmem:[%s1232_s26 + $0xc0] sm:$0xff] }
  0x2e   : > { %516 = vmatpush.msra.mxu1 %v435_v59  ;;  %557 = vmatpush.msra.mxu3 %v466_v61  ;;  %v705_v36 = vld [vmem:[%s1232_s26 + $0x1d0] sm:$0xff]  ;;  %v670_v39 = vld [vmem:[%s1232_s26 + $0xb8] sm:$0xff]  ;;  %v704_v40 = vld [vmem:[%s1232_s26 + $0x1c8] sm:$0xff] }
  0x2f   : > { %538 = vmatmul.f32.vlgmr.msra.gmra.mxu2 %v1199_v62  ;;  %558 = vmatmul.f32.vlgmr.msra.gmra.mxu3 %v1204_v63  ;;  %v595_v18 = vld.sshfl [vmem:[#allocation1 + $0x8] sm:$0xff pattern:$0x73625140]  ;;  %v594_v19 = vld.sshfl [vmem:[#allocation1] sm:$0xff pattern:$0x73625140] }
  0x30   : > { %497 = vmatpush.msra.mxu0 %v418_v0  ;;  %517 = vmatpush.msra.mxu1 %v434_v1  ;;  %v653_v37 = vld [vmem:[%s1232_s26 + $0x30] sm:$0xff]  ;;  %v652_v41 = vld [vmem:[%s1232_s26 + $0x28] sm:$0xff]  ;;  %v703_v43 = vld [vmem:[%s1232_s26 + $0x1c0] sm:$0xff] }
  0x31   : > { %498 = vmatmul.f32.vlgmr.msra.gmra.mxu0 %v1215_v2  ;;  %518 = vmatmul.f32.vlgmr.msra.gmra.mxu1 %v1220_v3  ;;  %v689_v38 = vld [vmem:[%s1232_s26 + $0x150] sm:$0xff]  ;;  %v688_v42 = vld [vmem:[%s1232_s26 + $0x148] sm:$0xff]  ;;  %v651_v44 = vld [vmem:[%s1232_s26 + $0x20] sm:$0xff] }
  0x32   : > { %582 = vmatpush.msrb.mxu0 %v563_v4  ;;  %711 = vmatpush.msrb.mxu3 %v662_v6  ;;  %v687_v45 = vld [vmem:[%s1232_s26 + $0x140] sm:$0xff]  ;;  %v702_v48 = vld [vmem:[%s1232_s26 + $0x1b8] sm:$0xff]  ;;  %v701_v50 = vld [vmem:[%s1232_s26 + $0x1b0] sm:$0xff] }
  0x33   : > { %1034 = vmatpush.msk.msrb.mxu2 %vm600_vm0, %v595_v18  ;;  %1032 = vmatpush.msk.msrb.mxu1 %vm600_vm0, %v594_v19  ;;  %v650_v55 = vld [vmem:[%s1232_s26 + $0x18] sm:$0xff]  ;;  %v669_v56 = vld [vmem:[%s1232_s26 + $0xb0] sm:$0xff]  ;;  %v700_v58 = vld [vmem:[%s1232_s26 + $0x1a8] sm:$0xff] }
  0x34   : > { %583 = vmatpush.msrb.mxu0 %v562_v5  ;;  %712 = vmatpush.msrb.mxu3 %v661_v7  ;;  %v686_v57 = vld [vmem:[%s1232_s26 + $0x138] sm:$0xff]  ;;  %v649_v59 = vld [vmem:[%s1232_s26 + $0x10] sm:$0xff]  ;;  %v668_v60 = vld [vmem:[%s1232_s26 + $0xa8] sm:$0xff] }
  0x35   : > { %771 = vmatpush.msra.mxu2 %v710_v14  ;;  %751 = vmatpush.msra.mxu1 %v694_v16  ;;  %v685_v61 = vld [vmem:[%s1232_s26 + $0x130] sm:$0xff]  ;;  %v699_v0 = vld [vmem:[%s1232_s26 + $0x1a0] sm:$0xff]  ;;  %v648_v1 = vld [vmem:[%s1232_s26 + $0x8] sm:$0xff] }
  0x36   : > { %731 = vmatpush.msra.mxu0 %v678_v10  ;;  %713 = vmatpush.msrb.mxu3 %v660_v9  ;;  %v667_v4 = vld [vmem:[%s1232_s26 + $0xa0] sm:$0xff]  ;;  %v684_v5 = vld [vmem:[%s1232_s26 + $0x128] sm:$0xff]  ;;  %v698_v6 = vld [vmem:[%s1232_s26 + $0x198] sm:$0xff] }
  0x37   : > { %772 = vmatpush.msra.mxu2 %v709_v20  ;;  %752 = vmatpush.msra.mxu1 %v693_v22  ;;  %v647_v7 = vld [vmem:[%s1232_s26] sm:$0xff]  ;;  %v666_v8 = vld [vmem:[%s1232_s26 + $0x98] sm:$0xff]  ;;  %v697_v10 = vld [vmem:[%s1232_s26 + $0x190] sm:$0xff] }
  0x38   : > { %732 = vmatpush.msra.mxu0 %v677_v11  ;;  %714 = vmatpush.msrb.mxu3 %v659_v12  ;;  %v683_v9 = vld [vmem:[%s1232_s26 + $0x120] sm:$0xff]  ;;  %v665_v11 = vld [vmem:[%s1232_s26 + $0x90] sm:$0xff]  ;;  %v682_v12 = vld [vmem:[%s1232_s26 + $0x118] sm:$0xff] }
  0x39   : > { %773 = vmatpush.msra.mxu2 %v708_v24  ;;  %753 = vmatpush.msra.mxu1 %v692_v26  ;;  %v664_v14 = vld [vmem:[%s1232_s26 + $0x88] sm:$0xff]  ;;  %v695_v16 = vld [vmem:[%s1232_s26 + $0x180] sm:$0xff] }
  0x3a   : > { %733 = vmatpush.msra.mxu0 %v676_v13  ;;  %715 = vmatpush.msrb.mxu3 %v658_v15  ;;  %v696_v13 = vld [vmem:[%s1232_s26 + $0x188] sm:$0xff]  ;;  %v681_v15 = vld [vmem:[%s1232_s26 + $0x110] sm:$0xff]  ;;  %v679_v19 = vld [vmem:[%s1232_s26 + $0x100] sm:$0xff] }
  0x3b   : > { %774 = vmatpush.msra.mxu2 %v707_v28  ;;  %754 = vmatpush.msra.mxu1 %v691_v30  ;;  %v680_v18 = vld [vmem:[%s1232_s26 + $0x108] sm:$0xff]  ;;  %v791_v22 = vld [vmem:[%s400_s13] sm:$0xff] }
  0x3c   : > { %734 = vmatpush.msra.mxu0 %v675_v17  ;;  %716 = vmatpush.msrb.mxu3 %v657_v21  ;;  %v663_v17 = vld [vmem:[%s1232_s26 + $0x80] sm:$0xff] }
  0x3d   : > { %775 = vmatpush.msra.mxu2 %v706_v32  ;;  %755 = vmatpush.msra.mxu1 %v690_v34 }
  0x3e   : > { %735 = vmatpush.msra.mxu0 %v674_v23  ;;  %717 = vmatpush.msrb.mxu3 %v656_v25  ;;  %v819_v23 = vld [vmem:[%s404_s17] sm:$0x3] }
  0x3f   : > { %776 = vmatpush.msra.mxu2 %v705_v36  ;;  %756 = vmatpush.msra.mxu1 %v689_v38 }
  0x40   : > { %736 = vmatpush.msra.mxu0 %v673_v27  ;;  %718 = vmatpush.msrb.mxu3 %v655_v29 }
  0x41   : > { %777 = vmatpush.msra.mxu2 %v704_v40  ;;  %757 = vmatpush.msra.mxu1 %v688_v42 }
  0x42   : > { %737 = vmatpush.msra.mxu0 %v672_v31  ;;  %719 = vmatpush.msrb.mxu3 %v654_v33 }
  0x43   : > { %778 = vmatpush.msra.mxu2 %v703_v43  ;;  %758 = vmatpush.msra.mxu1 %v687_v45 }
  0x44   : > { %738 = vmatpush.msra.mxu0 %v671_v35  ;;  %720 = vmatpush.msrb.mxu3 %v653_v37 }
  0x45   : > { %779 = vmatpush.msra.mxu2 %v702_v48  ;;  %759 = vmatpush.msra.mxu1 %v686_v57 }
  0x46   : > { %739 = vmatpush.msra.mxu0 %v670_v39  ;;  %721 = vmatpush.msrb.mxu3 %v652_v41 }
  0x47   : > { %780 = vmatpush.msra.mxu2 %v701_v50  ;;  %760 = vmatpush.msra.mxu1 %v685_v61 }
  0x48   : > { %722 = vmatpush.msrb.mxu3 %v651_v44  ;;  %740 = vmatpush.msra.mxu0 %v669_v56 }
  0x49   : > { %781 = vmatpush.msra.mxu2 %v700_v58  ;;  %761 = vmatpush.msra.mxu1 %v684_v5 }
  0x4a   : > { %723 = vmatpush.msrb.mxu3 %v650_v55  ;;  %741 = vmatpush.msra.mxu0 %v668_v60 }
  0x4b   : > { %782 = vmatpush.msra.mxu2 %v699_v0  ;;  %762 = vmatpush.msra.mxu1 %v683_v9 }
  0x4c   : > { %724 = vmatpush.msrb.mxu3 %v649_v59  ;;  %742 = vmatpush.msra.mxu0 %v667_v4 }
  0x4d   : > { %783 = vmatpush.msra.mxu2 %v698_v6  ;;  %763 = vmatpush.msra.mxu1 %v682_v12 }
  0x4e   : > { %725 = vmatpush.msrb.mxu3 %v648_v1  ;;  %743 = vmatpush.msra.mxu0 %v666_v8 }
  0x4f   : > { %784 = vmatpush.msra.mxu2 %v697_v10  ;;  %764 = vmatpush.msra.mxu1 %v681_v15 }
  0x50   : > { %726 = vmatpush.msrb.mxu3 %v647_v7  ;;  %744 = vmatpush.msra.mxu0 %v665_v11 }
  0x51   : > { %727 = vmatmul.f32.vlgmr.msrb.gmra.mxu3 %v1215_v2  ;;  %785 = vmatpush.msra.mxu2 %v696_v13 }
  0x52   : > { %745 = vmatpush.msra.mxu0 %v664_v14  ;;  %765 = vmatpush.msra.mxu1 %v680_v18 }
  0x53   : > { %786 = vmatpush.msra.mxu2 %v695_v16 }
  0x54   : > { %746 = vmatpush.msra.mxu0 %v663_v17  ;;  %766 = vmatpush.msra.mxu1 %v679_v19 }
  0xae   : > { %v499_v46 = vpop.f32.mrf.mxu0  ;;  %v519_v47 = vpop.f32.mrf.mxu1 }
  0xaf   : > { %v520_v49 = vadd.f32 %v519_v47, %v499_v46 }
  0xb2   : > { %v539_v51 = vpop.f32.mrf.mxu2  ;;  %v559_v52 = vpop.f32.mrf.mxu3 }
  0xb3   : > { %v540_v53 = vadd.f32 %v539_v51, %v520_v49 }
  0xb5   : > { %v560_v54 = vadd.f32 %v559_v52, %v540_v53 }
  0xb7   : > { %1031 = vmatmul.msk.f32.vlgmr.msrb.gmra.mxu0 %vm564_vm1, %v560_v54 }
  0xb8   : > { %1037 = vmatpush.msk.msrb.mxu0 %vm600_vm0, %v819_v23 }
  0xbf   : > { %747 = vmatmul.f32.vlgmr.msra.gmra.mxu0 %v1220_v3  ;;  %v792_v3 = vld [vmem:[%s400_s13 + $0x8] sm:$0xff] }
  0xc0   : > { %810 = vmatpush.msra.mxu3 %v792_v3 }
  0xc2   : > { %811 = vmatpush.msra.mxu3 %v791_v22 }
 0x134   : > { %v585_v20 = vpop.f32.mrf.mxu0 }
 0x135   : > { %vm588_vm2 = vcmp.ge.f32.partialorder %v585_v20, 0.0  ;;  %v589_v2 = vmul.f32 0.1, %v585_v20 }
 0x137   : > { %v590_v21 = vsel %vm588_vm2, %v585_v20, %v589_v2 }
 0x138   : > { %1033 = vmatmul.msk.f32.vlgmr.msrb.gmra.mxu1 %vm596_vm3, %v590_v21  ;;  %1035 = vmatmul.msk.f32.vlgmr.msrb.gmra.mxu2 %vm596_vm3, %v590_v21 }
 0x13c   : > { %v748_v24 = vpop.f32.mrf.mxu0 }
 0x140   : > { %787 = vmatmul.f32.vlgmr.msra.gmra.mxu2 %v1204_v63  ;;  %767 = vmatmul.f32.vlgmr.msra.gmra.mxu1 %v1199_v62  ;;  %v728_v63 = vpop.f32.mrf.mxu3 }
 0x141   : > { %v749_v26 = vadd.f32 %v748_v24, %v728_v63 }
 0x1b5   : > { %v622_v62 = vpop.f32.mrf.mxu1 }
 0x1b6   : > { %645 = vst [vmem:[%s409_s20] sm:$0xff] %v622_v62 }
 0x1bb   : > { %v642_v25 = vpop.f32.mrf.mxu2 }
 0x1bc   : > { %646 = vst.msk [vmem:[%s409_s20 + $0x8] sm:$0xff] %vm564_vm1, %v642_v25 }
 0x1bd   : > { %v768_v27 = vpop.f32.mrf.mxu1 }
 0x1be   : > { %v769_v28 = vadd.f32 %v768_v27, %v749_v26 }
 0x1c3   : > { %v788_v29 = vpop.f32.mrf.mxu2 }
 0x1c4   : > { %v789_v30 = vadd.f32 %v788_v29, %v769_v28 }
 0x1c6   : > { %1036 = vmatmul.msk.f32.vlgmr.msra.gmra.mxu3 %vm564_vm1, %v789_v30 }
 0x249   : > { %v813_v31 = vpop.f32.mrf.mxu3 }
 0x24a   : > { %vm816_vm4 = vcmp.ge.f32.partialorder %v813_v31, 0.0  ;;  %v817_v32 = vmul.f32 0.1, %v813_v31 }
 0x24c   : > { %v818_v33 = vsel %vm816_vm4, %v813_v31, %v817_v32 }
 0x24d   : > { %1038 = vmatmul.msk.f32.vlgmr.msrb.gmra.mxu0 %vm596_vm3, %v818_v33 }
 0x2ca   : > { %v843_v34 = vpop.f32.mrf.mxu0 }
 0x2cb   : > { %v1039_v35 = vmul.f32 -1.442695, %v843_v34 }
 0x2cd   : > { %1056 = vpow2.f32 %v1039_v35 }
 0x2d3   : > { %v1057_v36 = vpop.eup %1056 }
 0x2d4   : > { %v849_v37 = vadd.f32 1.0, %v1057_v36 }
 0x2d6   : > { %1058 = vrcp.f32 %v849_v37  ;;  %v861_v41 = vand.u32 2147483648, %v849_v37  ;;  %v859_v43 = vand.u32 2147483647, %v849_v37  ;;  %vm855_vm6 = vweird.f32 %v849_v37 }
 0x2d8   : > { %v862_v45 = vor.u32 1.1754944e-38, %v861_v41  ;;  %vm860_vm8 = vcmp.eq.f32.partialorder %v859_v43, 8.507059e+37 }
 0x2dc   : > { %v1059_v38 = vpop.eup %1058 }
 0x2dd   : > { %v851_v39 = vmul.f32 %v1059_v38, %v849_v37  ;;  %vm856_vm5 = vweird.f32 %v1059_v38 }
 0x2de   : > { %vm857_vm7 = vmor %vm855_vm6, %vm856_vm5 }
 0x2df   : > { %v852_v40 = vsub.f32 1.0, %v851_v39 }
 0x2e1   : > { %v853_v42 = vmul.f32 %v1059_v38, %v852_v40 }
 0x2e3   : > { %v854_v44 = vadd.f32 %v1059_v38, %v853_v42 }
 0x2e5   : > { %v858_v46 = vsel %vm857_vm7, %v1059_v38, %v854_v44 }
 0x2e6   : > { %v863_v47 = vsel %vm860_vm8, %v862_v45, %v858_v46 }
 0x2e7   : > { %865 = vst.msk [vmem:[%s413_s23] sm:$0xff] %vm564_vm1, %v863_v47 }
 0x2e8 PF: > { %s19_s27 = sadd.s32 1, %s1066_s27  }
 0x2e9   : > { %p16_p4 = scmp.ge.s32.totalorder %s19_s27, 4  }
 0x2eb   :  { %18 = sbr.rel (!%p16_p4) target bundleno = 1 (0x1), region = 105 }

// kernel: dasr_forward.9
= control target key start
LH: loop header
LB: loop body
LE: loop exit
PB: predicated region body
PF: predicated region fallthrough
CT: control target
= control target key end

     0   :  { %s1134_s15 = smov 0   ;;  %s1414_s0 = inlined_call_operand.vmem [shape: f32[2,8,8,16], index: 0, kind: input, shape index: {}]   ;;  %s1415_s1 = inlined_call_operand.vmem [shape: bf16[144,16], index: 1, kind: input, shape index: {}]   ;;  %s1416_s2 = inlined_call_operand.vmem [shape: f32[1,16], index: 2, kind: input, shape index: {}]   ;;  %s1417_s3 = inlined_call_operand.vmem [shape: f32[2,8,8,16], index: 3, kind: input, shape index: {}]   ;;  %s1418_s4 = inlined_call_operand.vmem [shape: f32[2,8,8,16], index: 4, kind: output, shape index: {}]  }
   0x1 LB: > { %s862_s16 = sadd.s32 4294967295, %s1099_s15   ;;  %p866_p0 = scmp.ge.s32.totalorder %s1099_s15, 1  ;;  %s1099_s15 = sphi %s1134_s15, %s14_s15  }
   0x2   : > { %p172_p1 = scmp.lt.s32.totalorder %s1099_s15, 3 }
   0x4   : > { %p173_p2 = pnand %p866_p0, %p172_p1 }
   0x5   : > { %p203_p3 = scmp.lt.s32.totalorder (!%p173_p2), %s862_s16, 1  ;;  %s1102_s21 = smov (!%p173_p2), 48  }
   0x6   : > { %176 = sbr.rel (%p173_p2) target bundleno = 377 (0x179), region = 36  ;;  %s1103_s22 = smov (!%p173_p2), 64  }
   0x7   : > { %s1104_s23 = smov (!%p173_p2), 80   ;;  %s1105_s24 = smov (!%p173_p2), 16  }
   0x8   : > { %s1106_s25 = smov (!%p173_p2), 112   ;;  %s1107_s26 = smov (!%p173_p2), 96  }
   0x9   : > { %s1108_s27 = smov (!%p173_p2), 32  }
   0xb   : > { %vm219_vm0 = vcmask 130048   ;;  %vm221_vm1 = vcmask 123904   ;;  %v1101_v0 = vmov 0.0   ;;  %s1420_s16 = smov (!%p203_p3, %s862_s16), 1  ;;  %v925_v53 = vld [vmem:[%s1415_s1 + $0x38] sm:$0xff]  ;;  %v924_v56 = vld [vmem:[%s1415_s1 + $0x30] sm:$0xff] }
   0xc   : > { %231 = vst.msk [vmem:[#allocation2 + $0x50] sm:$0xff] %vm219_vm0, %v1101_v0  ;;  %s1145_s17 = sshll.u32 %s1420_s16, 6  ;;  %927 = vmatpush.bf16.msra.mxu2 %v925_v53  ;;  %713 = vmatpush.bf16.msra.mxu0 %v925_v53  ;;  %v923_v60 = vld [vmem:[%s1415_s1 + $0x28] sm:$0xff]  ;;  %vm563_vm2 = vcmask 261120   ;;  %vm572_vm3 = vcmask 392192   ;;  %vm581_vm4 = vcmask 523264  }
   0xd   : > { %232 = vst.msk [vmem:[#allocation2 + $0x58] sm:$0x3] %vm221_vm1, %v1101_v0  ;;  %s1152_s20 = scalar_lea.vmem %s1414_s0, %s1145_s17  ;;  %vm590_vm5 = vcmask 654336   ;;  %vm599_vm6 = vcmask 785408   ;;  %vm608_vm7 = vcmask 916480   ;;  %s1386_s29 = scalar_lea.vmem %s1418_s4, %s1145_s17 }
   0xe   : > { %233 = vst.msk [vmem:[#allocation2 + $0x60] sm:$0xff] %vm219_vm0, %v1101_v0  ;;  %v245_v1 = vld [vmem:[%s1152_s20 + $0x20] sm:$0xff]  ;;  %v246_v2 = vld [vmem:[%s1152_s20 + $0x28] sm:$0xff]  ;;  %v244_v7 = vld [vmem:[%s1152_s20 + $0x18] sm:$0xff] }
   0xf   : > { %234 = vst.msk [vmem:[#allocation2 + $0x68] sm:$0x3] %vm221_vm1, %v1101_v0  ;;  %v247_v9 = vld [vmem:[%s1152_s20 + $0x30] sm:$0xff]  ;;  %v241_v11 = vld [vmem:[%s1152_s20] sm:$0xff]  ;;  %v242_v13 = vld [vmem:[%s1152_s20 + $0x8] sm:$0xff] }
  0x10   : > { %220 = vst.msk [vmem:[#allocation2] sm:$0xff] %vm219_vm0, %v1101_v0  ;;  %v243_v16 = vld [vmem:[%s1152_s20 + $0x10] sm:$0xff]  ;;  %v248_v18 = vld [vmem:[%s1152_s20 + $0x38] sm:$0xff]  ;;  %928 = vmatpush.bf16.msra.mxu2 %v924_v56  ;;  %714 = vmatpush.bf16.msra.mxu0 %v924_v56 }
  0x11   : > { %222 = vst.msk [vmem:[#allocation2 + $0x8] sm:$0x3] %vm221_vm1, %v1101_v0 }
  0x12   : > { %254 = vst.msk [vmem:[#allocation2 + $0x51] sm:$0xff] %vm219_vm0, %v245_v1  ;;  %v922_v1 = vld [vmem:[%s1415_s1 + $0x20] sm:$0xff] }
  0x13   : > { %255 = vst.msk [vmem:[#allocation2 + $0x61] sm:$0xff] %vm219_vm0, %v246_v2  ;;  %v926_v2 = vld [vmem:[%s1415_s1 + $0x40] sm:$0xff] }
  0x14   : > { %223 = vst.msk [vmem:[#allocation2 + $0x10] sm:$0xff] %vm219_vm0, %v1101_v0  ;;  %929 = vmatpush.bf16.msra.mxu2 %v923_v60  ;;  %715 = vmatpush.bf16.msra.mxu0 %v923_v60 }
  0x15   : > { %224 = vst.msk [vmem:[#allocation2 + $0x18] sm:$0x3] %vm221_vm1, %v1101_v0  ;;  %935 = vmatpush.bf16.msra.mxu3 %v926_v2  ;;  %749 = vmatpush.bf16.msra.mxu1 %v926_v2 }
  0x16   : > { %225 = vst.msk [vmem:[#allocation2 + $0x20] sm:$0xff] %vm219_vm0, %v1101_v0 }
  0x17   : > { %226 = vst.msk [vmem:[#allocation2 + $0x28] sm:$0x3] %vm221_vm1, %v1101_v0 }
  0x18   : > { %227 = vst.msk [vmem:[#allocation2 + $0x30] sm:$0xff] %vm219_vm0, %v1101_v0  ;;  %v274_v29 = vld [vmem:[#allocation2 + $0x2] sm:$0xff]  ;;  %930 = vmatpush.bf16.msra.mxu2 %v922_v1  ;;  %716 = vmatpush.bf16.msra.mxu0 %v922_v1 }
  0x19   : > { %v1165_v3 = vld [vmem:[#allocation2 + $0x50] sm:$0xff]  ;;  %228 = vst.msk [vmem:[#allocation2 + $0x38] sm:$0x3] %vm221_vm1, %v1101_v0  ;;  %v266_v32 = vld [vmem:[#allocation2 + $0x1] sm:$0xff] }
  0x1a   : > { %v1168_v4 = vld [vmem:[#allocation2 + $0x60] sm:$0xff]  ;;  %229 = vst.msk [vmem:[#allocation2 + $0x40] sm:$0xff] %vm219_vm0, %v1101_v0  ;;  %v271_v8 = vld [vmem:[#allocation2 + $0x51] sm:$0xff] }
  0x1b   : > { %v962_v5 = vpack.i.bf16 %v1168_v4, %v1165_v3  ;;  %230 = vst.msk [vmem:[#allocation2 + $0x48] sm:$0x3] %vm221_vm1, %v1101_v0  ;;  %v295_v6 = vld [vmem:[#allocation2 + $0x61] sm:$0xff]  ;;  %v1185_v12 = vld [vmem:[#allocation2 + $0x52] sm:$0xff] }
  0x1c   : > { %235 = vst.msk [vmem:[#allocation2 + $0x70] sm:$0xff] %vm219_vm0, %v1101_v0  ;;  %v967_v10 = vpack.i.bf16 %v295_v6, %v271_v8  ;;  %v1188_v14 = vld [vmem:[#allocation2 + $0x62] sm:$0xff] }
  0x1d   : > { %963 = vrot.lane.b32.xlu1 %v962_v5, %s1102_s21  ;;  %236 = vst.msk [vmem:[#allocation2 + $0x78] sm:$0x3] %vm221_vm1, %v1101_v0  ;;  %v972_v15 = vpack.i.bf16 %v1188_v14, %v1185_v12  ;;  %v921_v5 = vld [vmem:[%s1415_s1 + $0x18] sm:$0xff] }
  0x1e   : > { %237 = vst.msk [vmem:[#allocation2 + $0x80] sm:$0xff] %vm219_vm0, %v1101_v0  ;;  %931 = vmatpush.bf16.msra.mxu2 %v921_v5  ;;  %717 = vmatpush.bf16.msra.mxu0 %v921_v5 }
  0x1f   : > { %238 = vst.msk [vmem:[#allocation2 + $0x88] sm:$0x3] %vm221_vm1, %v1101_v0  ;;  %973 = vrot.lane.b32.xlu2 %v972_v15, %s1104_s23 }
  0x20   : > { %239 = vst.msk [vmem:[#allocation2 + $0x90] sm:$0xff] %vm219_vm0, %v1101_v0 }
  0x21   : > { %240 = vst.msk [vmem:[#allocation2 + $0x98] sm:$0x3] %vm221_vm1, %v1101_v0 }
  0x22   : > { %253 = vst.msk [vmem:[#allocation2 + $0x41] sm:$0xff] %vm219_vm0, %v244_v7  ;;  %v920_v7 = vld [vmem:[%s1415_s1 + $0x10] sm:$0xff] }
  0x23   : > { %256 = vst.msk [vmem:[#allocation2 + $0x71] sm:$0xff] %vm219_vm0, %v247_v9  ;;  %932 = vmatpush.bf16.msra.mxu2 %v920_v7  ;;  %718 = vmatpush.bf16.msra.mxu0 %v920_v7 }
  0x24   : > { %250 = vst.msk [vmem:[#allocation2 + $0x11] sm:$0xff] %vm219_vm0, %v241_v11 }
  0x25   : > { %968 = vrot.lane.b32.xlu1 %v967_v10, %s1103_s22  ;;  %251 = vst.msk [vmem:[#allocation2 + $0x21] sm:$0xff] %vm219_vm0, %v242_v13  ;;  %v918_v10 = vld [vmem:[%s1415_s1] sm:$0xff] }
  0x26   : > { %252 = vst.msk [vmem:[#allocation2 + $0x31] sm:$0xff] %vm219_vm0, %v243_v16 }
  0x27   : > { %257 = vst.msk [vmem:[#allocation2 + $0x81] sm:$0xff] %vm219_vm0, %v248_v18  ;;  %v314_v44 = vld [vmem:[#allocation2 + $0x90] sm:$0xff] }
  0x28   : > { %v322_v61 = vld [vmem:[#allocation2 + $0x91] sm:$0xff] }
  0x29   : > { %v1199_v17 = vld [vmem:[#allocation2 + $0x41] sm:$0xff] }
  0x2a   : > { %v1203_v19 = vpack.i.bf16 %v271_v8, %v1199_v17  ;;  %v320_v20 = vld [vmem:[#allocation2 + $0x71] sm:$0xff]  ;;  %v1212_v24 = vld [vmem:[#allocation2 + $0x42] sm:$0xff] }
  0x2b   : > { %v1205_v21 = vld [vmem:[#allocation2 + $0x70] sm:$0xff]  ;;  %v987_v22 = vpack.i.bf16 %v320_v20, %v295_v6  ;;  %v957_v26 = vpack.i.bf16 %v1185_v12, %v1212_v24  ;;  %v1257_v55 = vld [vmem:[#allocation2 + $0x40] sm:$0xff]  ;;  %v620_v6 = vpack.c.bf16 %v1185_v12, %v1212_v24  ;;  %v919_v8 = vld [vmem:[%s1415_s1 + $0x8] sm:$0xff] }
  0x2c   : > { %v977_v23 = vpack.i.bf16 %v1205_v21, %v1168_v4  ;;  %953 = vrot.lane.b32.xlu0 %v1203_v19, %s1105_s24  ;;  %v291_v25 = vld [vmem:[#allocation2 + $0x21] sm:$0xff]  ;;  %v267_v27 = vld [vmem:[#allocation2 + $0x11] sm:$0xff]  ;;  %v1082_v63 = vpack.i.bf16 %v1165_v3, %v1257_v55  ;;  %933 = vmatpush.bf16.msra.mxu2 %v919_v8 }
  0x2d   : > { %988 = vrot.lane.b32.xlu1 %v987_v22, %s1106_s25  ;;  %v1002_v28 = vpack.i.bf16 %v291_v25, %v267_v27  ;;  %v275_v30 = vld [vmem:[#allocation2 + $0x12] sm:$0xff]  ;;  %v982_v34 = vpack.i.bf16 %v267_v27, %v266_v32  ;;  %v1221_v36 = vld [vmem:[#allocation2 + $0x22] sm:$0xff]  ;;  %910 = vmatmul.msk.bf16.vlgmr.msra.gmra.mxu3 %vm219_vm0, %v620_v6 }
  0x2e   : > { %978 = vrot.lane.b32.xlu2 %v977_v23, %s1107_s26  ;;  %v992_v31 = vpack.i.bf16 %v275_v30, %v274_v29  ;;  %v316_v33 = vld [vmem:[#allocation2 + $0x31] sm:$0xff]  ;;  %v1007_v37 = vpack.i.bf16 %v1221_v36, %v275_v30  ;;  %v1227_v39 = vld [vmem:[#allocation2 + $0x20] sm:$0xff]  ;;  %719 = vmatpush.bf16.msra.mxu0 %v919_v8 }
  0x2f   : > { %v1017_v35 = vpack.i.bf16 %v316_v33, %v291_v25  ;;  %v1225_v38 = vld [vmem:[#allocation2 + $0x10] sm:$0xff]  ;;  %v289_v40 = vld [vmem:[#allocation2 + $0x80] sm:$0xff]  ;;  %v1072_v0 = vpack.i.bf16 %v1199_v17, %v316_v33 }
  0x30   : > { %v997_v41 = vpack.i.bf16 %v1227_v39, %v1225_v38  ;;  %v1032_v42 = vpack.i.bf16 %v289_v40, %v1205_v21  ;;  %v1235_v43 = vld [vmem:[#allocation2 + $0x30] sm:$0xff]  ;;  %v1047_v46 = vpack.i.bf16 %v314_v44, %v289_v40  ;;  %v321_v47 = vld [vmem:[#allocation2 + $0x81] sm:$0xff]  ;;  %934 = vmatpush.bf16.msra.mxu2 %v918_v10 }
  0x31   : > { %v1012_v45 = vpack.i.bf16 %v1235_v43, %v1227_v39  ;;  %v1037_v48 = vpack.i.bf16 %v321_v47, %v320_v20  ;;  %v281_v49 = vld [vmem:[#allocation2 + $0x72] sm:$0xff]  ;;  %v1253_v54 = vld [vmem:[#allocation2 + $0x82] sm:$0xff]  ;;  %v1067_v59 = vpack.i.bf16 %v1257_v55, %v1235_v43  ;;  %v1057_v62 = vpack.i.bf16 %v322_v61, %v321_v47 }
  0x32   : > { %v1244_v50 = vld [vmem:[#allocation2 + $0x32] sm:$0xff]  ;;  %v1027_v51 = vpack.i.bf16 %v281_v49, %v1188_v14  ;;  %v1042_v57 = vpack.i.bf16 %v1253_v54, %v281_v49  ;;  %720 = vmatpush.bf16.msra.mxu0 %v918_v10  ;;  %v622_v12 = vpack.c.bf16 %v281_v49, %v1188_v14 }
  0x33   : > { %v1062_v52 = vpack.i.bf16 %v1244_v50, %v1221_v36  ;;  %v1077_v58 = vpack.i.bf16 %v1212_v24, %v1244_v50  ;;  %v618_v24 = vpack.c.bf16 %v1244_v50, %v1221_v36 }
  0x34   : > { %958 = vrot.lane.b32.xlu0 %v957_v26, %s1108_s27 }
  0x35   : > { %1003 = vrot.lane.b32.xlu1 %v1002_v28, %s1103_s22  ;;  %909 = vmatmul.msk.bf16.vlgmr.msra.gmra.mxu1 %vm219_vm0, %v618_v24 }
  0x36   : > { %993 = vrot.lane.b32.xlu2 %v992_v31, %s1108_s27 }
  0x3c   : > { %983 = vrot.lane.b32.xlu0 %v982_v34, %s1105_s24 }
  0x3d   : > { %1018 = vrot.lane.b32.xlu1 %v1017_v35, %s1106_s25  ;;  %911 = vmatmul.msk.bf16.gmra.mxu3 %vm219_vm0, %v622_v12  ;;  %v330_v12 = vld [vmem:[#allocation2 + $0x92] sm:$0xff] }
  0x3e   : > { %1008 = vrot.lane.b32.xlu2 %v1007_v37, %s1104_s23 }
  0x44   : > { %998 = vrot.lane.b32.xlu0 %v997_v41, %s1102_s21 }
  0x45   : > { %1033 = vrot.lane.b32.xlu1 %v1032_v42, %s1102_s21 }
  0x46   : > { %1023 = vrot.lane.b32.xlu2 %v987_v22, %s1105_s24 }
  0x4c   : > { %1013 = vrot.lane.b32.xlu0 %v1012_v45, %s1107_s26 }
  0x4d   : > { %1048 = vrot.lane.b32.xlu1 %v1047_v46, %s1107_s26 }
  0x4e   : > { %1038 = vrot.lane.b32.xlu2 %v1037_v48, %s1103_s22 }
  0x54   : > { %1028 = vrot.lane.b32.xlu0 %v1027_v51, %s1108_s27 }
  0x55   : > { %1063 = vrot.lane.b32.xlu1 %v1062_v52, %s1108_s27 }
  0x56   : > { %1053 = vrot.lane.b32.xlu2 %v1017_v35, %s1105_s24 }
  0x5c   : > { %1043 = vrot.lane.b32.xlu0 %v1042_v57, %s1104_s23 }
  0x5d   : > { %1078 = vrot.lane.b32.xlu1 %v1077_v58, %s1104_s23  ;;  %v258_v58 = vld [vmem:[#allocation2] sm:$0xff] }
  0x5e   : > { %1068 = vrot.lane.b32.xlu2 %v1067_v59, %s1102_s21 }
  0x64   : > { %1058 = vrot.lane.b32.xlu0 %v1057_v62, %s1106_s25 }
  0x66   : > { %1083 = vrot.lane.b32.xlu2 %v1082_v63, %s1107_s26  ;;  %s1379_s26 = scalar_lea.vmem %s1417_s3, %s1145_s17 }
  0x6c   : > { %1073 = vrot.lane.b32.xlu0 %v1072_v0, %s1103_s22 }
  0x74   : > { %1088 = vrot.lane.b32.xlu0 %v1203_v19, %s1106_s25 }
  0x79   : > { %v974_v11 = vpop.permute.xlu2 %973 }
  0x7a   : > { %v976_v20 = vunpack.i.h.bf16 %v974_v11  ;;  %v975_v22 = vunpack.i.l.bf16 %v974_v11 }
  0x88   : > { %v979_v15 = vpop.permute.xlu2 %978 }
  0x89   : > { %v981_v26 = vunpack.i.h.bf16 %v979_v15  ;;  %v980_v27 = vunpack.i.l.bf16 %v979_v15 }
  0x8f   : > { %v964_v9 = vpop.permute.xlu1 %963 }
  0x90   : > { %v994_v23 = vpop.permute.xlu2 %993  ;;  %v966_v31 = vunpack.i.h.bf16 %v964_v9  ;;  %v965_v32 = vunpack.i.l.bf16 %v964_v9 }
  0x91   : > { %v996_v59 = vunpack.i.h.bf16 %v994_v23  ;;  %v995_v60 = vunpack.i.l.bf16 %v994_v23 }
  0x97   : > { %v969_v13 = vpop.permute.xlu1 %968 }
  0x98   : > { %v971_v14 = vunpack.i.h.bf16 %v969_v13  ;;  %v970_v28 = vunpack.i.l.bf16 %v969_v13 }
  0x9e   : > { %v954_v16 = vpop.permute.xlu0 %953 }
  0x9f   : > { %v989_v17 = vpop.permute.xlu1 %988  ;;  %v956_v18 = vunpack.i.h.bf16 %v954_v16  ;;  %v955_v19 = vunpack.i.l.bf16 %v954_v16 }
  0xa0   : > { %v991_v41 = vunpack.i.h.bf16 %v989_v17  ;;  %v990_v42 = vunpack.i.l.bf16 %v989_v17 }
  0xa1   : > { %v560_v33 = vsel %vm219_vm0, %v1165_v3, %v956_v18  ;;  %v559_v34 = vsel %vm219_vm0, %v1257_v55, %v955_v19  ;;  %v1009_v55 = vpop.permute.xlu2 %1008 }
  0xa2   : > { %v1011_v13 = vunpack.i.h.bf16 %v1009_v55  ;;  %v1010_v15 = vunpack.i.l.bf16 %v1009_v55 }
  0xa6   : > { %v959_v25 = vpop.permute.xlu0 %958 }
  0xa7   : > { %v961_v29 = vunpack.i.h.bf16 %v959_v25  ;;  %v960_v30 = vunpack.i.l.bf16 %v959_v25  ;;  %v1004_v47 = vpop.permute.xlu1 %1003 }
  0xa8   : > { %v1006_v7 = vunpack.i.h.bf16 %v1004_v47  ;;  %v1005_v8 = vunpack.i.l.bf16 %v1004_v47 }
  0xa9   : > { %v568_v35 = vsel %vm563_vm2, %v559_v34, %v960_v30  ;;  %v569_v36 = vsel %vm563_vm2, %v560_v33, %v961_v29  ;;  %v1024_v9 = vpop.permute.xlu2 %1023 }
  0xaa   : > { %v577_v37 = vsel %vm572_vm3, %v568_v35, %v965_v32  ;;  %v578_v40 = vsel %vm572_vm3, %v569_v36, %v966_v31  ;;  %v1026_v32 = vunpack.i.h.bf16 %v1024_v9  ;;  %v1025_v33 = vunpack.i.l.bf16 %v1024_v9 }
  0xab   : > { %v586_v44 = vsel %vm581_vm4, %v577_v37, %v970_v28  ;;  %v587_v45 = vsel %vm581_vm4, %v578_v40, %v971_v14 }
  0xac   : > { %v595_v3 = vsel %vm590_vm5, %v586_v44, %v975_v22  ;;  %v596_v46 = vsel %vm590_vm5, %v587_v45, %v976_v20  ;;  %v562_v37 = vsel %vm219_vm0, %v1205_v21, %v1026_v32  ;;  %v561_v40 = vsel %vm219_vm0, %v1168_v4, %v1025_v33 }
  0xad   : > { %v604_v48 = vsel %vm599_vm6, %v595_v3, %v980_v27  ;;  %v605_v49 = vsel %vm599_vm6, %v596_v46, %v981_v26 }
  0xae   : > { %v984_v50 = vpop.permute.xlu0 %983  ;;  %v613_v51 = vsel %vm608_vm7, %v604_v48, %v990_v42  ;;  %v614_v52 = vsel %vm608_vm7, %v605_v49, %v991_v41 }
  0xaf   : > { %v621_v53 = vpack.c.bf16 %v614_v52, %v613_v51  ;;  %v986_v56 = vunpack.i.h.bf16 %v984_v50  ;;  %v985_v57 = vunpack.i.l.bf16 %v984_v50  ;;  %v1019_v0 = vpop.permute.xlu1 %1018 }
  0xb0   : > { %v1021_v18 = vunpack.i.h.bf16 %v1019_v0  ;;  %v1020_v19 = vunpack.i.l.bf16 %v1019_v0 }
  0xb1   : > { %731 = vmatmul.bf16.vlgmr.msra.gmra.mxu2 %v621_v53  ;;  %v555_v61 = vsel %vm219_vm0, %v258_v58, %v985_v57  ;;  %v556_v62 = vsel %vm219_vm0, %v1225_v38, %v986_v56  ;;  %v624_v38 = vpack.c.bf16 %v330_v12, %v1253_v54  ;;  %v1039_v30 = vpop.permute.xlu2 %1038 }
  0xb2   : > { %v564_v5 = vsel %vm563_vm2, %v555_v61, %v995_v60  ;;  %v565_v6 = vsel %vm563_vm2, %v556_v62, %v996_v59  ;;  %v1041_v47 = vunpack.i.h.bf16 %v1039_v30  ;;  %v1040_v48 = vunpack.i.l.bf16 %v1039_v30 }
  0xb3   : > { %912 = vmatmul.msk.bf16.gmra.mxu3 %vm219_vm0, %v624_v38 }
  0xb6   : > { %v999_v63 = vpop.permute.xlu0 %998 }
  0xb7   : > { %v1001_v1 = vunpack.i.h.bf16 %v999_v63  ;;  %v1000_v2 = vunpack.i.l.bf16 %v999_v63  ;;  %v1034_v26 = vpop.permute.xlu1 %1033 }
  0xb8   : > { %v1036_v41 = vunpack.i.h.bf16 %v1034_v26  ;;  %v1035_v42 = vunpack.i.l.bf16 %v1034_v26 }
  0xb9   : > { %v573_v10 = vsel %vm572_vm3, %v564_v5, %v1000_v2  ;;  %v574_v11 = vsel %vm572_vm3, %v565_v6, %v1001_v1  ;;  %v1054_v44 = vpop.permute.xlu2 %1053 }
  0xba   : > { %v582_v16 = vsel %vm581_vm4, %v573_v10, %v1005_v8  ;;  %v583_v17 = vsel %vm581_vm4, %v574_v11, %v1006_v7  ;;  %v1056_v60 = vunpack.i.h.bf16 %v1054_v44  ;;  %v1055_v61 = vunpack.i.l.bf16 %v1054_v44 }
  0xbb   : > { %v591_v24 = vsel %vm590_vm5, %v582_v16, %v1010_v15  ;;  %v592_v25 = vsel %vm590_vm5, %v583_v17, %v1011_v13 }
  0xbc   : > { %v558_v10 = vsel %vm219_vm0, %v1235_v43, %v1056_v60  ;;  %v557_v11 = vsel %vm219_vm0, %v1227_v39, %v1055_v61  ;;  %v772_v61 = vld [vmem:[%s1379_s26 + $0x8] sm:$0xff] }
  0xbe   : > { %v1014_v20 = vpop.permute.xlu0 %1013 }
  0xbf   : > { %v1016_v22 = vunpack.i.h.bf16 %v1014_v20  ;;  %v1015_v23 = vunpack.i.l.bf16 %v1014_v20  ;;  %v1049_v36 = vpop.permute.xlu1 %1048 }
  0xc0   : > { %v1051_v53 = vunpack.i.h.bf16 %v1049_v36  ;;  %v1050_v55 = vunpack.i.l.bf16 %v1049_v36  ;;  %v756_v36 = vpop.f32.mrf.mxu3 }
  0xc1   : > { %v600_v27 = vsel %vm599_vm6, %v591_v24, %v1015_v23  ;;  %v601_v54 = vsel %vm599_vm6, %v592_v25, %v1016_v22  ;;  %v1069_v0 = vpop.permute.xlu2 %1068 }
  0xc2   : > { %v609_v14 = vsel %vm608_vm7, %v600_v27, %v1020_v19  ;;  %v610_v28 = vsel %vm608_vm7, %v601_v54, %v1021_v18  ;;  %v1071_v12 = vunpack.i.h.bf16 %v1069_v0  ;;  %v1070_v13 = vunpack.i.l.bf16 %v1069_v0 }
  0xc3   : > { %v617_v29 = vpack.c.bf16 %v610_v28, %v609_v14 }
  0xc5   : > { %721 = vmatmul.bf16.vlgmr.msra.gmra.mxu0 %v617_v29 }
  0xc6   : > { %v1029_v31 = vpop.permute.xlu0 %1028 }
  0xc7   : > { %v1031_v34 = vunpack.i.h.bf16 %v1029_v31  ;;  %v1030_v35 = vunpack.i.l.bf16 %v1029_v31  ;;  %v1064_v56 = vpop.permute.xlu1 %1063 }
  0xc8   : > { %v1066_v7 = vunpack.i.h.bf16 %v1064_v56  ;;  %v1065_v8 = vunpack.i.l.bf16 %v1064_v56 }
  0xc9   : > { %v571_v45 = vsel %vm563_vm2, %v562_v37, %v1031_v34  ;;  %v570_v3 = vsel %vm563_vm2, %v561_v40, %v1030_v35  ;;  %v1084_v24 = vpop.permute.xlu2 %1083  ;;  %v758_v37 = vpop.f32.mrf.mxu3  ;;  %v1092_v40 = vld [vmem:[%s1416_s2] ss:$0 sm:$0xff] }
  0xca   : > { %v579_v49 = vsel %vm572_vm3, %v570_v3, %v1035_v42  ;;  %v580_v50 = vsel %vm572_vm3, %v571_v45, %v1036_v41  ;;  %v566_v15 = vsel %vm563_vm2, %v557_v11, %v1065_v8  ;;  %v567_v38 = vsel %vm563_vm2, %v558_v10, %v1066_v7  ;;  %v775_v45 = vld [vmem:[%s1379_s26 + $0x20] sm:$0xff] }
  0xcb   : > { %v588_v21 = vsel %vm581_vm4, %v579_v49, %v1040_v48  ;;  %v589_v4 = vsel %vm581_vm4, %v580_v50, %v1041_v47  ;;  %v575_v20 = vsel %vm572_vm3, %v566_v15, %v1070_v13  ;;  %v576_v22 = vsel %vm572_vm3, %v567_v38, %v1071_v12  ;;  %v776_v50 = vld [vmem:[%s1379_s26 + $0x28] sm:$0xff]  ;;  %v778_v12 = vld [vmem:[%s1379_s26 + $0x38] sm:$0xff]  ;;  %v773_v38 = vld [vmem:[%s1379_s26 + $0x10] sm:$0xff] }
  0xcc   : > { %v1086_v26 = vunpack.i.h.bf16 %v1084_v24  ;;  %v1085_v27 = vunpack.i.l.bf16 %v1084_v24 }
  0xce   : > { %v1044_v46 = vpop.permute.xlu0 %1043 }
  0xcf   : > { %v1046_v51 = vunpack.i.h.bf16 %v1044_v46  ;;  %v1045_v52 = vunpack.i.l.bf16 %v1044_v46  ;;  %v1079_v17 = vpop.permute.xlu1 %1078 }
  0xd0   : > { %v1081_v23 = vunpack.i.h.bf16 %v1079_v17  ;;  %v1080_v43 = vunpack.i.l.bf16 %v1079_v17 }
  0xd1   : > { %v597_v57 = vsel %vm590_vm5, %v588_v21, %v1045_v52  ;;  %v598_v58 = vsel %vm590_vm5, %v589_v4, %v1046_v51  ;;  %v761_v41 = vpop.f32.mrf.mxu3  ;;  %v751_v52 = vpop.f32.mrf.mxu1 }
  0xd2   : > { %v606_v1 = vsel %vm599_vm6, %v597_v57, %v1050_v55  ;;  %v607_v2 = vsel %vm599_vm6, %v598_v58, %v1051_v53  ;;  %v771_v55 = vld [vmem:[%s1379_s26] sm:$0xff] }
  0xd6   : > { %v1059_v59 = vpop.permute.xlu0 %1058 }
  0xd7   : > { %v1061_v62 = vunpack.i.h.bf16 %v1059_v59  ;;  %v1060_v63 = vunpack.i.l.bf16 %v1059_v59 }
  0xd9   : > { %v615_v5 = vsel %vm608_vm7, %v606_v1, %v1060_v63  ;;  %v616_v6 = vsel %vm608_vm7, %v607_v2, %v1061_v62  ;;  %v763_v48 = vpop.f32.mrf.mxu3  ;;  %v753_v59 = vpop.f32.mrf.mxu1 }
  0xda   : > { %v623_v9 = vpack.c.bf16 %v616_v6, %v615_v5  ;;  %v777_v5 = vld [vmem:[%s1379_s26 + $0x30] sm:$0xff] }
  0xdc   : > { %736 = vmatmul.bf16.gmra.mxu2 %v623_v9 }
  0xde   : > { %v1074_v16 = vpop.permute.xlu0 %1073 }
  0xdf   : > { %v1076_v18 = vunpack.i.h.bf16 %v1074_v16  ;;  %v1075_v19 = vunpack.i.l.bf16 %v1074_v16 }
  0xe1   : > { %v585_v39 = vsel %vm581_vm4, %v576_v22, %v1076_v18  ;;  %v584_v25 = vsel %vm581_vm4, %v575_v20, %v1075_v19  ;;  %v774_v22 = vld [vmem:[%s1379_s26 + $0x18] sm:$0xff] }
  0xe2   : > { %v593_v54 = vsel %vm590_vm5, %v584_v25, %v1080_v43  ;;  %v594_v14 = vsel %vm590_vm5, %v585_v39, %v1081_v23 }
  0xe3   : > { %v602_v31 = vsel %vm599_vm6, %v593_v54, %v1085_v27  ;;  %v603_v32 = vsel %vm599_vm6, %v594_v14, %v1086_v26 }
  0xe6   : > { %v1089_v28 = vpop.permute.xlu0 %1088 }
  0xe7   : > { %v1091_v29 = vunpack.i.h.bf16 %v1089_v28  ;;  %v1090_v30 = vunpack.i.l.bf16 %v1089_v28 }
  0xe9   : > { %v611_v33 = vsel %vm608_vm7, %v602_v31, %v1090_v30  ;;  %v612_v34 = vsel %vm608_vm7, %v603_v32, %v1091_v29 }
  0xea   : > { %v619_v35 = vpack.c.bf16 %v612_v34, %v611_v33 }
  0xec   : > { %726 = vmatmul.bf16.gmra.mxu0 %v619_v35 }
 0x134   : > { %v732_v42 = vpop.f32.mrf.mxu2 }
 0x135   : > { %v733_v44 = vadd.f32 %v1092_v40, %v732_v42 }
 0x136   : > { %v766_v0 = vpop.f32.mrf.mxu3 }
 0x137   : > { %v762_v3 = vadd.f32 %v761_v41, %v733_v44 }
 0x139   : > { %v783_v46 = vadd.f32 %v775_v45, %v762_v3 }
 0x13b   : > { %791 = vst.msk [vmem:[%s1386_s29 + $0x20] sm:$0xff] %vm219_vm0, %v783_v46 }
 0x13c   : > { %v734_v47 = vpop.f32.mrf.mxu2 }
 0x13d   : > { %v735_v49 = vadd.f32 %v1092_v40, %v734_v47 }
 0x13e   : > { %v768_v9 = vpop.f32.mrf.mxu3 }
 0x13f   : > { %v764_v51 = vadd.f32 %v763_v48, %v735_v49 }
 0x141   : > { %v784_v21 = vadd.f32 %v776_v50, %v764_v51 }
 0x142   : > { %v722_v4 = vpop.f32.mrf.mxu0 }
 0x143   : > { %792 = vst.msk [vmem:[%s1386_s29 + $0x28] sm:$0xff] %vm219_vm0, %v784_v21  ;;  %v723_v53 = vadd.f32 %v1092_v40, %v722_v4 }
 0x145   : > { %v752_v56 = vadd.f32 %v751_v52, %v723_v53 }
 0x147   : > { %v779_v57 = vadd.f32 %v771_v55, %v752_v56 }
 0x149   : > { %787 = vst.msk [vmem:[%s1386_s29] sm:$0xff] %vm219_vm0, %v779_v57 }
 0x14a   : > { %v724_v58 = vpop.f32.mrf.mxu0 }
 0x14b   : > { %v725_v60 = vadd.f32 %v1092_v40, %v724_v58 }
 0x14d   : > { %v754_v62 = vadd.f32 %v753_v59, %v725_v60 }
 0x14f   : > { %v780_v63 = vadd.f32 %v772_v61, %v754_v62 }
 0x151   : > { %788 = vst.msk [vmem:[%s1386_s29 + $0x8] sm:$0xff] %vm219_vm0, %v780_v63 }
 0x15f   : > { %v737_v1 = vpop.f32.mrf.mxu2 }
 0x160   : > { %v738_v2 = vadd.f32 %v1092_v40, %v737_v1 }
 0x162   : > { %v767_v6 = vadd.f32 %v766_v0, %v738_v2 }
 0x164   : > { %v785_v7 = vadd.f32 %v777_v5, %v767_v6 }
 0x166   : > { %793 = vst.msk [vmem:[%s1386_s29 + $0x30] sm:$0xff] %vm219_vm0, %v785_v7 }
 0x167   : > { %v739_v8 = vpop.f32.mrf.mxu2 }
 0x168   : > { %v740_v10 = vadd.f32 %v1092_v40, %v739_v8 }
 0x169   : > { %v727_v11 = vpop.f32.mrf.mxu0 }
 0x16a   : > { %v728_v13 = vadd.f32 %v1092_v40, %v727_v11  ;;  %v769_v15 = vadd.f32 %v768_v9, %v740_v10 }
 0x16c   : > { %v757_v16 = vadd.f32 %v756_v36, %v728_v13  ;;  %v786_v17 = vadd.f32 %v778_v12, %v769_v15 }
 0x16e   : > { %v781_v18 = vadd.f32 %v773_v38, %v757_v16  ;;  %794 = vst.msk [vmem:[%s1386_s29 + $0x38] sm:$0xff] %vm219_vm0, %v786_v17 }
 0x170   : > { %789 = vst.msk [vmem:[%s1386_s29 + $0x10] sm:$0xff] %vm219_vm0, %v781_v18 }
 0x171   : > { %v729_v19 = vpop.f32.mrf.mxu0 }
 0x172   : > { %v730_v20 = vadd.f32 %v1092_v40, %v729_v19 }
 0x174   : > { %v759_v23 = vadd.f32 %v758_v37, %v730_v20 }
 0x176   : > { %v782_v43 = vadd.f32 %v774_v22, %v759_v23 }
 0x178   : > { %790 = vst.msk [vmem:[%s1386_s29 + $0x18] sm:$0xff] %vm219_vm0, %v782_v43 }
 0x179 PF: > { %s14_s15 = sadd.s32 1, %s1099_s15  }
 0x17a   : > { %p11_p4 = scmp.ge.s32.totalorder %s14_s15, 4  }
 0x17c   :  { %13 = sbr.rel (!%p11_p4) target bundleno = 1 (0x1), region = 71 }

// kernel: dasr_forward.10
= control target key start
LH: loop header
LB: loop body
LE: loop exit
PB: predicated region body
PF: predicated region fallthrough
CT: control target
= control target key end

     0   :  { %s1051_s12 = smov 0   ;;  %s1320_s0 = inlined_call_operand.vmem [shape: f32[2,8,8,16], index: 0, kind: input, shape index: {}]   ;;  %s1321_s1 = inlined_call_operand.vmem [shape: bf16[144,64], index: 1, kind: input, shape index: {}]   ;;  %s1322_s2 = inlined_call_operand.vmem [shape: f32[1,64], index: 2, kind: input, shape index: {}]   ;;  %s1323_s3 = inlined_call_operand.vmem [shape: f32[2,8,8,64], index: 3, kind: output, shape index: {}]  }
   0x1 LB: > { %s787_s13 = sadd.s32 4294967295, %s1021_s12   ;;  %p791_p0 = scmp.ge.s32.totalorder %s1021_s12, 1  ;;  %s1021_s12 = sphi %s1051_s12, %s13_s12  }
   0x2   : > { %p137_p1 = scmp.lt.s32.totalorder %s1021_s12, 3 }
   0x4   : > { %p138_p2 = pnand %p791_p0, %p137_p1 }
   0x5   : > { %p161_p3 = scmp.lt.s32.totalorder (!%p138_p2), %s787_s13, 1  ;;  %s1024_s18 = smov (!%p138_p2), 48  }
   0x6   : > { %141 = sbr.rel (%p138_p2) target bundleno = 375 (0x177), region = 32  ;;  %s1025_s19 = smov (!%p138_p2), 64  }
   0x7   : > { %s1026_s20 = smov (!%p138_p2), 80   ;;  %s1027_s21 = smov (!%p138_p2), 16  }
   0x8   : > { %s1028_s22 = smov (!%p138_p2), 112   ;;  %s1029_s23 = smov (!%p138_p2), 96  }
   0x9   : > { %s1030_s24 = smov (!%p138_p2), 32  }
   0xb   : > { %vm172_vm0 = vcmask 130048   ;;  %vm174_vm1 = vcmask 123904   ;;  %v1023_v0 = vmov 0.0   ;;  %s1325_s13 = smov (!%p161_p3, %s787_s13), 1  ;;  %v847_v53 = vld [vmem:[%s1321_s1 + $0x38] sm:$0xff]  ;;  %v846_v56 = vld [vmem:[%s1321_s1 + $0x30] sm:$0xff] }
   0xc   : > { %184 = vst.msk [vmem:[#allocation2 + $0x50] sm:$0xff] %vm172_vm0, %v1023_v0  ;;  %s838_s14 = sshll.u32 %s1325_s13, 6  ;;  %849 = vmatpush.bf16.msra.mxu2 %v847_v53  ;;  %666 = vmatpush.bf16.msra.mxu0 %v847_v53  ;;  %v845_v60 = vld [vmem:[%s1321_s1 + $0x28] sm:$0xff]  ;;  %vm516_vm2 = vcmask 261120   ;;  %vm525_vm3 = vcmask 392192   ;;  %vm534_vm4 = vcmask 523264  }
   0xd   : > { %185 = vst.msk [vmem:[#allocation2 + $0x58] sm:$0x3] %vm174_vm1, %v1023_v0  ;;  %s1071_s17 = scalar_lea.vmem %s1320_s0, %s838_s14  ;;  %vm543_vm5 = vcmask 654336   ;;  %vm552_vm6 = vcmask 785408   ;;  %vm561_vm7 = vcmask 916480  }
   0xe   : > { %186 = vst.msk [vmem:[#allocation2 + $0x60] sm:$0xff] %vm172_vm0, %v1023_v0  ;;  %v198_v1 = vld [vmem:[%s1071_s17 + $0x20] sm:$0xff]  ;;  %v199_v2 = vld [vmem:[%s1071_s17 + $0x28] sm:$0xff]  ;;  %v197_v7 = vld [vmem:[%s1071_s17 + $0x18] sm:$0xff] }
   0xf   : > { %187 = vst.msk [vmem:[#allocation2 + $0x68] sm:$0x3] %vm174_vm1, %v1023_v0  ;;  %v200_v9 = vld [vmem:[%s1071_s17 + $0x30] sm:$0xff]  ;;  %v194_v11 = vld [vmem:[%s1071_s17] sm:$0xff]  ;;  %v195_v13 = vld [vmem:[%s1071_s17 + $0x8] sm:$0xff] }
  0x10   : > { %173 = vst.msk [vmem:[#allocation2] sm:$0xff] %vm172_vm0, %v1023_v0  ;;  %v196_v16 = vld [vmem:[%s1071_s17 + $0x10] sm:$0xff]  ;;  %v201_v18 = vld [vmem:[%s1071_s17 + $0x38] sm:$0xff]  ;;  %850 = vmatpush.bf16.msra.mxu2 %v846_v56  ;;  %667 = vmatpush.bf16.msra.mxu0 %v846_v56 }
  0x11   : > { %175 = vst.msk [vmem:[#allocation2 + $0x8] sm:$0x3] %vm174_vm1, %v1023_v0 }
  0x12   : > { %207 = vst.msk [vmem:[#allocation2 + $0x51] sm:$0xff] %vm172_vm0, %v198_v1  ;;  %v844_v1 = vld [vmem:[%s1321_s1 + $0x20] sm:$0xff] }
  0x13   : > { %208 = vst.msk [vmem:[#allocation2 + $0x61] sm:$0xff] %vm172_vm0, %v199_v2  ;;  %v848_v2 = vld [vmem:[%s1321_s1 + $0x40] sm:$0xff] }
  0x14   : > { %176 = vst.msk [vmem:[#allocation2 + $0x10] sm:$0xff] %vm172_vm0, %v1023_v0  ;;  %851 = vmatpush.bf16.msra.mxu2 %v845_v60  ;;  %668 = vmatpush.bf16.msra.mxu0 %v845_v60 }
  0x15   : > { %177 = vst.msk [vmem:[#allocation2 + $0x18] sm:$0x3] %vm174_vm1, %v1023_v0  ;;  %857 = vmatpush.bf16.msra.mxu3 %v848_v2  ;;  %702 = vmatpush.bf16.msra.mxu1 %v848_v2 }
  0x16   : > { %178 = vst.msk [vmem:[#allocation2 + $0x20] sm:$0xff] %vm172_vm0, %v1023_v0 }
  0x17   : > { %179 = vst.msk [vmem:[#allocation2 + $0x28] sm:$0x3] %vm174_vm1, %v1023_v0 }
  0x18   : > { %180 = vst.msk [vmem:[#allocation2 + $0x30] sm:$0xff] %vm172_vm0, %v1023_v0  ;;  %v227_v29 = vld [vmem:[#allocation2 + $0x2] sm:$0xff]  ;;  %852 = vmatpush.bf16.msra.mxu2 %v844_v1  ;;  %669 = vmatpush.bf16.msra.mxu0 %v844_v1 }
  0x19   : > { %v1084_v3 = vld [vmem:[#allocation2 + $0x50] sm:$0xff]  ;;  %181 = vst.msk [vmem:[#allocation2 + $0x38] sm:$0x3] %vm174_vm1, %v1023_v0  ;;  %v219_v32 = vld [vmem:[#allocation2 + $0x1] sm:$0xff] }
  0x1a   : > { %v1087_v4 = vld [vmem:[#allocation2 + $0x60] sm:$0xff]  ;;  %182 = vst.msk [vmem:[#allocation2 + $0x40] sm:$0xff] %vm172_vm0, %v1023_v0  ;;  %v224_v8 = vld [vmem:[#allocation2 + $0x51] sm:$0xff] }
  0x1b   : > { %v884_v5 = vpack.i.bf16 %v1087_v4, %v1084_v3  ;;  %183 = vst.msk [vmem:[#allocation2 + $0x48] sm:$0x3] %vm174_vm1, %v1023_v0  ;;  %v248_v6 = vld [vmem:[#allocation2 + $0x61] sm:$0xff]  ;;  %v1104_v12 = vld [vmem:[#allocation2 + $0x52] sm:$0xff] }
  0x1c   : > { %188 = vst.msk [vmem:[#allocation2 + $0x70] sm:$0xff] %vm172_vm0, %v1023_v0  ;;  %v889_v10 = vpack.i.bf16 %v248_v6, %v224_v8  ;;  %v1107_v14 = vld [vmem:[#allocation2 + $0x62] sm:$0xff] }
  0x1d   : > { %885 = vrot.lane.b32.xlu1 %v884_v5, %s1024_s18  ;;  %189 = vst.msk [vmem:[#allocation2 + $0x78] sm:$0x3] %vm174_vm1, %v1023_v0  ;;  %v894_v15 = vpack.i.bf16 %v1107_v14, %v1104_v12  ;;  %v843_v5 = vld [vmem:[%s1321_s1 + $0x18] sm:$0xff] }
  0x1e   : > { %190 = vst.msk [vmem:[#allocation2 + $0x80] sm:$0xff] %vm172_vm0, %v1023_v0  ;;  %853 = vmatpush.bf16.msra.mxu2 %v843_v5  ;;  %670 = vmatpush.bf16.msra.mxu0 %v843_v5 }
  0x1f   : > { %191 = vst.msk [vmem:[#allocation2 + $0x88] sm:$0x3] %vm174_vm1, %v1023_v0  ;;  %895 = vrot.lane.b32.xlu2 %v894_v15, %s1026_s20 }
  0x20   : > { %192 = vst.msk [vmem:[#allocation2 + $0x90] sm:$0xff] %vm172_vm0, %v1023_v0 }
  0x21   : > { %193 = vst.msk [vmem:[#allocation2 + $0x98] sm:$0x3] %vm174_vm1, %v1023_v0 }
  0x22   : > { %206 = vst.msk [vmem:[#allocation2 + $0x41] sm:$0xff] %vm172_vm0, %v197_v7  ;;  %v842_v7 = vld [vmem:[%s1321_s1 + $0x10] sm:$0xff] }
  0x23   : > { %209 = vst.msk [vmem:[#allocation2 + $0x71] sm:$0xff] %vm172_vm0, %v200_v9  ;;  %854 = vmatpush.bf16.msra.mxu2 %v842_v7  ;;  %671 = vmatpush.bf16.msra.mxu0 %v842_v7 }
  0x24   : > { %203 = vst.msk [vmem:[#allocation2 + $0x11] sm:$0xff] %vm172_vm0, %v194_v11 }
  0x25   : > { %890 = vrot.lane.b32.xlu1 %v889_v10, %s1025_s19  ;;  %204 = vst.msk [vmem:[#allocation2 + $0x21] sm:$0xff] %vm172_vm0, %v195_v13  ;;  %v840_v10 = vld [vmem:[%s1321_s1] sm:$0xff] }
  0x26   : > { %205 = vst.msk [vmem:[#allocation2 + $0x31] sm:$0xff] %vm172_vm0, %v196_v16 }
  0x27   : > { %210 = vst.msk [vmem:[#allocation2 + $0x81] sm:$0xff] %vm172_vm0, %v201_v18  ;;  %v267_v44 = vld [vmem:[#allocation2 + $0x90] sm:$0xff] }
  0x28   : > { %v275_v61 = vld [vmem:[#allocation2 + $0x91] sm:$0xff] }
  0x29   : > { %v1118_v17 = vld [vmem:[#allocation2 + $0x41] sm:$0xff] }
  0x2a   : > { %v1122_v19 = vpack.i.bf16 %v224_v8, %v1118_v17  ;;  %v273_v20 = vld [vmem:[#allocation2 + $0x71] sm:$0xff]  ;;  %v1131_v24 = vld [vmem:[#allocation2 + $0x42] sm:$0xff] }
  0x2b   : > { %v1124_v21 = vld [vmem:[#allocation2 + $0x70] sm:$0xff]  ;;  %v909_v22 = vpack.i.bf16 %v273_v20, %v248_v6  ;;  %v879_v26 = vpack.i.bf16 %v1104_v12, %v1131_v24  ;;  %v1176_v55 = vld [vmem:[#allocation2 + $0x40] sm:$0xff]  ;;  %v573_v6 = vpack.c.bf16 %v1104_v12, %v1131_v24  ;;  %v841_v8 = vld [vmem:[%s1321_s1 + $0x8] sm:$0xff] }
  0x2c   : > { %v899_v23 = vpack.i.bf16 %v1124_v21, %v1087_v4  ;;  %875 = vrot.lane.b32.xlu0 %v1122_v19, %s1027_s21  ;;  %v244_v25 = vld [vmem:[#allocation2 + $0x21] sm:$0xff]  ;;  %v220_v27 = vld [vmem:[#allocation2 + $0x11] sm:$0xff]  ;;  %v1004_v63 = vpack.i.bf16 %v1084_v3, %v1176_v55  ;;  %855 = vmatpush.bf16.msra.mxu2 %v841_v8 }
  0x2d   : > { %910 = vrot.lane.b32.xlu1 %v909_v22, %s1028_s22  ;;  %v924_v28 = vpack.i.bf16 %v244_v25, %v220_v27  ;;  %v228_v30 = vld [vmem:[#allocation2 + $0x12] sm:$0xff]  ;;  %v904_v34 = vpack.i.bf16 %v220_v27, %v219_v32  ;;  %v1140_v36 = vld [vmem:[#allocation2 + $0x22] sm:$0xff]  ;;  %833 = vmatmul.msk.bf16.vlgmr.msra.gmra.mxu3 %vm172_vm0, %v573_v6 }
  0x2e   : > { %900 = vrot.lane.b32.xlu2 %v899_v23, %s1029_s23  ;;  %v914_v31 = vpack.i.bf16 %v228_v30, %v227_v29  ;;  %v269_v33 = vld [vmem:[#allocation2 + $0x31] sm:$0xff]  ;;  %v929_v37 = vpack.i.bf16 %v1140_v36, %v228_v30  ;;  %v1146_v39 = vld [vmem:[#allocation2 + $0x20] sm:$0xff]  ;;  %672 = vmatpush.bf16.msra.mxu0 %v841_v8 }
  0x2f   : > { %v939_v35 = vpack.i.bf16 %v269_v33, %v244_v25  ;;  %v1144_v38 = vld [vmem:[#allocation2 + $0x10] sm:$0xff]  ;;  %v242_v40 = vld [vmem:[#allocation2 + $0x80] sm:$0xff]  ;;  %v994_v0 = vpack.i.bf16 %v1118_v17, %v269_v33 }
  0x30   : > { %v919_v41 = vpack.i.bf16 %v1146_v39, %v1144_v38  ;;  %v954_v42 = vpack.i.bf16 %v242_v40, %v1124_v21  ;;  %v1154_v43 = vld [vmem:[#allocation2 + $0x30] sm:$0xff]  ;;  %v969_v46 = vpack.i.bf16 %v267_v44, %v242_v40  ;;  %v274_v47 = vld [vmem:[#allocation2 + $0x81] sm:$0xff]  ;;  %856 = vmatpush.bf16.msra.mxu2 %v840_v10 }
  0x31   : > { %v934_v45 = vpack.i.bf16 %v1154_v43, %v1146_v39  ;;  %v959_v48 = vpack.i.bf16 %v274_v47, %v273_v20  ;;  %v234_v49 = vld [vmem:[#allocation2 + $0x72] sm:$0xff]  ;;  %v1172_v54 = vld [vmem:[#allocation2 + $0x82] sm:$0xff]  ;;  %v989_v59 = vpack.i.bf16 %v1176_v55, %v1154_v43  ;;  %v979_v62 = vpack.i.bf16 %v275_v61, %v274_v47 }
  0x32   : > { %v1163_v50 = vld [vmem:[#allocation2 + $0x32] sm:$0xff]  ;;  %v949_v51 = vpack.i.bf16 %v234_v49, %v1107_v14  ;;  %v964_v57 = vpack.i.bf16 %v1172_v54, %v234_v49  ;;  %673 = vmatpush.bf16.msra.mxu0 %v840_v10  ;;  %v575_v12 = vpack.c.bf16 %v234_v49, %v1107_v14 }
  0x33   : > { %v984_v52 = vpack.i.bf16 %v1163_v50, %v1140_v36  ;;  %v999_v58 = vpack.i.bf16 %v1131_v24, %v1163_v50  ;;  %v571_v24 = vpack.c.bf16 %v1163_v50, %v1140_v36 }
  0x34   : > { %880 = vrot.lane.b32.xlu0 %v879_v26, %s1030_s24 }
  0x35   : > { %925 = vrot.lane.b32.xlu1 %v924_v28, %s1025_s19  ;;  %832 = vmatmul.msk.bf16.vlgmr.msra.gmra.mxu1 %vm172_vm0, %v571_v24 }
  0x36   : > { %915 = vrot.lane.b32.xlu2 %v914_v31, %s1030_s24 }
  0x3c   : > { %905 = vrot.lane.b32.xlu0 %v904_v34, %s1027_s21 }
  0x3d   : > { %940 = vrot.lane.b32.xlu1 %v939_v35, %s1028_s22  ;;  %834 = vmatmul.msk.bf16.gmra.mxu3 %vm172_vm0, %v575_v12  ;;  %v283_v12 = vld [vmem:[#allocation2 + $0x92] sm:$0xff] }
  0x3e   : > { %930 = vrot.lane.b32.xlu2 %v929_v37, %s1026_s20 }
  0x44   : > { %920 = vrot.lane.b32.xlu0 %v919_v41, %s1024_s18 }
  0x45   : > { %955 = vrot.lane.b32.xlu1 %v954_v42, %s1024_s18 }
  0x46   : > { %945 = vrot.lane.b32.xlu2 %v909_v22, %s1027_s21 }
  0x4c   : > { %935 = vrot.lane.b32.xlu0 %v934_v45, %s1029_s23 }
  0x4d   : > { %970 = vrot.lane.b32.xlu1 %v969_v46, %s1029_s23 }
  0x4e   : > { %960 = vrot.lane.b32.xlu2 %v959_v48, %s1025_s19 }
  0x54   : > { %950 = vrot.lane.b32.xlu0 %v949_v51, %s1030_s24 }
  0x55   : > { %985 = vrot.lane.b32.xlu1 %v984_v52, %s1030_s24 }
  0x56   : > { %975 = vrot.lane.b32.xlu2 %v939_v35, %s1027_s21 }
  0x5c   : > { %965 = vrot.lane.b32.xlu0 %v964_v57, %s1026_s20 }
  0x5d   : > { %1000 = vrot.lane.b32.xlu1 %v999_v58, %s1026_s20  ;;  %v211_v58 = vld [vmem:[#allocation2] sm:$0xff] }
  0x5e   : > { %990 = vrot.lane.b32.xlu2 %v989_v59, %s1024_s18 }
  0x64   : > { %980 = vrot.lane.b32.xlu0 %v979_v62, %s1028_s22 }
  0x66   : > { %1005 = vrot.lane.b32.xlu2 %v1004_v63, %s1029_s23  ;;  %s1299_s23 = scalar_lea.vmem %s1323_s3, %s838_s14 }
  0x6c   : > { %995 = vrot.lane.b32.xlu0 %v994_v0, %s1025_s19 }
  0x74   : > { %1010 = vrot.lane.b32.xlu0 %v1122_v19, %s1028_s22 }
  0x79   : > { %v896_v11 = vpop.permute.xlu2 %895 }
  0x7a   : > { %v898_v20 = vunpack.i.h.bf16 %v896_v11  ;;  %v897_v22 = vunpack.i.l.bf16 %v896_v11 }
  0x88   : > { %v901_v15 = vpop.permute.xlu2 %900 }
  0x89   : > { %v903_v26 = vunpack.i.h.bf16 %v901_v15  ;;  %v902_v27 = vunpack.i.l.bf16 %v901_v15 }
  0x8f   : > { %v886_v9 = vpop.permute.xlu1 %885 }
  0x90   : > { %v916_v23 = vpop.permute.xlu2 %915  ;;  %v888_v31 = vunpack.i.h.bf16 %v886_v9  ;;  %v887_v32 = vunpack.i.l.bf16 %v886_v9 }
  0x91   : > { %v918_v59 = vunpack.i.h.bf16 %v916_v23  ;;  %v917_v60 = vunpack.i.l.bf16 %v916_v23 }
  0x97   : > { %v891_v13 = vpop.permute.xlu1 %890 }
  0x98   : > { %v893_v14 = vunpack.i.h.bf16 %v891_v13  ;;  %v892_v28 = vunpack.i.l.bf16 %v891_v13 }
  0x9e   : > { %v876_v16 = vpop.permute.xlu0 %875 }
  0x9f   : > { %v911_v17 = vpop.permute.xlu1 %910  ;;  %v878_v18 = vunpack.i.h.bf16 %v876_v16  ;;  %v877_v19 = vunpack.i.l.bf16 %v876_v16 }
  0xa0   : > { %v913_v41 = vunpack.i.h.bf16 %v911_v17  ;;  %v912_v42 = vunpack.i.l.bf16 %v911_v17 }
  0xa1   : > { %v513_v33 = vsel %vm172_vm0, %v1084_v3, %v878_v18  ;;  %v512_v34 = vsel %vm172_vm0, %v1176_v55, %v877_v19  ;;  %v931_v55 = vpop.permute.xlu2 %930 }
  0xa2   : > { %v933_v13 = vunpack.i.h.bf16 %v931_v55  ;;  %v932_v15 = vunpack.i.l.bf16 %v931_v55 }
  0xa6   : > { %v881_v25 = vpop.permute.xlu0 %880 }
  0xa7   : > { %v883_v29 = vunpack.i.h.bf16 %v881_v25  ;;  %v882_v30 = vunpack.i.l.bf16 %v881_v25  ;;  %v926_v47 = vpop.permute.xlu1 %925 }
  0xa8   : > { %v928_v7 = vunpack.i.h.bf16 %v926_v47  ;;  %v927_v8 = vunpack.i.l.bf16 %v926_v47 }
  0xa9   : > { %v521_v35 = vsel %vm516_vm2, %v512_v34, %v882_v30  ;;  %v522_v36 = vsel %vm516_vm2, %v513_v33, %v883_v29  ;;  %v946_v9 = vpop.permute.xlu2 %945 }
  0xaa   : > { %v530_v37 = vsel %vm525_vm3, %v521_v35, %v887_v32  ;;  %v531_v40 = vsel %vm525_vm3, %v522_v36, %v888_v31  ;;  %v948_v32 = vunpack.i.h.bf16 %v946_v9  ;;  %v947_v33 = vunpack.i.l.bf16 %v946_v9 }
  0xab   : > { %v539_v44 = vsel %vm534_vm4, %v530_v37, %v892_v28  ;;  %v540_v45 = vsel %vm534_vm4, %v531_v40, %v893_v14 }
  0xac   : > { %v548_v3 = vsel %vm543_vm5, %v539_v44, %v897_v22  ;;  %v549_v46 = vsel %vm543_vm5, %v540_v45, %v898_v20  ;;  %v515_v37 = vsel %vm172_vm0, %v1124_v21, %v948_v32  ;;  %v514_v40 = vsel %vm172_vm0, %v1087_v4, %v947_v33 }
  0xad   : > { %v557_v48 = vsel %vm552_vm6, %v548_v3, %v902_v27  ;;  %v558_v49 = vsel %vm552_vm6, %v549_v46, %v903_v26 }
  0xae   : > { %v906_v50 = vpop.permute.xlu0 %905  ;;  %v566_v51 = vsel %vm561_vm7, %v557_v48, %v912_v42  ;;  %v567_v52 = vsel %vm561_vm7, %v558_v49, %v913_v41 }
  0xaf   : > { %v574_v53 = vpack.c.bf16 %v567_v52, %v566_v51  ;;  %v908_v56 = vunpack.i.h.bf16 %v906_v50  ;;  %v907_v57 = vunpack.i.l.bf16 %v906_v50  ;;  %v941_v0 = vpop.permute.xlu1 %940 }
  0xb0   : > { %v943_v18 = vunpack.i.h.bf16 %v941_v0  ;;  %v942_v19 = vunpack.i.l.bf16 %v941_v0 }
  0xb1   : > { %684 = vmatmul.bf16.vlgmr.msra.gmra.mxu2 %v574_v53  ;;  %v508_v61 = vsel %vm172_vm0, %v211_v58, %v907_v57  ;;  %v509_v62 = vsel %vm172_vm0, %v1144_v38, %v908_v56  ;;  %v577_v38 = vpack.c.bf16 %v283_v12, %v1172_v54  ;;  %v961_v30 = vpop.permute.xlu2 %960 }
  0xb2   : > { %v517_v5 = vsel %vm516_vm2, %v508_v61, %v917_v60  ;;  %v518_v6 = vsel %vm516_vm2, %v509_v62, %v918_v59  ;;  %v963_v47 = vunpack.i.h.bf16 %v961_v30  ;;  %v962_v48 = vunpack.i.l.bf16 %v961_v30 }
  0xb3   : > { %835 = vmatmul.msk.bf16.gmra.mxu3 %vm172_vm0, %v577_v38 }
  0xb6   : > { %v921_v63 = vpop.permute.xlu0 %920 }
  0xb7   : > { %v923_v1 = vunpack.i.h.bf16 %v921_v63  ;;  %v922_v2 = vunpack.i.l.bf16 %v921_v63  ;;  %v956_v26 = vpop.permute.xlu1 %955 }
  0xb8   : > { %v958_v41 = vunpack.i.h.bf16 %v956_v26  ;;  %v957_v42 = vunpack.i.l.bf16 %v956_v26 }
  0xb9   : > { %v526_v10 = vsel %vm525_vm3, %v517_v5, %v922_v2  ;;  %v527_v11 = vsel %vm525_vm3, %v518_v6, %v923_v1  ;;  %v976_v44 = vpop.permute.xlu2 %975 }
  0xba   : > { %v535_v16 = vsel %vm534_vm4, %v526_v10, %v927_v8  ;;  %v536_v17 = vsel %vm534_vm4, %v527_v11, %v928_v7  ;;  %v978_v60 = vunpack.i.h.bf16 %v976_v44  ;;  %v977_v61 = vunpack.i.l.bf16 %v976_v44 }
  0xbb   : > { %v544_v24 = vsel %vm543_vm5, %v535_v16, %v932_v15  ;;  %v545_v25 = vsel %vm543_vm5, %v536_v17, %v933_v13 }
  0xbc   : > { %v511_v10 = vsel %vm172_vm0, %v1154_v43, %v978_v60  ;;  %v510_v11 = vsel %vm172_vm0, %v1146_v39, %v977_v61 }
  0xbe   : > { %v936_v20 = vpop.permute.xlu0 %935 }
  0xbf   : > { %v938_v22 = vunpack.i.h.bf16 %v936_v20  ;;  %v937_v23 = vunpack.i.l.bf16 %v936_v20  ;;  %v971_v36 = vpop.permute.xlu1 %970 }
  0xc0   : > { %v973_v53 = vunpack.i.h.bf16 %v971_v36  ;;  %v972_v55 = vunpack.i.l.bf16 %v971_v36  ;;  %v709_v36 = vpop.f32.mrf.mxu3 }
  0xc1   : > { %v553_v27 = vsel %vm552_vm6, %v544_v24, %v937_v23  ;;  %v554_v54 = vsel %vm552_vm6, %v545_v25, %v938_v22  ;;  %v991_v0 = vpop.permute.xlu2 %990 }
  0xc2   : > { %v562_v14 = vsel %vm561_vm7, %v553_v27, %v942_v19  ;;  %v563_v28 = vsel %vm561_vm7, %v554_v54, %v943_v18  ;;  %v993_v12 = vunpack.i.h.bf16 %v991_v0  ;;  %v992_v13 = vunpack.i.l.bf16 %v991_v0 }
  0xc3   : > { %v570_v29 = vpack.c.bf16 %v563_v28, %v562_v14 }
  0xc5   : > { %674 = vmatmul.bf16.vlgmr.msra.gmra.mxu0 %v570_v29 }
  0xc6   : > { %v951_v31 = vpop.permute.xlu0 %950 }
  0xc7   : > { %v953_v34 = vunpack.i.h.bf16 %v951_v31  ;;  %v952_v35 = vunpack.i.l.bf16 %v951_v31  ;;  %v986_v56 = vpop.permute.xlu1 %985 }
  0xc8   : > { %v988_v7 = vunpack.i.h.bf16 %v986_v56  ;;  %v987_v8 = vunpack.i.l.bf16 %v986_v56 }
  0xc9   : > { %v524_v45 = vsel %vm516_vm2, %v515_v37, %v953_v34  ;;  %v523_v3 = vsel %vm516_vm2, %v514_v40, %v952_v35  ;;  %v1006_v24 = vpop.permute.xlu2 %1005  ;;  %v711_v37 = vpop.f32.mrf.mxu3  ;;  %v1014_v40 = vld [vmem:[%s1322_s2] ss:$0 sm:$0xff] }
  0xca   : > { %v532_v49 = vsel %vm525_vm3, %v523_v3, %v957_v42  ;;  %v533_v50 = vsel %vm525_vm3, %v524_v45, %v958_v41  ;;  %v519_v15 = vsel %vm516_vm2, %v510_v11, %v987_v8  ;;  %v520_v38 = vsel %vm516_vm2, %v511_v10, %v988_v7 }
  0xcb   : > { %v541_v21 = vsel %vm534_vm4, %v532_v49, %v962_v48  ;;  %v542_v4 = vsel %vm534_vm4, %v533_v50, %v963_v47  ;;  %v528_v20 = vsel %vm525_vm3, %v519_v15, %v992_v13  ;;  %v529_v22 = vsel %vm525_vm3, %v520_v38, %v993_v12  ;;  %v704_v49 = vpop.f32.mrf.mxu1 }
  0xcc   : > { %v1008_v26 = vunpack.i.h.bf16 %v1006_v24  ;;  %v1007_v27 = vunpack.i.l.bf16 %v1006_v24 }
  0xce   : > { %v966_v46 = vpop.permute.xlu0 %965 }
  0xcf   : > { %v968_v51 = vunpack.i.h.bf16 %v966_v46  ;;  %v967_v52 = vunpack.i.l.bf16 %v966_v46  ;;  %v1001_v17 = vpop.permute.xlu1 %1000 }
  0xd0   : > { %v1003_v23 = vunpack.i.h.bf16 %v1001_v17  ;;  %v1002_v43 = vunpack.i.l.bf16 %v1001_v17 }
  0xd1   : > { %v550_v57 = vsel %vm543_vm5, %v541_v21, %v967_v52  ;;  %v551_v58 = vsel %vm543_vm5, %v542_v4, %v968_v51  ;;  %v714_v41 = vpop.f32.mrf.mxu3 }
  0xd2   : > { %v559_v1 = vsel %vm552_vm6, %v550_v57, %v972_v55  ;;  %v560_v2 = vsel %vm552_vm6, %v551_v58, %v973_v53 }
  0xd3   : > { %v706_v4 = vpop.f32.mrf.mxu1 }
  0xd6   : > { %v981_v59 = vpop.permute.xlu0 %980 }
  0xd7   : > { %v983_v62 = vunpack.i.h.bf16 %v981_v59  ;;  %v982_v63 = vunpack.i.l.bf16 %v981_v59 }
  0xd9   : > { %v568_v5 = vsel %vm561_vm7, %v559_v1, %v982_v63  ;;  %v569_v6 = vsel %vm561_vm7, %v560_v2, %v983_v62  ;;  %v716_v46 = vpop.f32.mrf.mxu3 }
  0xda   : > { %v576_v9 = vpack.c.bf16 %v569_v6, %v568_v5 }
  0xdc   : > { %689 = vmatmul.bf16.gmra.mxu2 %v576_v9 }
  0xde   : > { %v996_v16 = vpop.permute.xlu0 %995 }
  0xdf   : > { %v998_v18 = vunpack.i.h.bf16 %v996_v16  ;;  %v997_v19 = vunpack.i.l.bf16 %v996_v16 }
  0xe1   : > { %v538_v39 = vsel %vm534_vm4, %v529_v22, %v998_v18  ;;  %v537_v25 = vsel %vm534_vm4, %v528_v20, %v997_v19 }
  0xe2   : > { %v546_v54 = vsel %vm543_vm5, %v537_v25, %v1002_v43  ;;  %v547_v14 = vsel %vm543_vm5, %v538_v39, %v1003_v23 }
  0xe3   : > { %v555_v31 = vsel %vm552_vm6, %v546_v54, %v1007_v27  ;;  %v556_v32 = vsel %vm552_vm6, %v547_v14, %v1008_v26 }
  0xe6   : > { %v1011_v28 = vpop.permute.xlu0 %1010 }
  0xe7   : > { %v1013_v29 = vunpack.i.h.bf16 %v1011_v28  ;;  %v1012_v30 = vunpack.i.l.bf16 %v1011_v28 }
  0xe9   : > { %v564_v33 = vsel %vm561_vm7, %v555_v31, %v1012_v30  ;;  %v565_v34 = vsel %vm561_vm7, %v556_v32, %v1013_v29 }
  0xea   : > { %v572_v35 = vpack.c.bf16 %v565_v34, %v564_v33 }
  0xec   : > { %679 = vmatmul.bf16.gmra.mxu0 %v572_v35 }
 0x134   : > { %v685_v42 = vpop.f32.mrf.mxu2 }
 0x135   : > { %v686_v44 = vadd.f32 %v1014_v40, %v685_v42 }
 0x136   : > { %v719_v56 = vpop.f32.mrf.mxu3 }
 0x137   : > { %v715_v45 = vadd.f32 %v714_v41, %v686_v44 }
 0x139   : > { %728 = vst.msk [vmem:[%s1299_s23 + $0x20] sm:$0xff] %vm534_vm4, %v715_v45 }
 0x13c   : > { %v687_v3 = vpop.f32.mrf.mxu2 }
 0x13d   : > { %v688_v47 = vadd.f32 %v1014_v40, %v687_v3 }
 0x13e   : > { %v721_v61 = vpop.f32.mrf.mxu3 }
 0x13f   : > { %v717_v48 = vadd.f32 %v716_v46, %v688_v47 }
 0x141   : > { %729 = vst.msk [vmem:[%s1299_s23 + $0x28] sm:$0xff] %vm534_vm4, %v717_v48 }
 0x142   : > { %v675_v50 = vpop.f32.mrf.mxu0 }
 0x143   : > { %v676_v51 = vadd.f32 %v1014_v40, %v675_v50 }
 0x145   : > { %v705_v52 = vadd.f32 %v704_v49, %v676_v51 }
 0x147   : > { %724 = vst.msk [vmem:[%s1299_s23] sm:$0xff] %vm534_vm4, %v705_v52 }
 0x14a   : > { %v677_v21 = vpop.f32.mrf.mxu0 }
 0x14b   : > { %v678_v53 = vadd.f32 %v1014_v40, %v677_v21 }
 0x14d   : > { %v707_v55 = vadd.f32 %v706_v4, %v678_v53 }
 0x14f   : > { %725 = vst.msk [vmem:[%s1299_s23 + $0x8] sm:$0xff] %vm534_vm4, %v707_v55 }
 0x15f   : > { %v690_v57 = vpop.f32.mrf.mxu2 }
 0x160   : > { %v691_v58 = vadd.f32 %v1014_v40, %v690_v57 }
 0x162   : > { %v720_v59 = vadd.f32 %v719_v56, %v691_v58 }
 0x164   : > { %730 = vst.msk [vmem:[%s1299_s23 + $0x30] sm:$0xff] %vm534_vm4, %v720_v59 }
 0x167   : > { %v692_v60 = vpop.f32.mrf.mxu2 }
 0x168   : > { %v693_v62 = vadd.f32 %v1014_v40, %v692_v60 }
 0x169   : > { %v680_v63 = vpop.f32.mrf.mxu0 }
 0x16a   : > { %v681_v0 = vadd.f32 %v1014_v40, %v680_v63  ;;  %v722_v1 = vadd.f32 %v721_v61, %v693_v62 }
 0x16c   : > { %v710_v2 = vadd.f32 %v709_v36, %v681_v0  ;;  %731 = vst.msk [vmem:[%s1299_s23 + $0x38] sm:$0xff] %vm534_vm4, %v722_v1 }
 0x16e   : > { %726 = vst.msk [vmem:[%s1299_s23 + $0x10] sm:$0xff] %vm534_vm4, %v710_v2 }
 0x171   : > { %v682_v5 = vpop.f32.mrf.mxu0 }
 0x172   : > { %v683_v6 = vadd.f32 %v1014_v40, %v682_v5 }
 0x174   : > { %v712_v7 = vadd.f32 %v711_v37, %v683_v6 }
 0x176   : > { %727 = vst.msk [vmem:[%s1299_s23 + $0x18] sm:$0xff] %vm534_vm4, %v712_v7 }
 0x177 PF: > { %s13_s12 = sadd.s32 1, %s1021_s12  }
 0x178   : > { %p10_p4 = scmp.ge.s32.totalorder %s13_s12, 4  }
 0x17a   :  { %12 = sbr.rel (!%p10_p4) target bundleno = 1 (0x1), region = 64 }

// kernel: dasr_forward.8
= control target key start
LH: loop header
LB: loop body
LE: loop exit
PB: predicated region body
PF: predicated region fallthrough
CT: control target
= control target key end

     0   :  { %s3893_s30 = smov 0   ;;  %s3895_s10 = smov 0   ;;  %s4973_s0 = inlined_call_operand.vmem [shape: f32[2,8,8,16], index: 0, kind: input, shape index: {}]   ;;  %s4974_s1 = inlined_call_operand.vmem [shape: f32[1,2,2,3,3,16], index: 1, kind: input, shape index: {}]   ;;  %s4975_s2 = inlined_call_operand.vmem [shape: f32[1,2,2,1,16], index: 2, kind: input, shape index: {}]   ;;  %s4976_s3 = inlined_call_operand.vmem [shape: bf16[1,2,16,16], index: 3, kind: input, shape index: {}]   ;;  %s4977_s4 = inlined_call_operand.vmem [shape: f32[1,2,1,16], index: 4, kind: input, shape index: {}]   ;;  %s4978_s5 = inlined_call_operand.vmem [shape: bf16[1,2,144,16], index: 5, kind: input, shape index: {}]   ;;  %s4979_s6 = inlined_call_operand.vmem [shape: f32[1,2,1,16], index: 6, kind: input, shape index: {}]   ;;  %s4980_s7 = inlined_call_operand.vmem [shape: bf16[144,16], index: 7, kind: input, shape index: {}]   ;;  %s4981_s8 = inlined_call_operand.vmem [shape: f32[1,16], index: 8, kind: input, shape index: {}]   ;;  %s4982_s9 = inlined_call_operand.vmem [shape: f32[2,8,8,16], index: 9, kind: output, shape index: {}]  }
   0x1   :  { %s3897_s11 = smov 0   ;;  %s3899_s12 = smov 0  }
   0x2   :  { %s3901_s13 = smov 0  }
   0x3 LB: > { %s31_s14 = sadd.s32 1, %s3829_s12  ;;  %p73_p1 = scmp.ne.s32.totalorder %s3821_s10, %s3817_s30  ;;  %s3833_s13 = sphi %s3901_s13, %s19_s13   ;;  %s3829_s12 = sphi %s3899_s12, %s5004_s12   ;;  %s3825_s11 = sphi %s3897_s11, %s5003_s11   ;;  %s3821_s10 = sphi %s3895_s10, %s5002_s10   ;;  %s3817_s30 = sphi %s3893_s30, %s5001_s30  }
   0x4   : > { %p33_p0 = scmp.ge.s32.totalorder %s31_s14, 2  ;;  %p74_p2 = scmp.eq.s32.totalorder %s3833_s13, 0 }
   0x5   : > { %s66_s17 = sadd.s32 1, %s3821_s10  ;;  %p3138_p5 = scmp.ge.s32.totalorder %s3833_s13, 2 }
   0x6   : > { %s5006_s14 = smov (%p33_p0, %s31_s14), 0  ;;  %p3924_p3 = por %p74_p2, %p73_p1 }
   0x7   : > { %s62_s16 = ssub.s32 %s3829_s12, %s5006_s14  ;;  %335 = sbr.rel (%p3138_p5) target bundleno = 26 (0x1a), region = 40 }
   0x8   : > { %p64_p4 = scmp.eq.s32.totalorder %s62_s16, 0 }
   0xa   : > { %s3932_s18 = scalar_select %p64_p4, %s3821_s10, %s66_s17  }
   0xc   : > { %346 = sbr.rel (!%p3924_p3) target bundleno = 21 (0x15), region = 48  ;;  %s348_s19 = sand.u32 (%p3924_p3), 1, %s3821_s10  }
   0xd   : > { %s3318_s20 = smul.u32 (%p3924_p3), 12, %s3829_s12 }
   0xe   : > { %s3317_s21 = smul.u32 (%p3924_p3), 24, %s348_s19 }
   0xf   : > { %s355_s24 = scalar_lea.vmem (%p3924_p3), %s4974_s1, %s3318_s20 }
  0x10   : > { %v372_v0 = vld [vmem:[%s355_s24] sm:$0xff] (%p3924_p3)   ;;  %v376_v1 = vld [vmem:[%s355_s24 + $0x8] sm:$0xf] (%p3924_p3)  ;;  %v378_v2 = vld [vmem:[%s355_s24 + $0x18] sm:$0xff] (%p3924_p3)   ;;  %s350_s25 = scalar_lea.vmem (%p3924_p3), [#allocation5], %s3317_s21 }
  0x11   : > { %373 = vst [vmem:[%s350_s25] sm:$0xff] %v372_v0   ;;  %v382_v3 = vld [vmem:[%s355_s24 + $0x20] sm:$0xf] }
  0x12   : > { %377 = vst [vmem:[%s350_s25 + $0x8] sm:$0xf] %v376_v1 }
  0x13   : > { %379 = vst [vmem:[%s350_s25 + $0xc] sm:$0xff] %v378_v2  }
  0x14   : > { %383 = vst [vmem:[%s350_s25 + $0x14] sm:$0xf] %v382_v3 }
  0x15 PF: > { %419 = sbr.rel (!%p3924_p3) target bundleno = 26 (0x1a), region = 89  ;;  %s421_s26 = sand.u32 (%p3924_p3), 1, %s3821_s10  }
  0x16   : > { %s426_s29 = scalar_lea.vmem (%p3924_p3), %s4975_s2, %s3829_s12  ;;  %s3140_s16 = sshll.u32 (%p3924_p3), %s421_s26, 1 }
  0x17   : > { %v443_v4 = vld [vmem:[%s426_s29] sm:$0x1] (%p3924_p3)  ;;  %v445_v5 = vld [vmem:[%s426_s29 + $0x2] sm:$0x1] (%p3924_p3)  ;;  %s423_s17 = scalar_lea.vmem (%p3924_p3), [#allocation6], %s3140_s16 }
  0x18   : > { %444 = vst [vmem:[%s423_s17] sm:$0x1] (%p3924_p3), %v443_v4 }
  0x19   : > { %446 = vst [vmem:[%s423_s17 + $0x1] sm:$0x1] (%p3924_p3), %v445_v5 }
  0x1a PF: > { %p3141_p6 = scmp.ge.s32.totalorder %s3833_s13, 1  ;;  %p465_p7 = scmp.lt.s32.totalorder %s3833_s13, 3 }
  0x1c   : > { %p466_p8 = pnand %p3141_p6, %p465_p7 }
  0x1d   : > { %s472_s20 = sand.u32 (!%p466_p8), 1, %s3817_s30   ;;  %p541_p9 = scmp.lt.s32.totalorder (!%p466_p8), %s3825_s11, 1 }
  0x1e   : > { %469 = sbr.rel (%p466_p8) target bundleno = 1316 (0x524), region = 123  ;;  %s3980_s25 = sshll.u32 (!%p466_p8), %s472_s20, 1 }
  0x1f   : > { %s3319_s21 = smul.u32 (!%p466_p8), 24, %s472_s20  ;;  %s481_s27 = scalar_lea.vmem (!%p466_p8), [#allocation6], %s3980_s25 }
  0x20   : > { %s3836_s15 = smov (!%p466_p8), 16   ;;  %s4986_s19 = smov (!%p466_p8), 80  }
  0x21   : > { %s3987_s26 = scalar_lea.vmem (!%p466_p8), [#allocation5], %s3319_s21  ;;  %s4988_s20 = smov (!%p466_p8), 48  }
  0x22   : > { %s3839_s21 = smov (!%p466_p8), 32   ;;  %s4984_s22 = smov (!%p466_p8), 64  }
  0x23   : > { %v3287_v6 = vld [vmem:[%s4976_s3] sm:$0xff]  ;;  %vm570_vm0 = vcmask 130048   ;;  %vm572_vm1 = vcmask 123904   ;;  %v3835_v7 = vmov 0.0   ;;  %s5008_s11 = smov (!%p541_p9, %s3825_s11), 1  ;;  %s4992_s23 = smov 96  }
  0x24   : > { %571 = vst.msk [vmem:[#allocation4] sm:$0xff] %vm570_vm0, %v3835_v7  ;;  %971 = vmatpush.bf16.msra.mxu0 %v3287_v6  ;;  %s4983_s30 = sshll.u32 %s5008_s11, 6  ;;  %v620_v10 = vld [vmem:[%s3987_s26] sm:$0x7]  ;;  %v621_v22 = vld [vmem:[%s3987_s26 + $0x4] sm:$0x7] }
  0x25   : > { %573 = vst.msk [vmem:[#allocation4 + $0x8] sm:$0x3] %vm572_vm1, %v3835_v7  ;;  %s3973_s24 = scalar_lea.vmem %s4973_s0, %s4983_s30  ;;  %v3998_v12 = vperm.slane %v620_v10, 0  ;;  %v4003_v13 = vperm.slane %v620_v10, 1  ;;  %v4016_v18 = vperm.slane %v620_v10, 2  ;;  %v4042_v27 = vperm.slane %v621_v22, 0 }
  0x26   : > { %574 = vst.msk [vmem:[#allocation4 + $0x10] sm:$0xff] %vm570_vm0, %v3835_v7  ;;  %v596_v8 = vld [vmem:[%s3973_s24] sm:$0xff]  ;;  %v3985_v9 = vld [vmem:[%s3973_s24 + $0x8] sm:$0xff]  ;;  %v3993_v11 = vld [vmem:[%s3973_s24 + $0x10] sm:$0xff]  ;;  %v4046_v28 = vperm.slane %v621_v22, 1  ;;  %v4050_v30 = vperm.slane %v621_v22, 2 }
  0x27   : > { %575 = vst.msk [vmem:[#allocation4 + $0x18] sm:$0x3] %vm572_vm1, %v3835_v7  ;;  %v622_v26 = vld [vmem:[%s3987_s26 + $0x8] sm:$0x7]  ;;  %v599_v47 = vld [vmem:[%s3973_s24 + $0x18] sm:$0xff]  ;;  %v602_v3 = vld [vmem:[%s3973_s24 + $0x30] sm:$0xff] }
  0x28   : > { %576 = vst.msk [vmem:[#allocation4 + $0x20] sm:$0xff] %vm570_vm0, %v3835_v7  ;;  %v4054_v34 = vperm.slane %v622_v26, 0  ;;  %v4065_v42 = vperm.slane %v622_v26, 1  ;;  %v4074_v50 = vperm.slane %v622_v26, 2  ;;  %v600_v51 = vld [vmem:[%s3973_s24 + $0x20] sm:$0xff]  ;;  %v601_v63 = vld [vmem:[%s3973_s24 + $0x28] sm:$0xff] }
  0x29   : > { %577 = vst.msk [vmem:[#allocation4 + $0x28] sm:$0x3] %vm572_vm1, %v3835_v7  ;;  %s4995_s25 = smov 48   ;;  %s4997_s17 = smov 64  }
  0x2a   : > { %578 = vst.msk [vmem:[#allocation4 + $0x30] sm:$0xff] %vm570_vm0, %v3835_v7  ;;  %s4998_s30 = smov 96   ;;  %s5000_s16 = sshll.u32 %s5008_s11, 6 }
  0x2b   : > { %579 = vst.msk [vmem:[#allocation4 + $0x38] sm:$0x3] %vm572_vm1, %v3835_v7  ;;  %v689_v14 = vld [vmem:[#allocation4] sm:$0xff] }
  0x2c   : > { %604 = vst.msk [vmem:[#allocation2] sm:$0xff] %vm570_vm0, %v596_v8  ;;  %v4005_v15 = vld [vmem:[#allocation4 + $0x1] sm:$0xff]  ;;  %v698_v16 = vmul.f32 %v3998_v12, %v689_v14 }
  0x2d   : > { %605 = vst.msk [vmem:[#allocation2 + $0x8] sm:$0xff] %vm570_vm0, %v3985_v9  ;;  %v723_v17 = vmul.f32 %v4003_v13, %v4005_v15  ;;  %v4022_v20 = vld [vmem:[#allocation4 + $0x2] sm:$0xff] }
  0x2e   : > { %606 = vst.msk [vmem:[#allocation2 + $0x10] sm:$0xff] %vm570_vm0, %v3993_v11  ;;  %v748_v25 = vmul.f32 %v4016_v18, %v4022_v20 }
  0x2f   : > { %580 = vst.msk [vmem:[#allocation4 + $0x40] sm:$0xff] %vm570_vm0, %v3835_v7  ;;  %v731_v24 = vadd.f32 %v723_v17, %v698_v16 }
  0x30   : > { %581 = vst.msk [vmem:[#allocation4 + $0x48] sm:$0x3] %vm572_vm1, %v3835_v7 }
  0x31   : > { %582 = vst.msk [vmem:[#allocation4 + $0x50] sm:$0xff] %vm570_vm0, %v3835_v7  ;;  %v756_v29 = vadd.f32 %v748_v25, %v731_v24 }
  0x32   : > { %583 = vst.msk [vmem:[#allocation4 + $0x58] sm:$0x3] %vm572_vm1, %v3835_v7 }
  0x33   : > { %v4020_v19 = vld [vmem:[#allocation2] sm:$0xff]  ;;  %584 = vst.msk [vmem:[#allocation4 + $0x60] sm:$0xff] %vm570_vm0, %v3835_v7 }
  0x34   : > { %v4026_v21 = vld [vmem:[#allocation2 + $0x8] sm:$0xff]  ;;  %681 = vst.msk [vmem:[#allocation4 + $0x11] sm:$0xff] %vm570_vm0, %v4020_v19 }
  0x35   : > { %v4031_v23 = vld [vmem:[#allocation2 + $0x10] sm:$0xff]  ;;  %682 = vst.msk [vmem:[#allocation4 + $0x21] sm:$0xff] %vm570_vm0, %v4026_v21 }
  0x36   : > { %683 = vst.msk [vmem:[#allocation4 + $0x31] sm:$0xff] %vm570_vm0, %v4031_v23 }
  0x37   : > { %585 = vst.msk [vmem:[#allocation4 + $0x68] sm:$0x3] %vm572_vm1, %v3835_v7 }
  0x38   : > { %586 = vst.msk [vmem:[#allocation4 + $0x70] sm:$0xff] %vm570_vm0, %v3835_v7 }
  0x39   : > { %587 = vst.msk [vmem:[#allocation4 + $0x78] sm:$0x3] %vm572_vm1, %v3835_v7 }
  0x3a   : > { %588 = vst.msk [vmem:[#allocation4 + $0x80] sm:$0xff] %vm570_vm0, %v3835_v7 }
  0x3b   : > { %v690_v31 = vld [vmem:[#allocation4 + $0x10] sm:$0xff]  ;;  %589 = vst.msk [vmem:[#allocation4 + $0x88] sm:$0x3] %vm572_vm1, %v3835_v7 }
  0x3c   : > { %v715_v32 = vld [vmem:[#allocation4 + $0x11] sm:$0xff]  ;;  %v699_v35 = vmul.f32 %v3998_v12, %v690_v31  ;;  %v765_v38 = vld [vmem:[#allocation4 + $0x20] sm:$0xff]  ;;  %v773_v39 = vmul.f32 %v4042_v27, %v690_v31  ;;  %590 = vst.msk [vmem:[#allocation4 + $0x90] sm:$0xff] %vm570_vm0, %v3835_v7 }
  0x3d   : > { %v740_v33 = vld [vmem:[#allocation4 + $0x12] sm:$0xff]  ;;  %v724_v36 = vmul.f32 %v4003_v13, %v715_v32  ;;  %v790_v40 = vld [vmem:[#allocation4 + $0x21] sm:$0xff]  ;;  %v798_v41 = vmul.f32 %v4046_v28, %v715_v32  ;;  %591 = vst.msk [vmem:[#allocation4 + $0x98] sm:$0x3] %vm572_vm1, %v3835_v7  ;;  %v774_v44 = vmul.f32 %v4042_v27, %v765_v38  ;;  %v849_v55 = vmul.f32 %v4054_v34, %v765_v38 }
  0x3e   : > { %v749_v37 = vmul.f32 %v4016_v18, %v740_v33  ;;  %v781_v45 = vadd.f32 %v773_v39, %v756_v29  ;;  %v823_v46 = vmul.f32 %v4050_v30, %v740_v33  ;;  %612 = vst.msk [vmem:[#allocation3] sm:$0xff] %vm570_vm0, %v596_v8  ;;  %v799_v48 = vmul.f32 %v4046_v28, %v790_v40  ;;  %v815_v49 = vld [vmem:[#allocation4 + $0x22] sm:$0xff]  ;;  %v841_v54 = vld [vmem:[#allocation4 + $0x30] sm:$0xff]  ;;  %v603_v32 = vld [vmem:[%s3973_s24 + $0x38] sm:$0xff]  ;;  %s4990_s24 = smov 112  }
  0x3f   : > { %v732_v43 = vadd.f32 %v724_v36, %v699_v35  ;;  %613 = vst.msk [vmem:[#allocation3 + $0x8] sm:$0xff] %vm570_vm0, %v3985_v9  ;;  %v700_v56 = vmul.f32 %v765_v38, %v3998_v12  ;;  %v725_v57 = vmul.f32 %v790_v40, %v4003_v13  ;;  %v750_v58 = vmul.f32 %v815_v49, %v4016_v18  ;;  %v866_v1 = vld [vmem:[#allocation4 + $0x31] sm:$0xff] }
  0x40   : > { %v806_v53 = vadd.f32 %v798_v41, %v781_v45  ;;  %614 = vst.msk [vmem:[#allocation3 + $0x10] sm:$0xff] %vm570_vm0, %v3993_v11  ;;  %v824_v60 = vmul.f32 %v4050_v30, %v815_v49  ;;  %v874_v62 = vmul.f32 %v4065_v42, %v790_v40  ;;  %v850_v0 = vmul.f32 %v4054_v34, %v841_v54  ;;  %v891_v6 = vld [vmem:[#allocation4 + $0x32] sm:$0xff] }
  0x41   : > { %v757_v52 = vadd.f32 %v749_v37, %v732_v43  ;;  %607 = vst.msk [vmem:[#allocation2 + $0x18] sm:$0xff] %vm570_vm0, %v599_v47  ;;  %v733_v2 = vadd.f32 %v725_v57, %v700_v56  ;;  %v899_v7 = vmul.f32 %v4074_v50, %v815_v49  ;;  %v775_v8 = vmul.f32 %v841_v54, %v4042_v27 }
  0x42   : > { %v831_v61 = vadd.f32 %v823_v46, %v806_v53  ;;  %608 = vst.msk [vmem:[#allocation2 + $0x20] sm:$0xff] %vm570_vm0, %v600_v51  ;;  %v875_v11 = vmul.f32 %v4065_v42, %v866_v1  ;;  %v900_v16 = vmul.f32 %v4074_v50, %v891_v6  ;;  %v701_v17 = vmul.f32 %v841_v54, %v3998_v12 }
  0x43   : > { %v782_v59 = vadd.f32 %v774_v44, %v757_v52  ;;  %615 = vst.msk [vmem:[#allocation3 + $0x18] sm:$0xff] %vm570_vm0, %v599_v47  ;;  %v758_v9 = vadd.f32 %v750_v58, %v733_v2  ;;  %v726_v22 = vmul.f32 %v866_v1, %v4003_v13  ;;  %v800_v31 = vmul.f32 %v866_v1, %v4046_v28 }
  0x44   : > { %v857_v5 = vadd.f32 %v849_v55, %v831_v61  ;;  %616 = vst.msk [vmem:[#allocation3 + $0x20] sm:$0xff] %vm570_vm0, %v600_v51  ;;  %v751_v38 = vmul.f32 %v891_v6, %v4016_v18  ;;  %v825_v41 = vmul.f32 %v891_v6, %v4050_v30 }
  0x45   : > { %v807_v4 = vadd.f32 %v799_v48, %v782_v59  ;;  %609 = vst.msk [vmem:[#allocation2 + $0x28] sm:$0xff] %vm570_vm0, %v601_v63  ;;  %v783_v29 = vadd.f32 %v775_v8, %v758_v9  ;;  %v734_v37 = vadd.f32 %v726_v22, %v701_v17 }
  0x46   : > { %v882_v14 = vadd.f32 %v874_v62, %v857_v5  ;;  %610 = vst.msk [vmem:[#allocation2 + $0x30] sm:$0xff] %vm570_vm0, %v602_v3 }
  0x47   : > { %v832_v10 = vadd.f32 %v824_v60, %v807_v4  ;;  %617 = vst.msk [vmem:[#allocation3 + $0x28] sm:$0xff] %vm570_vm0, %v601_v63  ;;  %v808_v40 = vadd.f32 %v800_v31, %v783_v29  ;;  %v759_v47 = vadd.f32 %v751_v38, %v734_v37 }
  0x48   : > { %v907_v25 = vadd.f32 %v899_v7, %v882_v14  ;;  %v4103_v26 = vld [vmem:[#allocation2 + $0x18] sm:$0xff]  ;;  %618 = vst.msk [vmem:[#allocation3 + $0x30] sm:$0xff] %vm570_vm0, %v602_v3 }
  0x49   : > { %v858_v24 = vadd.f32 %v850_v0, %v832_v10  ;;  %v4108_v33 = vld [vmem:[#allocation2 + $0x20] sm:$0xff]  ;;  %684 = vst.msk [vmem:[#allocation4 + $0x41] sm:$0xff] %vm570_vm0, %v4103_v26  ;;  %v833_v53 = vadd.f32 %v825_v41, %v808_v40 }
  0x4a   : > { %v923_v36 = vmul.f32 0.1, %v907_v25  ;;  %685 = vst.msk [vmem:[#allocation4 + $0x51] sm:$0xff] %vm570_vm0, %v4108_v33  ;;  %vm915_vm2 = vcmp.ge.f32.partialorder %v907_v25, 0.0 }
  0x4b   : > { %v883_v35 = vadd.f32 %v875_v11, %v858_v24  ;;  %611 = vst.msk [vmem:[#allocation2 + $0x38] sm:$0xff] %vm570_vm0, %v603_v32 }
  0x4c   : > { %v4117_v43 = vld [vmem:[#allocation2 + $0x28] sm:$0xff]  ;;  %619 = vst.msk [vmem:[#allocation3 + $0x38] sm:$0xff] %vm570_vm0, %v603_v32  ;;  %v931_v46 = vsel %vm915_vm2, %v907_v25, %v923_v36 }
  0x4d   : > { %v908_v39 = vadd.f32 %v900_v16, %v883_v35  ;;  %v4120_v44 = vld [vmem:[#allocation2 + $0x30] sm:$0xff]  ;;  %686 = vst.msk [vmem:[#allocation4 + $0x61] sm:$0xff] %vm570_vm0, %v4117_v43 }
  0x4e   : > { %687 = vst.msk [vmem:[#allocation4 + $0x71] sm:$0xff] %vm570_vm0, %v4120_v44 }
  0x4f   : > { %vm916_vm3 = vcmp.ge.f32.partialorder %v908_v39, 0.0  ;;  %v924_v45 = vmul.f32 0.1, %v908_v39 }
  0x50   : > { %v767_v49 = vld [vmem:[#allocation4 + $0x40] sm:$0xff] }
  0x51   : > { %v932_v48 = vsel %vm916_vm3, %v908_v39, %v924_v45  ;;  %v792_v51 = vld [vmem:[#allocation4 + $0x41] sm:$0xff]  ;;  %v776_v55 = vmul.f32 %v4042_v27, %v767_v49  ;;  %v843_v58 = vld [vmem:[#allocation4 + $0x50] sm:$0xff]  ;;  %v851_v61 = vmul.f32 %v4054_v34, %v767_v49  ;;  %v702_v5 = vmul.f32 %v767_v49, %v3998_v12 }
  0x52   : > { %v817_v52 = vld [vmem:[#allocation4 + $0x42] sm:$0xff]  ;;  %v939_v54 = vpack.c.bf16 %v932_v48, %v931_v46  ;;  %v801_v56 = vmul.f32 %v4046_v28, %v792_v51  ;;  %v868_v59 = vld [vmem:[#allocation4 + $0x51] sm:$0xff]  ;;  %v852_v62 = vmul.f32 %v4054_v34, %v843_v58  ;;  %v876_v63 = vmul.f32 %v4065_v42, %v792_v51 }
  0x53   : > { %v826_v57 = vmul.f32 %v4050_v30, %v817_v52  ;;  %v893_v60 = vld [vmem:[#allocation4 + $0x52] sm:$0xff]  ;;  %v877_v0 = vmul.f32 %v4065_v42, %v868_v59  ;;  %v784_v2 = vadd.f32 %v776_v55, %v759_v47  ;;  %v901_v3 = vmul.f32 %v4074_v50, %v817_v52 }
  0x54   : > { %v4133_v1 = vld [vmem:[#allocation2 + $0x38] sm:$0xff]  ;;  %3151 = vmatmul.msk.bf16.vlgmr.msra.gmra.mxu0 %vm570_vm0, %v939_v54  ;;  %v902_v4 = vmul.f32 %v4074_v50, %v893_v60  ;;  %v859_v6 = vadd.f32 %v851_v61, %v833_v53  ;;  %v703_v7 = vmul.f32 %v843_v58, %v3998_v12  ;;  %v727_v8 = vmul.f32 %v792_v51, %v4003_v13  ;;  %v769_v10 = vld [vmem:[#allocation4 + $0x60] sm:$0xff] }
  0x55   : > { %v728_v9 = vmul.f32 %v868_v59, %v4003_v13  ;;  %v794_v11 = vld [vmem:[#allocation4 + $0x61] sm:$0xff]  ;;  %688 = vst.msk [vmem:[#allocation4 + $0x81] sm:$0xff] %vm570_vm0, %v4133_v1  ;;  %v809_v14 = vadd.f32 %v801_v56, %v784_v2  ;;  %v752_v16 = vmul.f32 %v817_v52, %v4016_v18  ;;  %v753_v17 = vmul.f32 %v893_v60, %v4016_v18  ;;  %v845_v35 = vld [vmem:[#allocation4 + $0x70] sm:$0xff] }
  0x56   : > { %v777_v22 = vmul.f32 %v843_v58, %v4042_v27  ;;  %v819_v24 = vld [vmem:[#allocation4 + $0x62] sm:$0xff]  ;;  %v884_v25 = vadd.f32 %v876_v63, %v859_v6  ;;  %v735_v29 = vadd.f32 %v727_v8, %v702_v5  ;;  %v778_v32 = vmul.f32 %v4042_v27, %v769_v10  ;;  %v870_v47 = vld [vmem:[#allocation4 + $0x71] sm:$0xff] }
  0x57   : > { %v736_v31 = vadd.f32 %v728_v9, %v703_v7  ;;  %v834_v36 = vadd.f32 %v826_v57, %v809_v14  ;;  %v802_v37 = vmul.f32 %v868_v59, %v4046_v28  ;;  %v803_v38 = vmul.f32 %v4046_v28, %v794_v11  ;;  %v895_v48 = vld [vmem:[#allocation4 + $0x72] sm:$0xff] }
  0x58   : > { %v827_v39 = vmul.f32 %v893_v60, %v4050_v30  ;;  %v909_v40 = vadd.f32 %v901_v3, %v884_v25  ;;  %v760_v41 = vadd.f32 %v752_v16, %v735_v29  ;;  %v828_v46 = vmul.f32 %v4050_v30, %v819_v24 }
  0x59   : > { %v761_v45 = vadd.f32 %v753_v17, %v736_v31  ;;  %v860_v49 = vadd.f32 %v852_v62, %v834_v36  ;;  %v853_v51 = vmul.f32 %v4054_v34, %v769_v10  ;;  %v854_v52 = vmul.f32 %v4054_v34, %v845_v35 }
  0x5a   : > { %v878_v53 = vmul.f32 %v4065_v42, %v794_v11  ;;  %vm917_vm4 = vcmp.ge.f32.partialorder %v909_v40, 0.0  ;;  %v925_v54 = vmul.f32 0.1, %v909_v40  ;;  %v785_v55 = vadd.f32 %v777_v22, %v760_v41 }
  0x5b   : > { %v786_v56 = vadd.f32 %v778_v32, %v761_v45  ;;  %v885_v57 = vadd.f32 %v877_v0, %v860_v49  ;;  %v879_v58 = vmul.f32 %v4065_v42, %v870_v47  ;;  %v903_v59 = vmul.f32 %v4074_v50, %v819_v24 }
  0x5c   : > { %v904_v60 = vmul.f32 %v4074_v50, %v895_v48  ;;  %v933_v61 = vsel %vm917_vm4, %v909_v40, %v925_v54  ;;  %v810_v63 = vadd.f32 %v802_v37, %v785_v55  ;;  %v704_v2 = vmul.f32 %v769_v10, %v3998_v12  ;;  %v771_v8 = vld [vmem:[#allocation4 + $0x80] sm:$0xff] }
  0x5d   : > { %v811_v62 = vadd.f32 %v803_v38, %v786_v56  ;;  %v910_v3 = vadd.f32 %v902_v4, %v885_v57  ;;  %v705_v5 = vmul.f32 %v845_v35, %v3998_v12  ;;  %v729_v6 = vmul.f32 %v794_v11, %v4003_v13  ;;  %v796_v29 = vld [vmem:[#allocation4 + $0x81] sm:$0xff]  ;;  %v4176_v57 = vld [vmem:[#allocation4 + $0x91] sm:$0xff] }
  0x5e   : > { %v730_v7 = vmul.f32 %v870_v47, %v4003_v13  ;;  %v835_v0 = vadd.f32 %v827_v39, %v810_v63  ;;  %v754_v14 = vmul.f32 %v819_v24, %v4016_v18  ;;  %v755_v16 = vmul.f32 %v895_v48, %v4016_v18  ;;  %v821_v37 = vld [vmem:[#allocation4 + $0x82] sm:$0xff]  ;;  %v4181_v63 = vld [vmem:[#allocation4 + $0x92] sm:$0xff] }
  0x5f   : > { %v836_v9 = vadd.f32 %v828_v46, %v811_v62  ;;  %vm918_vm5 = vcmp.ge.f32.partialorder %v910_v3, 0.0  ;;  %v926_v17 = vmul.f32 0.1, %v910_v3  ;;  %v737_v22 = vadd.f32 %v729_v6, %v704_v2 }
  0x60   : > { %v738_v25 = vadd.f32 %v730_v7, %v705_v5  ;;  %v861_v10 = vadd.f32 %v853_v51, %v835_v0  ;;  %v779_v12 = vmul.f32 %v845_v35, %v4042_v27  ;;  %v780_v11 = vmul.f32 %v4042_v27, %v771_v8 }
  0x61   : > { %v862_v4 = vadd.f32 %v854_v52, %v836_v9  ;;  %v934_v31 = vsel %vm918_vm5, %v910_v3, %v926_v17  ;;  %v762_v13 = vadd.f32 %v754_v14, %v737_v22  ;;  %v804_v36 = vmul.f32 %v870_v47, %v4046_v28  ;;  %v4171_v52 = vld [vmem:[#allocation4 + $0x90] sm:$0xff]  ;;  %v3297_v17 = vld [vmem:[%s4978_s5 + $0x40] sm:$0xff] }
  0x62   : > { %v763_v32 = vadd.f32 %v755_v16, %v738_v25  ;;  %v940_v24 = vpack.c.bf16 %v934_v31, %v933_v61  ;;  %v886_v38 = vadd.f32 %v878_v53, %v861_v10  ;;  %v805_v39 = vmul.f32 %v4046_v28, %v796_v29  ;;  %v4190_v16 = vld [vmem:[%s481_s27] ss:$0 sm:$0xff]  ;;  %1515 = vmatpush.bf16.msra.mxu2 %v3297_v17 }
  0x63   : > { %v887_v18 = vadd.f32 %v879_v58, %v862_v4  ;;  %v787_v40 = vadd.f32 %v779_v12, %v762_v13  ;;  %v829_v45 = vmul.f32 %v895_v48, %v4050_v30  ;;  %v830_v35 = vmul.f32 %v4050_v30, %v821_v37 }
  0x64   : > { %v788_v41 = vadd.f32 %v780_v11, %v763_v32  ;;  %3152 = vmatmul.msk.bf16.gmra.mxu0 %vm570_vm0, %v940_v24  ;;  %v911_v27 = vadd.f32 %v903_v59, %v886_v38  ;;  %v855_v47 = vmul.f32 %v4054_v34, %v771_v8  ;;  %v856_v53 = vmul.f32 %v4054_v34, %v4171_v52 }
  0x65   : > { %v912_v46 = vadd.f32 %v904_v60, %v887_v18  ;;  %v812_v49 = vadd.f32 %v804_v36, %v787_v40  ;;  %v880_v30 = vmul.f32 %v4065_v42, %v796_v29  ;;  %v881_v48 = vmul.f32 %v4065_v42, %v4176_v57 }
  0x66   : > { %v813_v51 = vadd.f32 %v805_v39, %v788_v41  ;;  %v927_v28 = vmul.f32 0.1, %v911_v27  ;;  %vm919_vm6 = vcmp.ge.f32.partialorder %v911_v27, 0.0  ;;  %v905_v3 = vmul.f32 %v4074_v50, %v821_v37 }
  0x67   : > { %v928_v54 = vmul.f32 0.1, %v912_v46  ;;  %v837_v55 = vadd.f32 %v829_v45, %v812_v49  ;;  %vm920_vm7 = vcmp.ge.f32.partialorder %v912_v46, 0.0  ;;  %v906_v5 = vmul.f32 %v4074_v50, %v4181_v63  ;;  %v4195_v50 = vld [vmem:[%s4977_s4] ss:$0 sm:$0xff] }
  0x68   : > { %v838_v56 = vadd.f32 %v830_v35, %v813_v51  ;;  %v935_v58 = vsel %vm919_vm6, %v911_v27, %v927_v28  ;;  %v996_v22 = vmul.f32 %v4190_v16, %v4020_v19  ;;  %v997_v11 = vmul.f32 %v4190_v16, %v4026_v21 }
  0x69   : > { %v936_v59 = vsel %vm920_vm7, %v912_v46, %v928_v54  ;;  %v863_v60 = vadd.f32 %v855_v47, %v837_v55  ;;  %v998_v38 = vmul.f32 %v4190_v16, %v4031_v23  ;;  %v999_v47 = vmul.f32 %v4190_v16, %v4103_v26 }
  0x6a   : > { %v864_v61 = vadd.f32 %v856_v53, %v838_v56  ;;  %v941_v34 = vpack.c.bf16 %v936_v59, %v935_v58  ;;  %v1000_v59 = vmul.f32 %v4190_v16, %v4108_v33  ;;  %vm1348_vm3 = vcmask 261120  }
  0x6b   : > { %v888_v62 = vadd.f32 %v880_v30, %v863_v60  ;;  %vm1357_vm4 = vcmask 392192   ;;  %vm1366_vm5 = vcmask 523264   ;;  %vm1375_vm6 = vcmask 654336  }
  0x6c   : > { %v889_v2 = vadd.f32 %v881_v48, %v864_v61  ;;  %vm1384_vm7 = vcmask 785408  }
  0x6d   : > { %v913_v6 = vadd.f32 %v905_v3, %v888_v62 }
  0x6e   : > { %v914_v7 = vadd.f32 %v906_v5, %v889_v2 }
  0x6f   : > { %v929_v42 = vmul.f32 0.1, %v913_v6  ;;  %vm921_vm8 = vcmp.ge.f32.partialorder %v913_v6, 0.0 }
  0x70   : > { %v930_v8 = vmul.f32 0.1, %v914_v7  ;;  %vm922_vm9 = vcmp.ge.f32.partialorder %v914_v7, 0.0 }
  0x71   : > { %v937_v0 = vsel %vm921_vm8, %v913_v6, %v929_v42  ;;  %vm1393_vm8 = vcmask 916480  }
  0x72   : > { %v938_v9 = vsel %vm922_vm9, %v914_v7, %v930_v8 }
  0x73   : > { %v942_v14 = vpack.c.bf16 %v938_v9, %v937_v0  ;;  %v1001_v0 = vmul.f32 %v4190_v16, %v4117_v43 }
  0x74   : > { %3153 = vmatmul.msk.bf16.gmra.mxu0 %vm570_vm0, %v941_v34 }
  0x84   : > { %3154 = vmatmul.msk.bf16.gmra.mxu0 %vm570_vm0, %v942_v14 }
  0xd1   : > { %v973_v25 = vpop.f32.mrf.mxu0 }
  0xd2   : > { %v974_v29 = vadd.f32 %v4195_v50, %v973_v25 }
  0xd4   : > { %v1004_v10 = vadd.f32 %v996_v22, %v974_v29 }
  0xd6   : > { %vm1012_vm10 = vcmp.ge.f32.partialorder %v1004_v10, 0.0  ;;  %v1020_v4 = vmul.f32 0.1, %v1004_v10 }
  0xd8   : > { %v1028_v12 = vsel %vm1012_vm10, %v1004_v10, %v1020_v4 }
  0xd9   : > { %1036 = vst.msk [vmem:[#allocation4 + $0x11] sm:$0xff] %vm570_vm0, %v1028_v12  ;;  %v975_v31 = vpop.f32.mrf.mxu0 }
  0xda   : > { %v976_v13 = vadd.f32 %v4195_v50, %v975_v31  ;;  %v1002_v31 = vmul.f32 %v4190_v16, %v4120_v44 }
  0xdc   : > { %v1005_v32 = vadd.f32 %v997_v11, %v976_v13 }
  0xde   : > { %vm1013_vm11 = vcmp.ge.f32.partialorder %v1005_v32, 0.0  ;;  %v1021_v36 = vmul.f32 0.1, %v1005_v32 }
  0xe0   : > { %v1029_v37 = vsel %vm1013_vm11, %v1005_v32, %v1021_v36  ;;  %v1053_v24 = vld [vmem:[#allocation4 + $0x11] sm:$0xff] }
  0xe1   : > { %1037 = vst.msk [vmem:[#allocation4 + $0x21] sm:$0xff] %vm570_vm0, %v1029_v37  ;;  %v3368_v18 = vpack.i.bf16 %v1053_v24, %v4005_v15  ;;  %v978_v39 = vpop.f32.mrf.mxu0  ;;  %v1084_v35 = vld [vmem:[#allocation4 + $0x12] sm:$0xff] }
  0xe2   : > { %v979_v40 = vadd.f32 %v4195_v50, %v978_v39  ;;  %v4213_v46 = vld [vmem:[#allocation4 + $0x10] sm:$0xff]  ;;  %v3373_v54 = vpack.i.bf16 %v1084_v35, %v4022_v20 }
  0xe3   : > { %3369 = vrot.lane.b32.xlu0 %v3368_v18, %s3836_s15 }
  0xe4   : > { %v1006_v41 = vadd.f32 %v998_v38, %v979_v40 }
  0xe6   : > { %vm1014_vm12 = vcmp.ge.f32.partialorder %v1006_v41, 0.0  ;;  %v1022_v45 = vmul.f32 0.1, %v1006_v41 }
  0xe8   : > { %v1085_v27 = vld [vmem:[#allocation4 + $0x22] sm:$0xff]  ;;  %v1030_v51 = vsel %vm1014_vm12, %v1006_v41, %v1022_v45 }
  0xe9   : > { %v4215_v49 = vld [vmem:[#allocation4 + $0x20] sm:$0xff]  ;;  %v3388_v15 = vpack.i.bf16 %v1085_v27, %v1084_v35  ;;  %1038 = vst.msk [vmem:[#allocation4 + $0x31] sm:$0xff] %vm570_vm0, %v1030_v51  ;;  %v980_v28 = vpop.f32.mrf.mxu0 }
  0xea   : > { %v3378_v53 = vpack.i.bf16 %v4215_v49, %v4213_v46  ;;  %v981_v55 = vadd.f32 %v4195_v50, %v980_v28  ;;  %v1077_v30 = vld [vmem:[#allocation4 + $0x21] sm:$0xff] }
  0xeb   : > { %3389 = vrot.lane.b32.xlu2 %v3388_v15, %s4986_s19  ;;  %3374 = vrot.lane.b32.xlu0 %v3373_v54, %s3839_s21  ;;  %v3383_v61 = vpack.i.bf16 %v1077_v30, %v1053_v24 }
  0xec   : > { %3379 = vrot.lane.b32.xlu1 %v3378_v53, %s4988_s20  ;;  %v1007_v56 = vadd.f32 %v999_v47, %v981_v55 }
  0xee   : > { %vm1015_vm13 = vcmp.ge.f32.partialorder %v1007_v56, 0.0  ;;  %v1023_v48 = vmul.f32 0.1, %v1007_v56 }
  0xf0   : > { %v1031_v58 = vsel %vm1015_vm13, %v1007_v56, %v1023_v48  ;;  %v1109_v20 = vld [vmem:[#allocation4 + $0x32] sm:$0xff] }
  0xf1   : > { %v4229_v60 = vld [vmem:[#allocation4 + $0x30] sm:$0xff]  ;;  %1039 = vst.msk [vmem:[#allocation4 + $0x41] sm:$0xff] %vm570_vm0, %v1031_v58  ;;  %v983_v62 = vpop.f32.mrf.mxu0  ;;  %v1403_v2 = vpack.c.bf16 %v1109_v20, %v1085_v27  ;;  %v3408_v17 = vpack.i.bf16 %v1109_v20, %v1085_v27  ;;  %v1003_v27 = vmul.f32 %v4190_v16, %v4133_v1 }
  0xf2   : > { %v1101_v34 = vld [vmem:[#allocation4 + $0x31] sm:$0xff]  ;;  %v3393_v3 = vpack.i.bf16 %v4229_v60, %v4215_v49  ;;  %v984_v6 = vadd.f32 %v4195_v50, %v983_v62 }
  0xf3   : > { %v3398_v5 = vpack.i.bf16 %v1101_v34, %v1077_v30  ;;  %3191 = vmatmul.msk.bf16.vlgmr.msra.gmra.mxu2 %vm570_vm0, %v1403_v2 }
  0xf4   : > { %3384 = vrot.lane.b32.xlu1 %v3383_v61, %s4984_s22  ;;  %3394 = vrot.lane.b32.xlu2 %v3393_v3, %s4992_s23  ;;  %v1008_v7 = vadd.f32 %v1000_v59, %v984_v6 }
  0xf5   : > { %3399 = vrot.lane.b32.xlu0 %v3398_v5, %s4990_s24 }
  0xf6   : > { %vm1016_vm14 = vcmp.ge.f32.partialorder %v1008_v7, 0.0  ;;  %v1024_v42 = vmul.f32 0.1, %v1008_v7 }
  0xf8   : > { %v1032_v8 = vsel %vm1016_vm14, %v1008_v7, %v1024_v42  ;;  %v4241_v9 = vld [vmem:[#allocation4 + $0x40] sm:$0xff] }
  0xf9   : > { %1040 = vst.msk [vmem:[#allocation4 + $0x51] sm:$0xff] %vm570_vm0, %v1032_v8  ;;  %v985_v14 = vpop.f32.mrf.mxu0  ;;  %v3413_v22 = vpack.i.bf16 %v4241_v9, %v4229_v60  ;;  %v1079_v10 = vld [vmem:[#allocation4 + $0x41] sm:$0xff] }
  0xfa   : > { %v986_v25 = vadd.f32 %v4195_v50, %v985_v14  ;;  %v1110_v12 = vld [vmem:[#allocation4 + $0x42] sm:$0xff]  ;;  %v3418_v32 = vpack.i.bf16 %v1079_v10, %v1101_v34 }
  0xfb   : > { %v3423_v38 = vpack.i.bf16 %v1110_v12, %v1109_v20 }
  0xfc   : > { %3404 = vrot.lane.b32.xlu1 %v3398_v5, %s3836_s15  ;;  %3409 = vrot.lane.b32.xlu2 %v3408_v17, %s3839_s21  ;;  %v1009_v29 = vadd.f32 %v1001_v0, %v986_v25  ;;  %v3295_v25 = vld [vmem:[%s4978_s5 + $0x30] sm:$0xff] }
  0xfd   : > { %3414 = vrot.lane.b32.xlu0 %v3413_v22, %s4988_s20 }
  0xfe   : > { %vm1017_vm15 = vcmp.ge.f32.partialorder %v1009_v29, 0.0  ;;  %v1025_v4 = vmul.f32 0.1, %v1009_v29 }
 0x100   : > { %v1033_v11 = vsel %vm1017_vm15, %v1009_v29, %v1025_v4  ;;  %v1111_v13 = vld [vmem:[#allocation4 + $0x52] sm:$0xff]  ;;  %v3290_v4 = vld [vmem:[%s4978_s5 + $0x8] sm:$0xff] }
 0x101   : > { %v4252_v36 = vld [vmem:[#allocation4 + $0x50] sm:$0xff]  ;;  %1041 = vst.msk [vmem:[#allocation4 + $0x61] sm:$0xff] %vm570_vm0, %v1033_v11  ;;  %v988_v37 = vpop.f32.mrf.mxu0  ;;  %v1405_v24 = vpack.c.bf16 %v1111_v13, %v1110_v12  ;;  %v3443_v53 = vpack.i.bf16 %v1111_v13, %v1110_v12  ;;  %v3292_v29 = vld [vmem:[%s4978_s5 + $0x18] sm:$0xff]  ;;  %v3289_v12 = vld [vmem:[%s4978_s5] sm:$0xff] }
 0x102   : > { %v3428_v18 = vpack.i.bf16 %v4252_v36, %v4241_v9  ;;  %v989_v39 = vadd.f32 %v4195_v50, %v988_v37  ;;  %v1057_v41 = vld [vmem:[#allocation4 + $0x51] sm:$0xff] }
 0x103   : > { %3192 = vmatmul.msk.bf16.gmra.mxu2 %vm570_vm0, %v1405_v24  ;;  %v3438_v51 = vpack.i.bf16 %v1057_v41, %v1079_v10  ;;  %v3291_v10 = vld [vmem:[%s4978_s5 + $0x10] sm:$0xff] }
 0x104   : > { %3419 = vrot.lane.b32.xlu1 %v3418_v32, %s4984_s22  ;;  %3424 = vrot.lane.b32.xlu2 %v3423_v38, %s4986_s19  ;;  %v1010_v40 = vadd.f32 %v1002_v31, %v989_v39  ;;  %v4320_v39 = vld [vmem:[#allocation4] sm:$0xff] }
 0x105   : > { %3429 = vrot.lane.b32.xlu0 %v3428_v18, %s4992_s23 }
 0x106   : > { %vm1018_vm1 = vcmp.ge.f32.partialorder %v1010_v40, 0.0  ;;  %v1026_v45 = vmul.f32 0.1, %v1010_v40 }
 0x108   : > { %v1034_v35 = vsel %vm1018_vm1, %v1010_v40, %v1026_v45  ;;  %v4269_v54 = vld [vmem:[#allocation4 + $0x60] sm:$0xff] }
 0x109   : > { %1042 = vst.msk [vmem:[#allocation4 + $0x71] sm:$0xff] %vm570_vm0, %v1034_v35  ;;  %v990_v47 = vpop.f32.mrf.mxu0  ;;  %v1081_v56 = vld [vmem:[#allocation4 + $0x61] sm:$0xff]  ;;  %v3448_v58 = vpack.i.bf16 %v4269_v54, %v4252_v36 }
 0x10a   : > { %v991_v15 = vadd.f32 %v4195_v50, %v990_v47  ;;  %v1112_v16 = vld [vmem:[#allocation4 + $0x62] sm:$0xff]  ;;  %v3453_v59 = vpack.i.bf16 %v1081_v56, %v1057_v41 }
 0x10b   : > { %v3458_v20 = vpack.i.bf16 %v1112_v16, %v1111_v13 }
 0x10c   : > { %3434 = vrot.lane.b32.xlu1 %v3438_v51, %s4990_s24  ;;  %3439 = vrot.lane.b32.xlu2 %v3438_v51, %s3836_s15  ;;  %v1011_v28 = vadd.f32 %v1003_v27, %v991_v15 }
 0x10d   : > { %3444 = vrot.lane.b32.xlu0 %v3443_v53, %s3839_s21 }
 0x10e   : > { %vm1019_vm2 = vcmp.ge.f32.partialorder %v1011_v28, 0.0  ;;  %v1027_v55 = vmul.f32 0.1, %v1011_v28 }
 0x110   : > { %v1035_v30 = vsel %vm1019_vm2, %v1011_v28, %v1027_v55  ;;  %v1113_v48 = vld [vmem:[#allocation4 + $0x72] sm:$0xff] }
 0x111   : > { %1043 = vst.msk [vmem:[#allocation4 + $0x81] sm:$0xff] %vm570_vm0, %v1035_v30  ;;  %v1407_v50 = vpack.c.bf16 %v1113_v48, %v1112_v16  ;;  %v4278_v61 = vld [vmem:[#allocation4 + $0x70] sm:$0xff]  ;;  %v3478_v7 = vpack.i.bf16 %v1113_v48, %v1112_v16 }
 0x112   : > { %v1105_v34 = vld [vmem:[#allocation4 + $0x71] sm:$0xff]  ;;  %v3463_v62 = vpack.i.bf16 %v4278_v61, %v4269_v54 }
 0x113   : > { %3193 = vmatmul.msk.bf16.gmra.mxu2 %vm570_vm0, %v1407_v50  ;;  %v3468_v2 = vpack.i.bf16 %v1105_v34, %v1081_v56 }
 0x114   : > { %3449 = vrot.lane.b32.xlu1 %v3448_v58, %s4988_s20  ;;  %3454 = vrot.lane.b32.xlu2 %v3453_v59, %s4984_s22 }
 0x115   : > { %3459 = vrot.lane.b32.xlu0 %v3458_v20, %s4986_s19 }
 0x118   : > { %v1114_v3 = vld [vmem:[#allocation4 + $0x82] sm:$0xff] }
 0x119   : > { %v1075_v5 = vld [vmem:[#allocation4 + $0x80] sm:$0xff]  ;;  %v1409_v42 = vpack.c.bf16 %v4181_v63, %v1114_v3  ;;  %v3493_v14 = vpack.i.bf16 %v1114_v3, %v1113_v48  ;;  %v3296_v63 = vld [vmem:[%s4978_s5 + $0x38] sm:$0xff] }
 0x11a   : > { %v1083_v6 = vld [vmem:[#allocation4 + $0x81] sm:$0xff]  ;;  %v3483_v8 = vpack.i.bf16 %v1075_v5, %v4278_v61  ;;  %v3498_v17 = vpack.i.bf16 %v4171_v52, %v1075_v5  ;;  %1479 = vmatpush.bf16.msra.mxu1 %v3296_v63 }
 0x11b   : > { %v3488_v0 = vpack.i.bf16 %v1083_v6, %v1105_v34  ;;  %v3503_v22 = vpack.i.bf16 %v4176_v57, %v1083_v6  ;;  %v3294_v52 = vld [vmem:[%s4978_s5 + $0x28] sm:$0xff]  ;;  %v3293_v57 = vld [vmem:[%s4978_s5 + $0x20] sm:$0xff] }
 0x11c   : > { %3464 = vrot.lane.b32.xlu1 %v3463_v62, %s4992_s23  ;;  %3469 = vrot.lane.b32.xlu2 %v3468_v2, %s4990_s24 }
 0x11d   : > { %3474 = vrot.lane.b32.xlu0 %v3468_v2, %s3836_s15 }
 0x11e   : > { %1480 = vmatpush.bf16.msra.mxu1 %v3295_v25 }
 0x122   : > { %1481 = vmatpush.bf16.msra.mxu1 %v3294_v52 }
 0x123   : > { %3194 = vmatmul.msk.bf16.gmra.mxu2 %vm570_vm0, %v1409_v42 }
 0x124   : > { %3479 = vrot.lane.b32.xlu1 %v3478_v7, %s3839_s21  ;;  %3484 = vrot.lane.b32.xlu2 %v3483_v8, %s4988_s20 }
 0x125   : > { %3489 = vrot.lane.b32.xlu0 %v3488_v0, %s4984_s22  ;;  %s4999_s22 = smov 112  }
 0x126   : > { %1482 = vmatpush.bf16.msra.mxu1 %v3293_v57 }
 0x12a   : > { %1483 = vmatpush.bf16.msra.mxu1 %v3292_v29 }
 0x12c   : > { %3494 = vrot.lane.b32.xlu1 %v3493_v14, %s4986_s19  ;;  %3499 = vrot.lane.b32.xlu2 %v3498_v17, %s4992_s23  ;;  %s4940_s23 = scalar_lea.vmem %s4982_s9, %s5000_s16 }
 0x12d   : > { %3504 = vrot.lane.b32.xlu0 %v3503_v22, %s4990_s24 }
 0x12e   : > { %1484 = vmatpush.bf16.msra.mxu1 %v3291_v10 }
 0x132   : > { %1485 = vmatpush.bf16.msra.mxu1 %v3290_v4 }
 0x136   : > { %1486 = vmatpush.bf16.msra.mxu1 %v3289_v12 }
 0x145   : > { %v3390_v11 = vpop.permute.xlu2 %3389 }
 0x146   : > { %v3392_v53 = vunpack.i.h.bf16 %v3390_v11  ;;  %v3391_v55 = vunpack.i.l.bf16 %v3390_v11 }
 0x14e   : > { %v3395_v13 = vpop.permute.xlu2 %3394 }
 0x14f   : > { %v3396_v50 = vunpack.i.l.bf16 %v3395_v13 }
 0x155   : > { %v3370_v31 = vpop.permute.xlu0 %3369 }
 0x156   : > { %v3372_v24 = vunpack.i.h.bf16 %v3370_v31  ;;  %v3371_v38 = vunpack.i.l.bf16 %v3370_v31  ;;  %v3410_v18 = vpop.permute.xlu2 %3409 }
 0x157   : > { %v3412_v57 = vunpack.i.h.bf16 %v3410_v18  ;;  %v3411_v29 = vunpack.i.l.bf16 %v3410_v18 }
 0x158   : > { %v1340_v45 = vsel %vm570_vm0, %v4320_v39, %v3371_v38  ;;  %v1341_v35 = vsel %vm570_vm0, %v4213_v46, %v3372_v24  ;;  %v3397_v46 = vunpack.i.h.bf16 %v3395_v13 }
 0x15d   : > { %v3375_v37 = vpop.permute.xlu0 %3374 }
 0x15e   : > { %v3380_v32 = vpop.permute.xlu1 %3379  ;;  %v3377_v40 = vunpack.i.h.bf16 %v3375_v37  ;;  %v3376_v41 = vunpack.i.l.bf16 %v3375_v37  ;;  %v3425_v5 = vpop.permute.xlu2 %3424 }
 0x15f   : > { %v3382_v27 = vunpack.i.h.bf16 %v3380_v32  ;;  %v3381_v51 = vunpack.i.l.bf16 %v3380_v32  ;;  %v3427_v18 = vunpack.i.h.bf16 %v3425_v5 }
 0x160   : > { %v1349_v47 = vsel %vm1348_vm3, %v1340_v45, %v3376_v41  ;;  %v1350_v15 = vsel %vm1348_vm3, %v1341_v35, %v3377_v40  ;;  %v3426_v41 = vunpack.i.l.bf16 %v3425_v5 }
 0x161   : > { %v1358_v30 = vsel %vm1357_vm4, %v1349_v47, %v3381_v51  ;;  %v1359_v48 = vsel %vm1357_vm4, %v1350_v15, %v3382_v27 }
 0x166   : > { %v3385_v28 = vpop.permute.xlu1 %3384  ;;  %v3440_v10 = vpop.permute.xlu2 %3439 }
 0x167   : > { %v3387_v56 = vunpack.i.h.bf16 %v3385_v28  ;;  %v3386_v16 = vunpack.i.l.bf16 %v3385_v28  ;;  %v3400_v58 = vpop.permute.xlu0 %3399 }
 0x168   : > { %v3402_v34 = vunpack.i.h.bf16 %v3400_v58  ;;  %v3401_v62 = vunpack.i.l.bf16 %v3400_v58 }
 0x169   : > { %v1367_v59 = vsel %vm1366_vm5, %v1358_v30, %v3386_v16  ;;  %v1368_v20 = vsel %vm1366_vm5, %v1359_v48, %v3387_v56 }
 0x16a   : > { %v1376_v2 = vsel %vm1375_vm6, %v1367_v59, %v3391_v55  ;;  %v1377_v3 = vsel %vm1375_vm6, %v1368_v20, %v3392_v53 }
 0x16b   : > { %v1385_v6 = vsel %vm1384_vm7, %v1376_v2, %v3396_v50  ;;  %v1386_v7 = vsel %vm1384_vm7, %v1377_v3, %v3397_v46  ;;  %v3442_v46 = vunpack.i.h.bf16 %v3440_v10  ;;  %v3441_v50 = vunpack.i.l.bf16 %v3440_v10 }
 0x16c   : > { %v1394_v42 = vsel %vm1393_vm8, %v1385_v6, %v3401_v62  ;;  %v1395_v8 = vsel %vm1393_vm8, %v1386_v7, %v3402_v34 }
 0x16d   : > { %v1402_v0 = vpack.c.bf16 %v1395_v8, %v1394_v42  ;;  %v1345_v3 = vsel %vm570_vm0, %v4252_v36, %v3442_v46  ;;  %v1344_v5 = vsel %vm570_vm0, %v4241_v9, %v3441_v50 }
 0x16e   : > { %v3405_v14 = vpop.permute.xlu1 %3404  ;;  %v3455_v15 = vpop.permute.xlu2 %3454 }
 0x16f   : > { %v3407_v17 = vunpack.i.h.bf16 %v3405_v14  ;;  %v3406_v22 = vunpack.i.l.bf16 %v3405_v14  ;;  %1487 = vmatmul.bf16.vlgmr.msra.gmra.mxu1 %v1402_v0  ;;  %v3415_v63 = vpop.permute.xlu0 %3414 }
 0x170   : > { %v3417_v31 = vunpack.i.h.bf16 %v3415_v63  ;;  %v3416_v13 = vunpack.i.l.bf16 %v3415_v63 }
 0x171   : > { %v1343_v25 = vsel %vm570_vm0, %v4229_v60, %v3407_v17  ;;  %v1342_v52 = vsel %vm570_vm0, %v4215_v49, %v3406_v22  ;;  %v3457_v17 = vunpack.i.h.bf16 %v3455_v15  ;;  %v3456_v22 = vunpack.i.l.bf16 %v3455_v15 }
 0x172   : > { %v1351_v4 = vsel %vm1348_vm3, %v1342_v52, %v3411_v29  ;;  %v1352_v12 = vsel %vm1348_vm3, %v1343_v25, %v3412_v57 }
 0x173   : > { %v1361_v38 = vsel %vm1357_vm4, %v1352_v12, %v3417_v31  ;;  %v1360_v60 = vsel %vm1357_vm4, %v1351_v4, %v3416_v13 }
 0x176   : > { %v3420_v11 = vpop.permute.xlu1 %3419  ;;  %v3470_v7 = vpop.permute.xlu2 %3469 }
 0x177   : > { %v3422_v32 = vunpack.i.h.bf16 %v3420_v11  ;;  %v3421_v37 = vunpack.i.l.bf16 %v3420_v11  ;;  %v3430_v24 = vpop.permute.xlu0 %3429  ;;  %v3472_v10 = vunpack.i.h.bf16 %v3470_v7  ;;  %v3471_v4 = vunpack.i.l.bf16 %v3470_v7 }
 0x178   : > { %v3432_v27 = vunpack.i.h.bf16 %v3430_v24  ;;  %v3431_v51 = vunpack.i.l.bf16 %v3430_v24 }
 0x179   : > { %v1369_v40 = vsel %vm1366_vm5, %v1360_v60, %v3421_v37  ;;  %v1370_v49 = vsel %vm1366_vm5, %v1361_v38, %v3422_v32 }
 0x17a   : > { %v1378_v45 = vsel %vm1375_vm6, %v1369_v40, %v3426_v41  ;;  %v1379_v35 = vsel %vm1375_vm6, %v1370_v49, %v3427_v18 }
 0x17b   : > { %v1387_v56 = vsel %vm1384_vm7, %v1378_v45, %v3431_v51  ;;  %v1388_v16 = vsel %vm1384_vm7, %v1379_v35, %v3432_v27 }
 0x17e   : > { %v3435_v47 = vpop.permute.xlu1 %3434  ;;  %v3485_v38 = vpop.permute.xlu2 %3484 }
 0x17f   : > { %v3437_v53 = vunpack.i.h.bf16 %v3435_v47  ;;  %v3436_v28 = vunpack.i.l.bf16 %v3435_v47  ;;  %v3445_v55 = vpop.permute.xlu0 %3444 }
 0x180   : > { %v3447_v59 = vunpack.i.h.bf16 %v3445_v55  ;;  %v3446_v20 = vunpack.i.l.bf16 %v3445_v55 }
 0x181   : > { %v1396_v30 = vsel %vm1393_vm8, %v1387_v56, %v3436_v28  ;;  %v1397_v48 = vsel %vm1393_vm8, %v1388_v16, %v3437_v53  ;;  %v3487_v53 = vunpack.i.h.bf16 %v3485_v38  ;;  %v3486_v28 = vunpack.i.l.bf16 %v3485_v38 }
 0x182   : > { %v1404_v58 = vpack.c.bf16 %v1397_v48, %v1396_v30  ;;  %v1354_v42 = vsel %vm1348_vm3, %v1345_v3, %v3447_v59  ;;  %v1353_v8 = vsel %vm1348_vm3, %v1344_v5, %v3446_v20 }
 0x184   : > { %1492 = vmatmul.bf16.gmra.mxu1 %v1404_v58 }
 0x186   : > { %v3450_v34 = vpop.permute.xlu1 %3449  ;;  %v3500_v55 = vpop.permute.xlu2 %3499 }
 0x187   : > { %v3452_v62 = vunpack.i.h.bf16 %v3450_v34  ;;  %v3451_v2 = vunpack.i.l.bf16 %v3450_v34  ;;  %v3460_v6 = vpop.permute.xlu0 %3459  ;;  %v3501_v59 = vunpack.i.l.bf16 %v3500_v55 }
 0x188   : > { %v3462_v36 = vunpack.i.h.bf16 %v3460_v6  ;;  %v3461_v52 = vunpack.i.l.bf16 %v3460_v6 }
 0x189   : > { %v1362_v0 = vsel %vm1357_vm4, %v1353_v8, %v3451_v2  ;;  %v1363_v14 = vsel %vm1357_vm4, %v1354_v42, %v3452_v62 }
 0x18a   : > { %v1371_v63 = vsel %vm1366_vm5, %v1362_v0, %v3456_v22  ;;  %v1372_v25 = vsel %vm1366_vm5, %v1363_v14, %v3457_v17  ;;  %v1517_v14 = vpop.f32.mrf.mxu2  ;;  %v4389_v17 = vld [vmem:[%s4979_s6] ss:$0 sm:$0xff] }
 0x18b   : > { %v1380_v12 = vsel %vm1375_vm6, %v1371_v63, %v3461_v52  ;;  %v1381_v11 = vsel %vm1375_vm6, %v1372_v25, %v3462_v36  ;;  %v623_v25 = vld [vmem:[%s3987_s26 + $0xc] sm:$0x7] }
 0x18c   : > { %v4393_v52 = vperm.slane %v623_v25, 0 }
 0x18e   : > { %v3465_v57 = vpop.permute.xlu1 %3464 }
 0x18f   : > { %v3467_v9 = vunpack.i.h.bf16 %v3465_v57  ;;  %v3466_v29 = vunpack.i.l.bf16 %v3465_v57  ;;  %v3475_v31 = vpop.permute.xlu0 %3474  ;;  %v4395_v57 = vperm.slane %v623_v25, 1 }
 0x190   : > { %v3477_v40 = vunpack.i.h.bf16 %v3475_v31  ;;  %v3476_v49 = vunpack.i.l.bf16 %v3475_v31 }
 0x191   : > { %v1389_v13 = vsel %vm1384_vm7, %v1380_v12, %v3466_v29  ;;  %v1390_v32 = vsel %vm1384_vm7, %v1381_v11, %v3467_v9  ;;  %v1578_v11 = vmul.f32 %v4393_v52, %v4320_v39 }
 0x192   : > { %v1398_v37 = vsel %vm1393_vm8, %v1389_v13, %v3471_v4  ;;  %v1399_v24 = vsel %vm1393_vm8, %v1390_v32, %v3472_v10  ;;  %v1347_v27 = vsel %vm570_vm0, %v4278_v61, %v3477_v40  ;;  %v1346_v51 = vsel %vm570_vm0, %v4269_v54, %v3476_v49  ;;  %v1519_v9 = vpop.f32.mrf.mxu2  ;;  %v4397_v10 = vld [vmem:[#allocation4 + $0x1] sm:$0xff] }
 0x193   : > { %v1406_v60 = vpack.c.bf16 %v1399_v24, %v1398_v37  ;;  %v3502_v61 = vunpack.i.h.bf16 %v3500_v55  ;;  %v1603_v31 = vmul.f32 %v4395_v57, %v4397_v10  ;;  %v4407_v13 = vperm.slane %v623_v25, 2  ;;  %v624_v37 = vld [vmem:[%s3987_s26 + $0x10] sm:$0x7] }
 0x194   : > { %v4411_v24 = vld [vmem:[#allocation4 + $0x2] sm:$0xff]  ;;  %v4415_v49 = vperm.slane %v624_v37, 0 }
 0x195   : > { %1497 = vmatmul.bf16.gmra.mxu1 %v1406_v60  ;;  %v1611_v60 = vadd.f32 %v1603_v31, %v1578_v11  ;;  %v1628_v40 = vmul.f32 %v4407_v13, %v4411_v24 }
 0x196   : > { %v3480_v18 = vpop.permute.xlu1 %3479 }
 0x197   : > { %v3482_v41 = vunpack.i.h.bf16 %v3480_v18  ;;  %v3481_v45 = vunpack.i.l.bf16 %v3480_v18  ;;  %v3490_v35 = vpop.permute.xlu0 %3489 }
 0x198   : > { %v3492_v30 = vunpack.i.h.bf16 %v3490_v35  ;;  %v3491_v48 = vunpack.i.l.bf16 %v3490_v35 }
 0x199   : > { %v1355_v47 = vsel %vm1348_vm3, %v1346_v51, %v3481_v45  ;;  %v1356_v15 = vsel %vm1348_vm3, %v1347_v27, %v3482_v41  ;;  %v3288_v45 = vld [vmem:[%s4976_s3 + $0x8] sm:$0xff]  ;;  %v1636_v51 = vadd.f32 %v1628_v40, %v1611_v60 }
 0x19a   : > { %v1364_v56 = vsel %vm1357_vm4, %v1355_v47, %v3486_v28  ;;  %v1365_v16 = vsel %vm1357_vm4, %v1356_v15, %v3487_v53  ;;  %v1522_v18 = vpop.f32.mrf.mxu2  ;;  %1850 = vmatpush.bf16.msra.mxu3 %v3288_v45  ;;  %v4425_v15 = vperm.slane %v624_v37, 1  ;;  %v625_v53 = vld [vmem:[%s3987_s26 + $0x14] sm:$0x7] }
 0x19b   : > { %v1373_v54 = vsel %vm1366_vm5, %v1364_v56, %v3491_v48  ;;  %v1374_v20 = vsel %vm1366_vm5, %v1365_v16, %v3492_v30 }
 0x19e   : > { %v3495_v58 = vpop.permute.xlu1 %3494 }
 0x19f   : > { %v3497_v46 = vunpack.i.h.bf16 %v3495_v58  ;;  %v3496_v50 = vunpack.i.l.bf16 %v3495_v58  ;;  %v3505_v34 = vpop.permute.xlu0 %3504 }
 0x1a0   : > { %v3507_v3 = vunpack.i.h.bf16 %v3505_v34  ;;  %v3506_v5 = vunpack.i.l.bf16 %v3505_v34 }
 0x1a1   : > { %v1382_v62 = vsel %vm1375_vm6, %v1373_v54, %v3496_v50  ;;  %v1383_v2 = vsel %vm1375_vm6, %v1374_v20, %v3497_v46  ;;  %v4432_v46 = vperm.slane %v624_v37, 2  ;;  %v4434_v50 = vperm.slane %v625_v53, 0 }
 0x1a2   : > { %v1391_v6 = vsel %vm1384_vm7, %v1382_v62, %v3501_v59  ;;  %v1392_v7 = vsel %vm1384_vm7, %v1383_v2, %v3502_v61  ;;  %v1524_v34 = vpop.f32.mrf.mxu2  ;;  %v4451_v37 = vperm.slane %v625_v53, 2 }
 0x1a3   : > { %v1400_v42 = vsel %vm1393_vm8, %v1391_v6, %v3506_v5  ;;  %v1401_v8 = vsel %vm1393_vm8, %v1392_v7, %v3507_v3 }
 0x1a4   : > { %v1408_v0 = vpack.c.bf16 %v1401_v8, %v1400_v42 }
 0x1a6   : > { %1502 = vmatmul.bf16.gmra.mxu1 %v1408_v0 }
 0x1ec   : > { %v1488_v22 = vpop.f32.mrf.mxu1 }
 0x1ed   : > { %v1489_v63 = vadd.f32 %v4389_v17, %v1488_v22 }
 0x1ef   : > { %v1518_v36 = vadd.f32 %v1517_v14, %v1489_v63  ;;  %v4442_v14 = vperm.slane %v625_v53, 1 }
 0x1f1   : > { %vm1537_vm9 = vcmp.ge.f32.partialorder %v1518_v36, 0.0  ;;  %v1545_v29 = vmul.f32 0.1, %v1518_v36 }
 0x1f3   : > { %v4399_v4 = vsel %vm1537_vm9, %v1518_v36, %v1545_v29 }
 0x1f4   : > { %1561 = vst.msk [vmem:[#allocation4 + $0x11] sm:$0xff] %vm570_vm0, %v4399_v4  ;;  %v1490_v12 = vpop.f32.mrf.mxu1 }
 0x1f5   : > { %v1491_v32 = vadd.f32 %v4389_v17, %v1490_v12 }
 0x1f7   : > { %v1520_v38 = vadd.f32 %v1519_v9, %v1491_v32 }
 0x1f9   : > { %vm1538_vm10 = vcmp.ge.f32.partialorder %v1520_v38, 0.0  ;;  %v1546_v39 = vmul.f32 0.1, %v1520_v38 }
 0x1fb   : > { %v4417_v41 = vsel %vm1538_vm10, %v1520_v38, %v1546_v39  ;;  %v1570_v35 = vld [vmem:[#allocation4 + $0x10] sm:$0xff] }
 0x1fc   : > { %1562 = vst.msk [vmem:[#allocation4 + $0x21] sm:$0xff] %vm570_vm0, %v4417_v41  ;;  %v1595_v27 = vld [vmem:[#allocation4 + $0x11] sm:$0xff]  ;;  %v1653_v47 = vmul.f32 %v4415_v49, %v1570_v35  ;;  %v1579_v28 = vmul.f32 %v4393_v52, %v1570_v35 }
 0x1fd   : > { %v1604_v55 = vmul.f32 %v4395_v57, %v1595_v27  ;;  %v1620_v48 = vld [vmem:[#allocation4 + $0x12] sm:$0xff]  ;;  %v1678_v58 = vmul.f32 %v4425_v15, %v1595_v27 }
 0x1fe   : > { %v1661_v56 = vadd.f32 %v1653_v47, %v1636_v51  ;;  %v1629_v62 = vmul.f32 %v4407_v13, %v1620_v48  ;;  %v1703_v5 = vmul.f32 %v4432_v46, %v1620_v48 }
 0x1ff   : > { %v1612_v61 = vadd.f32 %v1604_v55, %v1579_v28 }
 0x200   : > { %v1686_v20 = vadd.f32 %v1678_v58, %v1661_v56 }
 0x201   : > { %v1493_v16 = vpop.f32.mrf.mxu1  ;;  %v1637_v7 = vadd.f32 %v1629_v62, %v1612_v61 }
 0x202   : > { %v1494_v30 = vadd.f32 %v4389_v17, %v1493_v16  ;;  %v1711_v0 = vadd.f32 %v1703_v5, %v1686_v20 }
 0x203   : > { %v1645_v59 = vld [vmem:[#allocation4 + $0x20] sm:$0xff] }
 0x204   : > { %v1523_v54 = vadd.f32 %v1522_v18, %v1494_v30  ;;  %v1654_v2 = vmul.f32 %v4415_v49, %v1645_v59  ;;  %v1728_v6 = vmul.f32 %v4434_v50, %v1645_v59  ;;  %v1670_v42 = vld [vmem:[#allocation4 + $0x21] sm:$0xff]  ;;  %v1580_v9 = vmul.f32 %v1645_v59, %v4393_v52  ;;  %v1527_v18 = vpop.f32.mrf.mxu2 }
 0x205   : > { %v1605_v29 = vmul.f32 %v1670_v42, %v4395_v57  ;;  %v1679_v12 = vmul.f32 %v4425_v15, %v1670_v42  ;;  %v1695_v31 = vld [vmem:[#allocation4 + $0x22] sm:$0xff]  ;;  %v1753_v32 = vmul.f32 %v4442_v14, %v1670_v42 }
 0x206   : > { %vm1539_vm11 = vcmp.ge.f32.partialorder %v1523_v54, 0.0  ;;  %v1547_v3 = vmul.f32 0.1, %v1523_v54  ;;  %v1662_v63 = vadd.f32 %v1654_v2, %v1637_v7  ;;  %v1736_v36 = vadd.f32 %v1728_v6, %v1711_v0 }
 0x207   : > { %v1613_v39 = vadd.f32 %v1605_v29, %v1580_v9  ;;  %v1704_v45 = vmul.f32 %v4432_v46, %v1695_v31  ;;  %v1778_v47 = vmul.f32 %v4451_v37, %v1695_v31  ;;  %v1630_v28 = vmul.f32 %v1695_v31, %v4407_v13 }
 0x208   : > { %v4440_v8 = vsel %vm1539_vm11, %v1523_v54, %v1547_v3  ;;  %v1687_v38 = vadd.f32 %v1679_v12, %v1662_v63  ;;  %v1761_v40 = vadd.f32 %v1753_v32, %v1736_v36 }
 0x209   : > { %1563 = vst.msk [vmem:[#allocation4 + $0x31] sm:$0xff] %vm570_vm0, %v4440_v8  ;;  %v1495_v22 = vpop.f32.mrf.mxu1  ;;  %v1638_v61 = vadd.f32 %v1630_v28, %v1613_v39 }
 0x20a   : > { %v1496_v25 = vadd.f32 %v4389_v17, %v1495_v22  ;;  %v1712_v53 = vadd.f32 %v1704_v45, %v1687_v38  ;;  %v1786_v48 = vadd.f32 %v1778_v47, %v1761_v40 }
 0x20c   : > { %v1525_v11 = vadd.f32 %v1524_v34, %v1496_v25  ;;  %v1802_v42 = vmul.f32 0.1, %v1786_v48  ;;  %vm1794_vm14 = vcmp.ge.f32.partialorder %v1786_v48, 0.0 }
 0x20e   : > { %vm1540_vm12 = vcmp.ge.f32.partialorder %v1525_v11, 0.0  ;;  %v1548_v60 = vmul.f32 0.1, %v1525_v11  ;;  %v1810_v40 = vsel %vm1794_vm14, %v1786_v48, %v1802_v42 }
 0x210   : > { %v4454_v35 = vsel %vm1540_vm12, %v1525_v11, %v1548_v60  ;;  %v1720_v27 = vld [vmem:[#allocation4 + $0x30] sm:$0xff]  ;;  %v1529_v11 = vpop.f32.mrf.mxu2 }
 0x211   : > { %v1745_v51 = vld [vmem:[#allocation4 + $0x31] sm:$0xff]  ;;  %1564 = vst.msk [vmem:[#allocation4 + $0x41] sm:$0xff] %vm570_vm0, %v4454_v35  ;;  %v1729_v55 = vmul.f32 %v4434_v50, %v1720_v27  ;;  %v1581_v56 = vmul.f32 %v1720_v27, %v4393_v52  ;;  %v1655_v59 = vmul.f32 %v1720_v27, %v4415_v49 }
 0x212   : > { %v1498_v16 = vpop.f32.mrf.mxu1  ;;  %v1770_v30 = vld [vmem:[#allocation4 + $0x32] sm:$0xff]  ;;  %v1606_v58 = vmul.f32 %v1745_v51, %v4395_v57  ;;  %v1754_v34 = vmul.f32 %v4442_v14, %v1745_v51  ;;  %v1680_v3 = vmul.f32 %v1745_v51, %v4425_v15 }
 0x213   : > { %v1499_v54 = vadd.f32 %v4389_v17, %v1498_v16  ;;  %v1737_v20 = vadd.f32 %v1729_v55, %v1712_v53  ;;  %v1663_v2 = vadd.f32 %v1655_v59, %v1638_v61  ;;  %v1779_v7 = vmul.f32 %v4451_v37, %v1770_v30 }
 0x214   : > { %v1614_v62 = vadd.f32 %v1606_v58, %v1581_v56  ;;  %v1631_v0 = vmul.f32 %v1770_v30, %v4407_v13  ;;  %v1705_v12 = vmul.f32 %v1770_v30, %v4432_v46 }
 0x215   : > { %v1528_v5 = vadd.f32 %v1527_v18, %v1499_v54  ;;  %v1762_v6 = vadd.f32 %v1754_v34, %v1737_v20  ;;  %v1688_v22 = vadd.f32 %v1680_v3, %v1663_v2 }
 0x216   : > { %v1639_v36 = vadd.f32 %v1631_v0, %v1614_v62 }
 0x217   : > { %vm1541_vm13 = vcmp.ge.f32.partialorder %v1528_v5, 0.0  ;;  %v1549_v63 = vmul.f32 0.1, %v1528_v5  ;;  %v1787_v25 = vadd.f32 %v1779_v7, %v1762_v6  ;;  %v1713_v39 = vadd.f32 %v1705_v12, %v1688_v22 }
 0x218   : > { %v1647_v9 = vld [vmem:[#allocation4 + $0x40] sm:$0xff]  ;;  %v1532_v0 = vpop.f32.mrf.mxu2 }
 0x219   : > { %v1672_v29 = vld [vmem:[#allocation4 + $0x41] sm:$0xff]  ;;  %v4470_v31 = vsel %vm1541_vm13, %v1528_v5, %v1549_v63  ;;  %vm1795_vm15 = vcmp.ge.f32.partialorder %v1787_v25, 0.0  ;;  %v1803_v32 = vmul.f32 0.1, %v1787_v25  ;;  %v1656_v38 = vmul.f32 %v4415_v49, %v1647_v9 }
 0x21a   : > { %1565 = vst.msk [vmem:[#allocation4 + $0x51] sm:$0xff] %vm570_vm0, %v4470_v31  ;;  %v1500_v60 = vpop.f32.mrf.mxu1  ;;  %v1730_v18 = vmul.f32 %v4434_v50, %v1647_v9  ;;  %v1681_v47 = vmul.f32 %v4425_v15, %v1672_v29  ;;  %v1582_v55 = vmul.f32 %v1647_v9, %v4393_v52  ;;  %v1607_v56 = vmul.f32 %v1672_v29, %v4395_v57  ;;  %v1697_v30 = vld [vmem:[#allocation4 + $0x42] sm:$0xff] }
 0x21b   : > { %v1501_v45 = vadd.f32 %v4389_v17, %v1500_v60  ;;  %v1811_v27 = vsel %vm1795_vm15, %v1787_v25, %v1803_v32  ;;  %v1664_v51 = vadd.f32 %v1656_v38, %v1639_v36  ;;  %v1755_v58 = vmul.f32 %v4442_v14, %v1672_v29 }
 0x21c   : > { %v1818_v28 = vpack.c.bf16 %v1811_v27, %v1810_v40  ;;  %v1738_v53 = vadd.f32 %v1730_v18, %v1713_v39  ;;  %v1615_v54 = vadd.f32 %v1607_v56, %v1582_v55  ;;  %v1706_v20 = vmul.f32 %v4432_v46, %v1697_v30 }
 0x21d   : > { %v1530_v16 = vadd.f32 %v1529_v11, %v1501_v45  ;;  %v1689_v48 = vadd.f32 %v1681_v47, %v1664_v51  ;;  %v1780_v3 = vmul.f32 %v4451_v37, %v1697_v30  ;;  %v1632_v5 = vmul.f32 %v1697_v30, %v4407_v13 }
 0x21e   : > { %3199 = vmatmul.msk.bf16.vlgmr.msra.gmra.mxu3 %vm570_vm0, %v1818_v28  ;;  %v1763_v59 = vadd.f32 %v1755_v58, %v1738_v53 }
 0x21f   : > { %vm1542_vm1 = vcmp.ge.f32.partialorder %v1530_v16, 0.0  ;;  %v1550_v61 = vmul.f32 0.1, %v1530_v16  ;;  %v1714_v6 = vadd.f32 %v1706_v20, %v1689_v48  ;;  %v1640_v9 = vadd.f32 %v1632_v5, %v1615_v54 }
 0x220   : > { %v1788_v63 = vadd.f32 %v1780_v3, %v1763_v59 }
 0x221   : > { %v4483_v34 = vsel %vm1542_vm1, %v1530_v16, %v1550_v61  ;;  %v1722_v62 = vld [vmem:[#allocation4 + $0x50] sm:$0xff] }
 0x222   : > { %v1747_v2 = vld [vmem:[#allocation4 + $0x51] sm:$0xff]  ;;  %1566 = vst.msk [vmem:[#allocation4 + $0x61] sm:$0xff] %vm570_vm0, %v4483_v34  ;;  %v1731_v7 = vmul.f32 %v4434_v50, %v1722_v62  ;;  %v1583_v25 = vmul.f32 %v1722_v62, %v4393_v52  ;;  %v1657_v32 = vmul.f32 %v1722_v62, %v4415_v49  ;;  %v1804_v27 = vmul.f32 0.1, %v1788_v63 }
 0x223   : > { %v1772_v42 = vld [vmem:[#allocation4 + $0x52] sm:$0xff]  ;;  %v1503_v22 = vpop.f32.mrf.mxu1  ;;  %v1608_v36 = vmul.f32 %v1747_v2, %v4395_v57  ;;  %v1756_v11 = vmul.f32 %v4442_v14, %v1747_v2  ;;  %v1682_v45 = vmul.f32 %v1747_v2, %v4425_v15  ;;  %vm1796_vm9 = vcmp.ge.f32.partialorder %v1788_v63, 0.0 }
 0x224   : > { %v1504_v29 = vadd.f32 %v4389_v17, %v1503_v22  ;;  %v1739_v12 = vadd.f32 %v1731_v7, %v1714_v6  ;;  %v1781_v38 = vmul.f32 %v4451_v37, %v1772_v42  ;;  %v1665_v18 = vadd.f32 %v1657_v32, %v1640_v9  ;;  %v1534_v6 = vpop.f32.mrf.mxu2 }
 0x225   : > { %v1616_v60 = vadd.f32 %v1608_v36, %v1583_v25  ;;  %v1633_v51 = vmul.f32 %v1772_v42, %v4407_v13  ;;  %v1707_v16 = vmul.f32 %v1772_v42, %v4432_v46  ;;  %v1812_v2 = vsel %vm1796_vm9, %v1788_v63, %v1804_v27 }
 0x226   : > { %v1533_v40 = vadd.f32 %v1532_v0, %v1504_v29  ;;  %v1764_v39 = vadd.f32 %v1756_v11, %v1739_v12  ;;  %v1690_v53 = vadd.f32 %v1682_v45, %v1665_v18 }
 0x227   : > { %v1641_v55 = vadd.f32 %v1633_v51, %v1616_v60 }
 0x228   : > { %vm1543_vm2 = vcmp.ge.f32.partialorder %v1533_v40, 0.0  ;;  %v1551_v47 = vmul.f32 0.1, %v1533_v40  ;;  %v1789_v28 = vadd.f32 %v1781_v38, %v1764_v39  ;;  %v1715_v54 = vadd.f32 %v1707_v16, %v1690_v53 }
 0x229   : > { %v1649_v56 = vld [vmem:[#allocation4 + $0x60] sm:$0xff] }
 0x22a   : > { %v4499_v30 = vsel %vm1543_vm2, %v1533_v40, %v1551_v47  ;;  %vm1797_vm10 = vcmp.ge.f32.partialorder %v1789_v28, 0.0  ;;  %v1805_v58 = vmul.f32 0.1, %v1789_v28  ;;  %v1658_v48 = vmul.f32 %v4415_v49, %v1649_v56  ;;  %v1674_v61 = vld [vmem:[#allocation4 + $0x61] sm:$0xff] }
 0x22b   : > { %1567 = vst.msk [vmem:[#allocation4 + $0x71] sm:$0xff] %vm570_vm0, %v4499_v30  ;;  %v1505_v59 = vpop.f32.mrf.mxu1  ;;  %v1732_v20 = vmul.f32 %v4434_v50, %v1649_v56  ;;  %v1683_v42 = vmul.f32 %v4425_v15, %v1674_v61  ;;  %v1584_v22 = vmul.f32 %v1649_v56, %v4393_v52  ;;  %v1699_v36 = vld [vmem:[#allocation4 + $0x62] sm:$0xff]  ;;  %v1757_v9 = vmul.f32 %v4442_v14, %v1674_v61 }
 0x22c   : > { %v1506_v62 = vadd.f32 %v4389_v17, %v1505_v59  ;;  %v1813_v3 = vsel %vm1797_vm10, %v1789_v28, %v1805_v58  ;;  %v1666_v5 = vadd.f32 %v1658_v48, %v1641_v55  ;;  %v1609_v29 = vmul.f32 %v1674_v61, %v4395_v57 }
 0x22d   : > { %v1819_v7 = vpack.c.bf16 %v1813_v3, %v1812_v2  ;;  %v1740_v0 = vadd.f32 %v1732_v20, %v1715_v54  ;;  %v1708_v11 = vmul.f32 %v4432_v46, %v1699_v36  ;;  %v1782_v39 = vmul.f32 %v4451_v37, %v1699_v36 }
 0x22e   : > { %v1535_v25 = vadd.f32 %v1534_v6, %v1506_v62  ;;  %v1691_v12 = vadd.f32 %v1683_v42, %v1666_v5  ;;  %v1617_v32 = vadd.f32 %v1609_v29, %v1584_v22  ;;  %v1634_v51 = vmul.f32 %v1699_v36, %v4407_v13  ;;  %v4528_v36 = vld [vmem:[#allocation4 + $0x90] sm:$0xff] }
 0x22f   : > { %3200 = vmatmul.msk.bf16.gmra.mxu3 %vm570_vm0, %v1819_v7  ;;  %v1765_v63 = vadd.f32 %v1757_v9, %v1740_v0 }
 0x230   : > { %vm1544_vm11 = vcmp.ge.f32.partialorder %v1535_v25, 0.0  ;;  %v1552_v17 = vmul.f32 0.1, %v1535_v25  ;;  %v1716_v18 = vadd.f32 %v1708_v11, %v1691_v12  ;;  %v1642_v16 = vadd.f32 %v1634_v51, %v1617_v32  ;;  %v4532_v32 = vld [vmem:[#allocation4 + $0x91] sm:$0xff] }
 0x231   : > { %v1790_v47 = vadd.f32 %v1782_v39, %v1765_v63 }
 0x232   : > { %v4512_v38 = vsel %vm1544_vm11, %v1535_v25, %v1552_v17  ;;  %v1724_v60 = vld [vmem:[#allocation4 + $0x70] sm:$0xff] }
 0x233   : > { %v1749_v40 = vld [vmem:[#allocation4 + $0x71] sm:$0xff]  ;;  %1568 = vst.msk [vmem:[#allocation4 + $0x81] sm:$0xff] %vm570_vm0, %v4512_v38  ;;  %v1733_v45 = vmul.f32 %v4434_v50, %v1724_v60  ;;  %v1585_v28 = vmul.f32 %v1724_v60, %v4393_v52  ;;  %v1659_v58 = vmul.f32 %v1724_v60, %v4415_v49  ;;  %v1806_v2 = vmul.f32 0.1, %v1790_v47 }
 0x234   : > { %v1774_v27 = vld [vmem:[#allocation4 + $0x72] sm:$0xff]  ;;  %v1610_v53 = vmul.f32 %v1749_v40, %v4395_v57  ;;  %v1758_v56 = vmul.f32 %v4442_v14, %v1749_v40  ;;  %v1684_v20 = vmul.f32 %v1749_v40, %v4425_v15  ;;  %vm1798_vm12 = vcmp.ge.f32.partialorder %v1790_v47, 0.0 }
 0x235   : > { %v1741_v55 = vadd.f32 %v1733_v45, %v1716_v18  ;;  %v1783_v48 = vmul.f32 %v4451_v37, %v1774_v27  ;;  %v1667_v54 = vadd.f32 %v1659_v58, %v1642_v16  ;;  %v1635_v3 = vmul.f32 %v1774_v27, %v4407_v13  ;;  %v4539_v18 = vld [vmem:[#allocation4 + $0x92] sm:$0xff] }
 0x236   : > { %v1618_v59 = vadd.f32 %v1610_v53, %v1585_v28  ;;  %v1709_v6 = vmul.f32 %v1774_v27, %v4432_v46  ;;  %v1814_v29 = vsel %vm1798_vm12, %v1790_v47, %v1806_v2 }
 0x237   : > { %v1766_v61 = vadd.f32 %v1758_v56, %v1741_v55  ;;  %v1692_v52 = vadd.f32 %v1684_v20, %v1667_v54  ;;  %v3306_v20 = vld [vmem:[%s4978_s5 + $0x88] sm:$0xff] }
 0x238   : > { %v1643_v42 = vadd.f32 %v1635_v3, %v1618_v59  ;;  %2388 = vmatpush.bf16.msrb.mxu2 %v3306_v20 }
 0x239   : > { %v1791_v62 = vadd.f32 %v1783_v48, %v1766_v61  ;;  %v1717_v25 = vadd.f32 %v1709_v6, %v1692_v52  ;;  %v4554_v61 = vld [vmem:[%s481_s27 + $0x1] ss:$0 sm:$0xff]  ;;  %s4996_s27 = smov 80  }
 0x23a   : > { %v1651_v57 = vld [vmem:[#allocation4 + $0x80] sm:$0xff]  ;;  %v1875_v54 = vmul.f32 %v4554_v61, %v4399_v4 }
 0x23b   : > { %v1676_v5 = vld [vmem:[#allocation4 + $0x81] sm:$0xff]  ;;  %vm1799_vm13 = vcmp.ge.f32.partialorder %v1791_v62, 0.0  ;;  %v1807_v7 = vmul.f32 0.1, %v1791_v62  ;;  %v1660_v0 = vmul.f32 %v4415_v49, %v1651_v57  ;;  %v1734_v9 = vmul.f32 %v4434_v50, %v1651_v57 }
 0x23c   : > { %v1701_v22 = vld [vmem:[#allocation4 + $0x82] sm:$0xff]  ;;  %v1685_v17 = vmul.f32 %v4425_v15, %v1676_v5  ;;  %v1735_v49 = vmul.f32 %v4434_v50, %v4528_v36  ;;  %v1759_v39 = vmul.f32 %v4442_v14, %v1676_v5  ;;  %v1760_v15 = vmul.f32 %v4442_v14, %v4532_v32  ;;  %v4550_v14 = vld [vmem:[%s4977_s4 + $0x1] ss:$0 sm:$0xff] }
 0x23d   : > { %v1815_v12 = vsel %vm1799_vm13, %v1791_v62, %v1807_v7  ;;  %v1668_v13 = vadd.f32 %v1660_v0, %v1643_v42  ;;  %v1742_v11 = vadd.f32 %v1734_v9, %v1717_v25  ;;  %v1710_v40 = vmul.f32 %v4432_v46, %v1701_v22 }
 0x23e   : > { %v1820_v63 = vpack.c.bf16 %v1815_v12, %v1814_v29  ;;  %v1784_v47 = vmul.f32 %v4451_v37, %v1701_v22  ;;  %v1785_v46 = vmul.f32 %v4451_v37, %v4539_v18  ;;  %v1876_v5 = vmul.f32 %v4554_v61, %v4417_v41 }
 0x23f   : > { %v1693_v60 = vadd.f32 %v1685_v17, %v1668_v13  ;;  %v1767_v27 = vadd.f32 %v1759_v39, %v1742_v11  ;;  %v1877_v12 = vmul.f32 %v4554_v61, %v4440_v8 }
 0x240   : > { %3201 = vmatmul.msk.bf16.gmra.mxu3 %vm570_vm0, %v1820_v63 }
 0x241   : > { %v1718_v45 = vadd.f32 %v1710_v40, %v1693_v60  ;;  %v1792_v50 = vadd.f32 %v1784_v47, %v1767_v27 }
 0x243   : > { %v1743_v51 = vadd.f32 %v1735_v49, %v1718_v45  ;;  %v1808_v55 = vmul.f32 0.1, %v1792_v50  ;;  %vm1800_vm15 = vcmp.ge.f32.partialorder %v1792_v50, 0.0  ;;  %v1878_v45 = vmul.f32 %v4554_v61, %v4454_v35 }
 0x245   : > { %v1768_v28 = vadd.f32 %v1760_v15, %v1743_v51  ;;  %v1816_v58 = vsel %vm1800_vm15, %v1792_v50, %v1808_v55 }
 0x247   : > { %v1793_v53 = vadd.f32 %v1785_v46, %v1768_v28 }
 0x249   : > { %vm1801_vm14 = vcmp.ge.f32.partialorder %v1793_v53, 0.0  ;;  %v1809_v56 = vmul.f32 0.1, %v1793_v53 }
 0x24b   : > { %v1817_v16 = vsel %vm1801_vm14, %v1793_v53, %v1809_v56 }
 0x24c   : > { %v1821_v48 = vpack.c.bf16 %v1817_v16, %v1816_v58  ;;  %v1879_v16 = vmul.f32 %v4554_v61, %v4470_v31 }
 0x250   : > { %3202 = vmatmul.msk.bf16.gmra.mxu3 %vm570_vm0, %v1821_v48 }
 0x2a1   : > { %v1852_v37 = vpop.f32.mrf.mxu3 }
 0x2a2   : > { %v1853_v59 = vadd.f32 %v4550_v14, %v1852_v37 }
 0x2a4   : > { %v1883_v62 = vadd.f32 %v1875_v54, %v1853_v59 }
 0x2a6   : > { %vm1891_vm1 = vcmp.ge.f32.partialorder %v1883_v62, 0.0  ;;  %v1899_v2 = vmul.f32 0.1, %v1883_v62 }
 0x2a8   : > { %v1907_v3 = vsel %vm1891_vm1, %v1883_v62, %v1899_v2 }
 0x2a9   : > { %1915 = vst.msk [vmem:[#allocation4 + $0x11] sm:$0xff] %vm570_vm0, %v1907_v3  ;;  %v1854_v52 = vpop.f32.mrf.mxu3 }
 0x2aa   : > { %v1855_v57 = vadd.f32 %v4550_v14, %v1854_v52  ;;  %v1880_v52 = vmul.f32 %v4554_v61, %v4483_v34 }
 0x2ac   : > { %v1884_v6 = vadd.f32 %v1876_v5, %v1855_v57 }
 0x2ae   : > { %vm1892_vm2 = vcmp.ge.f32.partialorder %v1884_v6, 0.0  ;;  %v1900_v4 = vmul.f32 0.1, %v1884_v6 }
 0x2b0   : > { %v1908_v7 = vsel %vm1892_vm2, %v1884_v6, %v1900_v4  ;;  %v1940_v42 = vld [vmem:[#allocation4 + $0x12] sm:$0xff] }
 0x2b1   : > { %v1932_v0 = vld [vmem:[#allocation4 + $0x11] sm:$0xff]  ;;  %1916 = vst.msk [vmem:[#allocation4 + $0x21] sm:$0xff] %vm570_vm0, %v1908_v7  ;;  %v3513_v22 = vpack.i.bf16 %v1940_v42, %v4411_v24 }
 0x2b2   : > { %v3508_v25 = vpack.i.bf16 %v1932_v0, %v4397_v10  ;;  %v1857_v9 = vpop.f32.mrf.mxu3  ;;  %v4574_v17 = vld [vmem:[#allocation4 + $0x10] sm:$0xff] }
 0x2b3   : > { %v1858_v29 = vadd.f32 %v4550_v14, %v1857_v9  ;;  %3514 = vrot.lane.b32.xlu2 %v3513_v22, %s3839_s21 }
 0x2b4   : > { %3509 = vrot.lane.b32.xlu1 %v3508_v25, %s3836_s15 }
 0x2b5   : > { %v1885_v41 = vadd.f32 %v1877_v12, %v1858_v29 }
 0x2b7   : > { %vm1893_vm9 = vcmp.ge.f32.partialorder %v1885_v41, 0.0  ;;  %v1901_v13 = vmul.f32 0.1, %v1885_v41 }
 0x2b8   : > { %v4576_v63 = vld [vmem:[#allocation4 + $0x20] sm:$0xff] }
 0x2b9   : > { %v1964_v24 = vld [vmem:[#allocation4 + $0x22] sm:$0xff]  ;;  %v1909_v10 = vsel %vm1893_vm9, %v1885_v41, %v1901_v13  ;;  %v3518_v60 = vpack.i.bf16 %v4576_v63, %v4574_v17  ;;  %v1881_v41 = vmul.f32 %v4554_v61, %v4499_v30 }
 0x2ba   : > { %v1956_v11 = vld [vmem:[#allocation4 + $0x21] sm:$0xff]  ;;  %v3528_v40 = vpack.i.bf16 %v1964_v24, %v1940_v42  ;;  %1917 = vst.msk [vmem:[#allocation4 + $0x31] sm:$0xff] %vm570_vm0, %v1909_v10  ;;  %v1859_v8 = vpop.f32.mrf.mxu3 }
 0x2bb   : > { %v3523_v49 = vpack.i.bf16 %v1956_v11, %v1932_v0  ;;  %v1860_v39 = vadd.f32 %v4550_v14, %v1859_v8  ;;  %3519 = vrot.lane.b32.xlu0 %v3518_v60, %s4995_s25 }
 0x2bc   : > { %3529 = vrot.lane.b32.xlu2 %v3528_v40, %s4996_s27 }
 0x2bd   : > { %3524 = vrot.lane.b32.xlu1 %v3523_v49, %s4997_s17  ;;  %v1886_v15 = vadd.f32 %v1878_v45, %v1860_v39  ;;  %v1882_v49 = vmul.f32 %v4554_v61, %v4512_v38  ;;  %v3305_v45 = vld [vmem:[%s4978_s5 + $0x80] sm:$0xff]  ;;  %v3304_v38 = vld [vmem:[%s4978_s5 + $0x78] sm:$0xff] }
 0x2be   : > { %2352 = vmatpush.bf16.msrb.mxu0 %v3305_v45 }
 0x2bf   : > { %vm1894_vm10 = vcmp.ge.f32.partialorder %v1886_v15, 0.0  ;;  %v1902_v27 = vmul.f32 0.1, %v1886_v15 }
 0x2c1   : > { %v1910_v51 = vsel %vm1894_vm10, %v1886_v15, %v1902_v27  ;;  %v1988_v47 = vld [vmem:[#allocation4 + $0x32] sm:$0xff] }
 0x2c2   : > { %v4587_v46 = vld [vmem:[#allocation4 + $0x30] sm:$0xff]  ;;  %1918 = vst.msk [vmem:[#allocation4 + $0x41] sm:$0xff] %vm570_vm0, %v1910_v51  ;;  %v2276_v50 = vpack.c.bf16 %v1988_v47, %v1964_v24  ;;  %v3548_v20 = vpack.i.bf16 %v1988_v47, %v1964_v24  ;;  %2353 = vmatpush.bf16.msrb.mxu0 %v3304_v38 }
 0x2c3   : > { %v1934_v28 = vld [vmem:[#allocation4 + $0x31] sm:$0xff]  ;;  %v3533_v35 = vpack.i.bf16 %v4587_v46, %v4576_v63  ;;  %v1862_v55 = vpop.f32.mrf.mxu3 }
 0x2c4   : > { %v3543_v53 = vpack.i.bf16 %v1934_v28, %v1956_v11  ;;  %v1863_v56 = vadd.f32 %v4550_v14, %v1862_v55  ;;  %3239 = vmatmul.msk.bf16.vlgmr.msrb.gmra.mxu2 %vm570_vm0, %v2276_v50 }
 0x2c5   : > { %3534 = vrot.lane.b32.xlu0 %v3533_v35, %s4998_s30 }
 0x2c6   : > { %3544 = vrot.lane.b32.xlu2 %v3543_v53, %s3836_s15  ;;  %3539 = vrot.lane.b32.xlu1 %v3543_v53, %s4999_s22  ;;  %v1887_v58 = vadd.f32 %v1879_v16, %v1863_v56 }
 0x2c8   : > { %vm1895_vm11 = vcmp.ge.f32.partialorder %v1887_v58, 0.0  ;;  %v1903_v48 = vmul.f32 0.1, %v1887_v58 }
 0x2c9   : > { %v1958_v37 = vld [vmem:[#allocation4 + $0x41] sm:$0xff] }
 0x2ca   : > { %v4599_v59 = vld [vmem:[#allocation4 + $0x40] sm:$0xff]  ;;  %v1911_v54 = vsel %vm1895_vm11, %v1887_v58, %v1903_v48  ;;  %v3558_v62 = vpack.i.bf16 %v1958_v37, %v1934_v28  ;;  %v3303_v58 = vld [vmem:[%s4978_s5 + $0x70] sm:$0xff] }
 0x2cb   : > { %v3553_v31 = vpack.i.bf16 %v4599_v59, %v4587_v46  ;;  %1919 = vst.msk [vmem:[#allocation4 + $0x51] sm:$0xff] %vm570_vm0, %v1911_v54  ;;  %v1864_v2 = vpop.f32.mrf.mxu3  ;;  %v1966_v5 = vld [vmem:[#allocation4 + $0x42] sm:$0xff]  ;;  %2354 = vmatpush.bf16.msrb.mxu0 %v3303_v58 }
 0x2cc   : > { %v1865_v3 = vadd.f32 %v4550_v14, %v1864_v2  ;;  %v3563_v7 = vpack.i.bf16 %v1966_v5, %v1988_v47 }
 0x2cd   : > { %3549 = vrot.lane.b32.xlu0 %v3548_v20, %s3839_s21 }
 0x2ce   : > { %3559 = vrot.lane.b32.xlu2 %v3558_v62, %s4997_s17  ;;  %3554 = vrot.lane.b32.xlu1 %v3553_v31, %s4995_s25  ;;  %v1888_v57 = vadd.f32 %v1880_v52, %v1865_v3  ;;  %v3302_v3 = vld [vmem:[%s4978_s5 + $0x68] sm:$0xff]  ;;  %v3301_v52 = vld [vmem:[%s4978_s5 + $0x60] sm:$0xff] }
 0x2cf   : > { %2355 = vmatpush.bf16.msrb.mxu0 %v3302_v3 }
 0x2d0   : > { %vm1896_vm12 = vcmp.ge.f32.partialorder %v1888_v57, 0.0  ;;  %v1904_v6 = vmul.f32 0.1, %v1888_v57 }
 0x2d2   : > { %v1912_v4 = vsel %vm1896_vm12, %v1888_v57, %v1904_v6  ;;  %v1990_v42 = vld [vmem:[#allocation4 + $0x52] sm:$0xff] }
 0x2d3   : > { %v1982_v0 = vld [vmem:[#allocation4 + $0x51] sm:$0xff]  ;;  %1920 = vst.msk [vmem:[#allocation4 + $0x61] sm:$0xff] %vm570_vm0, %v1912_v4  ;;  %v1867_v25 = vpop.f32.mrf.mxu3  ;;  %v2278_v34 = vpack.c.bf16 %v1990_v42, %v1966_v5  ;;  %v3583_v8 = vpack.i.bf16 %v1990_v42, %v1966_v5  ;;  %2356 = vmatpush.bf16.msrb.mxu0 %v3301_v52 }
 0x2d4   : > { %v4610_v22 = vld [vmem:[#allocation4 + $0x50] sm:$0xff]  ;;  %v3573_v9 = vpack.i.bf16 %v1982_v0, %v1958_v37  ;;  %v1868_v12 = vadd.f32 %v4550_v14, %v1867_v25  ;;  %v3300_v5 = vld [vmem:[%s4978_s5 + $0x58] sm:$0xff]  ;;  %v4679_v25 = vld [vmem:[#allocation4] sm:$0xff] }
 0x2d5   : > { %v3568_v29 = vpack.i.bf16 %v4610_v22, %v4599_v59  ;;  %3564 = vrot.lane.b32.xlu0 %v3563_v7, %s4996_s27  ;;  %3240 = vmatmul.msk.bf16.gmra.mxu2 %vm570_vm0, %v2278_v34  ;;  %v3299_v6 = vld [vmem:[%s4978_s5 + $0x50] sm:$0xff] }
 0x2d6   : > { %3574 = vrot.lane.b32.xlu2 %v3573_v9, %s4999_s22  ;;  %v1889_v13 = vadd.f32 %v1881_v41, %v1868_v12 }
 0x2d7   : > { %3569 = vrot.lane.b32.xlu1 %v3568_v29, %s4998_s30  ;;  %2357 = vmatpush.bf16.msrb.mxu0 %v3300_v5 }
 0x2d8   : > { %vm1897_vm13 = vcmp.ge.f32.partialorder %v1889_v13, 0.0  ;;  %v1905_v24 = vmul.f32 0.1, %v1889_v13 }
 0x2da   : > { %v1913_v11 = vsel %vm1897_vm13, %v1889_v13, %v1905_v24  ;;  %v4622_v10 = vld [vmem:[#allocation4 + $0x60] sm:$0xff] }
 0x2db   : > { %1921 = vst.msk [vmem:[#allocation4 + $0x71] sm:$0xff] %vm570_vm0, %v1913_v11  ;;  %v1869_v60 = vpop.f32.mrf.mxu3  ;;  %v3588_v30 = vpack.i.bf16 %v4622_v10, %v4610_v22  ;;  %v1960_v15 = vld [vmem:[#allocation4 + $0x61] sm:$0xff]  ;;  %2358 = vmatpush.bf16.msrb.mxu0 %v3299_v6 }
 0x2dc   : > { %v1870_v40 = vadd.f32 %v4550_v14, %v1869_v60  ;;  %v1991_v14 = vld [vmem:[#allocation4 + $0x62] sm:$0xff]  ;;  %v3593_v51 = vpack.i.bf16 %v1960_v15, %v1982_v0 }
 0x2dd   : > { %3579 = vrot.lane.b32.xlu0 %v3573_v9, %s3836_s15  ;;  %v3598_v53 = vpack.i.bf16 %v1991_v14, %v1990_v42 }
 0x2de   : > { %3589 = vrot.lane.b32.xlu2 %v3588_v30, %s4995_s25  ;;  %v1890_v39 = vadd.f32 %v1882_v49, %v1870_v40 }
 0x2df   : > { %3584 = vrot.lane.b32.xlu1 %v3583_v8, %s3839_s21 }
 0x2e0   : > { %vm1898_vm14 = vcmp.ge.f32.partialorder %v1890_v39, 0.0  ;;  %v1906_v27 = vmul.f32 0.1, %v1890_v39 }
 0x2e2   : > { %v1914_v61 = vsel %vm1898_vm14, %v1890_v39, %v1906_v27  ;;  %v1992_v47 = vld [vmem:[#allocation4 + $0x72] sm:$0xff] }
 0x2e3   : > { %v4639_v28 = vld [vmem:[#allocation4 + $0x70] sm:$0xff]  ;;  %1922 = vst.msk [vmem:[#allocation4 + $0x81] sm:$0xff] %vm570_vm0, %v1914_v61  ;;  %v2280_v50 = vpack.c.bf16 %v1992_v47, %v1991_v14  ;;  %v3618_v16 = vpack.i.bf16 %v1992_v47, %v1991_v14 }
 0x2e4   : > { %v3603_v35 = vpack.i.bf16 %v4639_v28, %v4622_v10  ;;  %v1984_v55 = vld [vmem:[#allocation4 + $0x71] sm:$0xff] }
 0x2e5   : > { %3594 = vrot.lane.b32.xlu0 %v3593_v51, %s4997_s17  ;;  %3241 = vmatmul.msk.bf16.gmra.mxu2 %vm570_vm0, %v2280_v50  ;;  %v3608_v56 = vpack.i.bf16 %v1984_v55, %v1960_v15 }
 0x2e6   : > { %3604 = vrot.lane.b32.xlu2 %v3603_v35, %s4998_s30 }
 0x2e7   : > { %3599 = vrot.lane.b32.xlu1 %v3598_v53, %s4996_s27 }
 0x2ea   : > { %v1954_v48 = vld [vmem:[#allocation4 + $0x80] sm:$0xff] }
 0x2eb   : > { %v1993_v37 = vld [vmem:[#allocation4 + $0x82] sm:$0xff]  ;;  %v3623_v20 = vpack.i.bf16 %v1954_v48, %v4639_v28 }
 0x2ec   : > { %v1962_v54 = vld [vmem:[#allocation4 + $0x81] sm:$0xff]  ;;  %v2282_v62 = vpack.c.bf16 %v4539_v18, %v1993_v37  ;;  %v3633_v31 = vpack.i.bf16 %v1993_v37, %v1992_v47  ;;  %v3638_v18 = vpack.i.bf16 %v4528_v36, %v1954_v48 }
 0x2ed   : > { %3609 = vrot.lane.b32.xlu0 %v3608_v56, %s4999_s22  ;;  %v3628_v2 = vpack.i.bf16 %v1962_v54, %v1984_v55  ;;  %v3643_v57 = vpack.i.bf16 %v4532_v32, %v1962_v54  ;;  %v3298_v36 = vld [vmem:[%s4978_s5 + $0x48] sm:$0xff] }
 0x2ee   : > { %3619 = vrot.lane.b32.xlu2 %v3618_v16, %s3839_s21  ;;  %2359 = vmatpush.bf16.msrb.mxu0 %v3298_v36 }
 0x2ef   : > { %3614 = vrot.lane.b32.xlu1 %v3608_v56, %s3836_s15 }
 0x2f5   : > { %3624 = vrot.lane.b32.xlu0 %v3623_v20, %s4995_s25  ;;  %3242 = vmatmul.msk.bf16.gmra.mxu2 %vm570_vm0, %v2282_v62 }
 0x2f6   : > { %3634 = vrot.lane.b32.xlu2 %v3633_v31, %s4996_s27 }
 0x2f7   : > { %3629 = vrot.lane.b32.xlu1 %v3628_v2, %s4997_s17 }
 0x2fd   : > { %3639 = vrot.lane.b32.xlu0 %v3638_v18, %s4998_s30 }
 0x2ff   : > { %3644 = vrot.lane.b32.xlu1 %v3643_v57, %s4999_s22 }
 0x30d   : > { %v3515_v4 = vpop.permute.xlu2 %3514 }
 0x30e   : > { %v3517_v24 = vunpack.i.h.bf16 %v3515_v4  ;;  %v3516_v11 = vunpack.i.l.bf16 %v3515_v4 }
 0x316   : > { %v3530_v32 = vpop.permute.xlu2 %3529 }
 0x317   : > { %v3532_v27 = vunpack.i.h.bf16 %v3530_v32  ;;  %v3531_v38 = vunpack.i.l.bf16 %v3530_v32 }
 0x320   : > { %v3545_v60 = vpop.permute.xlu2 %3544 }
 0x321   : > { %v3547_v20 = vunpack.i.h.bf16 %v3545_v60  ;;  %v3546_v62 = vunpack.i.l.bf16 %v3545_v60 }
 0x323   : > { %v2222_v18 = vsel %vm570_vm0, %v4587_v46, %v3547_v20  ;;  %v2221_v57 = vsel %vm570_vm0, %v4576_v63, %v3546_v62 }
 0x326   : > { %v3510_v7 = vpop.permute.xlu1 %3509 }
 0x327   : > { %v3512_v42 = vunpack.i.h.bf16 %v3510_v7  ;;  %v3511_v0 = vunpack.i.l.bf16 %v3510_v7 }
 0x328   : > { %v3560_v56 = vpop.permute.xlu2 %3559 }
 0x329   : > { %v2219_v9 = vsel %vm570_vm0, %v4679_v25, %v3511_v0  ;;  %v2220_v29 = vsel %vm570_vm0, %v4574_v17, %v3512_v42  ;;  %v3562_v0 = vunpack.i.h.bf16 %v3560_v56 }
 0x32a   : > { %v2227_v30 = vsel %vm1348_vm3, %v2219_v9, %v3516_v11  ;;  %v2228_v40 = vsel %vm1348_vm3, %v2220_v29, %v3517_v24 }
 0x32d   : > { %v3520_v34 = vpop.permute.xlu0 %3519 }
 0x32e   : > { %v3522_v12 = vunpack.i.h.bf16 %v3520_v34  ;;  %v3521_v41 = vunpack.i.l.bf16 %v3520_v34  ;;  %v3561_v34 = vunpack.i.l.bf16 %v3560_v56 }
 0x32f   : > { %v3525_v13 = vpop.permute.xlu1 %3524 }
 0x330   : > { %v3527_v49 = vunpack.i.h.bf16 %v3525_v13  ;;  %v3526_v8 = vunpack.i.l.bf16 %v3525_v13  ;;  %v2235_v39 = vsel %vm1357_vm4, %v2227_v30, %v3521_v41  ;;  %v2236_v45 = vsel %vm1357_vm4, %v2228_v40, %v3522_v12  ;;  %v3575_v32 = vpop.permute.xlu2 %3574 }
 0x331   : > { %v3577_v30 = vunpack.i.h.bf16 %v3575_v32  ;;  %v3576_v40 = vunpack.i.l.bf16 %v3575_v32 }
 0x332   : > { %v2243_v15 = vsel %vm1366_vm5, %v2235_v39, %v3526_v8  ;;  %v2244_v17 = vsel %vm1366_vm5, %v2236_v45, %v3527_v49 }
 0x333   : > { %v2251_v50 = vsel %vm1375_vm6, %v2243_v15, %v3531_v38  ;;  %v2252_v35 = vsel %vm1375_vm6, %v2244_v17, %v3532_v27 }
 0x337   : > { %v3535_v14 = vpop.permute.xlu0 %3534 }
 0x338   : > { %v3537_v61 = vunpack.i.h.bf16 %v3535_v14  ;;  %v3536_v51 = vunpack.i.l.bf16 %v3535_v14  ;;  %v3540_v47 = vpop.permute.xlu1 %3539  ;;  %v3590_v15 = vpop.permute.xlu2 %3589 }
 0x339   : > { %v3542_v53 = vunpack.i.h.bf16 %v3540_v47  ;;  %v3541_v55 = vunpack.i.l.bf16 %v3540_v47 }
 0x33a   : > { %v2259_v16 = vsel %vm1384_vm7, %v2251_v50, %v3536_v51  ;;  %v2260_v58 = vsel %vm1384_vm7, %v2252_v35, %v3537_v61 }
 0x33b   : > { %v2267_v48 = vsel %vm1393_vm8, %v2259_v16, %v3541_v55  ;;  %v2268_v37 = vsel %vm1393_vm8, %v2260_v58, %v3542_v53  ;;  %v3592_v16 = vunpack.i.h.bf16 %v3590_v15  ;;  %v3591_v58 = vunpack.i.l.bf16 %v3590_v15 }
 0x33c   : > { %v2275_v54 = vpack.c.bf16 %v2268_v37, %v2267_v48 }
 0x33e   : > { %2360 = vmatmul.bf16.vlgmr.msrb.gmra.mxu0 %v2275_v54 }
 0x33f   : > { %v3550_v31 = vpop.permute.xlu0 %3549 }
 0x340   : > { %v3552_v2 = vunpack.i.h.bf16 %v3550_v31  ;;  %v3551_v3 = vunpack.i.l.bf16 %v3550_v31  ;;  %v3555_v52 = vpop.permute.xlu1 %3554  ;;  %v3605_v48 = vpop.permute.xlu2 %3604 }
 0x341   : > { %v3557_v5 = vunpack.i.h.bf16 %v3555_v52  ;;  %v3556_v6 = vunpack.i.l.bf16 %v3555_v52 }
 0x342   : > { %v2229_v36 = vsel %vm1348_vm3, %v2221_v57, %v3551_v3  ;;  %v2230_v4 = vsel %vm1348_vm3, %v2222_v18, %v3552_v2  ;;  %v3607_v57 = vunpack.i.h.bf16 %v3605_v48 }
 0x343   : > { %v2238_v7 = vsel %vm1357_vm4, %v2230_v4, %v3557_v5  ;;  %v2237_v42 = vsel %vm1357_vm4, %v2229_v36, %v3556_v6  ;;  %v3606_v5 = vunpack.i.l.bf16 %v3605_v48 }
 0x344   : > { %v2245_v46 = vsel %vm1366_vm5, %v2237_v42, %v3561_v34  ;;  %v2246_v63 = vsel %vm1366_vm5, %v2238_v7, %v3562_v0 }
 0x347   : > { %v3565_v9 = vpop.permute.xlu0 %3564 }
 0x348   : > { %v3567_v29 = vunpack.i.h.bf16 %v3565_v9  ;;  %v3566_v12 = vunpack.i.l.bf16 %v3565_v9  ;;  %v3620_v0 = vpop.permute.xlu2 %3619 }
 0x349   : > { %v3570_v41 = vpop.permute.xlu1 %3569 }
 0x34a   : > { %v2253_v13 = vsel %vm1375_vm6, %v2245_v46, %v3566_v12  ;;  %v2254_v24 = vsel %vm1375_vm6, %v2246_v63, %v3567_v29  ;;  %v3572_v11 = vunpack.i.h.bf16 %v3570_v41  ;;  %v3571_v60 = vunpack.i.l.bf16 %v3570_v41 }
 0x34c   : > { %v2261_v49 = vsel %vm1384_vm7, %v2253_v13, %v3571_v60  ;;  %v2262_v8 = vsel %vm1384_vm7, %v2254_v24, %v3572_v11  ;;  %v3622_v24 = vunpack.i.h.bf16 %v3620_v0  ;;  %v3621_v11 = vunpack.i.l.bf16 %v3620_v0 }
 0x34d   : > { %v2269_v39 = vsel %vm1393_vm8, %v2261_v49, %v3576_v40  ;;  %v2270_v45 = vsel %vm1393_vm8, %v2262_v8, %v3577_v30 }
 0x34e   : > { %v2277_v17 = vpack.c.bf16 %v2270_v45, %v2269_v39 }
 0x34f   : > { %v3580_v27 = vpop.permute.xlu0 %3579 }
 0x350   : > { %v3582_v38 = vunpack.i.h.bf16 %v3580_v27  ;;  %v3581_v14 = vunpack.i.l.bf16 %v3580_v27  ;;  %2365 = vmatmul.bf16.gmra.mxu0 %v2277_v17 }
 0x351   : > { %v3585_v61 = vpop.permute.xlu1 %3584 }
 0x352   : > { %v3587_v51 = vunpack.i.h.bf16 %v3585_v61  ;;  %v3586_v47 = vunpack.i.l.bf16 %v3585_v61  ;;  %v2224_v50 = vsel %vm570_vm0, %v4610_v22, %v3582_v38  ;;  %v2223_v35 = vsel %vm570_vm0, %v4599_v59, %v3581_v14 }
 0x354   : > { %v2232_v53 = vsel %vm1348_vm3, %v2224_v50, %v3587_v51  ;;  %v2231_v55 = vsel %vm1348_vm3, %v2223_v35, %v3586_v47 }
 0x355   : > { %v2239_v62 = vsel %vm1357_vm4, %v2231_v55, %v3591_v58  ;;  %v2240_v31 = vsel %vm1357_vm4, %v2232_v53, %v3592_v16 }
 0x357   : > { %v3595_v56 = vpop.permute.xlu0 %3594 }
 0x358   : > { %v3597_v37 = vunpack.i.h.bf16 %v3595_v56  ;;  %v3596_v54 = vunpack.i.l.bf16 %v3595_v56 }
 0x359   : > { %v3600_v20 = vpop.permute.xlu1 %3599 }
 0x35a   : > { %v3602_v2 = vunpack.i.h.bf16 %v3600_v20  ;;  %v3601_v22 = vunpack.i.l.bf16 %v3600_v20  ;;  %v2247_v3 = vsel %vm1366_vm5, %v2239_v62, %v3596_v54  ;;  %v2248_v59 = vsel %vm1366_vm5, %v2240_v31, %v3597_v37  ;;  %v2390_v20 = vpop.f32.mrf.mxu2  ;;  %v4748_v62 = vld [vmem:[%s4979_s6 + $0x1] ss:$0 sm:$0xff] }
 0x35c   : > { %v2255_v52 = vsel %vm1375_vm6, %v2247_v3, %v3601_v22  ;;  %v2256_v18 = vsel %vm1375_vm6, %v2248_v59, %v3602_v2  ;;  %v3315_v22 = vld [vmem:[%s4980_s7 + $0x40] sm:$0xff] }
 0x35d   : > { %v2263_v7 = vsel %vm1384_vm7, %v2255_v52, %v3606_v5  ;;  %v2264_v42 = vsel %vm1384_vm7, %v2256_v18, %v3607_v57  ;;  %2921 = vmatpush.bf16.msra.mxu0 %v3315_v22  ;;  %3316 = vmatpush.bf16.msrb.mxu1 %v3315_v22 }
 0x35f   : > { %v3610_v6 = vpop.permute.xlu0 %3609 }
 0x360   : > { %v3612_v36 = vunpack.i.h.bf16 %v3610_v6  ;;  %v3611_v4 = vunpack.i.l.bf16 %v3610_v6 }
 0x361   : > { %v3615_v32 = vpop.permute.xlu1 %3614 }
 0x362   : > { %v2271_v34 = vsel %vm1393_vm8, %v2263_v7, %v3611_v4  ;;  %v2272_v9 = vsel %vm1393_vm8, %v2264_v42, %v3612_v36  ;;  %v3617_v29 = vunpack.i.h.bf16 %v3615_v32  ;;  %v3616_v12 = vunpack.i.l.bf16 %v3615_v32  ;;  %v2392_v52 = vpop.f32.mrf.mxu2  ;;  %v2472_v36 = vld [vmem:[#allocation4 + $0x2] sm:$0xff] }
 0x363   : > { %v2279_v46 = vpack.c.bf16 %v2272_v9, %v2271_v34  ;;  %v2464_v4 = vld [vmem:[#allocation4 + $0x1] sm:$0xff] }
 0x364   : > { %v2226_v63 = vsel %vm570_vm0, %v4639_v28, %v3617_v29  ;;  %v2225_v41 = vsel %vm570_vm0, %v4622_v10, %v3616_v12  ;;  %v3635_v28 = vpop.permute.xlu2 %3634 }
 0x365   : > { %2370 = vmatmul.bf16.gmra.mxu0 %v2279_v46  ;;  %v2233_v49 = vsel %vm1348_vm3, %v2225_v41, %v3621_v11  ;;  %v2234_v8 = vsel %vm1348_vm3, %v2226_v63, %v3622_v24  ;;  %v3637_v38 = vunpack.i.h.bf16 %v3635_v28  ;;  %v3636_v14 = vunpack.i.l.bf16 %v3635_v28 }
 0x367   : > { %v3625_v13 = vpop.permute.xlu0 %3624 }
 0x368   : > { %v3627_v60 = vunpack.i.h.bf16 %v3625_v13  ;;  %v3626_v30 = vunpack.i.l.bf16 %v3625_v13 }
 0x369   : > { %v3630_v40 = vpop.permute.xlu1 %3629 }
 0x36a   : > { %v3632_v39 = vunpack.i.h.bf16 %v3630_v40  ;;  %v3631_v45 = vunpack.i.l.bf16 %v3630_v40  ;;  %v2241_v15 = vsel %vm1357_vm4, %v2233_v49, %v3626_v30  ;;  %v2242_v17 = vsel %vm1357_vm4, %v2234_v8, %v3627_v60  ;;  %v2395_v0 = vpop.f32.mrf.mxu2 }
 0x36c   : > { %v2249_v27 = vsel %vm1366_vm5, %v2241_v15, %v3631_v45  ;;  %v2250_v10 = vsel %vm1366_vm5, %v2242_v17, %v3632_v39 }
 0x36d   : > { %v2257_v35 = vsel %vm1375_vm6, %v2249_v27, %v3636_v14  ;;  %v2258_v53 = vsel %vm1375_vm6, %v2250_v10, %v3637_v38 }
 0x36f   : > { %v3640_v61 = vpop.permute.xlu0 %3639 }
 0x370   : > { %v3642_v51 = vunpack.i.h.bf16 %v3640_v61  ;;  %v3641_v47 = vunpack.i.l.bf16 %v3640_v61 }
 0x371   : > { %v3645_v50 = vpop.permute.xlu1 %3644 }
 0x372   : > { %v3647_v55 = vunpack.i.h.bf16 %v3645_v50  ;;  %v3646_v56 = vunpack.i.l.bf16 %v3645_v50  ;;  %v2265_v16 = vsel %vm1384_vm7, %v2257_v35, %v3641_v47  ;;  %v2266_v58 = vsel %vm1384_vm7, %v2258_v53, %v3642_v51  ;;  %v2397_v30 = vpop.f32.mrf.mxu2 }
 0x374   : > { %v2273_v48 = vsel %vm1393_vm8, %v2265_v16, %v3646_v56  ;;  %v2274_v37 = vsel %vm1393_vm8, %v2266_v58, %v3647_v55 }
 0x375   : > { %v2281_v54 = vpack.c.bf16 %v2274_v37, %v2273_v48 }
 0x377   : > { %2375 = vmatmul.bf16.gmra.mxu0 %v2281_v54 }
 0x37a   : > { %v2400_v27 = vpop.f32.mrf.mxu2 }
 0x382   : > { %v2402_v53 = vpop.f32.mrf.mxu2 }
 0x3bb   : > { %v2361_v31 = vpop.f32.mrf.mxu0 }
 0x3bc   : > { %v2362_v2 = vadd.f32 %v4748_v62, %v2361_v31 }
 0x3be   : > { %v2391_v3 = vadd.f32 %v2390_v20, %v2362_v2 }
 0x3c0   : > { %v2410_v59 = vadd.f32 %v2391_v3, %v4020_v19  ;;  %v2405_v3 = vpop.f32.mrf.mxu2 }
 0x3c2   : > { %2418 = vst.msk [vmem:[#allocation2] sm:$0xff] %vm570_vm0, %v2410_v59 }
 0x3c3   : > { %2448 = vst.msk [vmem:[#allocation4 + $0x11] sm:$0xff] %vm570_vm0, %v2410_v59  ;;  %v2363_v18 = vpop.f32.mrf.mxu0 }
 0x3c4   : > { %v2364_v57 = vadd.f32 %v4748_v62, %v2363_v18 }
 0x3c6   : > { %v2393_v5 = vadd.f32 %v2392_v52, %v2364_v57 }
 0x3c8   : > { %v2411_v6 = vadd.f32 %v2393_v5, %v4026_v21 }
 0x3ca   : > { %2419 = vst.msk [vmem:[#allocation2 + $0x8] sm:$0xff] %vm570_vm0, %v2411_v6  ;;  %v2473_v32 = vld [vmem:[#allocation4 + $0x12] sm:$0xff] }
 0x3cb   : > { %v2465_v7 = vld [vmem:[#allocation4 + $0x11] sm:$0xff]  ;;  %2449 = vst.msk [vmem:[#allocation4 + $0x21] sm:$0xff] %vm570_vm0, %v2411_v6  ;;  %v3653_v19 = vpack.i.bf16 %v2473_v32, %v2472_v36 }
 0x3cc   : > { %v3648_v42 = vpack.i.bf16 %v2465_v7, %v2464_v4  ;;  %v4764_v21 = vld [vmem:[#allocation4 + $0x10] sm:$0xff] }
 0x3cd   : > { %v2366_v34 = vpop.f32.mrf.mxu0  ;;  %3654 = vrot.lane.b32.xlu0 %v3653_v19, %s3839_s21  ;;  %v2407_v19 = vpop.f32.mrf.mxu2 }
 0x3ce   : > { %3649 = vrot.lane.b32.xlu2 %v3648_v42, %s3836_s15  ;;  %v2367_v9 = vadd.f32 %v4748_v62, %v2366_v34 }
 0x3d0   : > { %v2396_v29 = vadd.f32 %v2395_v0, %v2367_v9  ;;  %v3313_v0 = vld [vmem:[%s4980_s7 + $0x30] sm:$0xff] }
 0x3d2   : > { %v2412_v12 = vadd.f32 %v2396_v29, %v4031_v23  ;;  %v4767_v46 = vld [vmem:[#allocation4 + $0x20] sm:$0xff] }
 0x3d3   : > { %v2497_v63 = vld [vmem:[#allocation4 + $0x22] sm:$0xff]  ;;  %v3658_v13 = vpack.i.bf16 %v4767_v46, %v4764_v21 }
 0x3d4   : > { %v2489_v41 = vld [vmem:[#allocation4 + $0x21] sm:$0xff]  ;;  %v3668_v24 = vpack.i.bf16 %v2497_v63, %v2473_v32  ;;  %2420 = vst.msk [vmem:[#allocation2 + $0x10] sm:$0xff] %vm570_vm0, %v2412_v12 }
 0x3d5   : > { %v3663_v11 = vpack.i.bf16 %v2489_v41, %v2465_v7  ;;  %2450 = vst.msk [vmem:[#allocation4 + $0x31] sm:$0xff] %vm570_vm0, %v2412_v12  ;;  %v2368_v60 = vpop.f32.mrf.mxu0  ;;  %3659 = vrot.lane.b32.xlu1 %v3658_v13, %s4995_s25 }
 0x3d6   : > { %3669 = vrot.lane.b32.xlu0 %v3668_v24, %s4996_s27  ;;  %v2369_v23 = vadd.f32 %v4748_v62, %v2368_v60 }
 0x3d7   : > { %3664 = vrot.lane.b32.xlu2 %v3663_v11, %s4997_s17 }
 0x3d8   : > { %v2398_v40 = vadd.f32 %v2397_v30, %v2369_v23 }
 0x3da   : > { %v2413_v49 = vadd.f32 %v2398_v40, %v4103_v26 }
 0x3dc   : > { %2421 = vst.msk [vmem:[#allocation2 + $0x18] sm:$0xff] %vm570_vm0, %v2413_v49  ;;  %v2521_v8 = vld [vmem:[#allocation4 + $0x32] sm:$0xff] }
 0x3dd   : > { %v4779_v39 = vld [vmem:[#allocation4 + $0x30] sm:$0xff]  ;;  %2451 = vst.msk [vmem:[#allocation4 + $0x41] sm:$0xff] %vm570_vm0, %v2413_v49  ;;  %v2809_v15 = vpack.c.bf16 %v2521_v8, %v2497_v63  ;;  %v3688_v51 = vpack.i.bf16 %v2521_v8, %v2497_v63 }
 0x3de   : > { %v2467_v45 = vld [vmem:[#allocation4 + $0x31] sm:$0xff]  ;;  %v3673_v17 = vpack.i.bf16 %v4779_v39, %v4767_v46 }
 0x3df   : > { %v3683_v28 = vpack.i.bf16 %v2467_v45, %v2489_v41  ;;  %3279 = vmatmul.msk.bf16.vlgmr.msra.gmra.mxu0 %vm570_vm0, %v2809_v15  ;;  %v2527_v49 = vld [vmem:[#allocation4 + $0x92] sm:$0xff] }
 0x3e0   : > { %3674 = vrot.lane.b32.xlu1 %v3673_v17, %s4998_s30 }
 0x3e1   : > { %3684 = vrot.lane.b32.xlu0 %v3683_v28, %s3836_s15  ;;  %3679 = vrot.lane.b32.xlu2 %v3683_v28, %s4999_s22 }
 0x3e2   : > { %v2371_v26 = vpop.f32.mrf.mxu0 }
 0x3e3   : > { %v2372_v10 = vadd.f32 %v4748_v62, %v2371_v26  ;;  %v2519_v26 = vld [vmem:[#allocation4 + $0x91] sm:$0xff] }
 0x3e4   : > { %v2491_v38 = vld [vmem:[#allocation4 + $0x41] sm:$0xff] }
 0x3e5   : > { %v4789_v14 = vld [vmem:[#allocation4 + $0x40] sm:$0xff]  ;;  %v2401_v61 = vadd.f32 %v2400_v27, %v2372_v10  ;;  %v3698_v47 = vpack.i.bf16 %v2491_v38, %v2467_v45  ;;  %v2511_v45 = vld [vmem:[#allocation4 + $0x90] sm:$0xff] }
 0x3e6   : > { %v3693_v50 = vpack.i.bf16 %v4789_v14, %v4779_v39  ;;  %v2499_v56 = vld [vmem:[#allocation4 + $0x42] sm:$0xff] }
 0x3e7   : > { %v2414_v35 = vadd.f32 %v2401_v61, %v4108_v33  ;;  %v3703_v48 = vpack.i.bf16 %v2499_v56, %v2521_v8  ;;  %v3311_v8 = vld [vmem:[%s4980_s7 + $0x20] sm:$0xff]  ;;  %v3309_v61 = vld [vmem:[%s4980_s7 + $0x10] sm:$0xff] }
 0x3e8   : > { %3689 = vrot.lane.b32.xlu1 %v3688_v51, %s3839_s21 }
 0x3e9   : > { %3699 = vrot.lane.b32.xlu0 %v3698_v47, %s4997_s17  ;;  %3694 = vrot.lane.b32.xlu2 %v3693_v50, %s4995_s25  ;;  %2422 = vst.msk [vmem:[#allocation2 + $0x20] sm:$0xff] %vm570_vm0, %v2414_v35  ;;  %v3308_v47 = vld [vmem:[%s4980_s7 + $0x8] sm:$0xff]  ;;  %v3307_v50 = vld [vmem:[%s4980_s7] sm:$0xff] }
 0x3ea   : > { %2452 = vst.msk [vmem:[#allocation4 + $0x51] sm:$0xff] %vm570_vm0, %v2414_v35  ;;  %v2373_v55 = vpop.f32.mrf.mxu0 }
 0x3eb   : > { %v2374_v16 = vadd.f32 %v4748_v62, %v2373_v55 }
 0x3ed   : > { %v2403_v58 = vadd.f32 %v2402_v53, %v2374_v16 }
 0x3ef   : > { %v2415_v37 = vadd.f32 %v2403_v58, %v4117_v43 }
 0x3f0   : > { %3704 = vrot.lane.b32.xlu1 %v3703_v48, %s4996_s27 }
 0x3f1   : > { %2423 = vst.msk [vmem:[#allocation2 + $0x28] sm:$0xff] %vm570_vm0, %v2415_v37  ;;  %v2523_v33 = vld [vmem:[#allocation4 + $0x52] sm:$0xff] }
 0x3f2   : > { %v2515_v54 = vld [vmem:[#allocation4 + $0x51] sm:$0xff]  ;;  %2453 = vst.msk [vmem:[#allocation4 + $0x61] sm:$0xff] %vm570_vm0, %v2415_v37  ;;  %v2811_v31 = vpack.c.bf16 %v2523_v33, %v2499_v56  ;;  %v3723_v36 = vpack.i.bf16 %v2523_v33, %v2499_v56 }
 0x3f3   : > { %v4803_v20 = vld [vmem:[#allocation4 + $0x50] sm:$0xff]  ;;  %v3713_v2 = vpack.i.bf16 %v2515_v54, %v2491_v38  ;;  %v3310_v38 = vld [vmem:[%s4980_s7 + $0x18] sm:$0xff] }
 0x3f4   : > { %v3708_v22 = vpack.i.bf16 %v4803_v20, %v4789_v14  ;;  %v2376_v59 = vpop.f32.mrf.mxu0  ;;  %3280 = vmatmul.msk.bf16.vlgmr.msrb.gmra.mxu1 %vm570_vm0, %v2811_v31 }
 0x3f5   : > { %3714 = vrot.lane.b32.xlu0 %v3713_v2, %s4999_s22  ;;  %v2377_v43 = vadd.f32 %v4748_v62, %v2376_v59 }
 0x3f6   : > { %3709 = vrot.lane.b32.xlu2 %v3708_v22, %s4998_s30 }
 0x3f7   : > { %v2406_v52 = vadd.f32 %v2405_v3, %v2377_v43 }
 0x3f8   : > { %3719 = vrot.lane.b32.xlu1 %v3713_v2, %s3836_s15 }
 0x3f9   : > { %v2416_v18 = vadd.f32 %v2406_v52, %v4120_v44  ;;  %v4814_v57 = vld [vmem:[#allocation4 + $0x60] sm:$0xff]  ;;  %v3314_v44 = vld [vmem:[%s4980_s7 + $0x38] sm:$0xff] }
 0x3fa   : > { %v3728_v5 = vpack.i.bf16 %v4814_v57, %v4803_v20  ;;  %v2493_v6 = vld [vmem:[#allocation4 + $0x61] sm:$0xff]  ;;  %2885 = vmatpush.bf16.msrb.mxu3 %v3314_v44 }
 0x3fb   : > { %2424 = vst.msk [vmem:[#allocation2 + $0x30] sm:$0xff] %vm570_vm0, %v2416_v18  ;;  %v3733_v7 = vpack.i.bf16 %v2493_v6, %v2515_v54  ;;  %v2501_v34 = vld [vmem:[#allocation4 + $0x62] sm:$0xff] }
 0x3fc   : > { %2454 = vst.msk [vmem:[#allocation4 + $0x71] sm:$0xff] %vm570_vm0, %v2416_v18  ;;  %v2378_v4 = vpop.f32.mrf.mxu0 }
 0x3fd   : > { %3729 = vrot.lane.b32.xlu0 %v3728_v5, %s4995_s25  ;;  %v2379_v32 = vadd.f32 %v4748_v62, %v2378_v4  ;;  %v3738_v62 = vpack.i.bf16 %v2501_v34, %v2523_v33 }
 0x3fe   : > { %3724 = vrot.lane.b32.xlu2 %v3723_v36, %s3839_s21  ;;  %2886 = vmatpush.bf16.msrb.mxu3 %v3313_v0 }
 0x3ff   : > { %v2408_v42 = vadd.f32 %v2407_v19, %v2379_v32 }
 0x400   : > { %3734 = vrot.lane.b32.xlu1 %v3733_v7, %s4997_s17 }
 0x401   : > { %v2417_v9 = vadd.f32 %v2408_v42, %v4133_v1  ;;  %v3312_v1 = vld [vmem:[%s4980_s7 + $0x28] sm:$0xff] }
 0x402   : > { %2887 = vmatpush.bf16.msrb.mxu3 %v3312_v1 }
 0x403   : > { %2425 = vst.msk [vmem:[#allocation2 + $0x38] sm:$0xff] %vm570_vm0, %v2417_v9  ;;  %v2525_v29 = vld [vmem:[#allocation4 + $0x72] sm:$0xff] }
 0x404   : > { %v4832_v12 = vld [vmem:[#allocation4 + $0x70] sm:$0xff]  ;;  %2455 = vst.msk [vmem:[#allocation4 + $0x81] sm:$0xff] %vm570_vm0, %v2417_v9  ;;  %v2813_v41 = vpack.c.bf16 %v2525_v29, %v2501_v34  ;;  %v3758_v60 = vpack.i.bf16 %v2525_v29, %v2501_v34 }
 0x405   : > { %v2517_v63 = vld [vmem:[#allocation4 + $0x71] sm:$0xff]  ;;  %v3743_v13 = vpack.i.bf16 %v4832_v12, %v4814_v57 }
 0x406   : > { %v3748_v24 = vpack.i.bf16 %v2517_v63, %v2493_v6  ;;  %3739 = vrot.lane.b32.xlu2 %v3738_v62, %s4996_s27  ;;  %3281 = vmatmul.msk.bf16.gmra.mxu1 %vm570_vm0, %v2813_v41 }
 0x407   : > { %3744 = vrot.lane.b32.xlu0 %v3743_v13, %s4998_s30  ;;  %2888 = vmatpush.bf16.msrb.mxu3 %v3311_v8 }
 0x408   : > { %3749 = vrot.lane.b32.xlu1 %v3748_v24, %s4999_s22 }
 0x40b   : > { %v2487_v11 = vld [vmem:[#allocation4 + $0x80] sm:$0xff]  ;;  %2889 = vmatpush.bf16.msrb.mxu3 %v3310_v38 }
 0x40c   : > { %v3763_v30 = vpack.i.bf16 %v2487_v11, %v4832_v12  ;;  %v2495_v23 = vld [vmem:[#allocation4 + $0x81] sm:$0xff]  ;;  %v3778_v27 = vpack.i.bf16 %v2511_v45, %v2487_v11 }
 0x40d   : > { %v2526_v40 = vld [vmem:[#allocation4 + $0x82] sm:$0xff]  ;;  %v3768_v15 = vpack.i.bf16 %v2495_v23, %v2517_v63  ;;  %v3783_v10 = vpack.i.bf16 %v2519_v26, %v2495_v23 }
 0x40e   : > { %3754 = vrot.lane.b32.xlu2 %v3748_v24, %s3836_s15  ;;  %v2815_v17 = vpack.c.bf16 %v2527_v49, %v2526_v40  ;;  %v3773_v28 = vpack.i.bf16 %v2526_v40, %v2525_v29 }
 0x40f   : > { %3759 = vrot.lane.b32.xlu0 %v3758_v60, %s3839_s21  ;;  %2890 = vmatpush.bf16.msrb.mxu3 %v3309_v61 }
 0x410   : > { %3764 = vrot.lane.b32.xlu1 %v3763_v30, %s4995_s25 }
 0x413   : > { %2891 = vmatpush.bf16.msrb.mxu3 %v3308_v47 }
 0x416   : > { %3769 = vrot.lane.b32.xlu2 %v3768_v15, %s4997_s17  ;;  %3282 = vmatmul.msk.bf16.gmra.mxu1 %vm570_vm0, %v2815_v17 }
 0x417   : > { %3774 = vrot.lane.b32.xlu0 %v3773_v28, %s4996_s27  ;;  %2892 = vmatpush.bf16.msrb.mxu3 %v3307_v50 }
 0x418   : > { %3779 = vrot.lane.b32.xlu1 %v3778_v27, %s4998_s30 }
 0x41e   : > { %3784 = vrot.lane.b32.xlu2 %v3783_v10, %s4999_s22 }
 0x428   : > { %v3650_v51 = vpop.permute.xlu2 %3649 }
 0x429   : > { %v3652_v56 = vunpack.i.h.bf16 %v3650_v51  ;;  %v3651_v16 = vunpack.i.l.bf16 %v3650_v51 }
 0x42b   : > { %v2752_v2 = vsel %vm570_vm0, %v4679_v25, %v3651_v16  ;;  %v2753_v22 = vsel %vm570_vm0, %v4764_v21, %v3652_v56 }
 0x431   : > { %v3665_v35 = vpop.permute.xlu2 %3664 }
 0x432   : > { %v3667_v18 = vunpack.i.h.bf16 %v3665_v35  ;;  %v3666_v5 = vunpack.i.l.bf16 %v3665_v35 }
 0x43b   : > { %v3680_v55 = vpop.permute.xlu2 %3679 }
 0x43c   : > { %v3682_v19 = vunpack.i.h.bf16 %v3680_v55  ;;  %v3681_v42 = vunpack.i.l.bf16 %v3680_v55 }
 0x43f   : > { %v3655_v53 = vpop.permute.xlu0 %3654 }
 0x440   : > { %v3657_v48 = vunpack.i.h.bf16 %v3655_v53  ;;  %v3656_v37 = vunpack.i.l.bf16 %v3655_v53 }
 0x442   : > { %v2760_v3 = vsel %vm1348_vm3, %v2752_v2, %v3656_v37  ;;  %v2761_v59 = vsel %vm1348_vm3, %v2753_v22, %v3657_v48 }
 0x443   : > { %v3695_v6 = vpop.permute.xlu2 %3694 }
 0x444   : > { %v3697_v17 = vunpack.i.h.bf16 %v3695_v6  ;;  %v3696_v28 = vunpack.i.l.bf16 %v3695_v6 }
 0x447   : > { %v3660_v58 = vpop.permute.xlu1 %3659 }
 0x448   : > { %v3662_v33 = vunpack.i.h.bf16 %v3660_v58  ;;  %v3661_v54 = vunpack.i.l.bf16 %v3660_v58  ;;  %v3670_v31 = vpop.permute.xlu0 %3669 }
 0x449   : > { %v3672_v32 = vunpack.i.h.bf16 %v3670_v31  ;;  %v3671_v25 = vunpack.i.l.bf16 %v3670_v31 }
 0x44a   : > { %v2768_v43 = vsel %vm1357_vm4, %v2760_v3, %v3661_v54  ;;  %v2769_v52 = vsel %vm1357_vm4, %v2761_v59, %v3662_v33 }
 0x44b   : > { %v2776_v36 = vsel %vm1366_vm5, %v2768_v43, %v3666_v5  ;;  %v2777_v4 = vsel %vm1366_vm5, %v2769_v52, %v3667_v18 }
 0x44c   : > { %v2784_v0 = vsel %vm1375_vm6, %v2776_v36, %v3671_v25  ;;  %v2785_v34 = vsel %vm1375_vm6, %v2777_v4, %v3672_v32 }
 0x450   : > { %v3710_v13 = vpop.permute.xlu2 %3709 }
 0x451   : > { %v3712_v55 = vunpack.i.h.bf16 %v3710_v13  ;;  %v3711_v56 = vunpack.i.l.bf16 %v3710_v13 }
 0x452   : > { %v3675_v7 = vpop.permute.xlu1 %3674 }
 0x453   : > { %v3677_v44 = vunpack.i.h.bf16 %v3675_v7  ;;  %v3676_v21 = vunpack.i.l.bf16 %v3675_v7  ;;  %v3685_v29 = vpop.permute.xlu0 %3684 }
 0x454   : > { %v3687_v1 = vunpack.i.h.bf16 %v3685_v29  ;;  %v3686_v11 = vunpack.i.l.bf16 %v3685_v29 }
 0x455   : > { %v2792_v9 = vsel %vm1384_vm7, %v2784_v0, %v3676_v21  ;;  %v2793_v62 = vsel %vm1384_vm7, %v2785_v34, %v3677_v44 }
 0x456   : > { %v2800_v63 = vsel %vm1393_vm8, %v2792_v9, %v3681_v42  ;;  %v2801_v41 = vsel %vm1393_vm8, %v2793_v62, %v3682_v19  ;;  %v2755_v40 = vsel %vm570_vm0, %v4779_v39, %v3687_v1  ;;  %v2754_v49 = vsel %vm570_vm0, %v4767_v46, %v3686_v11 }
 0x457   : > { %v2808_v24 = vpack.c.bf16 %v2801_v41, %v2800_v63 }
 0x458   : > { %v3725_v27 = vpop.permute.xlu2 %3724 }
 0x459   : > { %2893 = vmatmul.bf16.vlgmr.msrb.gmra.mxu3 %v2808_v24  ;;  %v3727_v4 = vunpack.i.h.bf16 %v3725_v27  ;;  %v3726_v32 = vunpack.i.l.bf16 %v3725_v27 }
 0x45a   : > { %v3690_v60 = vpop.permute.xlu1 %3689 }
 0x45b   : > { %v3692_v30 = vunpack.i.h.bf16 %v3690_v60  ;;  %v3691_v23 = vunpack.i.l.bf16 %v3690_v60  ;;  %v3700_v15 = vpop.permute.xlu0 %3699 }
 0x45c   : > { %v3702_v61 = vunpack.i.h.bf16 %v3700_v15  ;;  %v3701_v51 = vunpack.i.l.bf16 %v3700_v15 }
 0x45d   : > { %v2762_v8 = vsel %vm1348_vm3, %v2754_v49, %v3691_v23  ;;  %v2763_v45 = vsel %vm1348_vm3, %v2755_v40, %v3692_v30 }
 0x45e   : > { %v2770_v26 = vsel %vm1357_vm4, %v2762_v8, %v3696_v28  ;;  %v2771_v10 = vsel %vm1357_vm4, %v2763_v45, %v3697_v17 }
 0x45f   : > { %v2778_v50 = vsel %vm1366_vm5, %v2770_v26, %v3701_v51  ;;  %v2779_v46 = vsel %vm1366_vm5, %v2771_v10, %v3702_v61 }
 0x460   : > { %v3740_v22 = vpop.permute.xlu2 %3739 }
 0x461   : > { %v3742_v9 = vunpack.i.h.bf16 %v3740_v22  ;;  %v3741_v62 = vunpack.i.l.bf16 %v3740_v22 }
 0x462   : > { %v3705_v38 = vpop.permute.xlu1 %3704 }
 0x463   : > { %v3707_v47 = vunpack.i.h.bf16 %v3705_v38  ;;  %v3706_v39 = vunpack.i.l.bf16 %v3705_v38 }
 0x465   : > { %v2786_v35 = vsel %vm1375_vm6, %v2778_v50, %v3706_v39  ;;  %v2787_v53 = vsel %vm1375_vm6, %v2779_v46, %v3707_v47 }
 0x466   : > { %v2794_v37 = vsel %vm1384_vm7, %v2786_v35, %v3711_v56  ;;  %v2795_v33 = vsel %vm1384_vm7, %v2787_v53, %v3712_v55 }
 0x467   : > { %v3715_v16 = vpop.permute.xlu0 %3714 }
 0x468   : > { %v3717_v58 = vunpack.i.h.bf16 %v3715_v16  ;;  %v3716_v48 = vunpack.i.l.bf16 %v3715_v16  ;;  %v3755_v42 = vpop.permute.xlu2 %3754 }
 0x469   : > { %v3757_v15 = vunpack.i.h.bf16 %v3755_v42  ;;  %v3756_v17 = vunpack.i.l.bf16 %v3755_v42 }
 0x46a   : > { %v3720_v54 = vpop.permute.xlu1 %3719  ;;  %v2802_v31 = vsel %vm1393_vm8, %v2794_v37, %v3716_v48  ;;  %v2803_v2 = vsel %vm1393_vm8, %v2795_v33, %v3717_v58 }
 0x46b   : > { %v2810_v3 = vpack.c.bf16 %v2803_v2, %v2802_v31  ;;  %v3722_v59 = vunpack.i.h.bf16 %v3720_v54  ;;  %v3721_v43 = vunpack.i.l.bf16 %v3720_v54  ;;  %v2759_v38 = vsel %vm570_vm0, %v4832_v12, %v3757_v15 }
 0x46c   : > { %v2758_v61 = vsel %vm570_vm0, %v4814_v57, %v3756_v17 }
 0x46d   : > { %2898 = vmatmul.bf16.gmra.mxu3 %v2810_v3  ;;  %v2757_v18 = vsel %vm570_vm0, %v4803_v20, %v3722_v59  ;;  %v2756_v5 = vsel %vm570_vm0, %v4789_v14, %v3721_v43 }
 0x46e   : > { %v2764_v7 = vsel %vm1348_vm3, %v2756_v5, %v3726_v32  ;;  %v2765_v44 = vsel %vm1348_vm3, %v2757_v18, %v3727_v4 }
 0x46f   : > { %v3730_v52 = vpop.permute.xlu0 %3729 }
 0x470   : > { %v3732_v6 = vunpack.i.h.bf16 %v3730_v52  ;;  %v3731_v36 = vunpack.i.l.bf16 %v3730_v52  ;;  %v3770_v45 = vpop.permute.xlu2 %3769 }
 0x471   : > { %v3772_v53 = vunpack.i.h.bf16 %v3770_v45  ;;  %v3771_v55 = vunpack.i.l.bf16 %v3770_v45 }
 0x472   : > { %v3735_v25 = vpop.permute.xlu1 %3734  ;;  %v2772_v0 = vsel %vm1357_vm4, %v2764_v7, %v3731_v36  ;;  %v2773_v34 = vsel %vm1357_vm4, %v2765_v44, %v3732_v6  ;;  %v3794_v6 = vld [vmem:[%s4981_s8] ss:$0 sm:$0xff]  ;;  %v2923_v36 = vpop.f32.mrf.mxu0 }
 0x473   : > { %v3737_v21 = vunpack.i.h.bf16 %v3735_v25  ;;  %v3736_v19 = vunpack.i.l.bf16 %v3735_v25  ;;  %v2943_v25 = vld [vmem:[#allocation3] sm:$0xff] }
 0x475   : > { %v2780_v20 = vsel %vm1366_vm5, %v2772_v0, %v3736_v19  ;;  %v2781_v14 = vsel %vm1366_vm5, %v2773_v34, %v3737_v21  ;;  %v2944_v0 = vld [vmem:[#allocation3 + $0x8] sm:$0xff] }
 0x476   : > { %v2788_v11 = vsel %vm1375_vm6, %v2780_v20, %v3741_v62  ;;  %v2789_v60 = vsel %vm1375_vm6, %v2781_v14, %v3742_v9  ;;  %v2928_v14 = vpop.f32.mrf.mxu1 }
 0x478   : > { %v3785_v56 = vpop.permute.xlu2 %3784 }
 0x479   : > { %v3745_v29 = vpop.permute.xlu0 %3744  ;;  %v3787_v31 = vunpack.i.h.bf16 %v3785_v56  ;;  %v3786_v2 = vunpack.i.l.bf16 %v3785_v56  ;;  %v2950_v56 = vld [vmem:[#allocation3 + $0x38] sm:$0xff] }
 0x47a   : > { %v3747_v63 = vunpack.i.h.bf16 %v3745_v29  ;;  %v3746_v41 = vunpack.i.l.bf16 %v3745_v29  ;;  %v3750_v13 = vpop.permute.xlu1 %3749  ;;  %v2925_v42 = vpop.f32.mrf.mxu0  ;;  %v2945_v29 = vld [vmem:[#allocation3 + $0x10] sm:$0xff] }
 0x47b   : > { %v3752_v24 = vunpack.i.h.bf16 %v3750_v13  ;;  %v3751_v1 = vunpack.i.l.bf16 %v3750_v13 }
 0x47c   : > { %v2796_v30 = vsel %vm1384_vm7, %v2788_v11, %v3746_v41  ;;  %v2797_v23 = vsel %vm1384_vm7, %v2789_v60, %v3747_v63  ;;  %v2946_v11 = vld [vmem:[#allocation3 + $0x18] sm:$0xff] }
 0x47d   : > { %v2804_v40 = vsel %vm1393_vm8, %v2796_v30, %v3751_v1  ;;  %v2805_v49 = vsel %vm1393_vm8, %v2797_v23, %v3752_v24 }
 0x47e   : > { %v2812_v8 = vpack.c.bf16 %v2805_v49, %v2804_v40  ;;  %v2930_v41 = vpop.f32.mrf.mxu1 }
 0x480   : > { %2903 = vmatmul.bf16.gmra.mxu3 %v2812_v8  ;;  %v2947_v8 = vld [vmem:[#allocation3 + $0x20] sm:$0xff] }
 0x481   : > { %v3760_v28 = vpop.permute.xlu0 %3759 }
 0x482   : > { %v3762_v27 = vunpack.i.h.bf16 %v3760_v28  ;;  %v3761_v26 = vunpack.i.l.bf16 %v3760_v28  ;;  %v3765_v10 = vpop.permute.xlu1 %3764 }
 0x483   : > { %v3767_v51 = vunpack.i.h.bf16 %v3765_v10  ;;  %v3766_v47 = vunpack.i.l.bf16 %v3765_v10 }
 0x484   : > { %v2766_v39 = vsel %vm1348_vm3, %v2758_v61, %v3761_v26  ;;  %v2767_v50 = vsel %vm1348_vm3, %v2759_v38, %v3762_v27  ;;  %v2948_v26 = vld [vmem:[#allocation3 + $0x28] sm:$0xff] }
 0x485   : > { %v2774_v46 = vsel %vm1357_vm4, %v2766_v39, %v3766_v47  ;;  %v2775_v35 = vsel %vm1357_vm4, %v2767_v50, %v3767_v51  ;;  %v2949_v39 = vld [vmem:[#allocation3 + $0x30] sm:$0xff] }
 0x486   : > { %v2782_v37 = vsel %vm1366_vm5, %v2774_v46, %v3771_v55  ;;  %v2783_v57 = vsel %vm1366_vm5, %v2775_v35, %v3772_v53  ;;  %v2933_v23 = vpop.f32.mrf.mxu1 }
 0x489   : > { %v3775_v16 = vpop.permute.xlu0 %3774 }
 0x48a   : > { %v3777_v58 = vunpack.i.h.bf16 %v3775_v16  ;;  %v3776_v48 = vunpack.i.l.bf16 %v3775_v16  ;;  %v3780_v12 = vpop.permute.xlu1 %3779 }
 0x48b   : > { %v3782_v33 = vunpack.i.h.bf16 %v3780_v12  ;;  %v3781_v54 = vunpack.i.l.bf16 %v3780_v12 }
 0x48c   : > { %v2790_v22 = vsel %vm1375_vm6, %v2782_v37, %v3776_v48  ;;  %v2791_v3 = vsel %vm1375_vm6, %v2783_v57, %v3777_v58 }
 0x48d   : > { %v2798_v59 = vsel %vm1384_vm7, %v2790_v22, %v3781_v54  ;;  %v2799_v43 = vsel %vm1384_vm7, %v2791_v3, %v3782_v33 }
 0x48e   : > { %v2806_v52 = vsel %vm1393_vm8, %v2798_v59, %v3786_v2  ;;  %v2807_v18 = vsel %vm1393_vm8, %v2799_v43, %v3787_v31  ;;  %v2935_v17 = vpop.f32.mrf.mxu1 }
 0x48f   : > { %v2814_v5 = vpack.c.bf16 %v2807_v18, %v2806_v52 }
 0x491   : > { %2908 = vmatmul.bf16.gmra.mxu3 %v2814_v5 }
 0x496   : > { %v2938_v61 = vpop.f32.mrf.mxu1 }
 0x49e   : > { %v2940_v55 = vpop.f32.mrf.mxu1 }
 0x4dc   : > { %v2894_v4 = vpop.f32.mrf.mxu3 }
 0x4dd   : > { %v2895_v32 = vadd.f32 %v3794_v6, %v2894_v4 }
 0x4df   : > { %v2924_v7 = vadd.f32 %v2923_v36, %v2895_v32 }
 0x4e1   : > { %v2951_v44 = vadd.f32 %v2943_v25, %v2924_v7 }
 0x4e3   : > { %2959 = vst.msk [vmem:[%s4940_s23] sm:$0xff] %vm570_vm0, %v2951_v44 }
 0x4e4   : > { %v2896_v21 = vpop.f32.mrf.mxu3 }
 0x4e5   : > { %v2897_v19 = vadd.f32 %v3794_v6, %v2896_v21 }
 0x4e7   : > { %v2926_v34 = vadd.f32 %v2925_v42, %v2897_v19 }
 0x4e9   : > { %v2952_v20 = vadd.f32 %v2944_v0, %v2926_v34 }
 0x4eb   : > { %2960 = vst.msk [vmem:[%s4940_s23 + $0x8] sm:$0xff] %vm570_vm0, %v2952_v20 }
 0x4f0   : > { %v2899_v9 = vpop.f32.mrf.mxu3 }
 0x4f1   : > { %v2900_v62 = vadd.f32 %v3794_v6, %v2899_v9 }
 0x4f3   : > { %v2929_v63 = vadd.f32 %v2928_v14, %v2900_v62 }
 0x4f5   : > { %v2953_v13 = vadd.f32 %v2945_v29, %v2929_v63 }
 0x4f7   : > { %2961 = vst.msk [vmem:[%s4940_s23 + $0x10] sm:$0xff] %vm570_vm0, %v2953_v13 }
 0x4f8   : > { %v2901_v24 = vpop.f32.mrf.mxu3 }
 0x4f9   : > { %v2902_v1 = vadd.f32 %v3794_v6, %v2901_v24 }
 0x4fb   : > { %v2931_v60 = vadd.f32 %v2930_v41, %v2902_v1 }
 0x4fd   : > { %v2954_v30 = vadd.f32 %v2946_v11, %v2931_v60 }
 0x4ff   : > { %2962 = vst.msk [vmem:[%s4940_s23 + $0x18] sm:$0xff] %vm570_vm0, %v2954_v30 }
 0x503   : > { %v2904_v40 = vpop.f32.mrf.mxu3 }
 0x504   : > { %v2905_v49 = vadd.f32 %v3794_v6, %v2904_v40 }
 0x506   : > { %v2934_v45 = vadd.f32 %v2933_v23, %v2905_v49 }
 0x508   : > { %v2955_v15 = vadd.f32 %v2947_v8, %v2934_v45 }
 0x50a   : > { %2963 = vst.msk [vmem:[%s4940_s23 + $0x20] sm:$0xff] %vm570_vm0, %v2955_v15 }
 0x50b   : > { %v2906_v28 = vpop.f32.mrf.mxu3 }
 0x50c   : > { %v2907_v27 = vadd.f32 %v3794_v6, %v2906_v28 }
 0x50e   : > { %v2936_v10 = vadd.f32 %v2935_v17, %v2907_v27 }
 0x510   : > { %v2956_v38 = vadd.f32 %v2948_v26, %v2936_v10 }
 0x512   : > { %2964 = vst.msk [vmem:[%s4940_s23 + $0x28] sm:$0xff] %vm570_vm0, %v2956_v38 }
 0x514   : > { %v2909_v51 = vpop.f32.mrf.mxu3 }
 0x515   : > { %v2910_v47 = vadd.f32 %v3794_v6, %v2909_v51 }
 0x517   : > { %v2939_v50 = vadd.f32 %v2938_v61, %v2910_v47 }
 0x519   : > { %v2957_v46 = vadd.f32 %v2949_v39, %v2939_v50 }
 0x51b   : > { %2965 = vst.msk [vmem:[%s4940_s23 + $0x30] sm:$0xff] %vm570_vm0, %v2957_v46 }
 0x51c   : > { %v2911_v35 = vpop.f32.mrf.mxu3 }
 0x51d   : > { %v2912_v53 = vadd.f32 %v3794_v6, %v2911_v35 }
 0x51f   : > { %v2941_v16 = vadd.f32 %v2940_v55, %v2912_v53 }
 0x521   : > { %v2958_v58 = vadd.f32 %v2950_v56, %v2941_v16 }
 0x523   : > { %2966 = vst.msk [vmem:[%s4940_s23 + $0x38] sm:$0xff] %vm570_vm0, %v2958_v58 }
 0x524 PF: > { %s19_s13 = sadd.s32 1, %s3833_s13   ;;  %s5001_s30 = smov %s3821_s10 }
 0x525   : > { %p16_p10 = scmp.ge.s32.totalorder %s19_s13, 4   ;;  %s5002_s10 = smov %s3932_s18 }
 0x526   : > { %s5003_s11 = smov %s3829_s12  ;;  %s5004_s12 = smov %s5006_s14 }
 0x527   :  { %18 = sbr.rel (!%p16_p10) target bundleno = 3 (0x3), region = 199 }

// kernel: dasr_forward.11
= control target key start
LH: loop header
LB: loop body
LE: loop exit
PB: predicated region body
PF: predicated region fallthrough
CT: control target
= control target key end

     0   :  { %s2826_s12 = smov 0   ;;  %s4161_s0 = inlined_call_operand.vmem [shape: f32[2,16,16,16], index: 0, kind: input, shape index: {}]   ;;  %s4162_s1 = inlined_call_operand.vmem [shape: bf16[144,3], index: 1, kind: input, shape index: {}]   ;;  %s4163_s2 = inlined_call_operand.vmem [shape: f32[1,3], index: 2, kind: input, shape index: {}]   ;;  %s4164_s3 = inlined_call_operand.vmem [shape: f32[2,16,16,3], index: 3, kind: output, shape index: {}]  }
   0x1 LB: > { %s2130_s13 = sadd.s32 4294967295, %s2796_s12   ;;  %p2134_p0 = scmp.ge.s32.totalorder %s2796_s12, 1  ;;  %s2796_s12 = sphi %s2826_s12, %s13_s12  }
   0x2   : > { %p137_p1 = scmp.lt.s32.totalorder %s2796_s12, 3 }
   0x4   : > { %p138_p2 = pnand %p2134_p0, %p137_p1 }
   0x6   : > { %141 = sbr.rel (%p138_p2) target bundleno = 628 (0x274), region = 32 }
   0xb   : > { %vm172_vm0 = vcmask 130048   ;;  %vm175_vm1 = vcmask 123904   ;;  %v2798_v0 = vmov 0.0   ;;  %s2799_s14 = smov 16   ;;  %p161_p3 = scmp.lt.s32.totalorder %s2130_s13, 1  ;;  %vm1510_vm2 = vcmask 261120  }
   0xc   : > { %173 = vst.msk [vmem:[#allocation2] sm:$0xff] %vm172_vm0, %v2798_v0  ;;  %s2800_s19 = smov 32   ;;  %s2801_s20 = smov 48   ;;  %vm1543_vm3 = vcmask 392192   ;;  %vm1576_vm4 = vcmask 523264   ;;  %vm1609_vm5 = vcmask 654336  }
   0xd   : > { %174 = vst.msk [vmem:[#allocation2 + $0x8] sm:$0xff] %vm172_vm0, %v2798_v0  ;;  %s4237_s13 = smov (!%p161_p3, %s2130_s13), 1  ;;  %s2802_s21 = smov 64   ;;  %vm1642_vm6 = vcmask 785408   ;;  %vm1675_vm7 = vcmask 916480   ;;  %vm2042_vm8 = vcmask 23552  }
   0xe   : > { %176 = vst.msk [vmem:[#allocation2 + $0x10] sm:$0x3] %vm175_vm1, %v2798_v0  ;;  %s2193_s15 = sshll.u32 %s4237_s13, 8  ;;  %s2803_s24 = smov 80  }
   0xf   : > { %177 = vst.msk [vmem:[#allocation2 + $0x18] sm:$0xff] %vm172_vm0, %v2798_v0  ;;  %s2945_s18 = scalar_lea.vmem %s4161_s0, %s2193_s15  ;;  %s2804_s25 = smov 96  }
  0x10   : > { %178 = vst.msk [vmem:[#allocation2 + $0x20] sm:$0xff] %vm172_vm0, %v2798_v0  ;;  %v234_v4 = vld [vmem:[%s2945_s18 + $0x30] sm:$0xff]  ;;  %v235_v5 = vld [vmem:[%s2945_s18 + $0x38] sm:$0xff]  ;;  %v228_v8 = vld [vmem:[%s2945_s18] sm:$0xff]  ;;  %s2805_s26 = smov 112   ;;  %s4045_s23 = scalar_lea.vmem %s4164_s3, %s2193_s15 }
  0x11   : > { %179 = vst.msk [vmem:[#allocation2 + $0x28] sm:$0x3] %vm175_vm1, %v2798_v0  ;;  %v230_v6 = vld [vmem:[%s2945_s18 + $0x10] sm:$0xff]  ;;  %v231_v7 = vld [vmem:[%s2945_s18 + $0x18] sm:$0xff]  ;;  %v229_v9 = vld [vmem:[%s2945_s18 + $0x8] sm:$0xff] }
  0x12   : > { %180 = vst.msk [vmem:[#allocation2 + $0x30] sm:$0xff] %vm172_vm0, %v2798_v0  ;;  %v236_v10 = vld [vmem:[%s2945_s18 + $0x40] sm:$0xff]  ;;  %v237_v11 = vld [vmem:[%s2945_s18 + $0x48] sm:$0xff]  ;;  %v238_v15 = vld [vmem:[%s2945_s18 + $0x50] sm:$0xff] }
  0x13   : > { %181 = vst.msk [vmem:[#allocation2 + $0x38] sm:$0xff] %vm172_vm0, %v2798_v0  ;;  %v232_v12 = vld [vmem:[%s2945_s18 + $0x20] sm:$0xff]  ;;  %v233_v13 = vld [vmem:[%s2945_s18 + $0x28] sm:$0xff]  ;;  %v239_v17 = vld [vmem:[%s2945_s18 + $0x58] sm:$0xff] }
  0x14   : > { %v325_v1 = vld [vmem:[#allocation2 + $0x1] sm:$0xff]  ;;  %182 = vst.msk [vmem:[#allocation2 + $0x40] sm:$0x3] %vm175_vm1, %v2798_v0  ;;  %v242_v20 = vld [vmem:[%s2945_s18 + $0x70] sm:$0xff]  ;;  %v243_v22 = vld [vmem:[%s2945_s18 + $0x78] sm:$0xff] }
  0x15   : > { %v326_v2 = vld [vmem:[#allocation2 + $0x9] sm:$0xff]  ;;  %183 = vst.msk [vmem:[#allocation2 + $0x48] sm:$0xff] %vm172_vm0, %v2798_v0  ;;  %v240_v25 = vld [vmem:[%s2945_s18 + $0x60] sm:$0xff]  ;;  %v247_v42 = vld [vmem:[%s2945_s18 + $0x98] sm:$0xff] }
  0x16   : > { %v2229_v3 = vpack.i.bf16 %v326_v2, %v325_v1  ;;  %184 = vst.msk [vmem:[#allocation2 + $0x50] sm:$0xff] %vm172_vm0, %v2798_v0  ;;  %v241_v27 = vld [vmem:[%s2945_s18 + $0x68] sm:$0xff]  ;;  %v244_v30 = vld [vmem:[%s2945_s18 + $0x80] sm:$0xff]  ;;  %v246_v40 = vld [vmem:[%s2945_s18 + $0x90] sm:$0xff] }
  0x17   : > { %185 = vst.msk [vmem:[#allocation2 + $0x58] sm:$0x3] %vm175_vm1, %v2798_v0  ;;  %v245_v32 = vld [vmem:[%s2945_s18 + $0x88] sm:$0xff]  ;;  %v248_v35 = vld [vmem:[%s2945_s18 + $0xa0] sm:$0xff]  ;;  %v250_v44 = vld [vmem:[%s2945_s18 + $0xb0] sm:$0xff] }
  0x18   : > { %2230 = vrot.lane.b32.xlu0 %v2229_v3, %s2799_s14  ;;  %186 = vst.msk [vmem:[#allocation2 + $0x60] sm:$0xff] %vm172_vm0, %v2798_v0  ;;  %v249_v37 = vld [vmem:[%s2945_s18 + $0xa8] sm:$0xff]  ;;  %v251_v47 = vld [vmem:[%s2945_s18 + $0xb8] sm:$0xff]  ;;  %v254_v48 = vld [vmem:[%s2945_s18 + $0xd0] sm:$0xff] }
  0x19   : > { %187 = vst.msk [vmem:[#allocation2 + $0x68] sm:$0xff] %vm172_vm0, %v2798_v0  ;;  %v255_v51 = vld [vmem:[%s2945_s18 + $0xd8] sm:$0xff]  ;;  %v252_v53 = vld [vmem:[%s2945_s18 + $0xc0] sm:$0xff]  ;;  %v253_v56 = vld [vmem:[%s2945_s18 + $0xc8] sm:$0xff] }
  0x1a   : > { %188 = vst.msk [vmem:[#allocation2 + $0x70] sm:$0x3] %vm175_vm1, %v2798_v0  ;;  %v256_v58 = vld [vmem:[%s2945_s18 + $0xe0] sm:$0xff]  ;;  %v257_v59 = vld [vmem:[%s2945_s18 + $0xe8] sm:$0xff] }
  0x1b   : > { %189 = vst.msk [vmem:[#allocation2 + $0x78] sm:$0xff] %vm172_vm0, %v2798_v0 }
  0x1c   : > { %190 = vst.msk [vmem:[#allocation2 + $0x80] sm:$0xff] %vm172_vm0, %v2798_v0 }
  0x1d   : > { %191 = vst.msk [vmem:[#allocation2 + $0x88] sm:$0x3] %vm175_vm1, %v2798_v0 }
  0x1e   : > { %192 = vst.msk [vmem:[#allocation2 + $0x90] sm:$0xff] %vm172_vm0, %v2798_v0 }
  0x1f   : > { %193 = vst.msk [vmem:[#allocation2 + $0x98] sm:$0xff] %vm172_vm0, %v2798_v0 }
  0x20   : > { %194 = vst.msk [vmem:[#allocation2 + $0xa0] sm:$0x3] %vm175_vm1, %v2798_v0 }
  0x21   : > { %195 = vst.msk [vmem:[#allocation2 + $0xa8] sm:$0xff] %vm172_vm0, %v2798_v0 }
  0x22   : > { %196 = vst.msk [vmem:[#allocation2 + $0xb0] sm:$0xff] %vm172_vm0, %v2798_v0 }
  0x23   : > { %197 = vst.msk [vmem:[#allocation2 + $0xb8] sm:$0x3] %vm175_vm1, %v2798_v0 }
  0x24   : > { %198 = vst.msk [vmem:[#allocation2 + $0xc0] sm:$0xff] %vm172_vm0, %v2798_v0 }
  0x25   : > { %199 = vst.msk [vmem:[#allocation2 + $0xc8] sm:$0xff] %vm172_vm0, %v2798_v0 }
  0x26   : > { %200 = vst.msk [vmem:[#allocation2 + $0xd0] sm:$0x3] %vm175_vm1, %v2798_v0 }
  0x27   : > { %201 = vst.msk [vmem:[#allocation2 + $0xd8] sm:$0xff] %vm172_vm0, %v2798_v0 }
  0x28   : > { %202 = vst.msk [vmem:[#allocation2 + $0xe0] sm:$0xff] %vm172_vm0, %v2798_v0 }
  0x29   : > { %203 = vst.msk [vmem:[#allocation2 + $0xe8] sm:$0x3] %vm175_vm1, %v2798_v0 }
  0x2a   : > { %204 = vst.msk [vmem:[#allocation2 + $0xf0] sm:$0xff] %vm172_vm0, %v2798_v0 }
  0x2b   : > { %205 = vst.msk [vmem:[#allocation2 + $0xf8] sm:$0xff] %vm172_vm0, %v2798_v0 }
  0x2c   : > { %206 = vst.msk [vmem:[#allocation2 + $0x100] sm:$0x3] %vm175_vm1, %v2798_v0 }
  0x2d   : > { %207 = vst.msk [vmem:[#allocation2 + $0x108] sm:$0xff] %vm172_vm0, %v2798_v0 }
  0x2e   : > { %208 = vst.msk [vmem:[#allocation2 + $0x110] sm:$0xff] %vm172_vm0, %v2798_v0 }
  0x2f   : > { %209 = vst.msk [vmem:[#allocation2 + $0x118] sm:$0x3] %vm175_vm1, %v2798_v0 }
  0x30   : > { %210 = vst.msk [vmem:[#allocation2 + $0x120] sm:$0xff] %vm172_vm0, %v2798_v0 }
  0x31   : > { %211 = vst.msk [vmem:[#allocation2 + $0x128] sm:$0xff] %vm172_vm0, %v2798_v0 }
  0x32   : > { %212 = vst.msk [vmem:[#allocation2 + $0x130] sm:$0x3] %vm175_vm1, %v2798_v0 }
  0x33   : > { %213 = vst.msk [vmem:[#allocation2 + $0x138] sm:$0xff] %vm172_vm0, %v2798_v0 }
  0x34   : > { %214 = vst.msk [vmem:[#allocation2 + $0x140] sm:$0xff] %vm172_vm0, %v2798_v0 }
  0x35   : > { %215 = vst.msk [vmem:[#allocation2 + $0x148] sm:$0x3] %vm175_vm1, %v2798_v0 }
  0x36   : > { %216 = vst.msk [vmem:[#allocation2 + $0x150] sm:$0xff] %vm172_vm0, %v2798_v0 }
  0x37   : > { %217 = vst.msk [vmem:[#allocation2 + $0x158] sm:$0xff] %vm172_vm0, %v2798_v0 }
  0x38   : > { %218 = vst.msk [vmem:[#allocation2 + $0x160] sm:$0x3] %vm175_vm1, %v2798_v0 }
  0x39   : > { %219 = vst.msk [vmem:[#allocation2 + $0x168] sm:$0xff] %vm172_vm0, %v2798_v0 }
  0x3a   : > { %220 = vst.msk [vmem:[#allocation2 + $0x170] sm:$0xff] %vm172_vm0, %v2798_v0 }
  0x3b   : > { %221 = vst.msk [vmem:[#allocation2 + $0x178] sm:$0x3] %vm175_vm1, %v2798_v0 }
  0x3c   : > { %222 = vst.msk [vmem:[#allocation2 + $0x180] sm:$0xff] %vm172_vm0, %v2798_v0 }
  0x3d   : > { %223 = vst.msk [vmem:[#allocation2 + $0x188] sm:$0xff] %vm172_vm0, %v2798_v0 }
  0x3e   : > { %224 = vst.msk [vmem:[#allocation2 + $0x190] sm:$0x3] %vm175_vm1, %v2798_v0 }
  0x3f   : > { %225 = vst.msk [vmem:[#allocation2 + $0x198] sm:$0xff] %vm172_vm0, %v2798_v0 }
  0x40   : > { %226 = vst.msk [vmem:[#allocation2 + $0x1a0] sm:$0xff] %vm172_vm0, %v2798_v0 }
  0x41   : > { %227 = vst.msk [vmem:[#allocation2 + $0x1a8] sm:$0x3] %vm175_vm1, %v2798_v0 }
  0x42   : > { %267 = vst.msk [vmem:[#allocation2 + $0x61] sm:$0xff] %vm172_vm0, %v234_v4 }
  0x43   : > { %268 = vst.msk [vmem:[#allocation2 + $0x69] sm:$0xff] %vm172_vm0, %v235_v5 }
  0x44   : > { %263 = vst.msk [vmem:[#allocation2 + $0x31] sm:$0xff] %vm172_vm0, %v230_v6 }
  0x45   : > { %264 = vst.msk [vmem:[#allocation2 + $0x39] sm:$0xff] %vm172_vm0, %v231_v7 }
  0x46   : > { %261 = vst.msk [vmem:[#allocation2 + $0x19] sm:$0xff] %vm172_vm0, %v228_v8 }
  0x47   : > { %262 = vst.msk [vmem:[#allocation2 + $0x21] sm:$0xff] %vm172_vm0, %v229_v9 }
  0x48   : > { %269 = vst.msk [vmem:[#allocation2 + $0x79] sm:$0xff] %vm172_vm0, %v236_v10 }
  0x49   : > { %v333_v14 = vld [vmem:[#allocation2 + $0x61] sm:$0xff]  ;;  %270 = vst.msk [vmem:[#allocation2 + $0x81] sm:$0xff] %vm172_vm0, %v237_v11 }
  0x4a   : > { %v334_v16 = vld [vmem:[#allocation2 + $0x69] sm:$0xff]  ;;  %265 = vst.msk [vmem:[#allocation2 + $0x49] sm:$0xff] %vm172_vm0, %v232_v12 }
  0x4b   : > { %v2978_v18 = vpack.i.bf16 %v334_v16, %v333_v14  ;;  %v329_v19 = vld [vmem:[#allocation2 + $0x31] sm:$0xff]  ;;  %266 = vst.msk [vmem:[#allocation2 + $0x51] sm:$0xff] %vm172_vm0, %v233_v13 }
  0x4c   : > { %v330_v21 = vld [vmem:[#allocation2 + $0x39] sm:$0xff]  ;;  %271 = vst.msk [vmem:[#allocation2 + $0x91] sm:$0xff] %vm172_vm0, %v238_v15 }
  0x4d   : > { %2250 = vrot.lane.b32.xlu2 %v2978_v18, %s2799_s14  ;;  %v2986_v23 = vpack.i.bf16 %v330_v21, %v329_v19  ;;  %v327_v24 = vld [vmem:[#allocation2 + $0x19] sm:$0xff]  ;;  %272 = vst.msk [vmem:[#allocation2 + $0x99] sm:$0xff] %vm172_vm0, %v239_v17  ;;  %v357_v17 = vld [vmem:[#allocation2 + $0x2] sm:$0xff]  ;;  %v358_v19 = vld [vmem:[#allocation2 + $0xa] sm:$0xff] }
  0x4e   : > { %v328_v26 = vld [vmem:[#allocation2 + $0x21] sm:$0xff]  ;;  %275 = vst.msk [vmem:[#allocation2 + $0xc1] sm:$0xff] %vm172_vm0, %v242_v20  ;;  %v3076_v21 = vld [vmem:[#allocation2 + $0x32] sm:$0xff] }
  0x4f   : > { %2240 = vrot.lane.b32.xlu1 %v2986_v23, %s2799_s14  ;;  %v2994_v28 = vpack.i.bf16 %v328_v26, %v327_v24  ;;  %v335_v29 = vld [vmem:[#allocation2 + $0x79] sm:$0xff]  ;;  %276 = vst.msk [vmem:[#allocation2 + $0xc9] sm:$0xff] %vm172_vm0, %v243_v22  ;;  %v360_v16 = vld [vmem:[#allocation2 + $0x22] sm:$0xff]  ;;  %v2309_v24 = vpack.i.bf16 %v358_v19, %v357_v17  ;;  %v258_v19 = vld [vmem:[%s2945_s18 + $0xf0] sm:$0xff] }
  0x50   : > { %v336_v31 = vld [vmem:[#allocation2 + $0x81] sm:$0xff]  ;;  %273 = vst.msk [vmem:[#allocation2 + $0xa9] sm:$0xff] %vm172_vm0, %v240_v25 }
  0x51   : > { %2235 = vrot.lane.b32.xlu0 %v2994_v28, %s2799_s14  ;;  %v3002_v33 = vpack.i.bf16 %v336_v31, %v335_v29  ;;  %v331_v34 = vld [vmem:[#allocation2 + $0x49] sm:$0xff]  ;;  %274 = vst.msk [vmem:[#allocation2 + $0xb1] sm:$0xff] %vm172_vm0, %v241_v27  ;;  %v359_v15 = vld [vmem:[#allocation2 + $0x1a] sm:$0xff] }
  0x52   : > { %v332_v36 = vld [vmem:[#allocation2 + $0x51] sm:$0xff]  ;;  %277 = vst.msk [vmem:[#allocation2 + $0xd9] sm:$0xff] %vm172_vm0, %v244_v30  ;;  %v3074_v20 = vpack.i.bf16 %v360_v16, %v359_v15  ;;  %v3078_v22 = vld [vmem:[#allocation2 + $0x3a] sm:$0xff]  ;;  %v3086_v26 = vld [vmem:[#allocation2 + $0x62] sm:$0xff] }
  0x53   : > { %v3008_v38 = vpack.i.bf16 %v332_v36, %v331_v34  ;;  %v337_v39 = vld [vmem:[#allocation2 + $0x91] sm:$0xff]  ;;  %278 = vst.msk [vmem:[#allocation2 + $0xe1] sm:$0xff] %vm172_vm0, %v245_v32  ;;  %v3084_v25 = vpack.i.bf16 %v3078_v22, %v3076_v21  ;;  %v367_v32 = vld [vmem:[#allocation2 + $0x7a] sm:$0xff]  ;;  %v368_v34 = vld [vmem:[#allocation2 + $0x82] sm:$0xff] }
  0x54   : > { %v338_v41 = vld [vmem:[#allocation2 + $0x99] sm:$0xff]  ;;  %281 = vst.msk [vmem:[#allocation2 + $0x109] sm:$0xff] %vm172_vm0, %v248_v35  ;;  %v3088_v27 = vld [vmem:[#allocation2 + $0x6a] sm:$0xff]  ;;  %v2334_v36 = vpack.i.bf16 %v368_v34, %v367_v32 }
  0x55   : > { %2255 = vrot.lane.b32.xlu2 %v3002_v33, %s2799_s14  ;;  %v3016_v43 = vpack.i.bf16 %v338_v41, %v337_v39  ;;  %282 = vst.msk [vmem:[#allocation2 + $0x111] sm:$0xff] %vm172_vm0, %v249_v37  ;;  %v341_v45 = vld [vmem:[#allocation2 + $0xc1] sm:$0xff]  ;;  %v3091_v29 = vld [vmem:[#allocation2 + $0x4a] sm:$0xff]  ;;  %v3093_v30 = vld [vmem:[#allocation2 + $0x52] sm:$0xff]  ;;  %v2329_v31 = vpack.i.bf16 %v3088_v27, %v3086_v26 }
  0x56   : > { %v342_v46 = vld [vmem:[#allocation2 + $0xc9] sm:$0xff]  ;;  %279 = vst.msk [vmem:[#allocation2 + $0xf1] sm:$0xff] %vm172_vm0, %v246_v40  ;;  %v3101_v35 = vpack.i.bf16 %v3093_v30, %v3091_v29  ;;  %v369_v40 = vld [vmem:[#allocation2 + $0x92] sm:$0xff]  ;;  %v370_v41 = vld [vmem:[#allocation2 + $0x9a] sm:$0xff] }
  0x57   : > { %2245 = vrot.lane.b32.xlu1 %v3008_v38, %s2799_s14  ;;  %280 = vst.msk [vmem:[#allocation2 + $0xf9] sm:$0xff] %vm172_vm0, %v247_v42  ;;  %v339_v49 = vld [vmem:[#allocation2 + $0xa9] sm:$0xff]  ;;  %v3030_v52 = vpack.i.bf16 %v342_v46, %v341_v45  ;;  %v2339_v46 = vpack.i.bf16 %v370_v41, %v369_v40  ;;  %v3136_v16 = vld [vmem:[#allocation2 + $0x38] sm:$0xff]  ;;  %v395_v32 = vld [vmem:[#allocation2 + $0x60] sm:$0xff] }
  0x58   : > { %v340_v50 = vld [vmem:[#allocation2 + $0xb1] sm:$0xff]  ;;  %283 = vst.msk [vmem:[#allocation2 + $0x121] sm:$0xff] %vm172_vm0, %v250_v44  ;;  %v373_v44 = vld [vmem:[#allocation2 + $0xc2] sm:$0xff] }
  0x59   : > { %2260 = vrot.lane.b32.xlu0 %v3016_v43, %s2799_s14  ;;  %284 = vst.msk [vmem:[#allocation2 + $0x129] sm:$0xff] %vm172_vm0, %v251_v47  ;;  %v343_v54 = vld [vmem:[#allocation2 + $0xd9] sm:$0xff]  ;;  %v3036_v57 = vpack.i.bf16 %v340_v50, %v339_v49  ;;  %v371_v37 = vld [vmem:[#allocation2 + $0xaa] sm:$0xff] }
  0x5a   : > { %v344_v55 = vld [vmem:[#allocation2 + $0xe1] sm:$0xff]  ;;  %287 = vst.msk [vmem:[#allocation2 + $0x151] sm:$0xff] %vm172_vm0, %v254_v48  ;;  %v372_v39 = vld [vmem:[#allocation2 + $0xb2] sm:$0xff]  ;;  %v374_v45 = vld [vmem:[#allocation2 + $0xca] sm:$0xff] }
  0x5b   : > { %288 = vst.msk [vmem:[#allocation2 + $0x159] sm:$0xff] %vm172_vm0, %v255_v51  ;;  %v3044_v60 = vpack.i.bf16 %v344_v55, %v343_v54  ;;  %v347_v61 = vld [vmem:[#allocation2 + $0x109] sm:$0xff]  ;;  %v2344_v42 = vpack.i.bf16 %v372_v39, %v371_v37  ;;  %v2349_v47 = vpack.i.bf16 %v374_v45, %v373_v44  ;;  %v375_v50 = vld [vmem:[#allocation2 + $0xda] sm:$0xff] }
  0x5c   : > { %285 = vst.msk [vmem:[#allocation2 + $0x139] sm:$0xff] %vm172_vm0, %v252_v53  ;;  %v348_v62 = vld [vmem:[#allocation2 + $0x111] sm:$0xff]  ;;  %v376_v51 = vld [vmem:[#allocation2 + $0xe2] sm:$0xff] }
  0x5d   : > { %2270 = vrot.lane.b32.xlu2 %v3030_v52, %s2799_s14  ;;  %286 = vst.msk [vmem:[#allocation2 + $0x141] sm:$0xff] %vm172_vm0, %v253_v56  ;;  %v345_v63 = vld [vmem:[#allocation2 + $0xf1] sm:$0xff]  ;;  %v3053_v1 = vpack.i.bf16 %v348_v62, %v347_v61  ;;  %v3112_v56 = vpack.i.bf16 %v376_v51, %v375_v50  ;;  %v396_v34 = vld [vmem:[#allocation2 + $0x68] sm:$0xff]  ;;  %v398_v41 = vld [vmem:[#allocation2 + $0x80] sm:$0xff] }
  0x5e   : > { %289 = vst.msk [vmem:[#allocation2 + $0x169] sm:$0xff] %vm172_vm0, %v256_v58  ;;  %v346_v0 = vld [vmem:[#allocation2 + $0xf9] sm:$0xff]  ;;  %v379_v54 = vld [vmem:[#allocation2 + $0x10a] sm:$0xff]  ;;  %v3154_v39 = vpack.i.bf16 %v396_v34, %v395_v32 }
  0x5f   : > { %2265 = vrot.lane.b32.xlu1 %v3036_v57, %s2799_s14  ;;  %290 = vst.msk [vmem:[#allocation2 + $0x171] sm:$0xff] %vm172_vm0, %v257_v59  ;;  %v349_v2 = vld [vmem:[#allocation2 + $0x121] sm:$0xff]  ;;  %v3055_v4 = vpack.i.bf16 %v346_v0, %v345_v63  ;;  %v377_v48 = vld [vmem:[#allocation2 + $0xf2] sm:$0xff] }
  0x60   : > { %v350_v3 = vld [vmem:[#allocation2 + $0x129] sm:$0xff]  ;;  %4180 = vst [vmem:[#allocation3_spill] sm:$0xff] %v3084_v25  ;;  %v378_v49 = vld [vmem:[#allocation2 + $0xfa] sm:$0xff]  ;;  %v380_v55 = vld [vmem:[#allocation2 + $0x112] sm:$0xff] }
  0x61   : > { %2275 = vrot.lane.b32.xlu0 %v3044_v60, %s2799_s14  ;;  %v3059_v5 = vpack.i.bf16 %v350_v3, %v349_v2  ;;  %v353_v6 = vld [vmem:[#allocation2 + $0x151] sm:$0xff]  ;;  %4181 = vst [vmem:[#allocation4_spill] sm:$0xff] %v3101_v35  ;;  %v3110_v53 = vpack.i.bf16 %v378_v49, %v377_v48  ;;  %v3116_v58 = vpack.i.bf16 %v380_v55, %v379_v54  ;;  %v381_v62 = vld [vmem:[#allocation2 + $0x122] sm:$0xff] }
  0x62   : > { %v354_v7 = vld [vmem:[#allocation2 + $0x159] sm:$0xff]  ;;  %v382_v63 = vld [vmem:[#allocation2 + $0x12a] sm:$0xff]  ;;  %291 = vst.msk [vmem:[#allocation2 + $0x181] sm:$0xff] %vm172_vm0, %v258_v19 }
  0x63   : > { %v351_v8 = vld [vmem:[#allocation2 + $0x139] sm:$0xff]  ;;  %v3065_v10 = vpack.i.bf16 %v354_v7, %v353_v6  ;;  %4182 = vst [vmem:[#allocation5_spill] sm:$0xff] %v3116_v58  ;;  %v3122_v6 = vpack.i.bf16 %v382_v63, %v381_v62  ;;  %v3134_v15 = vld [vmem:[#allocation2 + $0x30] sm:$0xff]  ;;  %v3164_v45 = vld [vmem:[#allocation2 + $0xa8] sm:$0xff] }
  0x64   : > { %v352_v9 = vld [vmem:[#allocation2 + $0x141] sm:$0xff]  ;;  %v385_v2 = vld [vmem:[#allocation2 + $0x152] sm:$0xff]  ;;  %4184 = vst [vmem:[#allocation7_spill] sm:$0xff] %v3154_v39 }
  0x65   : > { %2285 = vrot.lane.b32.xlu2 %v3053_v1, %s2799_s14  ;;  %v355_v11 = vld [vmem:[#allocation2 + $0x169] sm:$0xff]  ;;  %v3067_v13 = vpack.i.bf16 %v352_v9, %v351_v8  ;;  %v383_v59 = vld [vmem:[#allocation2 + $0x13a] sm:$0xff]  ;;  %4183 = vst [vmem:[#allocation6_spill] sm:$0xff] %v3122_v6 }
  0x66   : > { %v356_v12 = vld [vmem:[#allocation2 + $0x171] sm:$0xff]  ;;  %v384_v61 = vld [vmem:[#allocation2 + $0x142] sm:$0xff]  ;;  %v386_v3 = vld [vmem:[#allocation2 + $0x15a] sm:$0xff] }
  0x67   : > { %2280 = vrot.lane.b32.xlu1 %v3055_v4, %s2799_s14  ;;  %v2304_v14 = vpack.i.bf16 %v356_v12, %v355_v11  ;;  %v2374_v0 = vpack.i.bf16 %v384_v61, %v383_v59  ;;  %v2379_v7 = vpack.i.bf16 %v386_v3, %v385_v2  ;;  %v3125_v8 = vld [vmem:[#allocation2 + $0x18] sm:$0xff]  ;;  %v3127_v9 = vld [vmem:[#allocation2 + $0x20] sm:$0xff]  ;;  %v387_v11 = vld [vmem:[#allocation2 + $0x16a] sm:$0xff] }
  0x68   : > { %v388_v12 = vld [vmem:[#allocation2 + $0x172] sm:$0xff]  ;;  %v403_v61 = vld [vmem:[#allocation2 + $0xc0] sm:$0xff]  ;;  %v404_v62 = vld [vmem:[#allocation2 + $0xc8] sm:$0xff] }
  0x69   : > { %2290 = vrot.lane.b32.xlu0 %v3059_v5, %s2799_s14  ;;  %v2384_v17 = vpack.i.bf16 %v388_v12, %v387_v11  ;;  %v3150_v37 = vld [vmem:[#allocation2 + $0x50] sm:$0xff]  ;;  %v397_v40 = vld [vmem:[#allocation2 + $0x78] sm:$0xff] }
  0x6a   : > { %v3162_v44 = vpack.i.bf16 %v398_v41, %v397_v40  ;;  %v3170_v50 = vld [vmem:[#allocation2 + $0x90] sm:$0xff]  ;;  %v3172_v51 = vld [vmem:[#allocation2 + $0x98] sm:$0xff] }
  0x6b   : > { %v2414_v63 = vpack.i.bf16 %v3172_v51, %v3170_v50  ;;  %v3187_v2 = vld [vmem:[#allocation2 + $0xf0] sm:$0xff]  ;;  %v3189_v3 = vld [vmem:[#allocation2 + $0xf8] sm:$0xff] }
  0x6c   : > { %4186 = vst [vmem:[#allocation9_spill] sm:$0xff] %v3162_v44  ;;  %v3199_v19 = vpack.i.bf16 %v3189_v3, %v3187_v2 }
  0x6d   : > { %2300 = vrot.lane.b32.xlu2 %v3065_v10, %s2799_s14 }
  0x6f   : > { %2295 = vrot.lane.b32.xlu1 %v3067_v13, %s2799_s14 }
  0x71   : > { %2305 = vrot.lane.b32.xlu0 %v2304_v14, %s2799_s14  ;;  %v2389_v14 = vpack.i.bf16 %v3127_v9, %v3125_v8 }
  0x75   : > { %2315 = vrot.lane.b32.xlu2 %v3074_v20, %s2800_s19 }
  0x77   : > { %2310 = vrot.lane.b32.xlu1 %v2309_v24, %s2800_s19  ;;  %v3142_v24 = vpack.i.bf16 %v3136_v16, %v3134_v15 }
  0x79   : > { %2320 = vrot.lane.b32.xlu0 %v3084_v25, %s2800_s19 }
  0x7d   : > { %2330 = vrot.lane.b32.xlu2 %v2329_v31, %s2800_s19  ;;  %v259_v31 = vld [vmem:[%s2945_s18 + $0xf8] sm:$0xff] }
  0x7e   : > { %292 = vst.msk [vmem:[#allocation2 + $0x189] sm:$0xff] %vm172_vm0, %v259_v31 }
  0x7f   : > { %2325 = vrot.lane.b32.xlu1 %v3101_v35, %s2800_s19 }
  0x81   : > { %2335 = vrot.lane.b32.xlu0 %v2334_v36, %s2800_s19  ;;  %v3148_v36 = vld [vmem:[#allocation2 + $0x48] sm:$0xff] }
  0x85   : > { %2345 = vrot.lane.b32.xlu2 %v2344_v42, %s2800_s19  ;;  %v3158_v42 = vpack.i.bf16 %v3150_v37, %v3148_v36  ;;  %v420_v25 = vld [vmem:[#allocation2 + $0x188] sm:$0xff] }
  0x87   : > { %2340 = vrot.lane.b32.xlu1 %v2339_v46, %s2800_s19  ;;  %4185 = vst [vmem:[#allocation8_spill] sm:$0xff] %v3158_v42  ;;  %v3166_v46 = vld [vmem:[#allocation2 + $0xb0] sm:$0xff] }
  0x88   : > { %v2419_v54 = vpack.i.bf16 %v3166_v46, %v3164_v45 }
  0x89   : > { %2350 = vrot.lane.b32.xlu0 %v2349_v47, %s2800_s19 }
  0x8d   : > { %2360 = vrot.lane.b32.xlu2 %v3110_v53, %s2800_s19 }
  0x8f   : > { %2355 = vrot.lane.b32.xlu1 %v3112_v56, %s2800_s19 }
  0x91   : > { %2365 = vrot.lane.b32.xlu0 %v3116_v58, %s2800_s19 }
  0x95   : > { %2375 = vrot.lane.b32.xlu2 %v2374_v0, %s2800_s19  ;;  %v2424_v0 = vpack.i.bf16 %v404_v62, %v403_v61 }
  0x97   : > { %2370 = vrot.lane.b32.xlu1 %v3122_v6, %s2800_s19 }
  0x99   : > { %2380 = vrot.lane.b32.xlu0 %v2379_v7, %s2800_s19 }
  0x9d   : > { %2390 = vrot.lane.b32.xlu2 %v2389_v14, %s2801_s20  ;;  %v3192_v14 = vld [vmem:[#allocation2 + $0xd8] sm:$0xff] }
  0x9e   : > { %4187 = vst [vmem:[#allocation10_spill] sm:$0xff] %v3192_v14 }
  0x9f   : > { %2385 = vrot.lane.b32.xlu1 %v2384_v17, %s2800_s19  ;;  %v3194_v17 = vld [vmem:[#allocation2 + $0xe0] sm:$0xff] }
  0xa0   : > { %4188 = vst [vmem:[#allocation11_spill] sm:$0xff] %v3194_v17 }
  0xa1   : > { %2395 = vrot.lane.b32.xlu0 %v3142_v24, %s2801_s20 }
  0xa5   : > { %2405 = vrot.lane.b32.xlu2 %v3154_v39, %s2801_s20  ;;  %v416_v39 = vld [vmem:[#allocation2 + $0x158] sm:$0xff] }
  0xa7   : > { %2400 = vrot.lane.b32.xlu1 %v3158_v42, %s2801_s20  ;;  %v2251_v47 = vpop.permute.xlu2 %2250  ;;  %v419_v42 = vld [vmem:[#allocation2 + $0x180] sm:$0xff] }
  0xa8   : > { %v2253_v48 = vunpack.i.h.bf16 %v2251_v47  ;;  %v2252_v49 = vunpack.i.l.bf16 %v2251_v47  ;;  %v410_v47 = vld [vmem:[#allocation2 + $0x110] sm:$0xff] }
  0xa9   : > { %2410 = vrot.lane.b32.xlu0 %v3162_v44, %s2801_s20 }
  0xaa   : > { %v3179_v55 = vsel %vm172_vm0, %v395_v32, %v2252_v49  ;;  %v3182_v59 = vsel %vm172_vm0, %v396_v34, %v2253_v48  ;;  %v409_v34 = vld [vmem:[#allocation2 + $0x108] sm:$0xff]  ;;  %v2429_v48 = vpack.i.bf16 %v3194_v17, %v3192_v14  ;;  %v3248_v14 = vld [vmem:[#allocation2 + $0x170] sm:$0xff] }
  0xab   : > { %v3211_v49 = vpack.i.bf16 %v410_v47, %v409_v34 }
  0xad   : > { %2420 = vrot.lane.b32.xlu2 %v2419_v54, %s2801_s20  ;;  %4189 = vst [vmem:[#allocation12_spill] sm:$0xff] %v3211_v49  ;;  %v3213_v54 = vld [vmem:[#allocation2 + $0x138] sm:$0xff] }
  0xaf   : > { %2415 = vrot.lane.b32.xlu1 %v2414_v63, %s2801_s20  ;;  %v2256_v7 = vpop.permute.xlu2 %2255  ;;  %v3215_v63 = vld [vmem:[#allocation2 + $0x140] sm:$0xff] }
  0xb0   : > { %v2258_v11 = vunpack.i.h.bf16 %v2256_v7  ;;  %v2257_v12 = vunpack.i.l.bf16 %v2256_v7  ;;  %v3218_v7 = vld [vmem:[#allocation2 + $0x120] sm:$0xff]  ;;  %v3228_v44 = vpack.i.bf16 %v3215_v63, %v3213_v54 }
  0xb1   : > { %2425 = vrot.lane.b32.xlu0 %v2424_v0, %s2801_s20  ;;  %4190 = vst [vmem:[#allocation13_spill] sm:$0xff] %v3218_v7 }
  0xb2   : > { %v3202_v31 = vsel %vm172_vm0, %v398_v41, %v2258_v11  ;;  %v3205_v32 = vsel %vm172_vm0, %v397_v40, %v2257_v12  ;;  %v3220_v11 = vld [vmem:[#allocation2 + $0x128] sm:$0xff]  ;;  %v3224_v12 = vpop.permute.xlu0 %2230  ;;  %4192 = vst [vmem:[#allocation15_spill] sm:$0xff] %v3228_v44 }
  0xb3   : > { %4191 = vst [vmem:[#allocation14_spill] sm:$0xff] %v3220_v11  ;;  %v3238_v35 = vpack.i.bf16 %v3220_v11, %v3218_v7 }
  0xb5   : > { %2435 = vrot.lane.b32.xlu2 %v3199_v19, %s2801_s20  ;;  %4194 = vst [vmem:[#allocation17_spill] sm:$0xff] %v3238_v35 }
  0xb7   : > { %2430 = vrot.lane.b32.xlu1 %v2429_v48, %s2801_s20  ;;  %v2271_v41 = vpop.permute.xlu2 %2270 }
  0xb8   : > { %v2273_v0 = vunpack.i.h.bf16 %v2271_v41  ;;  %v2272_v40 = vunpack.i.l.bf16 %v2271_v41  ;;  %v415_v41 = vld [vmem:[#allocation2 + $0x150] sm:$0xff] }
  0xb9   : > { %2440 = vrot.lane.b32.xlu0 %v3211_v49, %s2801_s20  ;;  %v3242_v58 = vpack.i.bf16 %v416_v39, %v415_v41 }
  0xba   : > { %v3231_v6 = vsel %vm172_vm0, %v404_v62, %v2273_v0  ;;  %v3234_v48 = vsel %vm172_vm0, %v403_v61, %v2272_v40  ;;  %v3246_v40 = vld [vmem:[#allocation2 + $0x168] sm:$0xff] }
  0xbb   : > { %4193 = vst [vmem:[#allocation16_spill] sm:$0xff] %v3234_v48 }
  0xbc   : > { %4195 = vst [vmem:[#allocation18_spill] sm:$0xff] %v3242_v58 }
  0xbd   : > { %2450 = vrot.lane.b32.xlu2 %v3228_v44, %s2801_s20  ;;  %v2464_v44 = vpack.i.bf16 %v420_v25, %v419_v42 }
  0xbf   : > { %2445 = vrot.lane.b32.xlu1 %v3238_v35, %s2801_s20  ;;  %v2286_v62 = vpop.permute.xlu2 %2285 }
  0xc0   : > { %v2288_v0 = vunpack.i.h.bf16 %v2286_v62  ;;  %v2287_v61 = vunpack.i.l.bf16 %v2286_v62  ;;  %v3262_v62 = vpack.i.bf16 %v3248_v14, %v3246_v40 }
  0xc1   : > { %v3250_v17 = vpop.permute.xlu1 %2240  ;;  %2455 = vrot.lane.b32.xlu0 %v3242_v58, %s2801_s20 }
  0xc2   : > { %v3255_v7 = vsel %vm172_vm0, %v410_v47, %v2288_v0  ;;  %v3258_v11 = vsel %vm172_vm0, %v409_v34, %v2287_v61 }
  0xc3   : > { %v2236_v35 = vpop.permute.xlu0 %2235 }
  0xc4   : > { %v2237_v0 = vunpack.i.l.bf16 %v2236_v35 }
  0xc5   : > { %2465 = vrot.lane.b32.xlu2 %v2464_v44, %s2801_s20  ;;  %v2238_v44 = vunpack.i.h.bf16 %v2236_v35 }
  0xc7   : > { %2460 = vrot.lane.b32.xlu1 %v3262_v62, %s2801_s20  ;;  %v2301_v49 = vpop.permute.xlu2 %2300 }
  0xc8   : > { %v2303_v48 = vunpack.i.h.bf16 %v2301_v49  ;;  %v2302_v58 = vunpack.i.l.bf16 %v2301_v49 }
  0xc9   : > { %v3267_v25 = vpop.permute.xlu1 %2245  ;;  %2470 = vrot.lane.b32.xlu0 %v2994_v28, %s2802_s21 }
  0xca   : > { %v3272_v42 = vsel %vm172_vm0, %v416_v39, %v2303_v48  ;;  %v3275_v34 = vsel %vm172_vm0, %v415_v41, %v2302_v58  ;;  %v1480_v39 = vsel %vm172_vm0, %v3125_v8, %v2237_v0  ;;  %v1481_v58 = vsel %vm172_vm0, %v3127_v9, %v2238_v44  ;;  %v2203_v41 = vld [vmem:[%s4162_s1 + $0x40] sm:$0xff] }
  0xcb   : > { %v3277_v47 = vpop.permute.xlu0 %2260  ;;  %1960 = vmatpush.bf16.msra.mxu1 %v2203_v41  ;;  %2212 = vmatpush.bf16.msra.mxu3 %v2203_v41 }
  0xcd   : > { %2480 = vrot.lane.b32.xlu2 %v3008_v38, %s2802_s21 }
  0xcf   : > { %2475 = vrot.lane.b32.xlu1 %v2986_v23, %s2802_s21  ;;  %v2316_v49 = vpop.permute.xlu2 %2315 }
  0xd0   : > { %v2318_v61 = vunpack.i.h.bf16 %v2316_v49  ;;  %v2317_v28 = vunpack.i.l.bf16 %v2316_v49 }
  0xd1   : > { %v2266_v48 = vpop.permute.xlu1 %2265  ;;  %2485 = vrot.lane.b32.xlu0 %v2978_v18, %s2802_s21  ;;  %v1709_v18 = vpack.c.bf16 %v3078_v22, %v3076_v21 }
  0xd2   : > { %v3290_v35 = vsel %vm1510_vm2, %v1480_v39, %v2317_v28  ;;  %v3293_v38 = vsel %vm1510_vm2, %v1481_v58, %v2318_v61  ;;  %v2267_v22 = vunpack.i.l.bf16 %v2266_v48 }
  0xd3   : > { %v3298_v49 = vpop.permute.xlu0 %2275  ;;  %2175 = vmatmul.msk.bf16.vlgmr.msra.gmra.mxu1 %vm172_vm0, %v1709_v18 }
  0xd5   : > { %2495 = vrot.lane.b32.xlu2 %v3016_v43, %s2802_s21 }
  0xd7   : > { %2490 = vrot.lane.b32.xlu1 %v3002_v33, %s2802_s21  ;;  %v2331_v8 = vpop.permute.xlu2 %2330  ;;  %v2268_v33 = vunpack.i.h.bf16 %v2266_v48 }
  0xd8   : > { %v2333_v9 = vunpack.i.h.bf16 %v2331_v8  ;;  %v2332_v44 = vunpack.i.l.bf16 %v2331_v8  ;;  %v2232_v8 = vunpack.i.l.bf16 %v3224_v12 }
  0xd9   : > { %v2281_v0 = vpop.permute.xlu1 %2280  ;;  %2500 = vrot.lane.b32.xlu0 %v3036_v57, %s2802_s21 }
  0xda   : > { %v3311_v61 = vsel %vm1510_vm2, %v3182_v59, %v2333_v9  ;;  %v3315_v43 = vsel %vm1510_vm2, %v3179_v55, %v2332_v44  ;;  %v1493_v59 = vsel %vm172_vm0, %v3166_v46, %v2268_v33  ;;  %v1492_v55 = vsel %vm172_vm0, %v3164_v45, %v2267_v22  ;;  %v294_v44 = vld [vmem:[#allocation2 + $0x8] sm:$0xff]  ;;  %v293_v33 = vld [vmem:[#allocation2] sm:$0xff] }
  0xdb   : > { %v3317_v21 = vpop.permute.xlu0 %2290  ;;  %v2283_v41 = vunpack.i.h.bf16 %v2281_v0  ;;  %v2282_v18 = vunpack.i.l.bf16 %v2281_v0  ;;  %v1711_v45 = vpack.c.bf16 %v3093_v30, %v3091_v29  ;;  %v2233_v46 = vunpack.i.h.bf16 %v3224_v12 }
  0xdd   : > { %2510 = vrot.lane.b32.xlu2 %v3044_v60, %s2802_s21  ;;  %v1499_v29 = vsel %vm172_vm0, %v3189_v3, %v2283_v41  ;;  %v1498_v30 = vsel %vm172_vm0, %v3187_v2, %v2282_v18 }
  0xdf   : > { %2505 = vrot.lane.b32.xlu1 %v3030_v52, %s2802_s21  ;;  %v2346_v28 = vpop.permute.xlu2 %2345 }
  0xe0   : > { %v2348_v57 = vunpack.i.h.bf16 %v2346_v28  ;;  %v2347_v39 = vunpack.i.l.bf16 %v2346_v28  ;;  %v2243_v28 = vunpack.i.h.bf16 %v3250_v17 }
  0xe1   : > { %v2296_v58 = vpop.permute.xlu1 %2295  ;;  %2515 = vrot.lane.b32.xlu0 %v3055_v4, %s2802_s21 }
  0xe2   : > { %v3330_v48 = vsel %vm1510_vm2, %v1493_v59, %v2348_v57  ;;  %v3333_v60 = vsel %vm1510_vm2, %v1492_v55, %v2347_v39 }
  0xe3   : > { %v3335_v52 = vpop.permute.xlu0 %2305  ;;  %2176 = vmatmul.msk.bf16.gmra.mxu1 %vm172_vm0, %v1711_v45  ;;  %v1478_v45 = vsel %vm172_vm0, %v293_v33, %v2232_v8  ;;  %v2247_v33 = vunpack.i.l.bf16 %v3267_v25 }
  0xe5   : > { %2525 = vrot.lane.b32.xlu2 %v3059_v5, %s2802_s21  ;;  %v2242_v5 = vunpack.i.l.bf16 %v3250_v17  ;;  %v1479_v17 = vsel %vm172_vm0, %v294_v44, %v2233_v46  ;;  %v2248_v44 = vunpack.i.h.bf16 %v3267_v25 }
  0xe7   : > { %2520 = vrot.lane.b32.xlu1 %v3053_v1, %s2802_s21  ;;  %v2361_v9 = vpop.permute.xlu2 %2360 }
  0xe8   : > { %v2363_v22 = vunpack.i.h.bf16 %v2361_v9  ;;  %v2362_v0 = vunpack.i.l.bf16 %v2361_v9 }
  0xe9   : > { %v2311_v12 = vpop.permute.xlu1 %2310  ;;  %2530 = vrot.lane.b32.xlu0 %v3067_v13, %s2802_s21  ;;  %v1482_v13 = vsel %vm172_vm0, %v3134_v15, %v2242_v5 }
  0xea   : > { %v2313_v57 = vunpack.i.h.bf16 %v2311_v12  ;;  %v2312_v39 = vunpack.i.l.bf16 %v2311_v12  ;;  %v3355_v59 = vsel %vm1510_vm2, %v1499_v29, %v2363_v22  ;;  %v3358_v55 = vsel %vm1510_vm2, %v1498_v30, %v2362_v0 }
  0xeb   : > { %v2321_v3 = vpop.permute.xlu0 %2320  ;;  %v1483_v22 = vsel %vm172_vm0, %v3136_v16, %v2243_v28  ;;  %v2298_v29 = vunpack.i.h.bf16 %v2296_v58  ;;  %v2297_v0 = vunpack.i.l.bf16 %v2296_v58 }
  0xec   : > { %v1512_v41 = vsel %vm1510_vm2, %v1479_v17, %v2313_v57  ;;  %v1511_v2 = vsel %vm1510_vm2, %v1478_v45, %v2312_v39  ;;  %v2323_v18 = vunpack.i.h.bf16 %v2321_v3  ;;  %v2322_v9 = vunpack.i.l.bf16 %v2321_v3 }
  0xed   : > { %2540 = vrot.lane.b32.xlu2 %v3112_v56, %s2803_s24  ;;  %v1505_v28 = vsel %vm172_vm0, %v3215_v63, %v2298_v29  ;;  %v1504_v56 = vsel %vm172_vm0, %v3213_v54, %v2297_v0  ;;  %v1485_v57 = vsel %vm172_vm0, %v3150_v37, %v2248_v44  ;;  %v1484_v63 = vsel %vm172_vm0, %v3148_v36, %v2247_v33 }
  0xee   : > { %v3371_v46 = vsel %vm1510_vm2, %v1483_v22, %v2323_v18  ;;  %v3374_v8 = vsel %vm1510_vm2, %v1482_v13, %v2322_v9  ;;  %v1713_v3 = vpack.c.bf16 %v3088_v27, %v3086_v26  ;;  %v2263_v37 = vunpack.i.h.bf16 %v3277_v47 }
  0xef   : > { %2535 = vrot.lane.b32.xlu1 %v3065_v10, %s2802_s21  ;;  %v2376_v15 = vpop.permute.xlu2 %2375  ;;  %v2262_v9 = vunpack.i.l.bf16 %v3277_v47 }
  0xf0   : > { %v2378_v16 = vunpack.i.h.bf16 %v2376_v15  ;;  %v2377_v58 = vunpack.i.l.bf16 %v2376_v15 }
  0xf1   : > { %v2326_v5 = vpop.permute.xlu1 %2325  ;;  %2545 = vrot.lane.b32.xlu0 %v3199_v19, %s2804_s25  ;;  %v1490_v29 = vsel %vm172_vm0, %v3170_v50, %v2262_v9  ;;  %v2278_v50 = vunpack.i.h.bf16 %v3298_v49 }
  0xf2   : > { %v2328_v30 = vunpack.i.h.bf16 %v2326_v5  ;;  %v2327_v12 = vunpack.i.l.bf16 %v2326_v5  ;;  %v3387_v25 = vsel %vm1510_vm2, %v1505_v28, %v2378_v16  ;;  %v3390_v10 = vsel %vm1510_vm2, %v1504_v56, %v2377_v58 }
  0xf3   : > { %v2336_v54 = vpop.permute.xlu0 %2335  ;;  %2177 = vmatmul.msk.bf16.gmra.mxu1 %vm172_vm0, %v1713_v3  ;;  %v2277_v16 = vunpack.i.l.bf16 %v3298_v49 }
  0xf4   : > { %v1517_v39 = vsel %vm1510_vm2, %v1484_v63, %v2327_v12  ;;  %v1518_v17 = vsel %vm1510_vm2, %v1485_v57, %v2328_v30  ;;  %v2338_v19 = vunpack.i.h.bf16 %v2336_v54  ;;  %v2337_v45 = vunpack.i.l.bf16 %v2336_v54  ;;  %v4198_v63 = vld [vmem:[#allocation11_spill] sm:$0xff]  ;;  %v4199_v54 = vld [vmem:[#allocation10_spill] sm:$0xff] }
  0xf5   : > { %2555 = vrot.lane.b32.xlu2 %v3074_v20, %s2803_s24  ;;  %v1497_v49 = vsel %vm172_vm0, %v4198_v63, %v2278_v50 }
  0xf6   : > { %v3404_v18 = vsel %vm1510_vm2, %v3202_v31, %v2338_v19  ;;  %v3408_v36 = vsel %vm1510_vm2, %v3205_v32, %v2337_v45 }
  0xf7   : > { %2550 = vrot.lane.b32.xlu1 %v3055_v4, %s2805_s26  ;;  %v2391_v20 = vpop.permute.xlu2 %2390  ;;  %v1491_v4 = vsel %vm172_vm0, %v3172_v51, %v2263_v37 }
  0xf8   : > { %v2393_v26 = vunpack.i.h.bf16 %v2391_v20  ;;  %v2392_v27 = vunpack.i.l.bf16 %v2391_v20  ;;  %v3457_v20 = vld [vmem:[#allocation2 + $0x7a] sm:$0xff] }
  0xf9   : > { %v2341_v31 = vpop.permute.xlu1 %2340  ;;  %2560 = vrot.lane.b32.xlu0 %v3142_v24, %s2804_s25 }
  0xfa   : > { %v2343_v32 = vunpack.i.h.bf16 %v2341_v31  ;;  %v2342_v13 = vunpack.i.l.bf16 %v2341_v31  ;;  %v3418_v22 = vsel %vm1543_vm3, %v1512_v41, %v2393_v26  ;;  %v3421_v47 = vsel %vm1543_vm3, %v1511_v2, %v2392_v27  ;;  %v4196_v2 = vld [vmem:[#allocation16_spill] sm:$0xff] }
  0xfb   : > { %v2351_v0 = vpop.permute.xlu0 %2350 }
  0xfc   : > { %v1523_v44 = vsel %vm1510_vm2, %v1490_v29, %v2342_v13  ;;  %v1524_v33 = vsel %vm1510_vm2, %v1491_v4, %v2343_v32  ;;  %v2353_v24 = vunpack.i.h.bf16 %v2351_v0  ;;  %v2352_v15 = vunpack.i.l.bf16 %v2351_v0 }
  0xfd   : > { %2570 = vrot.lane.b32.xlu2 %v3110_v53, %s2803_s24  ;;  %v4197_v53 = vld [vmem:[#allocation12_spill] sm:$0xff]  ;;  %v2293_v32 = vunpack.i.h.bf16 %v3317_v21  ;;  %v2292_v13 = vunpack.i.l.bf16 %v3317_v21 }
  0xfe   : > { %v3433_v41 = vsel %vm1510_vm2, %v3231_v6, %v2353_v24  ;;  %v3437_v51 = vsel %vm1510_vm2, %v4196_v2, %v2352_v15  ;;  %v520_v24 = vld [vmem:[#allocation2 + $0x49] sm:$0xff]  ;;  %v521_v15 = vld [vmem:[#allocation2 + $0x51] sm:$0xff] }
  0xff   : > { %2565 = vrot.lane.b32.xlu1 %v2986_v23, %s2805_s26  ;;  %v2406_v58 = vpop.permute.xlu2 %2405  ;;  %v1496_v23 = vsel %vm172_vm0, %v4199_v54, %v2277_v16  ;;  %v4201_v2 = vld [vmem:[#allocation8_spill] sm:$0xff] }
 0x100   : > { %v2408_v28 = vunpack.i.h.bf16 %v2406_v58  ;;  %v2407_v56 = vunpack.i.l.bf16 %v2406_v58 }
 0x101   : > { %v2356_v5 = vpop.permute.xlu1 %2355  ;;  %2575 = vrot.lane.b32.xlu0 %v4197_v53, %s2804_s25  ;;  %v2594_v53 = vpack.i.bf16 %v521_v15, %v520_v24 }
 0x102   : > { %v2358_v6 = vunpack.i.h.bf16 %v2356_v5  ;;  %v2357_v30 = vunpack.i.l.bf16 %v2356_v5  ;;  %v3446_v12 = vsel %vm1543_vm3, %v1518_v17, %v2408_v28  ;;  %v3449_v57 = vsel %vm1543_vm3, %v1517_v39, %v2407_v56  ;;  %v3459_v17 = vld [vmem:[#allocation2 + $0x82] sm:$0xff]  ;;  %v4200_v39 = vld [vmem:[#allocation3_spill] sm:$0xff] }
 0x103   : > { %v2366_v19 = vpop.permute.xlu0 %2365  ;;  %v1715_v26 = vpack.c.bf16 %v3459_v17, %v3457_v20  ;;  %v4203_v28 = vld [vmem:[#allocation13_spill] sm:$0xff] }
 0x104   : > { %v1529_v45 = vsel %vm1510_vm2, %v1496_v23, %v2357_v30  ;;  %v1530_v3 = vsel %vm1510_vm2, %v1497_v49, %v2358_v6  ;;  %v2368_v37 = vunpack.i.h.bf16 %v2366_v19  ;;  %v2367_v9 = vunpack.i.l.bf16 %v2366_v19 }
 0x105   : > { %2585 = vrot.lane.b32.xlu2 %v4200_v39, %s2803_s24  ;;  %2178 = vmatmul.msk.bf16.gmra.mxu1 %vm172_vm0, %v1715_v26  ;;  %v1502_v56 = vsel %vm172_vm0, %v4203_v28, %v2292_v13  ;;  %v2308_v23 = vunpack.i.h.bf16 %v3335_v52  ;;  %v2307_v19 = vunpack.i.l.bf16 %v3335_v52  ;;  %v538_v26 = vld [vmem:[#allocation2 + $0x121] sm:$0xff] }
 0x106   : > { %v3467_v27 = vsel %vm1510_vm2, %v3255_v7, %v2368_v37  ;;  %v3471_v31 = vsel %vm1510_vm2, %v3258_v11, %v2367_v9 }
 0x107   : > { %2580 = vrot.lane.b32.xlu1 %v3053_v1, %s2805_s26  ;;  %v2421_v4 = vpop.permute.xlu2 %2420  ;;  %v4202_v1 = vld [vmem:[#allocation14_spill] sm:$0xff]  ;;  %v1509_v52 = vsel %vm172_vm0, %v3248_v14, %v2308_v23  ;;  %v1508_v24 = vsel %vm172_vm0, %v3246_v40, %v2307_v19  ;;  %v4207_v23 = vld [vmem:[#allocation7_spill] sm:$0xff] }
 0x108   : > { %v2423_v29 = vunpack.i.h.bf16 %v2421_v4  ;;  %v2422_v0 = vunpack.i.l.bf16 %v2421_v4  ;;  %v1503_v58 = vsel %vm172_vm0, %v4202_v1, %v2293_v32  ;;  %v539_v32 = vld [vmem:[#allocation2 + $0x129] sm:$0xff]  ;;  %v4205_v4 = vld [vmem:[#allocation17_spill] sm:$0xff] }
 0x109   : > { %v2371_v7 = vpop.permute.xlu1 %2370  ;;  %2590 = vrot.lane.b32.xlu0 %v4201_v2, %s2804_s25 }
 0x10a   : > { %v2373_v11 = vunpack.i.h.bf16 %v2371_v7  ;;  %v2372_v50 = vunpack.i.l.bf16 %v2371_v7  ;;  %v3481_v16 = vsel %vm1543_vm3, %v1523_v44, %v2422_v0  ;;  %v3484_v21 = vsel %vm1543_vm3, %v1524_v33, %v2423_v29  ;;  %v4204_v44 = vld [vmem:[#allocation5_spill] sm:$0xff] }
 0x10b   : > { %v2381_v5 = vpop.permute.xlu0 %2380  ;;  %v2609_v7 = vpack.i.bf16 %v539_v32, %v538_v26 }
 0x10c   : > { %v1535_v6 = vsel %vm1510_vm2, %v1502_v56, %v2372_v50  ;;  %v1536_v30 = vsel %vm1510_vm2, %v1503_v58, %v2373_v11  ;;  %v2383_v63 = vunpack.i.h.bf16 %v2381_v5  ;;  %v2382_v49 = vunpack.i.l.bf16 %v2381_v5  ;;  %v3519_v58 = vld [vmem:[#allocation2 + $0x92] sm:$0xff] }
 0x10d   : > { %2600 = vrot.lane.b32.xlu2 %v4204_v44, %s2803_s24 }
 0x10e   : > { %v3496_v33 = vsel %vm1510_vm2, %v3272_v42, %v2383_v63  ;;  %v3500_v54 = vsel %vm1510_vm2, %v3275_v34, %v2382_v49  ;;  %v522_v63 = vld [vmem:[#allocation2 + $0x61] sm:$0xff]  ;;  %v523_v49 = vld [vmem:[#allocation2 + $0x69] sm:$0xff] }
 0x10f   : > { %2595 = vrot.lane.b32.xlu1 %v2594_v53, %s2805_s26  ;;  %v2436_v37 = vpop.permute.xlu2 %2435 }
 0x110   : > { %v2438_v9 = vunpack.i.h.bf16 %v2436_v37  ;;  %v2437_v39 = vunpack.i.l.bf16 %v2436_v37 }
 0x111   : > { %v2386_v13 = vpop.permute.xlu1 %2385  ;;  %2605 = vrot.lane.b32.xlu0 %v4205_v4, %s2804_s25 }
 0x112   : > { %v2388_v42 = vunpack.i.h.bf16 %v2386_v13  ;;  %v2387_v29 = vunpack.i.l.bf16 %v2386_v13  ;;  %v3508_v34 = vsel %vm1543_vm3, %v1529_v45, %v2437_v39  ;;  %v3511_v0 = vsel %vm1543_vm3, %v1530_v3, %v2438_v9  ;;  %v3521_v45 = vld [vmem:[#allocation2 + $0x9a] sm:$0xff] }
 0x113   : > { %v2396_v15 = vpop.permute.xlu0 %2395  ;;  %v4206_v3 = vld [vmem:[#allocation4_spill] sm:$0xff]  ;;  %v1717_v14 = vpack.c.bf16 %v3521_v45, %v3519_v58  ;;  %v2624_v39 = vpack.i.bf16 %v523_v49, %v522_v63 }
 0x114   : > { %v1541_v2 = vsel %vm1510_vm2, %v1508_v24, %v2387_v29  ;;  %v1542_v11 = vsel %vm1510_vm2, %v1509_v52, %v2388_v42  ;;  %v2398_v50 = vunpack.i.h.bf16 %v2396_v15  ;;  %v2397_v1 = vunpack.i.l.bf16 %v2396_v15  ;;  %v4208_v42 = vld [vmem:[#allocation6_spill] sm:$0xff]  ;;  %v540_v15 = vld [vmem:[#allocation2 + $0x139] sm:$0xff] }
 0x115   : > { %2615 = vrot.lane.b32.xlu2 %v4206_v3, %s2803_s24  ;;  %2179 = vmatmul.msk.bf16.gmra.mxu1 %vm172_vm0, %v1717_v14  ;;  %v459_v29 = vld [vmem:[#allocation2 + $0x62] sm:$0xff]  ;;  %v460_v52 = vld [vmem:[#allocation2 + $0x6a] sm:$0xff] }
 0x116   : > { %v3529_v40 = vsel %vm1543_vm3, %v3290_v35, %v2397_v1  ;;  %v3533_v28 = vsel %vm1543_vm3, %v3293_v38, %v2398_v50  ;;  %v4209_v1 = vld [vmem:[#allocation15_spill] sm:$0xff]  ;;  %v2644_v3 = vpack.i.bf16 %v460_v52, %v459_v29  ;;  %v525_v29 = vld [vmem:[#allocation2 + $0x81] sm:$0xff] }
 0x117   : > { %2610 = vrot.lane.b32.xlu1 %v2609_v7, %s2805_s26  ;;  %v2451_v56 = vpop.permute.xlu2 %2450  ;;  %v541_v7 = vld [vmem:[#allocation2 + $0x141] sm:$0xff] }
 0x118   : > { %v2453_v5 = vunpack.i.h.bf16 %v2451_v56  ;;  %v2452_v53 = vunpack.i.l.bf16 %v2451_v56  ;;  %v4212_v52 = vld [vmem:[#allocation9_spill] sm:$0xff] }
 0x119   : > { %v2401_v44 = vpop.permute.xlu1 %2400  ;;  %2620 = vrot.lane.b32.xlu0 %v4207_v23, %s2804_s25 }
 0x11a   : > { %v2403_v19 = vunpack.i.h.bf16 %v2401_v44  ;;  %v2402_v35 = vunpack.i.l.bf16 %v2401_v44  ;;  %v3540_v37 = vsel %vm1543_vm3, %v1535_v6, %v2452_v53  ;;  %v3543_v38 = vsel %vm1543_vm3, %v1536_v30, %v2453_v5 }
 0x11b   : > { %v2411_v9 = vpop.permute.xlu0 %2410  ;;  %v2639_v53 = vpack.i.bf16 %v541_v7, %v540_v15 }
 0x11c   : > { %v1548_v26 = vsel %vm1543_vm3, %v3374_v8, %v2402_v35  ;;  %v1549_v32 = vsel %vm1543_vm3, %v3371_v46, %v2403_v19  ;;  %v2413_v13 = vunpack.i.h.bf16 %v2411_v9  ;;  %v2412_v4 = vunpack.i.l.bf16 %v2411_v9  ;;  %v3572_v19 = vld [vmem:[#allocation2 + $0xaa] sm:$0xff]  ;;  %v3574_v35 = vld [vmem:[#allocation2 + $0xb2] sm:$0xff]  ;;  %v3589_v9 = vld [vmem:[#allocation2 + $0x142] sm:$0xff] }
 0x11d   : > { %2630 = vrot.lane.b32.xlu2 %v4208_v42, %s2803_s24  ;;  %v524_v42 = vld [vmem:[#allocation2 + $0x79] sm:$0xff] }
 0x11e   : > { %v3553_v6 = vsel %vm1543_vm3, %v3311_v61, %v2413_v13  ;;  %v3557_v30 = vsel %vm1543_vm3, %v3315_v43, %v2412_v4  ;;  %v2654_v15 = vpack.i.bf16 %v525_v29, %v524_v42  ;;  %v495_v42 = vld [vmem:[#allocation2 + $0x98] sm:$0xff]  ;;  %v2201_v29 = vld [vmem:[%s4162_s1 + $0x30] sm:$0xff] }
 0x11f   : > { %2625 = vrot.lane.b32.xlu1 %v2624_v39, %s2805_s26  ;;  %v2466_v8 = vpop.permute.xlu2 %2465 }
 0x120   : > { %v2468_v24 = vunpack.i.h.bf16 %v2466_v8  ;;  %v2467_v46 = vunpack.i.l.bf16 %v2466_v8 }
 0x121   : > { %v2416_v50 = vpop.permute.xlu1 %2415  ;;  %2635 = vrot.lane.b32.xlu0 %v4209_v1, %s2804_s25 }
 0x122   : > { %v2418_v61 = vunpack.i.h.bf16 %v2416_v50  ;;  %v2417_v14 = vunpack.i.l.bf16 %v2416_v50  ;;  %v3563_v56 = vsel %vm1543_vm3, %v1541_v2, %v2467_v46  ;;  %v3566_v43 = vsel %vm1543_vm3, %v1542_v11, %v2468_v24 }
 0x123   : > { %4210 = vst [vmem:[#allocation16_spill] sm:$0xff] %v3563_v56  ;;  %v2426_v5 = vpop.permute.xlu0 %2425  ;;  %v1719_v2 = vpack.c.bf16 %v3574_v35, %v3572_v19 }
 0x124   : > { %4211 = vst [vmem:[#allocation12_spill] sm:$0xff] %v3566_v43  ;;  %v1554_v63 = vsel %vm1543_vm3, %v3408_v36, %v2417_v14  ;;  %v1555_v49 = vsel %vm1543_vm3, %v3404_v18, %v2418_v61  ;;  %v2428_v44 = vunpack.i.h.bf16 %v2426_v5  ;;  %v2427_v23 = vunpack.i.l.bf16 %v2426_v5  ;;  %v3587_v18 = vld [vmem:[#allocation2 + $0x13a] sm:$0xff]  ;;  %v542_v5 = vld [vmem:[#allocation2 + $0x151] sm:$0xff] }
 0x125   : > { %2645 = vrot.lane.b32.xlu2 %v2644_v3, %s2803_s24  ;;  %2180 = vmatmul.msk.bf16.gmra.mxu1 %vm172_vm0, %v1719_v2  ;;  %v567_v43 = vld [vmem:[#allocation2 + $0xfa] sm:$0xff] }
 0x126   : > { %v3581_v11 = vsel %vm1543_vm3, %v3330_v48, %v2428_v44  ;;  %v3585_v36 = vsel %vm1543_vm3, %v3333_v60, %v2427_v23  ;;  %v2659_v60 = vpack.i.bf16 %v3589_v9, %v3587_v18 }
 0x127   : > { %2640 = vrot.lane.b32.xlu1 %v2639_v53, %s2805_s26  ;;  %v2481_v39 = vpop.permute.xlu2 %2480  ;;  %v543_v53 = vld [vmem:[#allocation2 + $0x159] sm:$0xff] }
 0x128   : > { %v2483_v13 = vunpack.i.h.bf16 %v2481_v39  ;;  %v2482_v4 = vunpack.i.l.bf16 %v2481_v39 }
 0x129   : > { %v3593_v48 = vpop.permute.xlu1 %2430  ;;  %2650 = vrot.lane.b32.xlu0 %v4212_v52, %s2804_s25 }
 0x12a   : > { %v3600_v8 = vsel %vm1576_vm4, %v1548_v26, %v2482_v4  ;;  %v3603_v24 = vsel %vm1576_vm4, %v1549_v32, %v2483_v13  ;;  %v2202_v26 = vld [vmem:[%s4162_s1 + $0x38] sm:$0xff]  ;;  %v494_v4 = vld [vmem:[#allocation2 + $0x90] sm:$0xff] }
 0x12b   : > { %v2441_v46 = vpop.permute.xlu0 %2440  ;;  %2204 = vmatpush.bf16.msra.mxu2 %v2202_v26  ;;  %1864 = vmatpush.bf16.msra.mxu0 %v2202_v26  ;;  %v3654_v26 = vld [vmem:[#allocation2 + $0x152] sm:$0xff] }
 0x12c   : > { %v2443_v7 = vunpack.i.h.bf16 %v2441_v46  ;;  %v2442_v50 = vunpack.i.l.bf16 %v2441_v46 }
 0x12d   : > { %2660 = vrot.lane.b32.xlu2 %v2659_v60, %s2803_s24  ;;  %v2669_v60 = vpack.i.bf16 %v543_v53, %v542_v5  ;;  %v527_v5 = vld [vmem:[#allocation2 + $0x99] sm:$0xff] }
 0x12e   : > { %v3608_v1 = vsel %vm1543_vm3, %v3355_v59, %v2443_v7  ;;  %v3612_v3 = vsel %vm1543_vm3, %v3358_v55, %v2442_v50  ;;  %v4213_v59 = vld [vmem:[#allocation18_spill] sm:$0xff]  ;;  %v2674_v55 = vpack.i.bf16 %v3459_v17, %v3457_v20  ;;  %v2679_v7 = vpack.i.bf16 %v495_v42, %v494_v4 }
 0x12f   : > { %2655 = vrot.lane.b32.xlu1 %v2654_v15, %s2805_s26  ;;  %v2496_v32 = vpop.permute.xlu2 %2495  ;;  %2205 = vmatpush.bf16.msra.mxu2 %v2201_v29  ;;  %v3641_v15 = vld [vmem:[#allocation2 + $0xca] sm:$0xff] }
 0x130   : > { %v2498_v61 = vunpack.i.h.bf16 %v2496_v32  ;;  %v2497_v14 = vunpack.i.l.bf16 %v2496_v32  ;;  %1865 = vmatpush.bf16.msra.mxu0 %v2201_v29  ;;  %v3656_v32 = vld [vmem:[#allocation2 + $0x15a] sm:$0xff] }
 0x131   : > { %v2446_v44 = vpop.permute.xlu1 %2445  ;;  %2665 = vrot.lane.b32.xlu0 %v4213_v59, %s2804_s25  ;;  %v2689_v53 = vpack.i.bf16 %v3656_v32, %v3654_v26  ;;  %v2198_v29 = vld [vmem:[%s4162_s1 + $0x18] sm:$0xff] }
 0x132   : > { %v2448_v23 = vunpack.i.h.bf16 %v2446_v44  ;;  %v2447_v2 = vunpack.i.l.bf16 %v2446_v44  ;;  %v3623_v39 = vsel %vm1576_vm4, %v1554_v63, %v2497_v14  ;;  %v3626_v13 = vsel %vm1576_vm4, %v1555_v49, %v2498_v61  ;;  %v3639_v49 = vld [vmem:[#allocation2 + $0xc2] sm:$0xff] }
 0x133   : > { %4214 = vst [vmem:[#allocation11_spill] sm:$0xff] %v3626_v13  ;;  %v2456_v52 = vpop.permute.xlu0 %2455  ;;  %v1721_v50 = vpack.c.bf16 %v3641_v15, %v3639_v49  ;;  %v2200_v61 = vld [vmem:[%s4162_s1 + $0x28] sm:$0xff] }
 0x134   : > { %v3633_v46 = vsel %vm1543_vm3, %v3471_v31, %v2447_v2  ;;  %v3637_v20 = vsel %vm1543_vm3, %v3467_v27, %v2448_v23  ;;  %v2458_v17 = vunpack.i.h.bf16 %v2456_v52  ;;  %v2457_v63 = vunpack.i.l.bf16 %v2456_v52  ;;  %2206 = vmatpush.bf16.msra.mxu2 %v2200_v61  ;;  %1866 = vmatpush.bf16.msra.mxu0 %v2200_v61 }
 0x135   : > { %2675 = vrot.lane.b32.xlu2 %v2674_v55, %s2803_s24  ;;  %2181 = vmatmul.msk.bf16.gmra.mxu1 %vm172_vm0, %v1721_v50  ;;  %v2199_v55 = vld [vmem:[%s4162_s1 + $0x20] sm:$0xff]  ;;  %v2197_v50 = vld [vmem:[%s4162_s1 + $0x10] sm:$0xff] }
 0x136   : > { %v3648_v31 = vsel %vm1543_vm3, %v3387_v25, %v2458_v17  ;;  %v3652_v27 = vsel %vm1543_vm3, %v3390_v10, %v2457_v63  ;;  %v526_v25 = vld [vmem:[#allocation2 + $0x91] sm:$0xff]  ;;  %v496_v63 = vld [vmem:[#allocation2 + $0xa8] sm:$0xff] }
 0x137   : > { %2670 = vrot.lane.b32.xlu1 %v2669_v60, %s2805_s26  ;;  %v3662_v14 = vpop.permute.xlu2 %2510  ;;  %v2684_v2 = vpack.i.bf16 %v527_v5, %v526_v25  ;;  %v544_v60 = vld [vmem:[#allocation2 + $0x169] sm:$0xff]  ;;  %v545_v17 = vld [vmem:[#allocation2 + $0x171] sm:$0xff] }
 0x138   : > { %2207 = vmatpush.bf16.msra.mxu2 %v2199_v55  ;;  %1867 = vmatpush.bf16.msra.mxu0 %v2199_v55  ;;  %v2699_v25 = vpack.i.bf16 %v545_v17, %v544_v60  ;;  %v2196_v55 = vld [vmem:[%s4162_s1 + $0x8] sm:$0xff]  ;;  %v529_v60 = vld [vmem:[#allocation2 + $0xb1] sm:$0xff] }
 0x139   : > { %v2461_v10 = vpop.permute.xlu1 %2460  ;;  %2680 = vrot.lane.b32.xlu0 %v2679_v7, %s2804_s25  ;;  %v497_v7 = vld [vmem:[#allocation2 + $0xb0] sm:$0xff] }
 0x13a   : > { %v2463_v44 = vunpack.i.h.bf16 %v2461_v10  ;;  %v2462_v59 = vunpack.i.l.bf16 %v2461_v10 }
 0x13b   : > { %v3671_v23 = vpop.permute.xlu0 %2470 }
 0x13c   : > { %v3675_v4 = vsel %vm1543_vm3, %v3500_v54, %v2462_v59  ;;  %v3679_v42 = vsel %vm1543_vm3, %v3496_v33, %v2463_v44  ;;  %2208 = vmatpush.bf16.msra.mxu2 %v2198_v29  ;;  %1868 = vmatpush.bf16.msra.mxu0 %v2198_v29  ;;  %v2704_v33 = vpack.i.bf16 %v3521_v45, %v3519_v58  ;;  %v565_v44 = vld [vmem:[#allocation2 + $0xe2] sm:$0xff] }
 0x13d   : > { %4215 = vst [vmem:[#allocation10_spill] sm:$0xff] %v3675_v4  ;;  %2690 = vrot.lane.b32.xlu2 %v2689_v53, %s2803_s24  ;;  %v564_v53 = vld [vmem:[#allocation2 + $0xda] sm:$0xff]  ;;  %v528_v29 = vld [vmem:[#allocation2 + $0xa9] sm:$0xff] }
 0x13e   : > { %4216 = vst [vmem:[#allocation3_spill] sm:$0xff] %v3679_v42  ;;  %v1723_v59 = vpack.c.bf16 %v565_v44, %v564_v53  ;;  %v571_v4 = vld [vmem:[#allocation2 + $0x12a] sm:$0xff] }
 0x13f   : > { %2685 = vrot.lane.b32.xlu1 %v2684_v2, %s2805_s26  ;;  %v3686_v52 = vpop.permute.xlu2 %2525 }
 0x140   : > { %2209 = vmatpush.bf16.msra.mxu2 %v2197_v50  ;;  %1869 = vmatpush.bf16.msra.mxu0 %v2197_v50 }
 0x141   : > { %v3688_v54 = vpop.permute.xlu1 %2475  ;;  %2695 = vrot.lane.b32.xlu0 %v3262_v62, %s2804_s25  ;;  %v2709_v62 = vpack.i.bf16 %v497_v7, %v496_v63  ;;  %v3716_v63 = vld [vmem:[#allocation2 + $0x172] sm:$0xff]  ;;  %v2195_v7 = vld [vmem:[%s4162_s1] sm:$0xff] }
 0x143   : > { %v2486_v61 = vpop.permute.xlu0 %2485 }
 0x144   : > { %v2488_v5 = vunpack.i.h.bf16 %v2486_v61  ;;  %v2487_v10 = vunpack.i.l.bf16 %v2486_v61  ;;  %2210 = vmatpush.bf16.msra.mxu2 %v2196_v55  ;;  %1870 = vmatpush.bf16.msra.mxu0 %v2196_v55  ;;  %v2714_v61 = vpack.i.bf16 %v529_v60, %v528_v29  ;;  %v514_v55 = vld [vmem:[#allocation2 + $0x180] sm:$0xff]  ;;  %v515_v29 = vld [vmem:[#allocation2 + $0x188] sm:$0xff] }
 0x145   : > { %2705 = vrot.lane.b32.xlu2 %v2704_v33, %s2803_s24  ;;  %2182 = vmatmul.msk.bf16.gmra.mxu1 %vm172_vm0, %v1723_v59  ;;  %v3714_v33 = vld [vmem:[#allocation2 + $0x16a] sm:$0xff]  ;;  %v451_v60 = vld [vmem:[#allocation2 + $0x181] sm:$0xff] }
 0x146   : > { %v3700_v58 = vsel %vm1576_vm4, %v3446_v12, %v2488_v5  ;;  %v3704_v45 = vsel %vm1576_vm4, %v3449_v57, %v2487_v10 }
 0x147   : > { %2700 = vrot.lane.b32.xlu1 %v2699_v25, %s2805_s26  ;;  %v3710_v2 = vpop.permute.xlu2 %2540 }
 0x148   : > { %2211 = vmatpush.bf16.msra.mxu2 %v2195_v7  ;;  %1871 = vmatpush.bf16.msra.mxu0 %v2195_v7 }
 0x149   : > { %v2491_v12 = vpop.permute.xlu1 %2490  ;;  %2710 = vrot.lane.b32.xlu0 %v2709_v62, %s2804_s25  ;;  %v2724_v62 = vpack.i.bf16 %v3716_v63, %v3714_v33 }
 0x14a   : > { %v2493_v17 = vunpack.i.h.bf16 %v2491_v12  ;;  %v2492_v57 = vunpack.i.l.bf16 %v2491_v12  ;;  %v452_v12 = vld [vmem:[#allocation2 + $0x189] sm:$0xff] }
 0x14b   : > { %v2501_v50 = vpop.permute.xlu0 %2500 }
 0x14c   : > { %v3723_v5 = vsel %vm1576_vm4, %v3557_v30, %v2492_v57  ;;  %v3727_v10 = vsel %vm1576_vm4, %v3553_v6, %v2493_v17  ;;  %v2503_v53 = vunpack.i.h.bf16 %v2501_v50  ;;  %v2502_v44 = vunpack.i.l.bf16 %v2501_v50 }
 0x14d   : > { %2720 = vrot.lane.b32.xlu2 %v2699_v25, %s2802_s21  ;;  %v2754_v50 = vpack.i.bf16 %v452_v12, %v451_v60  ;;  %v499_v60 = vld [vmem:[#allocation2 + $0xc8] sm:$0xff] }
 0x14e   : > { %v3734_v59 = vsel %vm1576_vm4, %v3481_v16, %v2502_v44  ;;  %v3738_v30 = vsel %vm1576_vm4, %v3484_v21, %v2503_v53  ;;  %v2729_v16 = vpack.i.bf16 %v515_v29, %v514_v55  ;;  %v566_v44 = vld [vmem:[#allocation2 + $0xf2] sm:$0xff]  ;;  %v530_v55 = vld [vmem:[#allocation2 + $0xc1] sm:$0xff]  ;;  %v531_v29 = vld [vmem:[#allocation2 + $0xc9] sm:$0xff] }
 0x14f   : > { %4217 = vst [vmem:[#allocation8_spill] sm:$0xff] %v3734_v59  ;;  %2715 = vrot.lane.b32.xlu1 %v2714_v61, %s2805_s26  ;;  %v3741_v6 = vpop.permute.xlu2 %2555  ;;  %v500_v59 = vld [vmem:[#allocation2 + $0xd8] sm:$0xff] }
 0x150   : > { %4218 = vst [vmem:[#allocation14_spill] sm:$0xff] %v3738_v30  ;;  %v3754_v53 = vpop.f32.mrf.mxu1  ;;  %v2543_v30 = vunpack.i.h.bf16 %v3710_v2 }
 0x151   : > { %v2506_v25 = vpop.permute.xlu1 %2505  ;;  %2725 = vrot.lane.b32.xlu0 %v2724_v62, %s2803_s24  ;;  %4221 = vst [vmem:[#allocation17_spill] sm:$0xff] %v3754_v53  ;;  %v2739_v62 = vpack.i.bf16 %v3574_v35, %v3572_v19  ;;  %v569_v19 = vld [vmem:[#allocation2 + $0x112] sm:$0xff] }
 0x152   : > { %v2508_v17 = vunpack.i.h.bf16 %v2506_v25  ;;  %v2507_v57 = vunpack.i.l.bf16 %v2506_v25  ;;  %v1725_v25 = vpack.c.bf16 %v567_v43, %v566_v44 }
 0x153   : > { %v3744_v7 = vpop.permute.xlu0 %2515 }
 0x154   : > { %v3748_v21 = vsel %vm1576_vm4, %v3585_v36, %v2507_v57  ;;  %v3752_v61 = vsel %vm1576_vm4, %v3581_v11, %v2508_v17  ;;  %v498_v11 = vld [vmem:[#allocation2 + $0xc0] sm:$0xff]  ;;  %v2749_v17 = vpack.i.bf16 %v531_v29, %v530_v55  ;;  %v568_v57 = vld [vmem:[#allocation2 + $0x10a] sm:$0xff] }
 0x155   : > { %4219 = vst [vmem:[#allocation13_spill] sm:$0xff] %v3748_v21  ;;  %2735 = vrot.lane.b32.xlu2 %v2754_v50, %s2805_s26  ;;  %2183 = vmatmul.msk.bf16.gmra.mxu1 %vm172_vm0, %v1725_v25  ;;  %v2744_v53 = vpack.i.bf16 %v499_v60, %v498_v11  ;;  %v1727_v43 = vpack.c.bf16 %v569_v19, %v568_v57  ;;  %v516_v25 = vld [vmem:[#allocation2 + $0x198] sm:$0xff]  ;;  %v517_v55 = vld [vmem:[#allocation2 + $0x1a0] sm:$0xff]  ;;  %v3783_v60 = vld [vmem:[#allocation2 + $0x18a] sm:$0xff] }
 0x156   : > { %4220 = vst [vmem:[#allocation5_spill] sm:$0xff] %v3752_v61  ;;  %v3781_v11 = vld [vmem:[#allocation2 + $0x182] sm:$0xff]  ;;  %v2764_v57 = vpack.i.bf16 %v517_v55, %v516_v25  ;;  %v548_v19 = vld [vmem:[#allocation2 + $0x199] sm:$0xff]  ;;  %v2513_v55 = vunpack.i.h.bf16 %v3662_v14 }
 0x157   : > { %2730 = vrot.lane.b32.xlu1 %v2729_v16, %s2804_s25  ;;  %v3760_v36 = vpop.permute.xlu2 %2570  ;;  %2184 = vmatmul.msk.bf16.vlgmr.msra.gmra.mxu3 %vm172_vm0, %v1727_v43  ;;  %v2759_v43 = vpack.i.bf16 %v3783_v60, %v3781_v11 }
 0x158   : > { %v3766_v21 = vpop.f32.mrf.mxu1 }
 0x159   : > { %v3763_v12 = vpop.permute.xlu1 %2520  ;;  %2740 = vrot.lane.b32.xlu0 %v2739_v62, %s2803_s24  ;;  %4222 = vst [vmem:[#allocation4_spill] sm:$0xff] %v3766_v21 }
 0x15b   : > { %v2531_v35 = vpop.permute.xlu0 %2530 }
 0x15c   : > { %v2533_v44 = vunpack.i.h.bf16 %v2531_v35  ;;  %v2532_v61 = vunpack.i.l.bf16 %v2531_v35  ;;  %v549_v35 = vld [vmem:[#allocation2 + $0x1a1] sm:$0xff] }
 0x15d   : > { %2750 = vrot.lane.b32.xlu2 %v2749_v17, %s2805_s26  ;;  %v2769_v56 = vpack.i.bf16 %v549_v35, %v548_v19  ;;  %v532_v35 = vld [vmem:[#allocation2 + $0xd9] sm:$0xff] }
 0x15e   : > { %v3772_v16 = vsel %vm1576_vm4, %v3540_v37, %v2532_v61  ;;  %v3776_v62 = vsel %vm1576_vm4, %v3543_v38, %v2533_v44  ;;  %v2432_v44 = vunpack.i.l.bf16 %v3593_v48 }
 0x15f   : > { %2745 = vrot.lane.b32.xlu1 %v2744_v53, %s2804_s25  ;;  %v3779_v29 = vpop.permute.xlu2 %2585  ;;  %v2433_v53 = vunpack.i.h.bf16 %v3593_v48  ;;  %v2542_v48 = vunpack.i.l.bf16 %v3710_v2 }
 0x160   : > { %v3798_v25 = vpop.f32.mrf.mxu1 }
 0x161   : > { %v2536_v17 = vpop.permute.xlu1 %2535  ;;  %2755 = vrot.lane.b32.xlu0 %v2754_v50, %s2802_s21  ;;  %4223 = vst [vmem:[#allocation7_spill] sm:$0xff] %v3798_v25 }
 0x162   : > { %v2538_v37 = vunpack.i.h.bf16 %v2536_v17  ;;  %v2537_v61 = vunpack.i.l.bf16 %v2536_v17  ;;  %v2512_v17 = vunpack.i.l.bf16 %v3662_v14  ;;  %v1561_v14 = vsel %vm1543_vm3, %v3433_v41, %v2433_v53  ;;  %v533_v41 = vld [vmem:[#allocation2 + $0xe1] sm:$0xff] }
 0x163   : > { %v2546_v38 = vpop.permute.xlu0 %2545  ;;  %v1594_v2 = vsel %vm1576_vm4, %v1561_v14, %v2513_v55  ;;  %v570_v53 = vld [vmem:[#allocation2 + $0x122] sm:$0xff] }
 0x164   : > { %v3792_v21 = vsel %vm1576_vm4, %v3652_v27, %v2537_v61  ;;  %v3796_v50 = vsel %vm1576_vm4, %v3648_v31, %v2538_v37  ;;  %v501_v27 = vld [vmem:[#allocation2 + $0xe0] sm:$0xff]  ;;  %v2548_v61 = vunpack.i.h.bf16 %v2546_v38  ;;  %v2547_v42 = vunpack.i.l.bf16 %v2546_v38 }
 0x165   : > { %2765 = vrot.lane.b32.xlu2 %v2764_v57, %s2804_s25  ;;  %v1560_v31 = vsel %vm1543_vm3, %v3437_v51, %v2432_v44  ;;  %v2779_v38 = vpack.i.bf16 %v501_v27, %v500_v59  ;;  %v1627_v51 = vsel %vm1609_vm5, %v1594_v2, %v2543_v30  ;;  %v2473_v30 = vunpack.i.h.bf16 %v3671_v23 }
 0x166   : > { %v1593_v57 = vsel %vm1576_vm4, %v1560_v31, %v2512_v17  ;;  %v2774_v17 = vpack.i.bf16 %v3641_v15, %v3639_v49  ;;  %v1729_v31 = vpack.c.bf16 %v571_v4, %v570_v53  ;;  %v2472_v27 = vunpack.i.l.bf16 %v3671_v23 }
 0x167   : > { %2760 = vrot.lane.b32.xlu1 %v2759_v43, %s2803_s24  ;;  %v3810_v37 = vpop.permute.xlu2 %2600  ;;  %v1626_v43 = vsel %vm1609_vm5, %v1593_v57, %v2542_v48  ;;  %v2784_v57 = vpack.i.bf16 %v533_v41, %v532_v35  ;;  %v2558_v49 = vunpack.i.h.bf16 %v3741_v6  ;;  %v2557_v15 = vunpack.i.l.bf16 %v3741_v6 }
 0x168   : > { %v1659_v55 = vsel %vm1642_vm6, %v1626_v43, %v2547_v42  ;;  %2185 = vmatmul.msk.bf16.gmra.mxu3 %vm172_vm0, %v1729_v31  ;;  %v3829_v42 = vpop.f32.mrf.mxu1  ;;  %v1578_v23 = vsel %vm1576_vm4, %v3418_v22, %v2473_v30  ;;  %v2518_v41 = vunpack.i.h.bf16 %v3744_v7  ;;  %v2517_v53 = vunpack.i.l.bf16 %v3744_v7 }
 0x169   : > { %v2551_v19 = vpop.permute.xlu1 %2550  ;;  %2770 = vrot.lane.b32.xlu0 %v2769_v56, %s2805_s26  ;;  %v1660_v56 = vsel %vm1642_vm6, %v1627_v51, %v2548_v61  ;;  %v1577_v61 = vsel %vm1576_vm4, %v3421_v47, %v2472_v27  ;;  %v1611_v6 = vsel %vm1609_vm5, %v1578_v23, %v2558_v49  ;;  %v1731_v23 = vpack.c.bf16 %v3589_v9, %v3587_v18 }
 0x16a   : > { %v2553_v44 = vunpack.i.h.bf16 %v2551_v19  ;;  %v2552_v25 = vunpack.i.l.bf16 %v2551_v19  ;;  %v1610_v19 = vsel %vm1609_vm5, %v1577_v61, %v2557_v15  ;;  %v1595_v30 = vsel %vm1576_vm4, %v3508_v34, %v2517_v53 }
 0x16b   : > { %v2561_v13 = vpop.permute.xlu0 %2560  ;;  %v1596_v27 = vsel %vm1576_vm4, %v3511_v0, %v2518_v41 }
 0x16c   : > { %v1692_v59 = vsel %vm1675_vm7, %v1659_v55, %v2552_v25  ;;  %v1693_v48 = vsel %vm1675_vm7, %v1660_v56, %v2553_v44  ;;  %v2563_v4 = vunpack.i.h.bf16 %v2561_v13  ;;  %v2562_v25 = vunpack.i.l.bf16 %v2561_v13 }
 0x16d   : > { %v1724_v14 = vpack.c.bf16 %v1693_v48, %v1692_v59  ;;  %2780 = vrot.lane.b32.xlu2 %v2779_v38, %s2804_s25  ;;  %v2573_v55 = vunpack.i.h.bf16 %v3760_v36  ;;  %v2572_v56 = vunpack.i.l.bf16 %v3760_v36 }
 0x16e   : > { %v1643_v51 = vsel %vm1642_vm6, %v1610_v19, %v2562_v25  ;;  %v1644_v44 = vsel %vm1642_vm6, %v1611_v6, %v2563_v4  ;;  %v2477_v19 = vunpack.i.l.bf16 %v3688_v54 }
 0x16f   : > { %2775 = vrot.lane.b32.xlu1 %v2774_v17, %s2803_s24  ;;  %1912 = vmatmul.bf16.vlgmr.msra.gmra.mxu2 %v1724_v14  ;;  %v3839_v43 = vpop.permute.xlu2 %2615  ;;  %v1629_v7 = vsel %vm1609_vm5, %v1596_v27, %v2573_v55  ;;  %v2602_v27 = vunpack.i.l.bf16 %v3810_v37 }
 0x170   : > { %v3849_v48 = vpop.f32.mrf.mxu1  ;;  %v1579_v18 = vsel %vm1576_vm4, %v3529_v40, %v2477_v19 }
 0x171   : > { %v2566_v2 = vpop.permute.xlu1 %2565  ;;  %2785 = vrot.lane.b32.xlu0 %v2784_v57, %s2805_s26  ;;  %v1628_v57 = vsel %vm1609_vm5, %v1595_v30, %v2572_v56  ;;  %v2603_v30 = vunpack.i.h.bf16 %v3810_v37 }
 0x172   : > { %v2568_v35 = vunpack.i.h.bf16 %v2566_v2  ;;  %v2567_v38 = vunpack.i.l.bf16 %v2566_v2  ;;  %v2478_v2 = vunpack.i.h.bf16 %v3688_v54 }
 0x173   : > { %v2576_v13 = vpop.permute.xlu0 %2575 }
 0x174   : > { %v1676_v22 = vsel %vm1675_vm7, %v1643_v51, %v2567_v38  ;;  %v1677_v47 = vsel %vm1675_vm7, %v1644_v44, %v2568_v35  ;;  %v2578_v31 = vunpack.i.h.bf16 %v2576_v13  ;;  %v2577_v59 = vunpack.i.l.bf16 %v2576_v13 }
 0x175   : > { %v1708_v17 = vpack.c.bf16 %v1677_v47, %v1676_v22  ;;  %v2588_v35 = vunpack.i.h.bf16 %v3779_v29  ;;  %v2587_v38 = vunpack.i.l.bf16 %v3779_v29  ;;  %v1580_v9 = vsel %vm1576_vm4, %v3533_v28, %v2478_v2 }
 0x176   : > { %v1661_v36 = vsel %vm1642_vm6, %v1628_v57, %v2577_v59  ;;  %v1662_v25 = vsel %vm1642_vm6, %v1629_v7, %v2578_v31  ;;  %v2523_v28 = vunpack.i.h.bf16 %v3763_v12  ;;  %v2522_v31 = vunpack.i.l.bf16 %v3763_v12 }
 0x177   : > { %1872 = vmatmul.bf16.vlgmr.msra.gmra.mxu0 %v1708_v17  ;;  %v3861_v61 = vpop.permute.xlu2 %2630  ;;  %v1612_v22 = vsel %vm1609_vm5, %v1579_v18, %v2587_v38  ;;  %v1613_v54 = vsel %vm1609_vm5, %v1580_v9, %v2588_v35  ;;  %v1733_v2 = vpack.c.bf16 %v3656_v32, %v3654_v26  ;;  %v2618_v35 = vunpack.i.h.bf16 %v3839_v43 }
 0x178   : > { %2186 = vmatmul.msk.bf16.gmra.mxu3 %vm172_vm0, %v1731_v23  ;;  %v3876_v53 = vpop.f32.mrf.mxu1  ;;  %v2617_v38 = vunpack.i.l.bf16 %v3839_v43 }
 0x179   : > { %v2581_v14 = vpop.permute.xlu1 %2580  ;;  %v1615_v32 = vsel %vm1609_vm5, %v3603_v24, %v2618_v35  ;;  %v2632_v24 = vunpack.i.l.bf16 %v3861_v61 }
 0x17a   : > { %v2583_v49 = vunpack.i.h.bf16 %v2581_v14  ;;  %v2582_v15 = vunpack.i.l.bf16 %v2581_v14  ;;  %v1614_v26 = vsel %vm1609_vm5, %v3600_v8, %v2617_v38  ;;  %v2633_v8 = vunpack.i.h.bf16 %v3861_v61 }
 0x17b   : > { %v2591_v4 = vpop.permute.xlu0 %2590 }
 0x17c   : > { %v1694_v34 = vsel %vm1675_vm7, %v1661_v36, %v2582_v15  ;;  %v1695_v0 = vsel %vm1675_vm7, %v1662_v25, %v2583_v49  ;;  %v2593_v13 = vunpack.i.h.bf16 %v2591_v4  ;;  %v2592_v51 = vunpack.i.l.bf16 %v2591_v4 }
 0x17d   : > { %v1726_v6 = vpack.c.bf16 %v1695_v0, %v1694_v34  ;;  %v1597_v49 = vsel %vm1576_vm4, %v3612_v3, %v2522_v31  ;;  %v1598_v15 = vsel %vm1576_vm4, %v3608_v1, %v2523_v28 }
 0x17e   : > { %v1645_v29 = vsel %vm1642_vm6, %v1612_v22, %v2592_v51  ;;  %v1646_v55 = vsel %vm1642_vm6, %v1613_v54, %v2593_v13  ;;  %v1630_v36 = vsel %vm1609_vm5, %v1597_v49, %v2602_v27  ;;  %v1631_v12 = vsel %vm1609_vm5, %v1598_v15, %v2603_v30 }
 0x17f   : > { %1917 = vmatmul.bf16.gmra.mxu2 %v1726_v6  ;;  %v3886_v14 = vpop.permute.xlu2 %2645 }
 0x181   : > { %v2596_v44 = vpop.permute.xlu1 %2595 }
 0x182   : > { %v2598_v47 = vunpack.i.h.bf16 %v2596_v44  ;;  %v2597_v41 = vunpack.i.l.bf16 %v2596_v44  ;;  %v3900_v1 = vpop.f32.mrf.mxu1 }
 0x183   : > { %v2606_v17 = vpop.permute.xlu0 %2605 }
 0x184   : > { %v1678_v56 = vsel %vm1675_vm7, %v1645_v29, %v2597_v41  ;;  %v1679_v40 = vsel %vm1675_vm7, %v1646_v55, %v2598_v47  ;;  %v2608_v57 = vunpack.i.h.bf16 %v2606_v17  ;;  %v2607_v7 = vunpack.i.l.bf16 %v2606_v17 }
 0x185   : > { %v1710_v59 = vpack.c.bf16 %v1679_v40, %v1678_v56  ;;  %v2528_v29 = vunpack.i.h.bf16 %v3686_v52  ;;  %v2527_v55 = vunpack.i.l.bf16 %v3686_v52 }
 0x186   : > { %v1663_v37 = vsel %vm1642_vm6, %v1630_v36, %v2607_v7  ;;  %v1664_v0 = vsel %vm1642_vm6, %v1631_v12, %v2608_v57  ;;  %v1735_v12 = vpack.c.bf16 %v3716_v63, %v3714_v33 }
 0x187   : > { %1877 = vmatmul.bf16.gmra.mxu0 %v1710_v59  ;;  %v3905_v18 = vpop.permute.xlu2 %2660  ;;  %v1599_v59 = vsel %vm1576_vm4, %v3633_v46, %v2527_v55  ;;  %v1600_v30 = vsel %vm1576_vm4, %v3637_v20, %v2528_v29 }
 0x188   : > { %2187 = vmatmul.msk.bf16.gmra.mxu3 %vm172_vm0, %v1733_v2  ;;  %v1632_v57 = vsel %vm1609_vm5, %v1599_v59, %v2632_v24  ;;  %v1633_v52 = vsel %vm1609_vm5, %v1600_v30, %v2633_v8 }
 0x189   : > { %v2611_v4 = vpop.permute.xlu1 %2610 }
 0x18a   : > { %v2613_v25 = vunpack.i.h.bf16 %v2611_v4  ;;  %v2612_v23 = vunpack.i.l.bf16 %v2611_v4  ;;  %v3919_v40 = vpop.f32.mrf.mxu1 }
 0x18b   : > { %v2621_v34 = vpop.permute.xlu0 %2620 }
 0x18c   : > { %v1696_v3 = vsel %vm1675_vm7, %v1663_v37, %v2612_v23  ;;  %v1697_v19 = vsel %vm1675_vm7, %v1664_v0, %v2613_v25  ;;  %v2623_v13 = vunpack.i.h.bf16 %v2621_v34  ;;  %v2622_v51 = vunpack.i.l.bf16 %v2621_v34 }
 0x18d   : > { %v1728_v6 = vpack.c.bf16 %v1697_v19, %v1696_v3  ;;  %v2648_v23 = vunpack.i.h.bf16 %v3886_v14  ;;  %v2647_v34 = vunpack.i.l.bf16 %v3886_v14 }
 0x18e   : > { %v1647_v47 = vsel %vm1642_vm6, %v1614_v26, %v2622_v51  ;;  %v1648_v41 = vsel %vm1642_vm6, %v1615_v32, %v2623_v13  ;;  %v2663_v32 = vunpack.i.h.bf16 %v3905_v18 }
 0x18f   : > { %1922 = vmatmul.bf16.gmra.mxu2 %v1728_v6  ;;  %v2676_v7 = vpop.permute.xlu2 %2675  ;;  %v1616_v33 = vsel %vm1609_vm5, %v3704_v45, %v2647_v34  ;;  %v1617_v63 = vsel %vm1609_vm5, %v3700_v58, %v2648_v23  ;;  %v2662_v45 = vunpack.i.l.bf16 %v3905_v18  ;;  %v1737_v18 = vpack.c.bf16 %v3783_v60, %v3781_v11 }
 0x191   : > { %v2626_v9 = vpop.permute.xlu1 %2625 }
 0x192   : > { %v2628_v44 = vunpack.i.h.bf16 %v2626_v9  ;;  %v2627_v22 = vunpack.i.l.bf16 %v2626_v9  ;;  %v3936_v2 = vpop.f32.mrf.mxu1 }
 0x193   : > { %v2636_v54 = vpop.permute.xlu0 %2635 }
 0x194   : > { %v1680_v43 = vsel %vm1675_vm7, %v1647_v47, %v2627_v22  ;;  %v1681_v17 = vsel %vm1675_vm7, %v1648_v41, %v2628_v44  ;;  %v2638_v28 = vunpack.i.h.bf16 %v2636_v54  ;;  %v2637_v31 = vunpack.i.l.bf16 %v2636_v54 }
 0x195   : > { %v1712_v56 = vpack.c.bf16 %v1681_v17, %v1680_v43  ;;  %v1634_v54 = vsel %vm1609_vm5, %v3772_v16, %v2662_v45  ;;  %v1635_v47 = vsel %vm1609_vm5, %v3776_v62, %v2663_v32  ;;  %v2678_v62 = vunpack.i.h.bf16 %v2676_v7 }
 0x196   : > { %v1665_v4 = vsel %vm1642_vm6, %v1632_v57, %v2637_v31  ;;  %v1666_v36 = vsel %vm1642_vm6, %v1633_v52, %v2638_v28  ;;  %v2677_v28 = vunpack.i.l.bf16 %v2676_v7 }
 0x197   : > { %1882 = vmatmul.bf16.gmra.mxu0 %v1712_v56  ;;  %v2691_v14 = vpop.permute.xlu2 %2690  ;;  %v1619_v11 = vsel %vm1609_vm5, %v3727_v10, %v2678_v62 }
 0x198   : > { %2188 = vmatmul.msk.bf16.gmra.mxu3 %vm172_vm0, %v1735_v12  ;;  %v1618_v57 = vsel %vm1609_vm5, %v3723_v5, %v2677_v28 }
 0x199   : > { %v2641_v27 = vpop.permute.xlu1 %2640 }
 0x19a   : > { %v2643_v49 = vunpack.i.h.bf16 %v2641_v27  ;;  %v2642_v15 = vunpack.i.l.bf16 %v2641_v27  ;;  %v3952_v17 = vpop.f32.mrf.mxu1 }
 0x19b   : > { %v2651_v61 = vpop.permute.xlu0 %2650 }
 0x19c   : > { %v1698_v46 = vsel %vm1675_vm7, %v1665_v4, %v2642_v15  ;;  %v1699_v20 = vsel %vm1675_vm7, %v1666_v36, %v2643_v49  ;;  %v2653_v37 = vunpack.i.h.bf16 %v2651_v61  ;;  %v2652_v0 = vunpack.i.l.bf16 %v2651_v61 }
 0x19d   : > { %v1730_v25 = vpack.c.bf16 %v1699_v20, %v1698_v46  ;;  %v2693_v46 = vunpack.i.h.bf16 %v2691_v14  ;;  %v2692_v20 = vunpack.i.l.bf16 %v2691_v14 }
 0x19e   : > { %v1649_v38 = vsel %vm1642_vm6, %v1616_v33, %v2652_v0  ;;  %v1650_v13 = vsel %vm1642_vm6, %v1617_v63, %v2653_v37  ;;  %v580_v33 = vld [vmem:[#allocation2 + $0x19a] sm:$0xff]  ;;  %v581_v63 = vld [vmem:[#allocation2 + $0x1a2] sm:$0xff] }
 0x19f   : > { %1927 = vmatmul.bf16.gmra.mxu2 %v1730_v25  ;;  %v2706_v31 = vpop.permute.xlu2 %2705  ;;  %v1636_v34 = vsel %vm1609_vm5, %v3792_v21, %v2692_v20  ;;  %v1637_v37 = vsel %vm1609_vm5, %v3796_v50, %v2693_v46 }
 0x1a0   : > { %v2708_v21 = vunpack.i.h.bf16 %v2706_v31 }
 0x1a1   : > { %v2656_v3 = vpop.permute.xlu1 %2655 }
 0x1a2   : > { %v2658_v19 = vunpack.i.h.bf16 %v2656_v3  ;;  %v2657_v6 = vunpack.i.l.bf16 %v2656_v3  ;;  %v3969_v36 = vpop.f32.mrf.mxu1 }
 0x1a3   : > { %v2666_v35 = vpop.permute.xlu0 %2665 }
 0x1a4   : > { %v1682_v51 = vsel %vm1675_vm7, %v1649_v38, %v2657_v6  ;;  %v1683_v9 = vsel %vm1675_vm7, %v1650_v13, %v2658_v19  ;;  %v2668_v44 = vunpack.i.h.bf16 %v2666_v35  ;;  %v2667_v22 = vunpack.i.l.bf16 %v2666_v35 }
 0x1a5   : > { %v1714_v26 = vpack.c.bf16 %v1683_v9, %v1682_v51  ;;  %v1739_v38 = vpack.c.bf16 %v581_v63, %v580_v33  ;;  %v2707_v9 = vunpack.i.l.bf16 %v2706_v31 }
 0x1a6   : > { %v1667_v55 = vsel %vm1642_vm6, %v1634_v54, %v2667_v22  ;;  %v1668_v56 = vsel %vm1642_vm6, %v1635_v47, %v2668_v44 }
 0x1a7   : > { %1887 = vmatmul.bf16.gmra.mxu0 %v1714_v26  ;;  %v2721_v10 = vpop.permute.xlu2 %2720  ;;  %v1620_v22 = vsel %vm1609_vm5, %v3623_v39, %v2707_v9 }
 0x1a8   : > { %2189 = vmatmul.msk.bf16.gmra.mxu3 %vm172_vm0, %v1737_v18 }
 0x1a9   : > { %v2671_v58 = vpop.permute.xlu1 %2670 }
 0x1aa   : > { %v2673_v41 = vunpack.i.h.bf16 %v2671_v58  ;;  %v2672_v43 = vunpack.i.l.bf16 %v2671_v58  ;;  %v3980_v50 = vpop.f32.mrf.mxu1  ;;  %v4224_v58 = vld [vmem:[#allocation11_spill] sm:$0xff] }
 0x1ab   : > { %v2681_v29 = vpop.permute.xlu0 %2680  ;;  %v1621_v54 = vsel %vm1609_vm5, %v4224_v58, %v2708_v21 }
 0x1ac   : > { %v1700_v8 = vsel %vm1675_vm7, %v1667_v55, %v2672_v43  ;;  %v1701_v24 = vsel %vm1675_vm7, %v1668_v56, %v2673_v41  ;;  %v2683_v59 = vunpack.i.h.bf16 %v2681_v29  ;;  %v2682_v30 = vunpack.i.l.bf16 %v2681_v29 }
 0x1ad   : > { %v1732_v16 = vpack.c.bf16 %v1701_v24, %v1700_v8  ;;  %v2723_v24 = vunpack.i.h.bf16 %v2721_v10 }
 0x1ae   : > { %v1651_v15 = vsel %vm1642_vm6, %v1618_v57, %v2682_v30  ;;  %v1652_v61 = vsel %vm1642_vm6, %v1619_v11, %v2683_v59  ;;  %v4226_v11 = vld [vmem:[#allocation3_spill] sm:$0xff] }
 0x1af   : > { %1932 = vmatmul.bf16.gmra.mxu2 %v1732_v16  ;;  %v2736_v45 = vpop.permute.xlu2 %2735  ;;  %v2722_v16 = vunpack.i.l.bf16 %v2721_v10 }
 0x1b0   : > { %v2738_v59 = vunpack.i.h.bf16 %v2736_v45  ;;  %v2737_v30 = vunpack.i.l.bf16 %v2736_v45 }
 0x1b1   : > { %v2686_v27 = vpop.permute.xlu1 %2685 }
 0x1b2   : > { %v2688_v60 = vunpack.i.h.bf16 %v2686_v27  ;;  %v2687_v52 = vunpack.i.l.bf16 %v2686_v27  ;;  %v3990_v39 = vpop.f32.mrf.mxu1  ;;  %v4225_v27 = vld [vmem:[#allocation10_spill] sm:$0xff] }
 0x1b3   : > { %v2696_v49 = vpop.permute.xlu0 %2695  ;;  %v1605_v57 = vsel %vm1576_vm4, %v4225_v27, %v2722_v16 }
 0x1b4   : > { %v1684_v7 = vsel %vm1675_vm7, %v1651_v15, %v2687_v52  ;;  %v1685_v4 = vsel %vm1675_vm7, %v1652_v61, %v2688_v60  ;;  %v2698_v5 = vunpack.i.h.bf16 %v2696_v49  ;;  %v2697_v25 = vunpack.i.l.bf16 %v2696_v49 }
 0x1b5   : > { %v1716_v12 = vpack.c.bf16 %v1685_v4, %v1684_v7  ;;  %v1606_v60 = vsel %vm1576_vm4, %v4226_v11, %v2723_v24 }
 0x1b6   : > { %v1669_v6 = vsel %vm1642_vm6, %v1636_v34, %v2697_v25  ;;  %v1670_v35 = vsel %vm1642_vm6, %v1637_v37, %v2698_v5 }
 0x1b7   : > { %1892 = vmatmul.bf16.gmra.mxu0 %v1716_v12  ;;  %v2751_v15 = vpop.permute.xlu2 %2750 }
 0x1b8   : > { %2190 = vmatmul.msk.bf16.gmra.mxu3 %vm172_vm0, %v1739_v38  ;;  %v2753_v37 = vunpack.i.h.bf16 %v2751_v15 }
 0x1b9   : > { %v2701_v23 = vpop.permute.xlu1 %2700 }
 0x1ba   : > { %v2703_v0 = vunpack.i.h.bf16 %v2701_v23  ;;  %v2702_v3 = vunpack.i.l.bf16 %v2701_v23  ;;  %v4002_v63 = vpop.f32.mrf.mxu1 }
 0x1bb   : > { %v2711_v19 = vpop.permute.xlu0 %2710 }
 0x1bc   : > { %v1702_v13 = vsel %vm1675_vm7, %v1669_v6, %v2702_v3  ;;  %v1703_v14 = vsel %vm1675_vm7, %v1670_v35, %v2703_v0  ;;  %v2713_v26 = vunpack.i.h.bf16 %v2711_v19  ;;  %v2712_v32 = vunpack.i.l.bf16 %v2711_v19  ;;  %v4227_v19 = vld [vmem:[#allocation8_spill] sm:$0xff]  ;;  %v4228_v35 = vld [vmem:[#allocation14_spill] sm:$0xff] }
 0x1bd   : > { %v1734_v51 = vpack.c.bf16 %v1703_v14, %v1702_v13  ;;  %v2752_v0 = vunpack.i.l.bf16 %v2751_v15 }
 0x1be   : > { %v1653_v29 = vsel %vm1642_vm6, %v1620_v22, %v2712_v32  ;;  %v1654_v55 = vsel %vm1642_vm6, %v1621_v54, %v2713_v26 }
 0x1bf   : > { %1937 = vmatmul.bf16.gmra.mxu2 %v1734_v51  ;;  %v2766_v21 = vpop.permute.xlu2 %2765 }
 0x1c0   : > { %v2768_v58 = vunpack.i.h.bf16 %v2766_v21  ;;  %v2767_v54 = vunpack.i.l.bf16 %v2766_v21 }
 0x1c1   : > { %v2716_v44 = vpop.permute.xlu1 %2715 }
 0x1c2   : > { %v2718_v47 = vunpack.i.h.bf16 %v2716_v44  ;;  %v2717_v41 = vunpack.i.l.bf16 %v2716_v44 }
 0x1c3   : > { %v2726_v43 = vpop.permute.xlu0 %2725 }
 0x1c4   : > { %v1686_v56 = vsel %vm1675_vm7, %v1653_v29, %v2717_v41  ;;  %v1687_v18 = vsel %vm1675_vm7, %v1654_v55, %v2718_v47  ;;  %v2728_v62 = vunpack.i.h.bf16 %v2726_v43  ;;  %v2727_v28 = vunpack.i.l.bf16 %v2726_v43  ;;  %v4229_v43 = vld [vmem:[#allocation16_spill] sm:$0xff] }
 0x1c5   : > { %v1718_v8 = vpack.c.bf16 %v1687_v18, %v1686_v56  ;;  %v4230_v55 = vld [vmem:[#allocation12_spill] sm:$0xff] }
 0x1c6   : > { %v1638_v61 = vsel %vm1609_vm5, %v1605_v57, %v2727_v28  ;;  %v1639_v7 = vsel %vm1609_vm5, %v1606_v60, %v2728_v62  ;;  %v4018_v28 = vpop.f32.mrf.mxu1 }
 0x1c7   : > { %1897 = vmatmul.bf16.gmra.mxu0 %v1718_v8  ;;  %v2781_v57 = vpop.permute.xlu2 %2780 }
 0x1c9   : > { %v2731_v31 = vpop.permute.xlu1 %2730 }
 0x1ca   : > { %v2733_v52 = vunpack.i.h.bf16 %v2731_v31  ;;  %v2732_v49 = vunpack.i.l.bf16 %v2731_v31 }
 0x1cb   : > { %v2741_v4 = vpop.permute.xlu0 %2740 }
 0x1cc   : > { %v1671_v12 = vsel %vm1642_vm6, %v1638_v61, %v2732_v49  ;;  %v1672_v46 = vsel %vm1642_vm6, %v1639_v7, %v2733_v52  ;;  %v2743_v10 = vunpack.i.h.bf16 %v2741_v4  ;;  %v2742_v23 = vunpack.i.l.bf16 %v2741_v4  ;;  %v4231_v4 = vld [vmem:[#allocation13_spill] sm:$0xff] }
 0x1cd   : > { %v1704_v20 = vsel %vm1675_vm7, %v1671_v12, %v2737_v30  ;;  %v1705_v5 = vsel %vm1675_vm7, %v1672_v46, %v2738_v59  ;;  %v2783_v52 = vunpack.i.h.bf16 %v2781_v57  ;;  %v2782_v49 = vunpack.i.l.bf16 %v2781_v57  ;;  %v4232_v46 = vld [vmem:[#allocation5_spill] sm:$0xff] }
 0x1ce   : > { %v1736_v25 = vpack.c.bf16 %v1705_v5, %v1704_v20  ;;  %v1622_v6 = vsel %vm1609_vm5, %v4227_v19, %v2742_v23  ;;  %v1623_v38 = vsel %vm1609_vm5, %v4228_v35, %v2743_v10  ;;  %v4037_v19 = vld [vmem:[%s4163_s2] ss:$0 sm:$0xff] }
 0x1d0   : > { %1942 = vmatmul.bf16.gmra.mxu2 %v1736_v25 }
 0x1d1   : > { %v2746_v34 = vpop.permute.xlu1 %2745 }
 0x1d2   : > { %v2748_v3 = vunpack.i.h.bf16 %v2746_v34  ;;  %v2747_v33 = vunpack.i.l.bf16 %v2746_v34 }
 0x1d3   : > { %v2756_v13 = vpop.permute.xlu0 %2755 }
 0x1d4   : > { %v1655_v14 = vsel %vm1642_vm6, %v1622_v6, %v2747_v33  ;;  %v1656_v51 = vsel %vm1642_vm6, %v1623_v38, %v2748_v3  ;;  %v2758_v45 = vunpack.i.h.bf16 %v2756_v13  ;;  %v2757_v44 = vunpack.i.l.bf16 %v2756_v13 }
 0x1d5   : > { %v1688_v9 = vsel %vm1675_vm7, %v1655_v14, %v2752_v0  ;;  %v1689_v26 = vsel %vm1675_vm7, %v1656_v51, %v2753_v37  ;;  %v4032_v0 = vpop.f32.mrf.mxu1 }
 0x1d6   : > { %v1720_v32 = vpack.c.bf16 %v1689_v26, %v1688_v9  ;;  %v1607_v29 = vsel %vm1576_vm4, %v4229_v43, %v2757_v44  ;;  %v1608_v56 = vsel %vm1576_vm4, %v4230_v55, %v2758_v45  ;;  %v4233_v9 = vld [vmem:[#allocation17_spill] sm:$0xff] }
 0x1d8   : > { %1902 = vmatmul.bf16.gmra.mxu0 %v1720_v32 }
 0x1d9   : > { %v2761_v22 = vpop.permute.xlu1 %2760 }
 0x1da   : > { %v2763_v47 = vunpack.i.h.bf16 %v2761_v22  ;;  %v2762_v41 = vunpack.i.l.bf16 %v2761_v22  ;;  %v2007_v33 = vpop.f32.mrf.mxu3 }
 0x1db   : > { %v2771_v18 = vpop.permute.xlu0 %2770 }
 0x1dc   : > { %v1640_v8 = vsel %vm1609_vm5, %v1607_v29, %v2762_v41  ;;  %v1641_v24 = vsel %vm1609_vm5, %v1608_v56, %v2763_v47  ;;  %v2773_v16 = vunpack.i.h.bf16 %v2771_v18  ;;  %v2772_v62 = vunpack.i.l.bf16 %v2771_v18  ;;  %v4234_v47 = vld [vmem:[#allocation4_spill] sm:$0xff] }
 0x1dd   : > { %v1673_v31 = vsel %vm1642_vm6, %v1640_v8, %v2767_v54  ;;  %v1674_v59 = vsel %vm1642_vm6, %v1641_v24, %v2768_v58  ;;  %v2002_v6 = vpop.f32.mrf.mxu1  ;;  %v4235_v24 = vld [vmem:[#allocation7_spill] sm:$0xff] }
 0x1de   : > { %v1706_v30 = vsel %vm1675_vm7, %v1673_v31, %v2772_v62  ;;  %v1707_v27 = vsel %vm1675_vm7, %v1674_v59, %v2773_v16 }
 0x1df   : > { %v1738_v11 = vpack.c.bf16 %v1707_v27, %v1706_v30 }
 0x1e1   : > { %v2776_v60 = vpop.permute.xlu1 %2775  ;;  %1947 = vmatmul.bf16.gmra.mxu2 %v1738_v11 }
 0x1e2   : > { %v2778_v15 = vunpack.i.h.bf16 %v2776_v60  ;;  %v2777_v61 = vunpack.i.l.bf16 %v2776_v60  ;;  %v2009_v21 = vpop.f32.mrf.mxu3 }
 0x1e3   : > { %v2786_v7 = vpop.permute.xlu0 %2785 }
 0x1e4   : > { %v1624_v12 = vsel %vm1609_vm5, %v4231_v4, %v2777_v61  ;;  %v1625_v20 = vsel %vm1609_vm5, %v4232_v46, %v2778_v15  ;;  %v2788_v5 = vunpack.i.h.bf16 %v2786_v7  ;;  %v2787_v25 = vunpack.i.l.bf16 %v2786_v7 }
 0x1e5   : > { %v1657_v10 = vsel %vm1642_vm6, %v1624_v12, %v2782_v49  ;;  %v1658_v23 = vsel %vm1642_vm6, %v1625_v20, %v2783_v52  ;;  %v2004_v45 = vpop.f32.mrf.mxu1 }
 0x1e6   : > { %v1690_v34 = vsel %vm1675_vm7, %v1657_v10, %v2787_v25  ;;  %v1691_v37 = vsel %vm1675_vm7, %v1658_v23, %v2788_v5 }
 0x1e7   : > { %v1722_v3 = vpack.c.bf16 %v1691_v37, %v1690_v34 }
 0x1e9   : > { %1907 = vmatmul.bf16.gmra.mxu0 %v1722_v3 }
 0x1eb   : > { %v2012_v43 = vpop.f32.mrf.mxu3 }
 0x1f2   : > { %v1913_v35 = vpop.f32.mrf.mxu2 }
 0x1f3   : > { %v1914_v38 = vadd.f32 %v4037_v19, %v1913_v35  ;;  %v2014_v31 = vpop.f32.mrf.mxu3 }
 0x1f4   : > { %v1873_v13 = vpop.f32.mrf.mxu0 }
 0x1f5   : > { %v1874_v14 = vadd.f32 %v4037_v19, %v1873_v13  ;;  %v2003_v51 = vadd.f32 %v2002_v6, %v1914_v38 }
 0x1f7   : > { %v1963_v26 = vadd.f32 %v4233_v9, %v1874_v14  ;;  %2059 = vst.msk [vmem:[%s4045_s23 + $0x80] sm:$0xff] %vm2042_vm8, %v2003_v51 }
 0x1f9   : > { %2043 = vst.msk [vmem:[%s4045_s23] sm:$0xff] %vm2042_vm8, %v1963_v26 }
 0x1fa   : > { %v1915_v32 = vpop.f32.mrf.mxu2 }
 0x1fb   : > { %v1916_v44 = vadd.f32 %v4037_v19, %v1915_v32  ;;  %v2017_v15 = vpop.f32.mrf.mxu3 }
 0x1fc   : > { %v1875_v22 = vpop.f32.mrf.mxu0 }
 0x1fd   : > { %v1876_v58 = vadd.f32 %v4037_v19, %v1875_v22  ;;  %v2005_v54 = vadd.f32 %v2004_v45, %v1916_v44 }
 0x1ff   : > { %v1965_v41 = vadd.f32 %v4234_v47, %v1876_v58  ;;  %2060 = vst.msk [vmem:[%s4045_s23 + $0x88] sm:$0xff] %vm2042_vm8, %v2005_v54 }
 0x201   : > { %2044 = vst.msk [vmem:[%s4045_s23 + $0x8] sm:$0xff] %vm2042_vm8, %v1965_v41 }
 0x202   : > { %v1918_v29 = vpop.f32.mrf.mxu2 }
 0x203   : > { %v1919_v55 = vadd.f32 %v4037_v19, %v1918_v29  ;;  %v2019_v25 = vpop.f32.mrf.mxu3 }
 0x204   : > { %v1878_v56 = vpop.f32.mrf.mxu0 }
 0x205   : > { %v2008_v18 = vadd.f32 %v2007_v33, %v1919_v55  ;;  %v1879_v8 = vadd.f32 %v4037_v19, %v1878_v56 }
 0x207   : > { %2061 = vst.msk [vmem:[%s4045_s23 + $0x90] sm:$0xff] %vm2042_vm8, %v2008_v18  ;;  %v1968_v16 = vadd.f32 %v4235_v24, %v1879_v8 }
 0x209   : > { %2045 = vst.msk [vmem:[%s4045_s23 + $0x10] sm:$0xff] %vm2042_vm8, %v1968_v16 }
 0x20a   : > { %v1920_v62 = vpop.f32.mrf.mxu2 }
 0x20b   : > { %v1921_v59 = vadd.f32 %v4037_v19, %v1920_v62  ;;  %v2022_v6 = vpop.f32.mrf.mxu3 }
 0x20c   : > { %v1880_v30 = vpop.f32.mrf.mxu0 }
 0x20d   : > { %v2010_v27 = vadd.f32 %v2009_v21, %v1921_v59  ;;  %v1881_v57 = vadd.f32 %v4037_v19, %v1880_v30 }
 0x20f   : > { %2062 = vst.msk [vmem:[%s4045_s23 + $0x98] sm:$0xff] %vm2042_vm8, %v2010_v27  ;;  %v1970_v11 = vadd.f32 %v3829_v42, %v1881_v57 }
 0x211   : > { %2046 = vst.msk [vmem:[%s4045_s23 + $0x18] sm:$0xff] %vm2042_vm8, %v1970_v11 }
 0x212   : > { %v1923_v60 = vpop.f32.mrf.mxu2 }
 0x213   : > { %v1924_v52 = vadd.f32 %v4037_v19, %v1923_v60  ;;  %v2024_v21 = vpop.f32.mrf.mxu3 }
 0x214   : > { %v1883_v49 = vpop.f32.mrf.mxu0 }
 0x215   : > { %v2013_v61 = vadd.f32 %v2012_v43, %v1924_v52  ;;  %v1884_v7 = vadd.f32 %v4037_v19, %v1883_v49 }
 0x217   : > { %2063 = vst.msk [vmem:[%s4045_s23 + $0xa0] sm:$0xff] %vm2042_vm8, %v2013_v61  ;;  %v1973_v4 = vadd.f32 %v3849_v48, %v1884_v7 }
 0x219   : > { %2047 = vst.msk [vmem:[%s4045_s23 + $0x20] sm:$0xff] %vm2042_vm8, %v1973_v4 }
 0x21a   : > { %v1925_v42 = vpop.f32.mrf.mxu2 }
 0x21b   : > { %v1926_v12 = vadd.f32 %v4037_v19, %v1925_v42  ;;  %v2027_v54 = vpop.f32.mrf.mxu3 }
 0x21c   : > { %v1885_v46 = vpop.f32.mrf.mxu0 }
 0x21d   : > { %v2015_v20 = vadd.f32 %v2014_v31, %v1926_v12  ;;  %v1886_v5 = vadd.f32 %v4037_v19, %v1885_v46 }
 0x21f   : > { %2064 = vst.msk [vmem:[%s4045_s23 + $0xa8] sm:$0xff] %vm2042_vm8, %v2015_v20  ;;  %v1975_v10 = vadd.f32 %v3876_v53, %v1886_v5 }
 0x221   : > { %2048 = vst.msk [vmem:[%s4045_s23 + $0x28] sm:$0xff] %vm2042_vm8, %v1975_v10 }
 0x222   : > { %v1928_v48 = vpop.f32.mrf.mxu2 }
 0x223   : > { %v1929_v23 = vadd.f32 %v4037_v19, %v1928_v48  ;;  %v2029_v8 = vpop.f32.mrf.mxu3 }
 0x224   : > { %v1888_v34 = vpop.f32.mrf.mxu0 }
 0x225   : > { %v2018_v37 = vadd.f32 %v2017_v15, %v1929_v23  ;;  %v1889_v3 = vadd.f32 %v4037_v19, %v1888_v34 }
 0x227   : > { %2065 = vst.msk [vmem:[%s4045_s23 + $0xb0] sm:$0xff] %vm2042_vm8, %v2018_v37  ;;  %v1978_v33 = vadd.f32 %v3900_v1, %v1889_v3 }
 0x229   : > { %2049 = vst.msk [vmem:[%s4045_s23 + $0x30] sm:$0xff] %vm2042_vm8, %v1978_v33 }
 0x22a   : > { %v1930_v53 = vpop.f32.mrf.mxu2 }
 0x22b   : > { %v1931_v35 = vadd.f32 %v4037_v19, %v1930_v53  ;;  %v2032_v27 = vpop.f32.mrf.mxu3 }
 0x22c   : > { %v1890_v38 = vpop.f32.mrf.mxu0 }
 0x22d   : > { %v2020_v13 = vadd.f32 %v2019_v25, %v1931_v35  ;;  %v1891_v14 = vadd.f32 %v4037_v19, %v1890_v38 }
 0x22f   : > { %2066 = vst.msk [vmem:[%s4045_s23 + $0xb8] sm:$0xff] %vm2042_vm8, %v2020_v13  ;;  %v1980_v51 = vadd.f32 %v3919_v40, %v1891_v14 }
 0x231   : > { %2050 = vst.msk [vmem:[%s4045_s23 + $0x38] sm:$0xff] %vm2042_vm8, %v1980_v51 }
 0x232   : > { %v1933_v1 = vpop.f32.mrf.mxu2 }
 0x233   : > { %v1934_v9 = vadd.f32 %v4037_v19, %v1933_v1 }
 0x234   : > { %v1893_v26 = vpop.f32.mrf.mxu0 }
 0x235   : > { %v2023_v32 = vadd.f32 %v2022_v6, %v1934_v9  ;;  %v1894_v45 = vadd.f32 %v4037_v19, %v1893_v26 }
 0x237   : > { %2067 = vst.msk [vmem:[%s4045_s23 + $0xc0] sm:$0xff] %vm2042_vm8, %v2023_v32  ;;  %v1983_v44 = vadd.f32 %v3936_v2, %v1894_v45 }
 0x239   : > { %2051 = vst.msk [vmem:[%s4045_s23 + $0x40] sm:$0xff] %vm2042_vm8, %v1983_v44 }
 0x23a   : > { %v1935_v40 = vpop.f32.mrf.mxu2 }
 0x23b   : > { %v1936_v22 = vadd.f32 %v4037_v19, %v1935_v40 }
 0x23c   : > { %v1895_v58 = vpop.f32.mrf.mxu0 }
 0x23d   : > { %v2025_v47 = vadd.f32 %v2024_v21, %v1936_v22  ;;  %v1896_v41 = vadd.f32 %v4037_v19, %v1895_v58 }
 0x23f   : > { %2068 = vst.msk [vmem:[%s4045_s23 + $0xc8] sm:$0xff] %vm2042_vm8, %v2025_v47  ;;  %v1985_v43 = vadd.f32 %v3952_v17, %v1896_v41 }
 0x241   : > { %2052 = vst.msk [vmem:[%s4045_s23 + $0x48] sm:$0xff] %vm2042_vm8, %v1985_v43 }
 0x242   : > { %v1938_v2 = vpop.f32.mrf.mxu2 }
 0x243   : > { %v1939_v29 = vadd.f32 %v4037_v19, %v1938_v2 }
 0x244   : > { %v1898_v55 = vpop.f32.mrf.mxu0 }
 0x245   : > { %v2028_v56 = vadd.f32 %v2027_v54, %v1939_v29  ;;  %v1899_v18 = vadd.f32 %v4037_v19, %v1898_v55 }
 0x247   : > { %2069 = vst.msk [vmem:[%s4045_s23 + $0xd0] sm:$0xff] %vm2042_vm8, %v2028_v56  ;;  %v1988_v24 = vadd.f32 %v3969_v36, %v1899_v18 }
 0x249   : > { %2053 = vst.msk [vmem:[%s4045_s23 + $0x50] sm:$0xff] %vm2042_vm8, %v1988_v24 }
 0x24a   : > { %v1940_v17 = vpop.f32.mrf.mxu2 }
 0x24b   : > { %v1941_v16 = vadd.f32 %v4037_v19, %v1940_v17 }
 0x24c   : > { %v1900_v62 = vpop.f32.mrf.mxu0 }
 0x24d   : > { %v2030_v31 = vadd.f32 %v2029_v8, %v1941_v16  ;;  %v1901_v59 = vadd.f32 %v4037_v19, %v1900_v62 }
 0x24f   : > { %2070 = vst.msk [vmem:[%s4045_s23 + $0xd8] sm:$0xff] %vm2042_vm8, %v2030_v31  ;;  %v1990_v30 = vadd.f32 %v3980_v50, %v1901_v59  ;;  %v2034_v50 = vpop.f32.mrf.mxu3 }
 0x251   : > { %2054 = vst.msk [vmem:[%s4045_s23 + $0x58] sm:$0xff] %vm2042_vm8, %v1990_v30 }
 0x253   : > { %v1943_v36 = vpop.f32.mrf.mxu2 }
 0x254   : > { %v1944_v57 = vadd.f32 %v4037_v19, %v1943_v36 }
 0x255   : > { %v1903_v11 = vpop.f32.mrf.mxu0 }
 0x256   : > { %v2033_v60 = vadd.f32 %v2032_v27, %v1944_v57  ;;  %v1904_v52 = vadd.f32 %v4037_v19, %v1903_v11 }
 0x258   : > { %2071 = vst.msk [vmem:[%s4045_s23 + $0xe0] sm:$0xff] %vm2042_vm8, %v2033_v60  ;;  %v1993_v49 = vadd.f32 %v3990_v39, %v1904_v52  ;;  %v2037_v39 = vpop.f32.mrf.mxu3 }
 0x25a   : > { %2055 = vst.msk [vmem:[%s4045_s23 + $0x60] sm:$0xff] %vm2042_vm8, %v1993_v49 }
 0x25b   : > { %v1945_v15 = vpop.f32.mrf.mxu2 }
 0x25c   : > { %v1946_v61 = vadd.f32 %v4037_v19, %v1945_v15 }
 0x25d   : > { %v1905_v7 = vpop.f32.mrf.mxu0 }
 0x25e   : > { %v2035_v4 = vadd.f32 %v2034_v50, %v1946_v61  ;;  %v1906_v42 = vadd.f32 %v4037_v19, %v1905_v7 }
 0x260   : > { %2072 = vst.msk [vmem:[%s4045_s23 + $0xe8] sm:$0xff] %vm2042_vm8, %v2035_v4  ;;  %v1995_v12 = vadd.f32 %v4002_v63, %v1906_v42  ;;  %v2039_v34 = vpop.f32.mrf.mxu3 }
 0x262   : > { %2056 = vst.msk [vmem:[%s4045_s23 + $0x68] sm:$0xff] %vm2042_vm8, %v1995_v12 }
 0x264   : > { %v1948_v46 = vpop.f32.mrf.mxu2 }
 0x265   : > { %v1949_v20 = vadd.f32 %v4037_v19, %v1948_v46 }
 0x266   : > { %v1908_v5 = vpop.f32.mrf.mxu0 }
 0x267   : > { %v2038_v25 = vadd.f32 %v2037_v39, %v1949_v20  ;;  %v1909_v10 = vadd.f32 %v4037_v19, %v1908_v5 }
 0x269   : > { %2073 = vst.msk [vmem:[%s4045_s23 + $0xf0] sm:$0xff] %vm2042_vm8, %v2038_v25  ;;  %v1998_v48 = vadd.f32 %v4018_v28, %v1909_v10 }
 0x26b   : > { %2057 = vst.msk [vmem:[%s4045_s23 + $0x70] sm:$0xff] %vm2042_vm8, %v1998_v48 }
 0x26c   : > { %v1950_v23 = vpop.f32.mrf.mxu2 }
 0x26d   : > { %v1951_v63 = vadd.f32 %v4037_v19, %v1950_v23 }
 0x26e   : > { %v1910_v37 = vpop.f32.mrf.mxu0 }
 0x26f   : > { %v2040_v3 = vadd.f32 %v2039_v34, %v1951_v63  ;;  %v1911_v33 = vadd.f32 %v4037_v19, %v1910_v37 }
 0x271   : > { %2074 = vst.msk [vmem:[%s4045_s23 + $0xf8] sm:$0xff] %vm2042_vm8, %v2040_v3  ;;  %v2000_v6 = vadd.f32 %v4032_v0, %v1911_v33 }
 0x273   : > { %2058 = vst.msk [vmem:[%s4045_s23 + $0x78] sm:$0xff] %vm2042_vm8, %v2000_v6 }
 0x274 PF: > { %s13_s12 = sadd.s32 1, %s2796_s12  }
 0x275   : > { %p10_p4 = scmp.ge.s32.totalorder %s13_s12, 4  }
 0x277   :  { %12 = sbr.rel (!%p10_p4) target bundleno = 1 (0x1), region = 64 }

</bundles_post_ra>
